<compile_context>
chip_gen: v7x
topology: tpu7x:2x2x1
jax: 0.10.0
libtpu: 0.0.40
codegen_flags: <defaults>
</compile_context>

<pallas_src>
import jax
import jax.numpy as jnp
from jax import lax
from jax.experimental import pallas as pl
from jax.experimental.pallas import tpu as pltpu


# ----------------------------------------------------------------------------
# Pallas kernel: full BiLSTM stack + hidden2tag projection (per batch tile)
# ----------------------------------------------------------------------------
def _make_bilstm_kernel(L, T, B, H, D0, n_out_pad):
    GH = 4 * H          # per-direction gate width
    G2 = 8 * H          # fused fwd+bwd gate width
    f32 = jnp.float32
    bf16 = jnp.bfloat16
    unroll = T if T <= 16 else 4

    def sig(x):
        # 1 EUP push (tanh) instead of exp + reciprocal
        return 0.5 * (jnp.tanh(0.5 * x) + 1.0)

    def cell(gates, c_prev):
        # PyTorch LSTM gate order: input, forget, cell(g), output
        i = sig(gates[:, 0 * H:1 * H])
        f = sig(gates[:, 1 * H:2 * H])
        g = jnp.tanh(gates[:, 2 * H:3 * H])
        o = sig(gates[:, 3 * H:4 * H])
        c = f * c_prev + i * g
        h = o * jnp.tanh(c)
        return h, c

    def kernel(*refs):
        x_ref = refs[0]                                   # [T, B, D0] bf16
        pos = 1
        layer_refs = []                                   # per layer: (w_in, b_in, whh_bd)
        for _ in range(L):
            layer_refs.append(refs[pos:pos + 3])
            pos += 3
        wtag_ref, btag_ref = refs[pos], refs[pos + 1]
        pos += 2
        out_ref = refs[pos]                               # [T, B, n_out_pad] bf16
        xg_s, h_s = refs[pos + 1], refs[pos + 2]          # VMEM scratch

        for l in range(L):  # static python loop over layers
            w_in, b_in, whh_bd = layer_refs[l]

            # ---- fused input-gate precompute for BOTH directions (bf16 MXU, f32 acc),
            #      written straight into the merged bf16 scratch with the bias folded.
            #      (For very large T*B this could be chunked over T to bound vreg pressure.)
            if l == 0:
                inp2d = x_ref[...].reshape(T * B, D0)                    # bf16
            else:
                inp2d = h_s[...].reshape(T * B, 2 * H).astype(bf16)      # [h_fwd ; h_bwd]
            xg = jnp.dot(inp2d, w_in[...], preferred_element_type=f32) + b_in[...]
            xg_s[...] = xg.astype(bf16).reshape(T, B, G2)

            whh_v = whh_bd[...]                                          # [2H, 8H] bf16
            c0 = jnp.zeros((B, H), f32)
            hc0 = jnp.zeros((B, 2 * H), bf16)

            # ---- fused fwd/bwd recurrence: iteration t advances fwd@t and bwd@(T-1-t)
            #      with ONE bf16 [B,2H]x[2H,8H] matmul per step (block-diag Whh).
            def step(t, carry):
                hc, cf, cb = carry
                tb = T - 1 - t
                rec = jnp.dot(hc, whh_v, preferred_element_type=f32)     # [B, 8H] f32
                g_f = xg_s[t, :, :GH].astype(f32) + rec[:, :GH]
                g_b = xg_s[tb, :, GH:].astype(f32) + rec[:, GH:]
                hf, cf = cell(g_f, cf)
                hb, cb = cell(g_b, cb)
                h_s[t, :, :H] = hf
                h_s[tb, :, H:] = hb
                hc_new = jnp.concatenate([hf, hb], axis=1).astype(bf16)
                return (hc_new, cf, cb)

            lax.fori_loop(0, T, step, (hc0, c0, c0), unroll=unroll)

        # ---- hidden2tag: single K=2H matmul on the merged hidden scratch,
        #      lane-dense (n_out padded to 128) bf16 output store.
        h2d = h_s[...].reshape(T * B, 2 * H).astype(bf16)
        feats = jnp.dot(h2d, wtag_ref[...], preferred_element_type=f32) + btag_ref[...]
        out_ref[...] = feats.astype(out_ref.dtype).reshape(T, B, n_out_pad)

    return kernel


# ----------------------------------------------------------------------------
# One-time parameter preprocessing (hoisted out of the forward path)
# ----------------------------------------------------------------------------
def prepare_kernel_params(params, features, lstm_units, layer_nums, n_out):
    H, L = lstm_units, layer_nums
    GH = 4 * H
    n_out_pad = ((n_out + 127) // 128) * 128
    f32, bf16 = jnp.float32, jnp.bfloat16

    weights = []
    for l in range(L):
        wih_f, whh_f, bih_f, bhh_f = params['lstm'][(l, 'fwd')]
        wih_b, whh_b, bih_b, bhh_b = params['lstm'][(l, 'bwd')]
        # fused input projection for both directions: [D_l, 8H] (D_l = D0 or 2H)
        w_in = jnp.concatenate([wih_f.T, wih_b.T], axis=1).astype(bf16)
        b_in = jnp.concatenate([bih_f + bhh_f, bih_b + bhh_b]).reshape(1, 2 * GH).astype(f32)
        # block-diagonal recurrent weight: one [2H,8H] bf16 matmul per fused fwd/bwd step
        z = jnp.zeros((H, GH), f32)
        whh_bd = jnp.concatenate(
            [jnp.concatenate([whh_f.T, z], axis=1),
             jnp.concatenate([z, whh_b.T], axis=1)], axis=0).astype(bf16)
        weights += [w_in, b_in, whh_bd]

    w2t, b2t = params['hidden2tag']
    w_tag = jnp.pad(w2t.T, ((0, 0), (0, n_out_pad - n_out))).astype(bf16)   # [2H, n_out_pad]
    b_tag = jnp.pad(b2t, (0, n_out_pad - n_out)).reshape(1, n_out_pad).astype(f32)
    weights += [w_tag, b_tag]
    return weights, n_out_pad


# ----------------------------------------------------------------------------
# Wrapper (glue: embedding lookup, padding, layout transpose, pallas_call)
# ----------------------------------------------------------------------------
def bilstm_crf_forward(input_dict, params, kernel_weights, n_out_pad, features,
                       max_len, lstm_units, layer_nums, n_out, batch_tile=None):
    T, H, L = max_len, lstm_units, layer_nums
    G2 = 8 * H

    # embedding lookup + concat along feature dim (glue, like nn.Embedding + torch.cat)
    embs = [jnp.take(params['embed'][name], input_dict[name], axis=0) for name in features]
    x = jnp.concatenate(embs, axis=-1)                       # [B, T, D0] f32
    B, _, D0 = x.shape

    # pad batch to a full sublane multiple
    B_pad = max(8, ((B + 7) // 8) * 8)
    if B_pad != B:
        x = jnp.pad(x, ((0, B_pad - B), (0, 0), (0, 0)))
    x_tm = jnp.transpose(x, (1, 0, 2)).astype(jnp.bfloat16)  # [T, B_pad, D0]

    # batch tiling heuristic: the recurrence is T serial steps regardless of batch, so
    # only split into tiles when each tile keeps >= 256 rows (per-step matmul stays
    # throughput-bound; also what makes 2-TC sharding on v7x worthwhile).
    if batch_tile is None:
        batch_tile = 256 if (B_pad >= 512 and B_pad % 256 == 0) else B_pad
    assert B_pad % batch_tile == 0 and batch_tile % 8 == 0
    BT = batch_tile
    n_tiles = B_pad // BT

    kernel = _make_bilstm_kernel(L, T, BT, H, D0, n_out_pad)

    scratch_shapes = [
        pltpu.VMEM((T, BT, G2), jnp.bfloat16),    # merged fwd+bwd gate pre-activations
        pltpu.VMEM((T, BT, 2 * H), jnp.float32),  # merged [h_fwd ; h_bwd] hidden states
    ]

    # generation-aware VMEM ceiling: ~85% of physical (v5e/v6e: 128 MiB -> ~109 MiB,
    # v7x: 64 MiB -> ~54 MiB), with an estimate-based value below that.
    try:
        phys_vmem = int(pltpu.get_tpu_info().vmem_capacity_bytes)
    except Exception:
        phys_vmem = 64 * 1024 * 1024
    cap = int(0.85 * phys_vmem)
    blk_bytes = T * BT * D0 * 2 + T * BT * n_out_pad * 2
    w_bytes = sum(int(w.size) * w.dtype.itemsize for w in kernel_weights)
    scr_bytes = T * BT * G2 * 2 + T * BT * 2 * H * 4
    est = 2 * blk_bytes + 2 * w_bytes + scr_bytes
    vmem_limit = int(min(cap, max(32 * 1024 * 1024, 2 * est)))

    out_shape = jax.ShapeDtypeStruct((T, B_pad, n_out_pad), jnp.bfloat16)

    def build_specs(single_buffer_invariant):
        def spec(shape, idx, invariant):
            if single_buffer_invariant and invariant:
                # constant-index blocks don't need a second pipeline buffer
                return pl.BlockSpec(shape, idx, pipeline_mode=pl.Buffered(1))
            return pl.BlockSpec(shape, idx)
        in_specs = [spec((T, BT, D0), lambda b: (0, b, 0), n_tiles == 1)]
        for w in kernel_weights:
            in_specs.append(spec(w.shape, lambda b, _nd=w.ndim: (0,) * _nd, True))
        out_spec = spec((T, BT, n_out_pad), lambda b: (0, b, 0), n_tiles == 1)
        return in_specs, out_spec

    def run(single_buffer_invariant):
        in_specs, out_spec = build_specs(single_buffer_invariant)
        return pl.pallas_call(
            kernel,
            out_shape=out_shape,
            grid=(n_tiles,),
            in_specs=in_specs,
            out_specs=out_spec,
            scratch_shapes=scratch_shapes,
            compiler_params=pltpu.CompilerParams(
                dimension_semantics=("parallel",),
                vmem_limit_bytes=vmem_limit),
        )(x_tm, *kernel_weights)

    try:
        out_tm = run(True)        # weights (and x/out for a 1-tile grid) single-buffered
    except Exception:
        out_tm = run(False)       # fallback if this jax version rejects pl.Buffered(1)

    feats = jnp.transpose(out_tm, (1, 0, 2)).astype(jnp.float32)   # [B_pad, T, n_out_pad]
    return feats[:B, :, :n_out]                                    # strip batch / tag padding


# ----------------------------------------------------------------------------
# Deterministic parameter init (mirrors shapes in BiLSTMCRFModel.__init__)
# ----------------------------------------------------------------------------
def init_params(key, feature_size_dict, feature_dim_dict, features, lstm_units, layer_nums, target_size):
    scope = 0.1
    H, L = lstm_units, layer_nums
    n_out = target_size + 2
    D0 = sum(feature_dim_dict[f] for f in features)
    params = {'embed': {}, 'lstm': {}, 'hidden2tag': None}

    for name in features:
        key, k = jax.random.split(key)
        params['embed'][name] = jax.random.uniform(
            k, (feature_size_dict[name], feature_dim_dict[name]),
            minval=-scope, maxval=scope, dtype=jnp.float32)
    # TODO(synk): module also builds an (unused-in-forward) 'label' embedding and a CRF; omitted here.

    k_lstm = 1.0 / jnp.sqrt(H)
    for l in range(L):
        d_in = D0 if l == 0 else 2 * H
        for d in ('fwd', 'bwd'):
            key, k1, k2, k3, k4 = jax.random.split(key, 5)
            params['lstm'][(l, d)] = (
                jax.random.uniform(k1, (4 * H, d_in), minval=-k_lstm, maxval=k_lstm, dtype=jnp.float32),
                jax.random.uniform(k2, (4 * H, H), minval=-k_lstm, maxval=k_lstm, dtype=jnp.float32),
                jax.random.uniform(k3, (4 * H,), minval=-k_lstm, maxval=k_lstm, dtype=jnp.float32),
                jax.random.uniform(k4, (4 * H,), minval=-k_lstm, maxval=k_lstm, dtype=jnp.float32),
            )

    key, kw, kb = jax.random.split(key, 3)
    k_lin = 1.0 / jnp.sqrt(2 * H)
    params['hidden2tag'] = (
        jax.random.uniform(kw, (n_out, 2 * H), minval=-scope, maxval=scope, dtype=jnp.float32),
        jax.random.uniform(kb, (n_out,), minval=-k_lin, maxval=k_lin, dtype=jnp.float32),
    )
    return params


# ----------------------------------------------------------------------------
# Pure-JAX f32 reference for verification
# ----------------------------------------------------------------------------
def reference_forward(input_dict, params, features, max_len, lstm_units, layer_nums, n_out):
    H, L, T = lstm_units, layer_nums, max_len
    embs = [jnp.take(params['embed'][name], input_dict[name], axis=0) for name in features]
    x = jnp.transpose(jnp.concatenate(embs, axis=-1), (1, 0, 2)).astype(jnp.float32)  # [T,B,D0]
    B = x.shape[1]

    for l in range(L):
        outs = []
        for d, rev in (('fwd', False), ('bwd', True)):
            w_ih, w_hh, b_ih, b_hh = params['lstm'][(l, d)]
            seq = x[::-1] if rev else x

            def step(carry, xt):
                h, c = carry
                g = xt @ w_ih.T + b_ih + h @ w_hh.T + b_hh
                i = jax.nn.sigmoid(g[:, :H])
                f = jax.nn.sigmoid(g[:, H:2 * H])
                gg = jnp.tanh(g[:, 2 * H:3 * H])
                o = jax.nn.sigmoid(g[:, 3 * H:])
                c = f * c + i * gg
                h = o * jnp.tanh(c)
                return (h, c), h

            _, hs = lax.scan(step, (jnp.zeros((B, H)), jnp.zeros((B, H))), seq)
            if rev:
                hs = hs[::-1]
            outs.append(hs)
        x = jnp.concatenate(outs, axis=-1)

    w, b = params['hidden2tag']
    bt = jnp.transpose(x, (1, 0, 2)).reshape(B * T, 2 * H)
    return (bt @ w.T + b).reshape(B, T, n_out)


# ----------------------------------------------------------------------------
if __name__ == "__main__":
    # Small configuration consistent with the module's __init__ args.
    features = ['word', 'pos']
    feature_size_dict = {'word': 100, 'pos': 20, 'label': 10}
    feature_dim_dict = {'word': 32, 'pos': 16}
    lstm_units = 32
    layer_nums = 2
    max_len = 8
    batch = 2
    target_size = feature_size_dict['label']
    n_out = target_size + 2

    key = jax.random.PRNGKey(0)
    key, kp, kw, kpos = jax.random.split(key, 4)
    params = init_params(kp, feature_size_dict, feature_dim_dict, features,
                         lstm_units, layer_nums, target_size)

    input_dict = {
        'word': jax.random.randint(kw, (batch, max_len), 1, feature_size_dict['word'], dtype=jnp.int32),
        'pos': jax.random.randint(kpos, (batch, max_len), 1, feature_size_dict['pos'], dtype=jnp.int32),
    }

    # one-time weight preprocessing (fusion / transposes / padding / bf16 cast)
    kernel_weights, n_out_pad = prepare_kernel_params(params, features, lstm_units, layer_nums, n_out)

    feats = bilstm_crf_forward(input_dict, params, kernel_weights, n_out_pad, features,
                               max_len, lstm_units, layer_nums, n_out)
    feats = jax.block_until_ready(feats)

    ref = reference_forward(input_dict, params, features, max_len, lstm_units, layer_nums, n_out)
    ref = jax.block_until_ready(ref)

    assert feats.shape == (batch, max_len, n_out), feats.shape
    # bf16 operands/scratch/output vs f32 reference: allow a slightly wider (but still tight
    # relative to the logit scale feeding the CRF) absolute tolerance.
    max_err = float(jnp.max(jnp.abs(feats - ref)))
    assert max_err < 5e-2, f"mismatch vs reference: {max_err}"

    print("KERNEL_OK")
</pallas_src>

<mosaic_0001>
module attributes {stable_mosaic.version = 11 : i64} {
  func.func @kernel(%arg0: i32, %arg1: memref<8x8x48xbf16, #tpu.memory_space<vmem>>, %arg2: memref<48x256xbf16, #tpu.memory_space<vmem>>, %arg3: memref<1x256xf32, #tpu.memory_space<vmem>>, %arg4: memref<64x256xbf16, #tpu.memory_space<vmem>>, %arg5: memref<64x256xbf16, #tpu.memory_space<vmem>>, %arg6: memref<1x256xf32, #tpu.memory_space<vmem>>, %arg7: memref<64x256xbf16, #tpu.memory_space<vmem>>, %arg8: memref<64x128xbf16, #tpu.memory_space<vmem>>, %arg9: memref<1x128xf32, #tpu.memory_space<vmem>>, %arg10: memref<8x8x128xbf16, #tpu.memory_space<vmem>>, %arg11: memref<8x8x256xbf16, #tpu.memory_space<vmem>>, %arg12: memref<8x8x64xf32, #tpu.memory_space<vmem>>) attributes {dimension_semantics = [#tpu.dimension_semantics<parallel>], iteration_bounds = array<i64: 1>, scalar_prefetch = 0 : i64, scratch_operands = 2 : i64, tpu.core_type = #tpu.core_type<tc>, window_params = [{pipeline_mode = #tpu.pipeline_mode<synchronous>, transform_indices = @transform_0, window_bounds = array<i64: 8, 8, 48>}, {pipeline_mode = #tpu.pipeline_mode<synchronous>, transform_indices = @transform_1, window_bounds = array<i64: 48, 256>}, {pipeline_mode = #tpu.pipeline_mode<synchronous>, transform_indices = @transform_2, window_bounds = array<i64: 1, 256>}, {pipeline_mode = #tpu.pipeline_mode<synchronous>, transform_indices = @transform_3, window_bounds = array<i64: 64, 256>}, {pipeline_mode = #tpu.pipeline_mode<synchronous>, transform_indices = @transform_4, window_bounds = array<i64: 64, 256>}, {pipeline_mode = #tpu.pipeline_mode<synchronous>, transform_indices = @transform_5, window_bounds = array<i64: 1, 256>}, {pipeline_mode = #tpu.pipeline_mode<synchronous>, transform_indices = @transform_6, window_bounds = array<i64: 64, 256>}, {pipeline_mode = #tpu.pipeline_mode<synchronous>, transform_indices = @transform_7, window_bounds = array<i64: 64, 128>}, {pipeline_mode = #tpu.pipeline_mode<synchronous>, transform_indices = @transform_8, window_bounds = array<i64: 1, 128>}, {pipeline_mode = #tpu.pipeline_mode<synchronous>, transform_indices = @transform_9, window_bounds = array<i64: 8, 8, 128>}]} {
    %c0 = arith.constant 0 : index
    %c0_0 = arith.constant 0 : index
    %c0_1 = arith.constant 0 : index
    %0 = vector.load %arg1[%c0, %c0_0, %c0_1] : memref<8x8x48xbf16, #tpu.memory_space<vmem>>, vector<8x8x48xbf16>
    %1 = vector.shape_cast %0 : vector<8x8x48xbf16> to vector<64x48xbf16>
    %c0_2 = arith.constant 0 : index
    %c0_3 = arith.constant 0 : index
    %2 = vector.load %arg2[%c0_2, %c0_3] : memref<48x256xbf16, #tpu.memory_space<vmem>>, vector<48x256xbf16>
    %cst = arith.constant dense<0.000000e+00> : vector<64x256xf32>
    %3 = tpu.matmul %1, %2, %cst {dimension_numbers = #tpu.dot_dimension_numbers<[1], [0], [0], [1], [0, 0, 1, 1], [], []>} : vector<64x48xbf16>, vector<48x256xbf16>, vector<64x256xf32> -> vector<64x256xf32>
    %c0_4 = arith.constant 0 : index
    %c0_5 = arith.constant 0 : index
    %4 = vector.load %arg3[%c0_4, %c0_5] : memref<1x256xf32, #tpu.memory_space<vmem>>, vector<1x256xf32>
    %5 = vector.broadcast %4 : vector<1x256xf32> to vector<64x256xf32>
    %6 = arith.addf %3, %5 : vector<64x256xf32>
    %7 = arith.truncf %6 : vector<64x256xf32> to vector<64x256xbf16>
    %8 = vector.shape_cast %7 : vector<64x256xbf16> to vector<8x8x256xbf16>
    %c0_6 = arith.constant 0 : index
    %c0_7 = arith.constant 0 : index
    %c0_8 = arith.constant 0 : index
    %9 = vector.load %arg11[%c0_6, %c0_7, %c0_8] : memref<8x8x256xbf16, #tpu.memory_space<vmem>>, vector<8x8x256xbf16>
    tpu.vector_store %arg11[%c0_6, %c0_7, %c0_8], %8 {strides = array<i32>} : memref<8x8x256xbf16, #tpu.memory_space<vmem>>, vector<8x8x256xbf16>,
    %c0_9 = arith.constant 0 : index
    %c0_10 = arith.constant 0 : index
    %10 = vector.load %arg4[%c0_9, %c0_10] : memref<64x256xbf16, #tpu.memory_space<vmem>>, vector<64x256xbf16>
    %cst_11 = arith.constant 0.000000e+00 : f32
    %11 = vector.broadcast %cst_11 : f32 to vector<8x32xf32>
    %cst_12 = arith.constant 0.000000e+00 : bf16
    %12 = vector.broadcast %cst_12 : bf16 to vector<8x64xbf16>
    %c0_i32 = arith.constant 0 : i32
    %c7_i32 = arith.constant 7 : i32
    %13 = arith.subi %c7_i32, %c0_i32 : i32
    %cst_13 = arith.constant dense<0.000000e+00> : vector<8x256xf32>
    %14 = tpu.matmul %12, %10, %cst_13 {dimension_numbers = #tpu.dot_dimension_numbers<[1], [0], [0], [1], [0, 0, 1, 1], [], []>} : vector<8x64xbf16>, vector<64x256xbf16>, vector<8x256xf32> -> vector<8x256xf32>
    %15 = arith.index_cast %c0_i32 : i32 to index
    %c0_14 = arith.constant 0 : index
    %c0_15 = arith.constant 0 : index
    %16 = vector.load %arg11[%15, %c0_14, %c0_15] : memref<8x8x256xbf16, #tpu.memory_space<vmem>>, vector<1x8x128xbf16>
    %17 = vector.shape_cast %16 : vector<1x8x128xbf16> to vector<8x128xbf16>
    %18 = arith.extf %17 : vector<8x128xbf16> to vector<8x128xf32>
    %19 = vector.extract_strided_slice %14 {offsets = [0, 0], sizes = [8, 128], strides = [1, 1]} : vector<8x256xf32> to vector<8x128xf32>
    %20 = arith.addf %18, %19 : vector<8x128xf32>
    %21 = arith.index_cast %13 : i32 to index
    %c0_16 = arith.constant 0 : index
    %c128 = arith.constant 128 : index
    %22 = vector.load %arg11[%21, %c0_16, %c128] : memref<8x8x256xbf16, #tpu.memory_space<vmem>>, vector<1x8x128xbf16>
    %23 = vector.shape_cast %22 : vector<1x8x128xbf16> to vector<8x128xbf16>
    %24 = arith.extf %23 : vector<8x128xbf16> to vector<8x128xf32>
    %25 = vector.extract_strided_slice %14 {offsets = [0, 128], sizes = [8, 128], strides = [1, 1]} : vector<8x256xf32> to vector<8x128xf32>
    %26 = arith.addf %24, %25 : vector<8x128xf32>
    %27 = vector.extract_strided_slice %20 {offsets = [0, 0], sizes = [8, 32], strides = [1, 1]} : vector<8x128xf32> to vector<8x32xf32>
    %cst_17 = arith.constant 5.000000e-01 : f32
    %28 = vector.broadcast %cst_17 : f32 to vector<8x32xf32>
    %29 = arith.mulf %28, %27 : vector<8x32xf32>
    %30 = math.tanh %29 : vector<8x32xf32>
    %cst_18 = arith.constant 1.000000e+00 : f32
    %31 = vector.broadcast %cst_18 : f32 to vector<8x32xf32>
    %32 = arith.addf %30, %31 : vector<8x32xf32>
    %cst_19 = arith.constant 5.000000e-01 : f32
    %33 = vector.broadcast %cst_19 : f32 to vector<8x32xf32>
    %34 = arith.mulf %33, %32 : vector<8x32xf32>
    %35 = vector.extract_strided_slice %20 {offsets = [0, 32], sizes = [8, 32], strides = [1, 1]} : vector<8x128xf32> to vector<8x32xf32>
    %cst_20 = arith.constant 5.000000e-01 : f32
    %36 = vector.broadcast %cst_20 : f32 to vector<8x32xf32>
    %37 = arith.mulf %36, %35 : vector<8x32xf32>
    %38 = math.tanh %37 : vector<8x32xf32>
    %cst_21 = arith.constant 1.000000e+00 : f32
    %39 = vector.broadcast %cst_21 : f32 to vector<8x32xf32>
    %40 = arith.addf %38, %39 : vector<8x32xf32>
    %cst_22 = arith.constant 5.000000e-01 : f32
    %41 = vector.broadcast %cst_22 : f32 to vector<8x32xf32>
    %42 = arith.mulf %41, %40 : vector<8x32xf32>
    %43 = vector.extract_strided_slice %20 {offsets = [0, 64], sizes = [8, 32], strides = [1, 1]} : vector<8x128xf32> to vector<8x32xf32>
    %44 = math.tanh %43 : vector<8x32xf32>
    %45 = vector.extract_strided_slice %20 {offsets = [0, 96], sizes = [8, 32], strides = [1, 1]} : vector<8x128xf32> to vector<8x32xf32>
    %cst_23 = arith.constant 5.000000e-01 : f32
    %46 = vector.broadcast %cst_23 : f32 to vector<8x32xf32>
    %47 = arith.mulf %46, %45 : vector<8x32xf32>
    %48 = math.tanh %47 : vector<8x32xf32>
    %cst_24 = arith.constant 1.000000e+00 : f32
    %49 = vector.broadcast %cst_24 : f32 to vector<8x32xf32>
    %50 = arith.addf %48, %49 : vector<8x32xf32>
    %cst_25 = arith.constant 5.000000e-01 : f32
    %51 = vector.broadcast %cst_25 : f32 to vector<8x32xf32>
    %52 = arith.mulf %51, %50 : vector<8x32xf32>
    %53 = arith.mulf %42, %11 : vector<8x32xf32>
    %54 = arith.mulf %34, %44 : vector<8x32xf32>
    %55 = arith.addf %53, %54 : vector<8x32xf32>
    %56 = math.tanh %55 : vector<8x32xf32>
    %57 = arith.mulf %52, %56 : vector<8x32xf32>
    %58 = vector.extract_strided_slice %26 {offsets = [0, 0], sizes = [8, 32], strides = [1, 1]} : vector<8x128xf32> to vector<8x32xf32>
    %cst_26 = arith.constant 5.000000e-01 : f32
    %59 = vector.broadcast %cst_26 : f32 to vector<8x32xf32>
    %60 = arith.mulf %59, %58 : vector<8x32xf32>
    %61 = math.tanh %60 : vector<8x32xf32>
    %cst_27 = arith.constant 1.000000e+00 : f32
    %62 = vector.broadcast %cst_27 : f32 to vector<8x32xf32>
    %63 = arith.addf %61, %62 : vector<8x32xf32>
    %cst_28 = arith.constant 5.000000e-01 : f32
    %64 = vector.broadcast %cst_28 : f32 to vector<8x32xf32>
    %65 = arith.mulf %64, %63 : vector<8x32xf32>
    %66 = vector.extract_strided_slice %26 {offsets = [0, 32], sizes = [8, 32], strides = [1, 1]} : vector<8x128xf32> to vector<8x32xf32>
    %cst_29 = arith.constant 5.000000e-01 : f32
    %67 = vector.broadcast %cst_29 : f32 to vector<8x32xf32>
    %68 = arith.mulf %67, %66 : vector<8x32xf32>
    %69 = math.tanh %68 : vector<8x32xf32>
    %cst_30 = arith.constant 1.000000e+00 : f32
    %70 = vector.broadcast %cst_30 : f32 to vector<8x32xf32>
    %71 = arith.addf %69, %70 : vector<8x32xf32>
    %cst_31 = arith.constant 5.000000e-01 : f32
    %72 = vector.broadcast %cst_31 : f32 to vector<8x32xf32>
    %73 = arith.mulf %72, %71 : vector<8x32xf32>
    %74 = vector.extract_strided_slice %26 {offsets = [0, 64], sizes = [8, 32], strides = [1, 1]} : vector<8x128xf32> to vector<8x32xf32>
    %75 = math.tanh %74 : vector<8x32xf32>
    %76 = vector.extract_strided_slice %26 {offsets = [0, 96], sizes = [8, 32], strides = [1, 1]} : vector<8x128xf32> to vector<8x32xf32>
    %cst_32 = arith.constant 5.000000e-01 : f32
    %77 = vector.broadcast %cst_32 : f32 to vector<8x32xf32>
    %78 = arith.mulf %77, %76 : vector<8x32xf32>
    %79 = math.tanh %78 : vector<8x32xf32>
    %cst_33 = arith.constant 1.000000e+00 : f32
    %80 = vector.broadcast %cst_33 : f32 to vector<8x32xf32>
    %81 = arith.addf %79, %80 : vector<8x32xf32>
    %cst_34 = arith.constant 5.000000e-01 : f32
    %82 = vector.broadcast %cst_34 : f32 to vector<8x32xf32>
    %83 = arith.mulf %82, %81 : vector<8x32xf32>
    %84 = arith.mulf %73, %11 : vector<8x32xf32>
    %85 = arith.mulf %65, %75 : vector<8x32xf32>
    %86 = arith.addf %84, %85 : vector<8x32xf32>
    %87 = math.tanh %86 : vector<8x32xf32>
    %88 = arith.mulf %83, %87 : vector<8x32xf32>
    %89 = arith.index_cast %c0_i32 : i32 to index
    %c0_35 = arith.constant 0 : index
    %c0_36 = arith.constant 0 : index
    %90 = vector.load %arg12[%89, %c0_35, %c0_36] : memref<8x8x64xf32, #tpu.memory_space<vmem>>, vector<1x8x32xf32>
    %91 = vector.shape_cast %90 : vector<1x8x32xf32> to vector<8x32xf32>
    %92 = vector.shape_cast %57 : vector<8x32xf32> to vector<1x8x32xf32>
    tpu.vector_store %arg12[%89, %c0_35, %c0_36], %92 {strides = array<i32>} : memref<8x8x64xf32, #tpu.memory_space<vmem>>, vector<1x8x32xf32>,
    %93 = arith.index_cast %13 : i32 to index
    %c0_37 = arith.constant 0 : index
    %c32 = arith.constant 32 : index
    %94 = vector.load %arg12[%93, %c0_37, %c32] : memref<8x8x64xf32, #tpu.memory_space<vmem>>, vector<1x8x32xf32>
    %95 = vector.shape_cast %94 : vector<1x8x32xf32> to vector<8x32xf32>
    %96 = vector.shape_cast %88 : vector<8x32xf32> to vector<1x8x32xf32>
    tpu.vector_store %arg12[%93, %c0_37, %c32], %96 {strides = array<i32>} : memref<8x8x64xf32, #tpu.memory_space<vmem>>, vector<1x8x32xf32>,
    %97 = tpu.concatenate %57, %88 in 1 : vector<8x32xf32>, vector<8x32xf32> -> vector<8x64xf32>
    %98 = arith.truncf %97 : vector<8x64xf32> to vector<8x64xbf16>
    %c1_i32 = arith.constant 1 : i32
    %c7_i32_38 = arith.constant 7 : i32
    %99 = arith.subi %c7_i32_38, %c1_i32 : i32
    %cst_39 = arith.constant dense<0.000000e+00> : vector<8x256xf32>
    %100 = tpu.matmul %98, %10, %cst_39 {dimension_numbers = #tpu.dot_dimension_numbers<[1], [0], [0], [1], [0, 0, 1, 1], [], []>} : vector<8x64xbf16>, vector<64x256xbf16>, vector<8x256xf32> -> vector<8x256xf32>
    %101 = arith.index_cast %c1_i32 : i32 to index
    %c0_40 = arith.constant 0 : index
    %c0_41 = arith.constant 0 : index
    %102 = vector.load %arg11[%101, %c0_40, %c0_41] : memref<8x8x256xbf16, #tpu.memory_space<vmem>>, vector<1x8x128xbf16>
    %103 = vector.shape_cast %102 : vector<1x8x128xbf16> to vector<8x128xbf16>
    %104 = arith.extf %103 : vector<8x128xbf16> to vector<8x128xf32>
    %105 = vector.extract_strided_slice %100 {offsets = [0, 0], sizes = [8, 128], strides = [1, 1]} : vector<8x256xf32> to vector<8x128xf32>
    %106 = arith.addf %104, %105 : vector<8x128xf32>
    %107 = arith.index_cast %99 : i32 to index
    %c0_42 = arith.constant 0 : index
    %c128_43 = arith.constant 128 : index
    %108 = vector.load %arg11[%107, %c0_42, %c128_43] : memref<8x8x256xbf16, #tpu.memory_space<vmem>>, vector<1x8x128xbf16>
    %109 = vector.shape_cast %108 : vector<1x8x128xbf16> to vector<8x128xbf16>
    %110 = arith.extf %109 : vector<8x128xbf16> to vector<8x128xf32>
    %111 = vector.extract_strided_slice %100 {offsets = [0, 128], sizes = [8, 128], strides = [1, 1]} : vector<8x256xf32> to vector<8x128xf32>
    %112 = arith.addf %110, %111 : vector<8x128xf32>
    %113 = vector.extract_strided_slice %106 {offsets = [0, 0], sizes = [8, 32], strides = [1, 1]} : vector<8x128xf32> to vector<8x32xf32>
    %cst_44 = arith.constant 5.000000e-01 : f32
    %114 = vector.broadcast %cst_44 : f32 to vector<8x32xf32>
    %115 = arith.mulf %114, %113 : vector<8x32xf32>
    %116 = math.tanh %115 : vector<8x32xf32>
    %cst_45 = arith.constant 1.000000e+00 : f32
    %117 = vector.broadcast %cst_45 : f32 to vector<8x32xf32>
    %118 = arith.addf %116, %117 : vector<8x32xf32>
    %cst_46 = arith.constant 5.000000e-01 : f32
    %119 = vector.broadcast %cst_46 : f32 to vector<8x32xf32>
    %120 = arith.mulf %119, %118 : vector<8x32xf32>
    %121 = vector.extract_strided_slice %106 {offsets = [0, 32], sizes = [8, 32], strides = [1, 1]} : vector<8x128xf32> to vector<8x32xf32>
    %cst_47 = arith.constant 5.000000e-01 : f32
    %122 = vector.broadcast %cst_47 : f32 to vector<8x32xf32>
    %123 = arith.mulf %122, %121 : vector<8x32xf32>
    %124 = math.tanh %123 : vector<8x32xf32>
    %cst_48 = arith.constant 1.000000e+00 : f32
    %125 = vector.broadcast %cst_48 : f32 to vector<8x32xf32>
    %126 = arith.addf %124, %125 : vector<8x32xf32>
    %cst_49 = arith.constant 5.000000e-01 : f32
    %127 = vector.broadcast %cst_49 : f32 to vector<8x32xf32>
    %128 = arith.mulf %127, %126 : vector<8x32xf32>
    %129 = vector.extract_strided_slice %106 {offsets = [0, 64], sizes = [8, 32], strides = [1, 1]} : vector<8x128xf32> to vector<8x32xf32>
    %130 = math.tanh %129 : vector<8x32xf32>
    %131 = vector.extract_strided_slice %106 {offsets = [0, 96], sizes = [8, 32], strides = [1, 1]} : vector<8x128xf32> to vector<8x32xf32>
    %cst_50 = arith.constant 5.000000e-01 : f32
    %132 = vector.broadcast %cst_50 : f32 to vector<8x32xf32>
    %133 = arith.mulf %132, %131 : vector<8x32xf32>
    %134 = math.tanh %133 : vector<8x32xf32>
    %cst_51 = arith.constant 1.000000e+00 : f32
    %135 = vector.broadcast %cst_51 : f32 to vector<8x32xf32>
    %136 = arith.addf %134, %135 : vector<8x32xf32>
    %cst_52 = arith.constant 5.000000e-01 : f32
    %137 = vector.broadcast %cst_52 : f32 to vector<8x32xf32>
    %138 = arith.mulf %137, %136 : vector<8x32xf32>
    %139 = arith.mulf %128, %55 : vector<8x32xf32>
    %140 = arith.mulf %120, %130 : vector<8x32xf32>
    %141 = arith.addf %139, %140 : vector<8x32xf32>
    %142 = math.tanh %141 : vector<8x32xf32>
    %143 = arith.mulf %138, %142 : vector<8x32xf32>
    %144 = vector.extract_strided_slice %112 {offsets = [0, 0], sizes = [8, 32], strides = [1, 1]} : vector<8x128xf32> to vector<8x32xf32>
    %cst_53 = arith.constant 5.000000e-01 : f32
    %145 = vector.broadcast %cst_53 : f32 to vector<8x32xf32>
    %146 = arith.mulf %145, %144 : vector<8x32xf32>
    %147 = math.tanh %146 : vector<8x32xf32>
    %cst_54 = arith.constant 1.000000e+00 : f32
    %148 = vector.broadcast %cst_54 : f32 to vector<8x32xf32>
    %149 = arith.addf %147, %148 : vector<8x32xf32>
    %cst_55 = arith.constant 5.000000e-01 : f32
    %150 = vector.broadcast %cst_55 : f32 to vector<8x32xf32>
    %151 = arith.mulf %150, %149 : vector<8x32xf32>
    %152 = vector.extract_strided_slice %112 {offsets = [0, 32], sizes = [8, 32], strides = [1, 1]} : vector<8x128xf32> to vector<8x32xf32>
    %cst_56 = arith.constant 5.000000e-01 : f32
    %153 = vector.broadcast %cst_56 : f32 to vector<8x32xf32>
    %154 = arith.mulf %153, %152 : vector<8x32xf32>
    %155 = math.tanh %154 : vector<8x32xf32>
    %cst_57 = arith.constant 1.000000e+00 : f32
    %156 = vector.broadcast %cst_57 : f32 to vector<8x32xf32>
    %157 = arith.addf %155, %156 : vector<8x32xf32>
    %cst_58 = arith.constant 5.000000e-01 : f32
    %158 = vector.broadcast %cst_58 : f32 to vector<8x32xf32>
    %159 = arith.mulf %158, %157 : vector<8x32xf32>
    %160 = vector.extract_strided_slice %112 {offsets = [0, 64], sizes = [8, 32], strides = [1, 1]} : vector<8x128xf32> to vector<8x32xf32>
    %161 = math.tanh %160 : vector<8x32xf32>
    %162 = vector.extract_strided_slice %112 {offsets = [0, 96], sizes = [8, 32], strides = [1, 1]} : vector<8x128xf32> to vector<8x32xf32>
    %cst_59 = arith.constant 5.000000e-01 : f32
    %163 = vector.broadcast %cst_59 : f32 to vector<8x32xf32>
    %164 = arith.mulf %163, %162 : vector<8x32xf32>
    %165 = math.tanh %164 : vector<8x32xf32>
    %cst_60 = arith.constant 1.000000e+00 : f32
    %166 = vector.broadcast %cst_60 : f32 to vector<8x32xf32>
    %167 = arith.addf %165, %166 : vector<8x32xf32>
    %cst_61 = arith.constant 5.000000e-01 : f32
    %168 = vector.broadcast %cst_61 : f32 to vector<8x32xf32>
    %169 = arith.mulf %168, %167 : vector<8x32xf32>
    %170 = arith.mulf %159, %86 : vector<8x32xf32>
    %171 = arith.mulf %151, %161 : vector<8x32xf32>
    %172 = arith.addf %170, %171 : vector<8x32xf32>
    %173 = math.tanh %172 : vector<8x32xf32>
    %174 = arith.mulf %169, %173 : vector<8x32xf32>
    %175 = arith.index_cast %c1_i32 : i32 to index
    %c0_62 = arith.constant 0 : index
    %c0_63 = arith.constant 0 : index
    %176 = vector.load %arg12[%175, %c0_62, %c0_63] : memref<8x8x64xf32, #tpu.memory_space<vmem>>, vector<1x8x32xf32>
    %177 = vector.shape_cast %176 : vector<1x8x32xf32> to vector<8x32xf32>
    %178 = vector.shape_cast %143 : vector<8x32xf32> to vector<1x8x32xf32>
    tpu.vector_store %arg12[%175, %c0_62, %c0_63], %178 {strides = array<i32>} : memref<8x8x64xf32, #tpu.memory_space<vmem>>, vector<1x8x32xf32>,
    %179 = arith.index_cast %99 : i32 to index
    %c0_64 = arith.constant 0 : index
    %c32_65 = arith.constant 32 : index
    %180 = vector.load %arg12[%179, %c0_64, %c32_65] : memref<8x8x64xf32, #tpu.memory_space<vmem>>, vector<1x8x32xf32>
    %181 = vector.shape_cast %180 : vector<1x8x32xf32> to vector<8x32xf32>
    %182 = vector.shape_cast %174 : vector<8x32xf32> to vector<1x8x32xf32>
    tpu.vector_store %arg12[%179, %c0_64, %c32_65], %182 {strides = array<i32>} : memref<8x8x64xf32, #tpu.memory_space<vmem>>, vector<1x8x32xf32>,
    %183 = tpu.concatenate %143, %174 in 1 : vector<8x32xf32>, vector<8x32xf32> -> vector<8x64xf32>
    %184 = arith.truncf %183 : vector<8x64xf32> to vector<8x64xbf16>
    %c2_i32 = arith.constant 2 : i32
    %c7_i32_66 = arith.constant 7 : i32
    %185 = arith.subi %c7_i32_66, %c2_i32 : i32
    %cst_67 = arith.constant dense<0.000000e+00> : vector<8x256xf32>
    %186 = tpu.matmul %184, %10, %cst_67 {dimension_numbers = #tpu.dot_dimension_numbers<[1], [0], [0], [1], [0, 0, 1, 1], [], []>} : vector<8x64xbf16>, vector<64x256xbf16>, vector<8x256xf32> -> vector<8x256xf32>
    %187 = arith.index_cast %c2_i32 : i32 to index
    %c0_68 = arith.constant 0 : index
    %c0_69 = arith.constant 0 : index
    %188 = vector.load %arg11[%187, %c0_68, %c0_69] : memref<8x8x256xbf16, #tpu.memory_space<vmem>>, vector<1x8x128xbf16>
    %189 = vector.shape_cast %188 : vector<1x8x128xbf16> to vector<8x128xbf16>
    %190 = arith.extf %189 : vector<8x128xbf16> to vector<8x128xf32>
    %191 = vector.extract_strided_slice %186 {offsets = [0, 0], sizes = [8, 128], strides = [1, 1]} : vector<8x256xf32> to vector<8x128xf32>
    %192 = arith.addf %190, %191 : vector<8x128xf32>
    %193 = arith.index_cast %185 : i32 to index
    %c0_70 = arith.constant 0 : index
    %c128_71 = arith.constant 128 : index
    %194 = vector.load %arg11[%193, %c0_70, %c128_71] : memref<8x8x256xbf16, #tpu.memory_space<vmem>>, vector<1x8x128xbf16>
    %195 = vector.shape_cast %194 : vector<1x8x128xbf16> to vector<8x128xbf16>
    %196 = arith.extf %195 : vector<8x128xbf16> to vector<8x128xf32>
    %197 = vector.extract_strided_slice %186 {offsets = [0, 128], sizes = [8, 128], strides = [1, 1]} : vector<8x256xf32> to vector<8x128xf32>
    %198 = arith.addf %196, %197 : vector<8x128xf32>
    %199 = vector.extract_strided_slice %192 {offsets = [0, 0], sizes = [8, 32], strides = [1, 1]} : vector<8x128xf32> to vector<8x32xf32>
    %cst_72 = arith.constant 5.000000e-01 : f32
    %200 = vector.broadcast %cst_72 : f32 to vector<8x32xf32>
    %201 = arith.mulf %200, %199 : vector<8x32xf32>
    %202 = math.tanh %201 : vector<8x32xf32>
    %cst_73 = arith.constant 1.000000e+00 : f32
    %203 = vector.broadcast %cst_73 : f32 to vector<8x32xf32>
    %204 = arith.addf %202, %203 : vector<8x32xf32>
    %cst_74 = arith.constant 5.000000e-01 : f32
    %205 = vector.broadcast %cst_74 : f32 to vector<8x32xf32>
    %206 = arith.mulf %205, %204 : vector<8x32xf32>
    %207 = vector.extract_strided_slice %192 {offsets = [0, 32], sizes = [8, 32], strides = [1, 1]} : vector<8x128xf32> to vector<8x32xf32>
    %cst_75 = arith.constant 5.000000e-01 : f32
    %208 = vector.broadcast %cst_75 : f32 to vector<8x32xf32>
    %209 = arith.mulf %208, %207 : vector<8x32xf32>
    %210 = math.tanh %209 : vector<8x32xf32>
    %cst_76 = arith.constant 1.000000e+00 : f32
    %211 = vector.broadcast %cst_76 : f32 to vector<8x32xf32>
    %212 = arith.addf %210, %211 : vector<8x32xf32>
    %cst_77 = arith.constant 5.000000e-01 : f32
    %213 = vector.broadcast %cst_77 : f32 to vector<8x32xf32>
    %214 = arith.mulf %213, %212 : vector<8x32xf32>
    %215 = vector.extract_strided_slice %192 {offsets = [0, 64], sizes = [8, 32], strides = [1, 1]} : vector<8x128xf32> to vector<8x32xf32>
    %216 = math.tanh %215 : vector<8x32xf32>
    %217 = vector.extract_strided_slice %192 {offsets = [0, 96], sizes = [8, 32], strides = [1, 1]} : vector<8x128xf32> to vector<8x32xf32>
    %cst_78 = arith.constant 5.000000e-01 : f32
    %218 = vector.broadcast %cst_78 : f32 to vector<8x32xf32>
    %219 = arith.mulf %218, %217 : vector<8x32xf32>
    %220 = math.tanh %219 : vector<8x32xf32>
    %cst_79 = arith.constant 1.000000e+00 : f32
    %221 = vector.broadcast %cst_79 : f32 to vector<8x32xf32>
    %222 = arith.addf %220, %221 : vector<8x32xf32>
    %cst_80 = arith.constant 5.000000e-01 : f32
    %223 = vector.broadcast %cst_80 : f32 to vector<8x32xf32>
    %224 = arith.mulf %223, %222 : vector<8x32xf32>
    %225 = arith.mulf %214, %141 : vector<8x32xf32>
    %226 = arith.mulf %206, %216 : vector<8x32xf32>
    %227 = arith.addf %225, %226 : vector<8x32xf32>
    %228 = math.tanh %227 : vector<8x32xf32>
    %229 = arith.mulf %224, %228 : vector<8x32xf32>
    %230 = vector.extract_strided_slice %198 {offsets = [0, 0], sizes = [8, 32], strides = [1, 1]} : vector<8x128xf32> to vector<8x32xf32>
    %cst_81 = arith.constant 5.000000e-01 : f32
    %231 = vector.broadcast %cst_81 : f32 to vector<8x32xf32>
    %232 = arith.mulf %231, %230 : vector<8x32xf32>
    %233 = math.tanh %232 : vector<8x32xf32>
    %cst_82 = arith.constant 1.000000e+00 : f32
    %234 = vector.broadcast %cst_82 : f32 to vector<8x32xf32>
    %235 = arith.addf %233, %234 : vector<8x32xf32>
    %cst_83 = arith.constant 5.000000e-01 : f32
    %236 = vector.broadcast %cst_83 : f32 to vector<8x32xf32>
    %237 = arith.mulf %236, %235 : vector<8x32xf32>
    %238 = vector.extract_strided_slice %198 {offsets = [0, 32], sizes = [8, 32], strides = [1, 1]} : vector<8x128xf32> to vector<8x32xf32>
    %cst_84 = arith.constant 5.000000e-01 : f32
    %239 = vector.broadcast %cst_84 : f32 to vector<8x32xf32>
    %240 = arith.mulf %239, %238 : vector<8x32xf32>
    %241 = math.tanh %240 : vector<8x32xf32>
    %cst_85 = arith.constant 1.000000e+00 : f32
    %242 = vector.broadcast %cst_85 : f32 to vector<8x32xf32>
    %243 = arith.addf %241, %242 : vector<8x32xf32>
    %cst_86 = arith.constant 5.000000e-01 : f32
    %244 = vector.broadcast %cst_86 : f32 to vector<8x32xf32>
    %245 = arith.mulf %244, %243 : vector<8x32xf32>
    %246 = vector.extract_strided_slice %198 {offsets = [0, 64], sizes = [8, 32], strides = [1, 1]} : vector<8x128xf32> to vector<8x32xf32>
    %247 = math.tanh %246 : vector<8x32xf32>
    %248 = vector.extract_strided_slice %198 {offsets = [0, 96], sizes = [8, 32], strides = [1, 1]} : vector<8x128xf32> to vector<8x32xf32>
    %cst_87 = arith.constant 5.000000e-01 : f32
    %249 = vector.broadcast %cst_87 : f32 to vector<8x32xf32>
    %250 = arith.mulf %249, %248 : vector<8x32xf32>
    %251 = math.tanh %250 : vector<8x32xf32>
    %cst_88 = arith.constant 1.000000e+00 : f32
    %252 = vector.broadcast %cst_88 : f32 to vector<8x32xf32>
    %253 = arith.addf %251, %252 : vector<8x32xf32>
    %cst_89 = arith.constant 5.000000e-01 : f32
    %254 = vector.broadcast %cst_89 : f32 to vector<8x32xf32>
    %255 = arith.mulf %254, %253 : vector<8x32xf32>
    %256 = arith.mulf %245, %172 : vector<8x32xf32>
    %257 = arith.mulf %237, %247 : vector<8x32xf32>
    %258 = arith.addf %256, %257 : vector<8x32xf32>
    %259 = math.tanh %258 : vector<8x32xf32>
    %260 = arith.mulf %255, %259 : vector<8x32xf32>
    %261 = arith.index_cast %c2_i32 : i32 to index
    %c0_90 = arith.constant 0 : index
    %c0_91 = arith.constant 0 : index
    %262 = vector.load %arg12[%261, %c0_90, %c0_91] : memref<8x8x64xf32, #tpu.memory_space<vmem>>, vector<1x8x32xf32>
    %263 = vector.shape_cast %262 : vector<1x8x32xf32> to vector<8x32xf32>
    %264 = vector.shape_cast %229 : vector<8x32xf32> to vector<1x8x32xf32>
    tpu.vector_store %arg12[%261, %c0_90, %c0_91], %264 {strides = array<i32>} : memref<8x8x64xf32, #tpu.memory_space<vmem>>, vector<1x8x32xf32>,
    %265 = arith.index_cast %185 : i32 to index
    %c0_92 = arith.constant 0 : index
    %c32_93 = arith.constant 32 : index
    %266 = vector.load %arg12[%265, %c0_92, %c32_93] : memref<8x8x64xf32, #tpu.memory_space<vmem>>, vector<1x8x32xf32>
    %267 = vector.shape_cast %266 : vector<1x8x32xf32> to vector<8x32xf32>
    %268 = vector.shape_cast %260 : vector<8x32xf32> to vector<1x8x32xf32>
    tpu.vector_store %arg12[%265, %c0_92, %c32_93], %268 {strides = array<i32>} : memref<8x8x64xf32, #tpu.memory_space<vmem>>, vector<1x8x32xf32>,
    %269 = tpu.concatenate %229, %260 in 1 : vector<8x32xf32>, vector<8x32xf32> -> vector<8x64xf32>
    %270 = arith.truncf %269 : vector<8x64xf32> to vector<8x64xbf16>
    %c3_i32 = arith.constant 3 : i32
    %c7_i32_94 = arith.constant 7 : i32
    %271 = arith.subi %c7_i32_94, %c3_i32 : i32
    %cst_95 = arith.constant dense<0.000000e+00> : vector<8x256xf32>
    %272 = tpu.matmul %270, %10, %cst_95 {dimension_numbers = #tpu.dot_dimension_numbers<[1], [0], [0], [1], [0, 0, 1, 1], [], []>} : vector<8x64xbf16>, vector<64x256xbf16>, vector<8x256xf32> -> vector<8x256xf32>
    %273 = arith.index_cast %c3_i32 : i32 to index
    %c0_96 = arith.constant 0 : index
    %c0_97 = arith.constant 0 : index
    %274 = vector.load %arg11[%273, %c0_96, %c0_97] : memref<8x8x256xbf16, #tpu.memory_space<vmem>>, vector<1x8x128xbf16>
    %275 = vector.shape_cast %274 : vector<1x8x128xbf16> to vector<8x128xbf16>
    %276 = arith.extf %275 : vector<8x128xbf16> to vector<8x128xf32>
    %277 = vector.extract_strided_slice %272 {offsets = [0, 0], sizes = [8, 128], strides = [1, 1]} : vector<8x256xf32> to vector<8x128xf32>
    %278 = arith.addf %276, %277 : vector<8x128xf32>
    %279 = arith.index_cast %271 : i32 to index
    %c0_98 = arith.constant 0 : index
    %c128_99 = arith.constant 128 : index
    %280 = vector.load %arg11[%279, %c0_98, %c128_99] : memref<8x8x256xbf16, #tpu.memory_space<vmem>>, vector<1x8x128xbf16>
    %281 = vector.shape_cast %280 : vector<1x8x128xbf16> to vector<8x128xbf16>
    %282 = arith.extf %281 : vector<8x128xbf16> to vector<8x128xf32>
    %283 = vector.extract_strided_slice %272 {offsets = [0, 128], sizes = [8, 128], strides = [1, 1]} : vector<8x256xf32> to vector<8x128xf32>
    %284 = arith.addf %282, %283 : vector<8x128xf32>
    %285 = vector.extract_strided_slice %278 {offsets = [0, 0], sizes = [8, 32], strides = [1, 1]} : vector<8x128xf32> to vector<8x32xf32>
    %cst_100 = arith.constant 5.000000e-01 : f32
    %286 = vector.broadcast %cst_100 : f32 to vector<8x32xf32>
    %287 = arith.mulf %286, %285 : vector<8x32xf32>
    %288 = math.tanh %287 : vector<8x32xf32>
    %cst_101 = arith.constant 1.000000e+00 : f32
    %289 = vector.broadcast %cst_101 : f32 to vector<8x32xf32>
    %290 = arith.addf %288, %289 : vector<8x32xf32>
    %cst_102 = arith.constant 5.000000e-01 : f32
    %291 = vector.broadcast %cst_102 : f32 to vector<8x32xf32>
    %292 = arith.mulf %291, %290 : vector<8x32xf32>
    %293 = vector.extract_strided_slice %278 {offsets = [0, 32], sizes = [8, 32], strides = [1, 1]} : vector<8x128xf32> to vector<8x32xf32>
    %cst_103 = arith.constant 5.000000e-01 : f32
    %294 = vector.broadcast %cst_103 : f32 to vector<8x32xf32>
    %295 = arith.mulf %294, %293 : vector<8x32xf32>
    %296 = math.tanh %295 : vector<8x32xf32>
    %cst_104 = arith.constant 1.000000e+00 : f32
    %297 = vector.broadcast %cst_104 : f32 to vector<8x32xf32>
    %298 = arith.addf %296, %297 : vector<8x32xf32>
    %cst_105 = arith.constant 5.000000e-01 : f32
    %299 = vector.broadcast %cst_105 : f32 to vector<8x32xf32>
    %300 = arith.mulf %299, %298 : vector<8x32xf32>
    %301 = vector.extract_strided_slice %278 {offsets = [0, 64], sizes = [8, 32], strides = [1, 1]} : vector<8x128xf32> to vector<8x32xf32>
    %302 = math.tanh %301 : vector<8x32xf32>
    %303 = vector.extract_strided_slice %278 {offsets = [0, 96], sizes = [8, 32], strides = [1, 1]} : vector<8x128xf32> to vector<8x32xf32>
    %cst_106 = arith.constant 5.000000e-01 : f32
    %304 = vector.broadcast %cst_106 : f32 to vector<8x32xf32>
    %305 = arith.mulf %304, %303 : vector<8x32xf32>
    %306 = math.tanh %305 : vector<8x32xf32>
    %cst_107 = arith.constant 1.000000e+00 : f32
    %307 = vector.broadcast %cst_107 : f32 to vector<8x32xf32>
    %308 = arith.addf %306, %307 : vector<8x32xf32>
    %cst_108 = arith.constant 5.000000e-01 : f32
    %309 = vector.broadcast %cst_108 : f32 to vector<8x32xf32>
    %310 = arith.mulf %309, %308 : vector<8x32xf32>
    %311 = arith.mulf %300, %227 : vector<8x32xf32>
    %312 = arith.mulf %292, %302 : vector<8x32xf32>
    %313 = arith.addf %311, %312 : vector<8x32xf32>
    %314 = math.tanh %313 : vector<8x32xf32>
    %315 = arith.mulf %310, %314 : vector<8x32xf32>
    %316 = vector.extract_strided_slice %284 {offsets = [0, 0], sizes = [8, 32], strides = [1, 1]} : vector<8x128xf32> to vector<8x32xf32>
    %cst_109 = arith.constant 5.000000e-01 : f32
    %317 = vector.broadcast %cst_109 : f32 to vector<8x32xf32>
    %318 = arith.mulf %317, %316 : vector<8x32xf32>
    %319 = math.tanh %318 : vector<8x32xf32>
    %cst_110 = arith.constant 1.000000e+00 : f32
    %320 = vector.broadcast %cst_110 : f32 to vector<8x32xf32>
    %321 = arith.addf %319, %320 : vector<8x32xf32>
    %cst_111 = arith.constant 5.000000e-01 : f32
    %322 = vector.broadcast %cst_111 : f32 to vector<8x32xf32>
    %323 = arith.mulf %322, %321 : vector<8x32xf32>
    %324 = vector.extract_strided_slice %284 {offsets = [0, 32], sizes = [8, 32], strides = [1, 1]} : vector<8x128xf32> to vector<8x32xf32>
    %cst_112 = arith.constant 5.000000e-01 : f32
    %325 = vector.broadcast %cst_112 : f32 to vector<8x32xf32>
    %326 = arith.mulf %325, %324 : vector<8x32xf32>
    %327 = math.tanh %326 : vector<8x32xf32>
    %cst_113 = arith.constant 1.000000e+00 : f32
    %328 = vector.broadcast %cst_113 : f32 to vector<8x32xf32>
    %329 = arith.addf %327, %328 : vector<8x32xf32>
    %cst_114 = arith.constant 5.000000e-01 : f32
    %330 = vector.broadcast %cst_114 : f32 to vector<8x32xf32>
    %331 = arith.mulf %330, %329 : vector<8x32xf32>
    %332 = vector.extract_strided_slice %284 {offsets = [0, 64], sizes = [8, 32], strides = [1, 1]} : vector<8x128xf32> to vector<8x32xf32>
    %333 = math.tanh %332 : vector<8x32xf32>
    %334 = vector.extract_strided_slice %284 {offsets = [0, 96], sizes = [8, 32], strides = [1, 1]} : vector<8x128xf32> to vector<8x32xf32>
    %cst_115 = arith.constant 5.000000e-01 : f32
    %335 = vector.broadcast %cst_115 : f32 to vector<8x32xf32>
    %336 = arith.mulf %335, %334 : vector<8x32xf32>
    %337 = math.tanh %336 : vector<8x32xf32>
    %cst_116 = arith.constant 1.000000e+00 : f32
    %338 = vector.broadcast %cst_116 : f32 to vector<8x32xf32>
    %339 = arith.addf %337, %338 : vector<8x32xf32>
    %cst_117 = arith.constant 5.000000e-01 : f32
    %340 = vector.broadcast %cst_117 : f32 to vector<8x32xf32>
    %341 = arith.mulf %340, %339 : vector<8x32xf32>
    %342 = arith.mulf %331, %258 : vector<8x32xf32>
    %343 = arith.mulf %323, %333 : vector<8x32xf32>
    %344 = arith.addf %342, %343 : vector<8x32xf32>
    %345 = math.tanh %344 : vector<8x32xf32>
    %346 = arith.mulf %341, %345 : vector<8x32xf32>
    %347 = arith.index_cast %c3_i32 : i32 to index
    %c0_118 = arith.constant 0 : index
    %c0_119 = arith.constant 0 : index
    %348 = vector.load %arg12[%347, %c0_118, %c0_119] : memref<8x8x64xf32, #tpu.memory_space<vmem>>, vector<1x8x32xf32>
    %349 = vector.shape_cast %348 : vector<1x8x32xf32> to vector<8x32xf32>
    %350 = vector.shape_cast %315 : vector<8x32xf32> to vector<1x8x32xf32>
    tpu.vector_store %arg12[%347, %c0_118, %c0_119], %350 {strides = array<i32>} : memref<8x8x64xf32, #tpu.memory_space<vmem>>, vector<1x8x32xf32>,
    %351 = arith.index_cast %271 : i32 to index
    %c0_120 = arith.constant 0 : index
    %c32_121 = arith.constant 32 : index
    %352 = vector.load %arg12[%351, %c0_120, %c32_121] : memref<8x8x64xf32, #tpu.memory_space<vmem>>, vector<1x8x32xf32>
    %353 = vector.shape_cast %352 : vector<1x8x32xf32> to vector<8x32xf32>
    %354 = vector.shape_cast %346 : vector<8x32xf32> to vector<1x8x32xf32>
    tpu.vector_store %arg12[%351, %c0_120, %c32_121], %354 {strides = array<i32>} : memref<8x8x64xf32, #tpu.memory_space<vmem>>, vector<1x8x32xf32>,
    %355 = tpu.concatenate %315, %346 in 1 : vector<8x32xf32>, vector<8x32xf32> -> vector<8x64xf32>
    %356 = arith.truncf %355 : vector<8x64xf32> to vector<8x64xbf16>
    %c4_i32 = arith.constant 4 : i32
    %c7_i32_122 = arith.constant 7 : i32
    %357 = arith.subi %c7_i32_122, %c4_i32 : i32
    %cst_123 = arith.constant dense<0.000000e+00> : vector<8x256xf32>
    %358 = tpu.matmul %356, %10, %cst_123 {dimension_numbers = #tpu.dot_dimension_numbers<[1], [0], [0], [1], [0, 0, 1, 1], [], []>} : vector<8x64xbf16>, vector<64x256xbf16>, vector<8x256xf32> -> vector<8x256xf32>
    %359 = arith.index_cast %c4_i32 : i32 to index
    %c0_124 = arith.constant 0 : index
    %c0_125 = arith.constant 0 : index
    %360 = vector.load %arg11[%359, %c0_124, %c0_125] : memref<8x8x256xbf16, #tpu.memory_space<vmem>>, vector<1x8x128xbf16>
    %361 = vector.shape_cast %360 : vector<1x8x128xbf16> to vector<8x128xbf16>
    %362 = arith.extf %361 : vector<8x128xbf16> to vector<8x128xf32>
    %363 = vector.extract_strided_slice %358 {offsets = [0, 0], sizes = [8, 128], strides = [1, 1]} : vector<8x256xf32> to vector<8x128xf32>
    %364 = arith.addf %362, %363 : vector<8x128xf32>
    %365 = arith.index_cast %357 : i32 to index
    %c0_126 = arith.constant 0 : index
    %c128_127 = arith.constant 128 : index
    %366 = vector.load %arg11[%365, %c0_126, %c128_127] : memref<8x8x256xbf16, #tpu.memory_space<vmem>>, vector<1x8x128xbf16>
    %367 = vector.shape_cast %366 : vector<1x8x128xbf16> to vector<8x128xbf16>
    %368 = arith.extf %367 : vector<8x128xbf16> to vector<8x128xf32>
    %369 = vector.extract_strided_slice %358 {offsets = [0, 128], sizes = [8, 128], strides = [1, 1]} : vector<8x256xf32> to vector<8x128xf32>
    %370 = arith.addf %368, %369 : vector<8x128xf32>
    %371 = vector.extract_strided_slice %364 {offsets = [0, 0], sizes = [8, 32], strides = [1, 1]} : vector<8x128xf32> to vector<8x32xf32>
    %cst_128 = arith.constant 5.000000e-01 : f32
    %372 = vector.broadcast %cst_128 : f32 to vector<8x32xf32>
    %373 = arith.mulf %372, %371 : vector<8x32xf32>
    %374 = math.tanh %373 : vector<8x32xf32>
    %cst_129 = arith.constant 1.000000e+00 : f32
    %375 = vector.broadcast %cst_129 : f32 to vector<8x32xf32>
    %376 = arith.addf %374, %375 : vector<8x32xf32>
    %cst_130 = arith.constant 5.000000e-01 : f32
    %377 = vector.broadcast %cst_130 : f32 to vector<8x32xf32>
    %378 = arith.mulf %377, %376 : vector<8x32xf32>
    %379 = vector.extract_strided_slice %364 {offsets = [0, 32], sizes = [8, 32], strides = [1, 1]} : vector<8x128xf32> to vector<8x32xf32>
    %cst_131 = arith.constant 5.000000e-01 : f32
    %380 = vector.broadcast %cst_131 : f32 to vector<8x32xf32>
    %381 = arith.mulf %380, %379 : vector<8x32xf32>
    %382 = math.tanh %381 : vector<8x32xf32>
    %cst_132 = arith.constant 1.000000e+00 : f32
    %383 = vector.broadcast %cst_132 : f32 to vector<8x32xf32>
    %384 = arith.addf %382, %383 : vector<8x32xf32>
    %cst_133 = arith.constant 5.000000e-01 : f32
    %385 = vector.broadcast %cst_133 : f32 to vector<8x32xf32>
    %386 = arith.mulf %385, %384 : vector<8x32xf32>
    %387 = vector.extract_strided_slice %364 {offsets = [0, 64], sizes = [8, 32], strides = [1, 1]} : vector<8x128xf32> to vector<8x32xf32>
    %388 = math.tanh %387 : vector<8x32xf32>
    %389 = vector.extract_strided_slice %364 {offsets = [0, 96], sizes = [8, 32], strides = [1, 1]} : vector<8x128xf32> to vector<8x32xf32>
    %cst_134 = arith.constant 5.000000e-01 : f32
    %390 = vector.broadcast %cst_134 : f32 to vector<8x32xf32>
    %391 = arith.mulf %390, %389 : vector<8x32xf32>
    %392 = math.tanh %391 : vector<8x32xf32>
    %cst_135 = arith.constant 1.000000e+00 : f32
    %393 = vector.broadcast %cst_135 : f32 to vector<8x32xf32>
    %394 = arith.addf %392, %393 : vector<8x32xf32>
    %cst_136 = arith.constant 5.000000e-01 : f32
    %395 = vector.broadcast %cst_136 : f32 to vector<8x32xf32>
    %396 = arith.mulf %395, %394 : vector<8x32xf32>
    %397 = arith.mulf %386, %313 : vector<8x32xf32>
    %398 = arith.mulf %378, %388 : vector<8x32xf32>
    %399 = arith.addf %397, %398 : vector<8x32xf32>
    %400 = math.tanh %399 : vector<8x32xf32>
    %401 = arith.mulf %396, %400 : vector<8x32xf32>
    %402 = vector.extract_strided_slice %370 {offsets = [0, 0], sizes = [8, 32], strides = [1, 1]} : vector<8x128xf32> to vector<8x32xf32>
    %cst_137 = arith.constant 5.000000e-01 : f32
    %403 = vector.broadcast %cst_137 : f32 to vector<8x32xf32>
    %404 = arith.mulf %403, %402 : vector<8x32xf32>
    %405 = math.tanh %404 : vector<8x32xf32>
    %cst_138 = arith.constant 1.000000e+00 : f32
    %406 = vector.broadcast %cst_138 : f32 to vector<8x32xf32>
    %407 = arith.addf %405, %406 : vector<8x32xf32>
    %cst_139 = arith.constant 5.000000e-01 : f32
    %408 = vector.broadcast %cst_139 : f32 to vector<8x32xf32>
    %409 = arith.mulf %408, %407 : vector<8x32xf32>
    %410 = vector.extract_strided_slice %370 {offsets = [0, 32], sizes = [8, 32], strides = [1, 1]} : vector<8x128xf32> to vector<8x32xf32>
    %cst_140 = arith.constant 5.000000e-01 : f32
    %411 = vector.broadcast %cst_140 : f32 to vector<8x32xf32>
    %412 = arith.mulf %411, %410 : vector<8x32xf32>
    %413 = math.tanh %412 : vector<8x32xf32>
    %cst_141 = arith.constant 1.000000e+00 : f32
    %414 = vector.broadcast %cst_141 : f32 to vector<8x32xf32>
    %415 = arith.addf %413, %414 : vector<8x32xf32>
    %cst_142 = arith.constant 5.000000e-01 : f32
    %416 = vector.broadcast %cst_142 : f32 to vector<8x32xf32>
    %417 = arith.mulf %416, %415 : vector<8x32xf32>
    %418 = vector.extract_strided_slice %370 {offsets = [0, 64], sizes = [8, 32], strides = [1, 1]} : vector<8x128xf32> to vector<8x32xf32>
    %419 = math.tanh %418 : vector<8x32xf32>
    %420 = vector.extract_strided_slice %370 {offsets = [0, 96], sizes = [8, 32], strides = [1, 1]} : vector<8x128xf32> to vector<8x32xf32>
    %cst_143 = arith.constant 5.000000e-01 : f32
    %421 = vector.broadcast %cst_143 : f32 to vector<8x32xf32>
    %422 = arith.mulf %421, %420 : vector<8x32xf32>
    %423 = math.tanh %422 : vector<8x32xf32>
    %cst_144 = arith.constant 1.000000e+00 : f32
    %424 = vector.broadcast %cst_144 : f32 to vector<8x32xf32>
    %425 = arith.addf %423, %424 : vector<8x32xf32>
    %cst_145 = arith.constant 5.000000e-01 : f32
    %426 = vector.broadcast %cst_145 : f32 to vector<8x32xf32>
    %427 = arith.mulf %426, %425 : vector<8x32xf32>
    %428 = arith.mulf %417, %344 : vector<8x32xf32>
    %429 = arith.mulf %409, %419 : vector<8x32xf32>
    %430 = arith.addf %428, %429 : vector<8x32xf32>
    %431 = math.tanh %430 : vector<8x32xf32>
    %432 = arith.mulf %427, %431 : vector<8x32xf32>
    %433 = arith.index_cast %c4_i32 : i32 to index
    %c0_146 = arith.constant 0 : index
    %c0_147 = arith.constant 0 : index
    %434 = vector.load %arg12[%433, %c0_146, %c0_147] : memref<8x8x64xf32, #tpu.memory_space<vmem>>, vector<1x8x32xf32>
    %435 = vector.shape_cast %434 : vector<1x8x32xf32> to vector<8x32xf32>
    %436 = vector.shape_cast %401 : vector<8x32xf32> to vector<1x8x32xf32>
    tpu.vector_store %arg12[%433, %c0_146, %c0_147], %436 {strides = array<i32>} : memref<8x8x64xf32, #tpu.memory_space<vmem>>, vector<1x8x32xf32>,
    %437 = arith.index_cast %357 : i32 to index
    %c0_148 = arith.constant 0 : index
    %c32_149 = arith.constant 32 : index
    %438 = vector.load %arg12[%437, %c0_148, %c32_149] : memref<8x8x64xf32, #tpu.memory_space<vmem>>, vector<1x8x32xf32>
    %439 = vector.shape_cast %438 : vector<1x8x32xf32> to vector<8x32xf32>
    %440 = vector.shape_cast %432 : vector<8x32xf32> to vector<1x8x32xf32>
    tpu.vector_store %arg12[%437, %c0_148, %c32_149], %440 {strides = array<i32>} : memref<8x8x64xf32, #tpu.memory_space<vmem>>, vector<1x8x32xf32>,
    %441 = tpu.concatenate %401, %432 in 1 : vector<8x32xf32>, vector<8x32xf32> -> vector<8x64xf32>
    %442 = arith.truncf %441 : vector<8x64xf32> to vector<8x64xbf16>
    %c5_i32 = arith.constant 5 : i32
    %c7_i32_150 = arith.constant 7 : i32
    %443 = arith.subi %c7_i32_150, %c5_i32 : i32
    %cst_151 = arith.constant dense<0.000000e+00> : vector<8x256xf32>
    %444 = tpu.matmul %442, %10, %cst_151 {dimension_numbers = #tpu.dot_dimension_numbers<[1], [0], [0], [1], [0, 0, 1, 1], [], []>} : vector<8x64xbf16>, vector<64x256xbf16>, vector<8x256xf32> -> vector<8x256xf32>
    %445 = arith.index_cast %c5_i32 : i32 to index
    %c0_152 = arith.constant 0 : index
    %c0_153 = arith.constant 0 : index
    %446 = vector.load %arg11[%445, %c0_152, %c0_153] : memref<8x8x256xbf16, #tpu.memory_space<vmem>>, vector<1x8x128xbf16>
    %447 = vector.shape_cast %446 : vector<1x8x128xbf16> to vector<8x128xbf16>
    %448 = arith.extf %447 : vector<8x128xbf16> to vector<8x128xf32>
    %449 = vector.extract_strided_slice %444 {offsets = [0, 0], sizes = [8, 128], strides = [1, 1]} : vector<8x256xf32> to vector<8x128xf32>
    %450 = arith.addf %448, %449 : vector<8x128xf32>
    %451 = arith.index_cast %443 : i32 to index
    %c0_154 = arith.constant 0 : index
    %c128_155 = arith.constant 128 : index
    %452 = vector.load %arg11[%451, %c0_154, %c128_155] : memref<8x8x256xbf16, #tpu.memory_space<vmem>>, vector<1x8x128xbf16>
    %453 = vector.shape_cast %452 : vector<1x8x128xbf16> to vector<8x128xbf16>
    %454 = arith.extf %453 : vector<8x128xbf16> to vector<8x128xf32>
    %455 = vector.extract_strided_slice %444 {offsets = [0, 128], sizes = [8, 128], strides = [1, 1]} : vector<8x256xf32> to vector<8x128xf32>
    %456 = arith.addf %454, %455 : vector<8x128xf32>
    %457 = vector.extract_strided_slice %450 {offsets = [0, 0], sizes = [8, 32], strides = [1, 1]} : vector<8x128xf32> to vector<8x32xf32>
    %cst_156 = arith.constant 5.000000e-01 : f32
    %458 = vector.broadcast %cst_156 : f32 to vector<8x32xf32>
    %459 = arith.mulf %458, %457 : vector<8x32xf32>
    %460 = math.tanh %459 : vector<8x32xf32>
    %cst_157 = arith.constant 1.000000e+00 : f32
    %461 = vector.broadcast %cst_157 : f32 to vector<8x32xf32>
    %462 = arith.addf %460, %461 : vector<8x32xf32>
    %cst_158 = arith.constant 5.000000e-01 : f32
    %463 = vector.broadcast %cst_158 : f32 to vector<8x32xf32>
    %464 = arith.mulf %463, %462 : vector<8x32xf32>
    %465 = vector.extract_strided_slice %450 {offsets = [0, 32], sizes = [8, 32], strides = [1, 1]} : vector<8x128xf32> to vector<8x32xf32>
    %cst_159 = arith.constant 5.000000e-01 : f32
    %466 = vector.broadcast %cst_159 : f32 to vector<8x32xf32>
    %467 = arith.mulf %466, %465 : vector<8x32xf32>
    %468 = math.tanh %467 : vector<8x32xf32>
    %cst_160 = arith.constant 1.000000e+00 : f32
    %469 = vector.broadcast %cst_160 : f32 to vector<8x32xf32>
    %470 = arith.addf %468, %469 : vector<8x32xf32>
    %cst_161 = arith.constant 5.000000e-01 : f32
    %471 = vector.broadcast %cst_161 : f32 to vector<8x32xf32>
    %472 = arith.mulf %471, %470 : vector<8x32xf32>
    %473 = vector.extract_strided_slice %450 {offsets = [0, 64], sizes = [8, 32], strides = [1, 1]} : vector<8x128xf32> to vector<8x32xf32>
    %474 = math.tanh %473 : vector<8x32xf32>
    %475 = vector.extract_strided_slice %450 {offsets = [0, 96], sizes = [8, 32], strides = [1, 1]} : vector<8x128xf32> to vector<8x32xf32>
    %cst_162 = arith.constant 5.000000e-01 : f32
    %476 = vector.broadcast %cst_162 : f32 to vector<8x32xf32>
    %477 = arith.mulf %476, %475 : vector<8x32xf32>
    %478 = math.tanh %477 : vector<8x32xf32>
    %cst_163 = arith.constant 1.000000e+00 : f32
    %479 = vector.broadcast %cst_163 : f32 to vector<8x32xf32>
    %480 = arith.addf %478, %479 : vector<8x32xf32>
    %cst_164 = arith.constant 5.000000e-01 : f32
    %481 = vector.broadcast %cst_164 : f32 to vector<8x32xf32>
    %482 = arith.mulf %481, %480 : vector<8x32xf32>
    %483 = arith.mulf %472, %399 : vector<8x32xf32>
    %484 = arith.mulf %464, %474 : vector<8x32xf32>
    %485 = arith.addf %483, %484 : vector<8x32xf32>
    %486 = math.tanh %485 : vector<8x32xf32>
    %487 = arith.mulf %482, %486 : vector<8x32xf32>
    %488 = vector.extract_strided_slice %456 {offsets = [0, 0], sizes = [8, 32], strides = [1, 1]} : vector<8x128xf32> to vector<8x32xf32>
    %cst_165 = arith.constant 5.000000e-01 : f32
    %489 = vector.broadcast %cst_165 : f32 to vector<8x32xf32>
    %490 = arith.mulf %489, %488 : vector<8x32xf32>
    %491 = math.tanh %490 : vector<8x32xf32>
    %cst_166 = arith.constant 1.000000e+00 : f32
    %492 = vector.broadcast %cst_166 : f32 to vector<8x32xf32>
    %493 = arith.addf %491, %492 : vector<8x32xf32>
    %cst_167 = arith.constant 5.000000e-01 : f32
    %494 = vector.broadcast %cst_167 : f32 to vector<8x32xf32>
    %495 = arith.mulf %494, %493 : vector<8x32xf32>
    %496 = vector.extract_strided_slice %456 {offsets = [0, 32], sizes = [8, 32], strides = [1, 1]} : vector<8x128xf32> to vector<8x32xf32>
    %cst_168 = arith.constant 5.000000e-01 : f32
    %497 = vector.broadcast %cst_168 : f32 to vector<8x32xf32>
    %498 = arith.mulf %497, %496 : vector<8x32xf32>
    %499 = math.tanh %498 : vector<8x32xf32>
    %cst_169 = arith.constant 1.000000e+00 : f32
    %500 = vector.broadcast %cst_169 : f32 to vector<8x32xf32>
    %501 = arith.addf %499, %500 : vector<8x32xf32>
    %cst_170 = arith.constant 5.000000e-01 : f32
    %502 = vector.broadcast %cst_170 : f32 to vector<8x32xf32>
    %503 = arith.mulf %502, %501 : vector<8x32xf32>
    %504 = vector.extract_strided_slice %456 {offsets = [0, 64], sizes = [8, 32], strides = [1, 1]} : vector<8x128xf32> to vector<8x32xf32>
    %505 = math.tanh %504 : vector<8x32xf32>
    %506 = vector.extract_strided_slice %456 {offsets = [0, 96], sizes = [8, 32], strides = [1, 1]} : vector<8x128xf32> to vector<8x32xf32>
    %cst_171 = arith.constant 5.000000e-01 : f32
    %507 = vector.broadcast %cst_171 : f32 to vector<8x32xf32>
    %508 = arith.mulf %507, %506 : vector<8x32xf32>
    %509 = math.tanh %508 : vector<8x32xf32>
    %cst_172 = arith.constant 1.000000e+00 : f32
    %510 = vector.broadcast %cst_172 : f32 to vector<8x32xf32>
    %511 = arith.addf %509, %510 : vector<8x32xf32>
    %cst_173 = arith.constant 5.000000e-01 : f32
    %512 = vector.broadcast %cst_173 : f32 to vector<8x32xf32>
    %513 = arith.mulf %512, %511 : vector<8x32xf32>
    %514 = arith.mulf %503, %430 : vector<8x32xf32>
    %515 = arith.mulf %495, %505 : vector<8x32xf32>
    %516 = arith.addf %514, %515 : vector<8x32xf32>
    %517 = math.tanh %516 : vector<8x32xf32>
    %518 = arith.mulf %513, %517 : vector<8x32xf32>
    %519 = arith.index_cast %c5_i32 : i32 to index
    %c0_174 = arith.constant 0 : index
    %c0_175 = arith.constant 0 : index
    %520 = vector.load %arg12[%519, %c0_174, %c0_175] : memref<8x8x64xf32, #tpu.memory_space<vmem>>, vector<1x8x32xf32>
    %521 = vector.shape_cast %520 : vector<1x8x32xf32> to vector<8x32xf32>
    %522 = vector.shape_cast %487 : vector<8x32xf32> to vector<1x8x32xf32>
    tpu.vector_store %arg12[%519, %c0_174, %c0_175], %522 {strides = array<i32>} : memref<8x8x64xf32, #tpu.memory_space<vmem>>, vector<1x8x32xf32>,
    %523 = arith.index_cast %443 : i32 to index
    %c0_176 = arith.constant 0 : index
    %c32_177 = arith.constant 32 : index
    %524 = vector.load %arg12[%523, %c0_176, %c32_177] : memref<8x8x64xf32, #tpu.memory_space<vmem>>, vector<1x8x32xf32>
    %525 = vector.shape_cast %524 : vector<1x8x32xf32> to vector<8x32xf32>
    %526 = vector.shape_cast %518 : vector<8x32xf32> to vector<1x8x32xf32>
    tpu.vector_store %arg12[%523, %c0_176, %c32_177], %526 {strides = array<i32>} : memref<8x8x64xf32, #tpu.memory_space<vmem>>, vector<1x8x32xf32>,
    %527 = tpu.concatenate %487, %518 in 1 : vector<8x32xf32>, vector<8x32xf32> -> vector<8x64xf32>
    %528 = arith.truncf %527 : vector<8x64xf32> to vector<8x64xbf16>
    %c6_i32 = arith.constant 6 : i32
    %c7_i32_178 = arith.constant 7 : i32
    %529 = arith.subi %c7_i32_178, %c6_i32 : i32
    %cst_179 = arith.constant dense<0.000000e+00> : vector<8x256xf32>
    %530 = tpu.matmul %528, %10, %cst_179 {dimension_numbers = #tpu.dot_dimension_numbers<[1], [0], [0], [1], [0, 0, 1, 1], [], []>} : vector<8x64xbf16>, vector<64x256xbf16>, vector<8x256xf32> -> vector<8x256xf32>
    %531 = arith.index_cast %c6_i32 : i32 to index
    %c0_180 = arith.constant 0 : index
    %c0_181 = arith.constant 0 : index
    %532 = vector.load %arg11[%531, %c0_180, %c0_181] : memref<8x8x256xbf16, #tpu.memory_space<vmem>>, vector<1x8x128xbf16>
    %533 = vector.shape_cast %532 : vector<1x8x128xbf16> to vector<8x128xbf16>
    %534 = arith.extf %533 : vector<8x128xbf16> to vector<8x128xf32>
    %535 = vector.extract_strided_slice %530 {offsets = [0, 0], sizes = [8, 128], strides = [1, 1]} : vector<8x256xf32> to vector<8x128xf32>
    %536 = arith.addf %534, %535 : vector<8x128xf32>
    %537 = arith.index_cast %529 : i32 to index
    %c0_182 = arith.constant 0 : index
    %c128_183 = arith.constant 128 : index
    %538 = vector.load %arg11[%537, %c0_182, %c128_183] : memref<8x8x256xbf16, #tpu.memory_space<vmem>>, vector<1x8x128xbf16>
    %539 = vector.shape_cast %538 : vector<1x8x128xbf16> to vector<8x128xbf16>
    %540 = arith.extf %539 : vector<8x128xbf16> to vector<8x128xf32>
    %541 = vector.extract_strided_slice %530 {offsets = [0, 128], sizes = [8, 128], strides = [1, 1]} : vector<8x256xf32> to vector<8x128xf32>
    %542 = arith.addf %540, %541 : vector<8x128xf32>
    %543 = vector.extract_strided_slice %536 {offsets = [0, 0], sizes = [8, 32], strides = [1, 1]} : vector<8x128xf32> to vector<8x32xf32>
    %cst_184 = arith.constant 5.000000e-01 : f32
    %544 = vector.broadcast %cst_184 : f32 to vector<8x32xf32>
    %545 = arith.mulf %544, %543 : vector<8x32xf32>
    %546 = math.tanh %545 : vector<8x32xf32>
    %cst_185 = arith.constant 1.000000e+00 : f32
    %547 = vector.broadcast %cst_185 : f32 to vector<8x32xf32>
    %548 = arith.addf %546, %547 : vector<8x32xf32>
    %cst_186 = arith.constant 5.000000e-01 : f32
    %549 = vector.broadcast %cst_186 : f32 to vector<8x32xf32>
    %550 = arith.mulf %549, %548 : vector<8x32xf32>
    %551 = vector.extract_strided_slice %536 {offsets = [0, 32], sizes = [8, 32], strides = [1, 1]} : vector<8x128xf32> to vector<8x32xf32>
    %cst_187 = arith.constant 5.000000e-01 : f32
    %552 = vector.broadcast %cst_187 : f32 to vector<8x32xf32>
    %553 = arith.mulf %552, %551 : vector<8x32xf32>
    %554 = math.tanh %553 : vector<8x32xf32>
    %cst_188 = arith.constant 1.000000e+00 : f32
    %555 = vector.broadcast %cst_188 : f32 to vector<8x32xf32>
    %556 = arith.addf %554, %555 : vector<8x32xf32>
    %cst_189 = arith.constant 5.000000e-01 : f32
    %557 = vector.broadcast %cst_189 : f32 to vector<8x32xf32>
    %558 = arith.mulf %557, %556 : vector<8x32xf32>
    %559 = vector.extract_strided_slice %536 {offsets = [0, 64], sizes = [8, 32], strides = [1, 1]} : vector<8x128xf32> to vector<8x32xf32>
    %560 = math.tanh %559 : vector<8x32xf32>
    %561 = vector.extract_strided_slice %536 {offsets = [0, 96], sizes = [8, 32], strides = [1, 1]} : vector<8x128xf32> to vector<8x32xf32>
    %cst_190 = arith.constant 5.000000e-01 : f32
    %562 = vector.broadcast %cst_190 : f32 to vector<8x32xf32>
    %563 = arith.mulf %562, %561 : vector<8x32xf32>
    %564 = math.tanh %563 : vector<8x32xf32>
    %cst_191 = arith.constant 1.000000e+00 : f32
    %565 = vector.broadcast %cst_191 : f32 to vector<8x32xf32>
    %566 = arith.addf %564, %565 : vector<8x32xf32>
    %cst_192 = arith.constant 5.000000e-01 : f32
    %567 = vector.broadcast %cst_192 : f32 to vector<8x32xf32>
    %568 = arith.mulf %567, %566 : vector<8x32xf32>
    %569 = arith.mulf %558, %485 : vector<8x32xf32>
    %570 = arith.mulf %550, %560 : vector<8x32xf32>
    %571 = arith.addf %569, %570 : vector<8x32xf32>
    %572 = math.tanh %571 : vector<8x32xf32>
    %573 = arith.mulf %568, %572 : vector<8x32xf32>
    %574 = vector.extract_strided_slice %542 {offsets = [0, 0], sizes = [8, 32], strides = [1, 1]} : vector<8x128xf32> to vector<8x32xf32>
    %cst_193 = arith.constant 5.000000e-01 : f32
    %575 = vector.broadcast %cst_193 : f32 to vector<8x32xf32>
    %576 = arith.mulf %575, %574 : vector<8x32xf32>
    %577 = math.tanh %576 : vector<8x32xf32>
    %cst_194 = arith.constant 1.000000e+00 : f32
    %578 = vector.broadcast %cst_194 : f32 to vector<8x32xf32>
    %579 = arith.addf %577, %578 : vector<8x32xf32>
    %cst_195 = arith.constant 5.000000e-01 : f32
    %580 = vector.broadcast %cst_195 : f32 to vector<8x32xf32>
    %581 = arith.mulf %580, %579 : vector<8x32xf32>
    %582 = vector.extract_strided_slice %542 {offsets = [0, 32], sizes = [8, 32], strides = [1, 1]} : vector<8x128xf32> to vector<8x32xf32>
    %cst_196 = arith.constant 5.000000e-01 : f32
    %583 = vector.broadcast %cst_196 : f32 to vector<8x32xf32>
    %584 = arith.mulf %583, %582 : vector<8x32xf32>
    %585 = math.tanh %584 : vector<8x32xf32>
    %cst_197 = arith.constant 1.000000e+00 : f32
    %586 = vector.broadcast %cst_197 : f32 to vector<8x32xf32>
    %587 = arith.addf %585, %586 : vector<8x32xf32>
    %cst_198 = arith.constant 5.000000e-01 : f32
    %588 = vector.broadcast %cst_198 : f32 to vector<8x32xf32>
    %589 = arith.mulf %588, %587 : vector<8x32xf32>
    %590 = vector.extract_strided_slice %542 {offsets = [0, 64], sizes = [8, 32], strides = [1, 1]} : vector<8x128xf32> to vector<8x32xf32>
    %591 = math.tanh %590 : vector<8x32xf32>
    %592 = vector.extract_strided_slice %542 {offsets = [0, 96], sizes = [8, 32], strides = [1, 1]} : vector<8x128xf32> to vector<8x32xf32>
    %cst_199 = arith.constant 5.000000e-01 : f32
    %593 = vector.broadcast %cst_199 : f32 to vector<8x32xf32>
    %594 = arith.mulf %593, %592 : vector<8x32xf32>
    %595 = math.tanh %594 : vector<8x32xf32>
    %cst_200 = arith.constant 1.000000e+00 : f32
    %596 = vector.broadcast %cst_200 : f32 to vector<8x32xf32>
    %597 = arith.addf %595, %596 : vector<8x32xf32>
    %cst_201 = arith.constant 5.000000e-01 : f32
    %598 = vector.broadcast %cst_201 : f32 to vector<8x32xf32>
    %599 = arith.mulf %598, %597 : vector<8x32xf32>
    %600 = arith.mulf %589, %516 : vector<8x32xf32>
    %601 = arith.mulf %581, %591 : vector<8x32xf32>
    %602 = arith.addf %600, %601 : vector<8x32xf32>
    %603 = math.tanh %602 : vector<8x32xf32>
    %604 = arith.mulf %599, %603 : vector<8x32xf32>
    %605 = arith.index_cast %c6_i32 : i32 to index
    %c0_202 = arith.constant 0 : index
    %c0_203 = arith.constant 0 : index
    %606 = vector.load %arg12[%605, %c0_202, %c0_203] : memref<8x8x64xf32, #tpu.memory_space<vmem>>, vector<1x8x32xf32>
    %607 = vector.shape_cast %606 : vector<1x8x32xf32> to vector<8x32xf32>
    %608 = vector.shape_cast %573 : vector<8x32xf32> to vector<1x8x32xf32>
    tpu.vector_store %arg12[%605, %c0_202, %c0_203], %608 {strides = array<i32>} : memref<8x8x64xf32, #tpu.memory_space<vmem>>, vector<1x8x32xf32>,
    %609 = arith.index_cast %529 : i32 to index
    %c0_204 = arith.constant 0 : index
    %c32_205 = arith.constant 32 : index
    %610 = vector.load %arg12[%609, %c0_204, %c32_205] : memref<8x8x64xf32, #tpu.memory_space<vmem>>, vector<1x8x32xf32>
    %611 = vector.shape_cast %610 : vector<1x8x32xf32> to vector<8x32xf32>
    %612 = vector.shape_cast %604 : vector<8x32xf32> to vector<1x8x32xf32>
    tpu.vector_store %arg12[%609, %c0_204, %c32_205], %612 {strides = array<i32>} : memref<8x8x64xf32, #tpu.memory_space<vmem>>, vector<1x8x32xf32>,
    %613 = tpu.concatenate %573, %604 in 1 : vector<8x32xf32>, vector<8x32xf32> -> vector<8x64xf32>
    %614 = arith.truncf %613 : vector<8x64xf32> to vector<8x64xbf16>
    %c7_i32_206 = arith.constant 7 : i32
    %c7_i32_207 = arith.constant 7 : i32
    %615 = arith.subi %c7_i32_207, %c7_i32_206 : i32
    %cst_208 = arith.constant dense<0.000000e+00> : vector<8x256xf32>
    %616 = tpu.matmul %614, %10, %cst_208 {dimension_numbers = #tpu.dot_dimension_numbers<[1], [0], [0], [1], [0, 0, 1, 1], [], []>} : vector<8x64xbf16>, vector<64x256xbf16>, vector<8x256xf32> -> vector<8x256xf32>
    %617 = arith.index_cast %c7_i32_206 : i32 to index
    %c0_209 = arith.constant 0 : index
    %c0_210 = arith.constant 0 : index
    %618 = vector.load %arg11[%617, %c0_209, %c0_210] : memref<8x8x256xbf16, #tpu.memory_space<vmem>>, vector<1x8x128xbf16>
    %619 = vector.shape_cast %618 : vector<1x8x128xbf16> to vector<8x128xbf16>
    %620 = arith.extf %619 : vector<8x128xbf16> to vector<8x128xf32>
    %621 = vector.extract_strided_slice %616 {offsets = [0, 0], sizes = [8, 128], strides = [1, 1]} : vector<8x256xf32> to vector<8x128xf32>
    %622 = arith.addf %620, %621 : vector<8x128xf32>
    %623 = arith.index_cast %615 : i32 to index
    %c0_211 = arith.constant 0 : index
    %c128_212 = arith.constant 128 : index
    %624 = vector.load %arg11[%623, %c0_211, %c128_212] : memref<8x8x256xbf16, #tpu.memory_space<vmem>>, vector<1x8x128xbf16>
    %625 = vector.shape_cast %624 : vector<1x8x128xbf16> to vector<8x128xbf16>
    %626 = arith.extf %625 : vector<8x128xbf16> to vector<8x128xf32>
    %627 = vector.extract_strided_slice %616 {offsets = [0, 128], sizes = [8, 128], strides = [1, 1]} : vector<8x256xf32> to vector<8x128xf32>
    %628 = arith.addf %626, %627 : vector<8x128xf32>
    %629 = vector.extract_strided_slice %622 {offsets = [0, 0], sizes = [8, 32], strides = [1, 1]} : vector<8x128xf32> to vector<8x32xf32>
    %cst_213 = arith.constant 5.000000e-01 : f32
    %630 = vector.broadcast %cst_213 : f32 to vector<8x32xf32>
    %631 = arith.mulf %630, %629 : vector<8x32xf32>
    %632 = math.tanh %631 : vector<8x32xf32>
    %cst_214 = arith.constant 1.000000e+00 : f32
    %633 = vector.broadcast %cst_214 : f32 to vector<8x32xf32>
    %634 = arith.addf %632, %633 : vector<8x32xf32>
    %cst_215 = arith.constant 5.000000e-01 : f32
    %635 = vector.broadcast %cst_215 : f32 to vector<8x32xf32>
    %636 = arith.mulf %635, %634 : vector<8x32xf32>
    %637 = vector.extract_strided_slice %622 {offsets = [0, 32], sizes = [8, 32], strides = [1, 1]} : vector<8x128xf32> to vector<8x32xf32>
    %cst_216 = arith.constant 5.000000e-01 : f32
    %638 = vector.broadcast %cst_216 : f32 to vector<8x32xf32>
    %639 = arith.mulf %638, %637 : vector<8x32xf32>
    %640 = math.tanh %639 : vector<8x32xf32>
    %cst_217 = arith.constant 1.000000e+00 : f32
    %641 = vector.broadcast %cst_217 : f32 to vector<8x32xf32>
    %642 = arith.addf %640, %641 : vector<8x32xf32>
    %cst_218 = arith.constant 5.000000e-01 : f32
    %643 = vector.broadcast %cst_218 : f32 to vector<8x32xf32>
    %644 = arith.mulf %643, %642 : vector<8x32xf32>
    %645 = vector.extract_strided_slice %622 {offsets = [0, 64], sizes = [8, 32], strides = [1, 1]} : vector<8x128xf32> to vector<8x32xf32>
    %646 = math.tanh %645 : vector<8x32xf32>
    %647 = vector.extract_strided_slice %622 {offsets = [0, 96], sizes = [8, 32], strides = [1, 1]} : vector<8x128xf32> to vector<8x32xf32>
    %cst_219 = arith.constant 5.000000e-01 : f32
    %648 = vector.broadcast %cst_219 : f32 to vector<8x32xf32>
    %649 = arith.mulf %648, %647 : vector<8x32xf32>
    %650 = math.tanh %649 : vector<8x32xf32>
    %cst_220 = arith.constant 1.000000e+00 : f32
    %651 = vector.broadcast %cst_220 : f32 to vector<8x32xf32>
    %652 = arith.addf %650, %651 : vector<8x32xf32>
    %cst_221 = arith.constant 5.000000e-01 : f32
    %653 = vector.broadcast %cst_221 : f32 to vector<8x32xf32>
    %654 = arith.mulf %653, %652 : vector<8x32xf32>
    %655 = arith.mulf %644, %571 : vector<8x32xf32>
    %656 = arith.mulf %636, %646 : vector<8x32xf32>
    %657 = arith.addf %655, %656 : vector<8x32xf32>
    %658 = math.tanh %657 : vector<8x32xf32>
    %659 = arith.mulf %654, %658 : vector<8x32xf32>
    %660 = vector.extract_strided_slice %628 {offsets = [0, 0], sizes = [8, 32], strides = [1, 1]} : vector<8x128xf32> to vector<8x32xf32>
    %cst_222 = arith.constant 5.000000e-01 : f32
    %661 = vector.broadcast %cst_222 : f32 to vector<8x32xf32>
    %662 = arith.mulf %661, %660 : vector<8x32xf32>
    %663 = math.tanh %662 : vector<8x32xf32>
    %cst_223 = arith.constant 1.000000e+00 : f32
    %664 = vector.broadcast %cst_223 : f32 to vector<8x32xf32>
    %665 = arith.addf %663, %664 : vector<8x32xf32>
    %cst_224 = arith.constant 5.000000e-01 : f32
    %666 = vector.broadcast %cst_224 : f32 to vector<8x32xf32>
    %667 = arith.mulf %666, %665 : vector<8x32xf32>
    %668 = vector.extract_strided_slice %628 {offsets = [0, 32], sizes = [8, 32], strides = [1, 1]} : vector<8x128xf32> to vector<8x32xf32>
    %cst_225 = arith.constant 5.000000e-01 : f32
    %669 = vector.broadcast %cst_225 : f32 to vector<8x32xf32>
    %670 = arith.mulf %669, %668 : vector<8x32xf32>
    %671 = math.tanh %670 : vector<8x32xf32>
    %cst_226 = arith.constant 1.000000e+00 : f32
    %672 = vector.broadcast %cst_226 : f32 to vector<8x32xf32>
    %673 = arith.addf %671, %672 : vector<8x32xf32>
    %cst_227 = arith.constant 5.000000e-01 : f32
    %674 = vector.broadcast %cst_227 : f32 to vector<8x32xf32>
    %675 = arith.mulf %674, %673 : vector<8x32xf32>
    %676 = vector.extract_strided_slice %628 {offsets = [0, 64], sizes = [8, 32], strides = [1, 1]} : vector<8x128xf32> to vector<8x32xf32>
    %677 = math.tanh %676 : vector<8x32xf32>
    %678 = vector.extract_strided_slice %628 {offsets = [0, 96], sizes = [8, 32], strides = [1, 1]} : vector<8x128xf32> to vector<8x32xf32>
    %cst_228 = arith.constant 5.000000e-01 : f32
    %679 = vector.broadcast %cst_228 : f32 to vector<8x32xf32>
    %680 = arith.mulf %679, %678 : vector<8x32xf32>
    %681 = math.tanh %680 : vector<8x32xf32>
    %cst_229 = arith.constant 1.000000e+00 : f32
    %682 = vector.broadcast %cst_229 : f32 to vector<8x32xf32>
    %683 = arith.addf %681, %682 : vector<8x32xf32>
    %cst_230 = arith.constant 5.000000e-01 : f32
    %684 = vector.broadcast %cst_230 : f32 to vector<8x32xf32>
    %685 = arith.mulf %684, %683 : vector<8x32xf32>
    %686 = arith.mulf %675, %602 : vector<8x32xf32>
    %687 = arith.mulf %667, %677 : vector<8x32xf32>
    %688 = arith.addf %686, %687 : vector<8x32xf32>
    %689 = math.tanh %688 : vector<8x32xf32>
    %690 = arith.mulf %685, %689 : vector<8x32xf32>
    %691 = arith.index_cast %c7_i32_206 : i32 to index
    %c0_231 = arith.constant 0 : index
    %c0_232 = arith.constant 0 : index
    %692 = vector.load %arg12[%691, %c0_231, %c0_232] : memref<8x8x64xf32, #tpu.memory_space<vmem>>, vector<1x8x32xf32>
    %693 = vector.shape_cast %692 : vector<1x8x32xf32> to vector<8x32xf32>
    %694 = vector.shape_cast %659 : vector<8x32xf32> to vector<1x8x32xf32>
    tpu.vector_store %arg12[%691, %c0_231, %c0_232], %694 {strides = array<i32>} : memref<8x8x64xf32, #tpu.memory_space<vmem>>, vector<1x8x32xf32>,
    %695 = arith.index_cast %615 : i32 to index
    %c0_233 = arith.constant 0 : index
    %c32_234 = arith.constant 32 : index
    %696 = vector.load %arg12[%695, %c0_233, %c32_234] : memref<8x8x64xf32, #tpu.memory_space<vmem>>, vector<1x8x32xf32>
    %697 = vector.shape_cast %696 : vector<1x8x32xf32> to vector<8x32xf32>
    %698 = vector.shape_cast %690 : vector<8x32xf32> to vector<1x8x32xf32>
    tpu.vector_store %arg12[%695, %c0_233, %c32_234], %698 {strides = array<i32>} : memref<8x8x64xf32, #tpu.memory_space<vmem>>, vector<1x8x32xf32>,
    %699 = tpu.concatenate %659, %690 in 1 : vector<8x32xf32>, vector<8x32xf32> -> vector<8x64xf32>
    %700 = arith.truncf %699 : vector<8x64xf32> to vector<8x64xbf16>
    %c8_i32 = arith.constant 8 : i32
    %c0_235 = arith.constant 0 : index
    %c0_236 = arith.constant 0 : index
    %c0_237 = arith.constant 0 : index
    %701 = vector.load %arg12[%c0_235, %c0_236, %c0_237] : memref<8x8x64xf32, #tpu.memory_space<vmem>>, vector<8x8x64xf32>
    %702 = vector.shape_cast %701 : vector<8x8x64xf32> to vector<64x64xf32>
    %703 = arith.truncf %702 : vector<64x64xf32> to vector<64x64xbf16>
    %c0_238 = arith.constant 0 : index
    %c0_239 = arith.constant 0 : index
    %704 = vector.load %arg5[%c0_238, %c0_239] : memref<64x256xbf16, #tpu.memory_space<vmem>>, vector<64x256xbf16>
    %cst_240 = arith.constant dense<0.000000e+00> : vector<64x256xf32>
    %705 = tpu.matmul %703, %704, %cst_240 {dimension_numbers = #tpu.dot_dimension_numbers<[1], [0], [0], [1], [0, 0, 1, 1], [], []>} : vector<64x64xbf16>, vector<64x256xbf16>, vector<64x256xf32> -> vector<64x256xf32>
    %c0_241 = arith.constant 0 : index
    %c0_242 = arith.constant 0 : index
    %706 = vector.load %arg6[%c0_241, %c0_242] : memref<1x256xf32, #tpu.memory_space<vmem>>, vector<1x256xf32>
    %707 = vector.broadcast %706 : vector<1x256xf32> to vector<64x256xf32>
    %708 = arith.addf %705, %707 : vector<64x256xf32>
    %709 = arith.truncf %708 : vector<64x256xf32> to vector<64x256xbf16>
    %710 = vector.shape_cast %709 : vector<64x256xbf16> to vector<8x8x256xbf16>
    %c0_243 = arith.constant 0 : index
    %c0_244 = arith.constant 0 : index
    %c0_245 = arith.constant 0 : index
    %711 = vector.load %arg11[%c0_243, %c0_244, %c0_245] : memref<8x8x256xbf16, #tpu.memory_space<vmem>>, vector<8x8x256xbf16>
    tpu.vector_store %arg11[%c0_243, %c0_244, %c0_245], %710 {strides = array<i32>} : memref<8x8x256xbf16, #tpu.memory_space<vmem>>, vector<8x8x256xbf16>,
    %c0_246 = arith.constant 0 : index
    %c0_247 = arith.constant 0 : index
    %712 = vector.load %arg7[%c0_246, %c0_247] : memref<64x256xbf16, #tpu.memory_space<vmem>>, vector<64x256xbf16>
    %cst_248 = arith.constant 0.000000e+00 : f32
    %713 = vector.broadcast %cst_248 : f32 to vector<8x32xf32>
    %cst_249 = arith.constant 0.000000e+00 : bf16
    %714 = vector.broadcast %cst_249 : bf16 to vector<8x64xbf16>
    %c0_i32_250 = arith.constant 0 : i32
    %c7_i32_251 = arith.constant 7 : i32
    %715 = arith.subi %c7_i32_251, %c0_i32_250 : i32
    %cst_252 = arith.constant dense<0.000000e+00> : vector<8x256xf32>
    %716 = tpu.matmul %714, %712, %cst_252 {dimension_numbers = #tpu.dot_dimension_numbers<[1], [0], [0], [1], [0, 0, 1, 1], [], []>} : vector<8x64xbf16>, vector<64x256xbf16>, vector<8x256xf32> -> vector<8x256xf32>
    %717 = arith.index_cast %c0_i32_250 : i32 to index
    %c0_253 = arith.constant 0 : index
    %c0_254 = arith.constant 0 : index
    %718 = vector.load %arg11[%717, %c0_253, %c0_254] : memref<8x8x256xbf16, #tpu.memory_space<vmem>>, vector<1x8x128xbf16>
    %719 = vector.shape_cast %718 : vector<1x8x128xbf16> to vector<8x128xbf16>
    %720 = arith.extf %719 : vector<8x128xbf16> to vector<8x128xf32>
    %721 = vector.extract_strided_slice %716 {offsets = [0, 0], sizes = [8, 128], strides = [1, 1]} : vector<8x256xf32> to vector<8x128xf32>
    %722 = arith.addf %720, %721 : vector<8x128xf32>
    %723 = arith.index_cast %715 : i32 to index
    %c0_255 = arith.constant 0 : index
    %c128_256 = arith.constant 128 : index
    %724 = vector.load %arg11[%723, %c0_255, %c128_256] : memref<8x8x256xbf16, #tpu.memory_space<vmem>>, vector<1x8x128xbf16>
    %725 = vector.shape_cast %724 : vector<1x8x128xbf16> to vector<8x128xbf16>
    %726 = arith.extf %725 : vector<8x128xbf16> to vector<8x128xf32>
    %727 = vector.extract_strided_slice %716 {offsets = [0, 128], sizes = [8, 128], strides = [1, 1]} : vector<8x256xf32> to vector<8x128xf32>
    %728 = arith.addf %726, %727 : vector<8x128xf32>
    %729 = vector.extract_strided_slice %722 {offsets = [0, 0], sizes = [8, 32], strides = [1, 1]} : vector<8x128xf32> to vector<8x32xf32>
    %cst_257 = arith.constant 5.000000e-01 : f32
    %730 = vector.broadcast %cst_257 : f32 to vector<8x32xf32>
    %731 = arith.mulf %730, %729 : vector<8x32xf32>
    %732 = math.tanh %731 : vector<8x32xf32>
    %cst_258 = arith.constant 1.000000e+00 : f32
    %733 = vector.broadcast %cst_258 : f32 to vector<8x32xf32>
    %734 = arith.addf %732, %733 : vector<8x32xf32>
    %cst_259 = arith.constant 5.000000e-01 : f32
    %735 = vector.broadcast %cst_259 : f32 to vector<8x32xf32>
    %736 = arith.mulf %735, %734 : vector<8x32xf32>
    %737 = vector.extract_strided_slice %722 {offsets = [0, 32], sizes = [8, 32], strides = [1, 1]} : vector<8x128xf32> to vector<8x32xf32>
    %cst_260 = arith.constant 5.000000e-01 : f32
    %738 = vector.broadcast %cst_260 : f32 to vector<8x32xf32>
    %739 = arith.mulf %738, %737 : vector<8x32xf32>
    %740 = math.tanh %739 : vector<8x32xf32>
    %cst_261 = arith.constant 1.000000e+00 : f32
    %741 = vector.broadcast %cst_261 : f32 to vector<8x32xf32>
    %742 = arith.addf %740, %741 : vector<8x32xf32>
    %cst_262 = arith.constant 5.000000e-01 : f32
    %743 = vector.broadcast %cst_262 : f32 to vector<8x32xf32>
    %744 = arith.mulf %743, %742 : vector<8x32xf32>
    %745 = vector.extract_strided_slice %722 {offsets = [0, 64], sizes = [8, 32], strides = [1, 1]} : vector<8x128xf32> to vector<8x32xf32>
    %746 = math.tanh %745 : vector<8x32xf32>
    %747 = vector.extract_strided_slice %722 {offsets = [0, 96], sizes = [8, 32], strides = [1, 1]} : vector<8x128xf32> to vector<8x32xf32>
    %cst_263 = arith.constant 5.000000e-01 : f32
    %748 = vector.broadcast %cst_263 : f32 to vector<8x32xf32>
    %749 = arith.mulf %748, %747 : vector<8x32xf32>
    %750 = math.tanh %749 : vector<8x32xf32>
    %cst_264 = arith.constant 1.000000e+00 : f32
    %751 = vector.broadcast %cst_264 : f32 to vector<8x32xf32>
    %752 = arith.addf %750, %751 : vector<8x32xf32>
    %cst_265 = arith.constant 5.000000e-01 : f32
    %753 = vector.broadcast %cst_265 : f32 to vector<8x32xf32>
    %754 = arith.mulf %753, %752 : vector<8x32xf32>
    %755 = arith.mulf %744, %713 : vector<8x32xf32>
    %756 = arith.mulf %736, %746 : vector<8x32xf32>
    %757 = arith.addf %755, %756 : vector<8x32xf32>
    %758 = math.tanh %757 : vector<8x32xf32>
    %759 = arith.mulf %754, %758 : vector<8x32xf32>
    %760 = vector.extract_strided_slice %728 {offsets = [0, 0], sizes = [8, 32], strides = [1, 1]} : vector<8x128xf32> to vector<8x32xf32>
    %cst_266 = arith.constant 5.000000e-01 : f32
    %761 = vector.broadcast %cst_266 : f32 to vector<8x32xf32>
    %762 = arith.mulf %761, %760 : vector<8x32xf32>
    %763 = math.tanh %762 : vector<8x32xf32>
    %cst_267 = arith.constant 1.000000e+00 : f32
    %764 = vector.broadcast %cst_267 : f32 to vector<8x32xf32>
    %765 = arith.addf %763, %764 : vector<8x32xf32>
    %cst_268 = arith.constant 5.000000e-01 : f32
    %766 = vector.broadcast %cst_268 : f32 to vector<8x32xf32>
    %767 = arith.mulf %766, %765 : vector<8x32xf32>
    %768 = vector.extract_strided_slice %728 {offsets = [0, 32], sizes = [8, 32], strides = [1, 1]} : vector<8x128xf32> to vector<8x32xf32>
    %cst_269 = arith.constant 5.000000e-01 : f32
    %769 = vector.broadcast %cst_269 : f32 to vector<8x32xf32>
    %770 = arith.mulf %769, %768 : vector<8x32xf32>
    %771 = math.tanh %770 : vector<8x32xf32>
    %cst_270 = arith.constant 1.000000e+00 : f32
    %772 = vector.broadcast %cst_270 : f32 to vector<8x32xf32>
    %773 = arith.addf %771, %772 : vector<8x32xf32>
    %cst_271 = arith.constant 5.000000e-01 : f32
    %774 = vector.broadcast %cst_271 : f32 to vector<8x32xf32>
    %775 = arith.mulf %774, %773 : vector<8x32xf32>
    %776 = vector.extract_strided_slice %728 {offsets = [0, 64], sizes = [8, 32], strides = [1, 1]} : vector<8x128xf32> to vector<8x32xf32>
    %777 = math.tanh %776 : vector<8x32xf32>
    %778 = vector.extract_strided_slice %728 {offsets = [0, 96], sizes = [8, 32], strides = [1, 1]} : vector<8x128xf32> to vector<8x32xf32>
    %cst_272 = arith.constant 5.000000e-01 : f32
    %779 = vector.broadcast %cst_272 : f32 to vector<8x32xf32>
    %780 = arith.mulf %779, %778 : vector<8x32xf32>
    %781 = math.tanh %780 : vector<8x32xf32>
    %cst_273 = arith.constant 1.000000e+00 : f32
    %782 = vector.broadcast %cst_273 : f32 to vector<8x32xf32>
    %783 = arith.addf %781, %782 : vector<8x32xf32>
    %cst_274 = arith.constant 5.000000e-01 : f32
    %784 = vector.broadcast %cst_274 : f32 to vector<8x32xf32>
    %785 = arith.mulf %784, %783 : vector<8x32xf32>
    %786 = arith.mulf %775, %713 : vector<8x32xf32>
    %787 = arith.mulf %767, %777 : vector<8x32xf32>
    %788 = arith.addf %786, %787 : vector<8x32xf32>
    %789 = math.tanh %788 : vector<8x32xf32>
    %790 = arith.mulf %785, %789 : vector<8x32xf32>
    %791 = arith.index_cast %c0_i32_250 : i32 to index
    %c0_275 = arith.constant 0 : index
    %c0_276 = arith.constant 0 : index
    %792 = vector.load %arg12[%791, %c0_275, %c0_276] : memref<8x8x64xf32, #tpu.memory_space<vmem>>, vector<1x8x32xf32>
    %793 = vector.shape_cast %792 : vector<1x8x32xf32> to vector<8x32xf32>
    %794 = vector.shape_cast %759 : vector<8x32xf32> to vector<1x8x32xf32>
    tpu.vector_store %arg12[%791, %c0_275, %c0_276], %794 {strides = array<i32>} : memref<8x8x64xf32, #tpu.memory_space<vmem>>, vector<1x8x32xf32>,
    %795 = arith.index_cast %715 : i32 to index
    %c0_277 = arith.constant 0 : index
    %c32_278 = arith.constant 32 : index
    %796 = vector.load %arg12[%795, %c0_277, %c32_278] : memref<8x8x64xf32, #tpu.memory_space<vmem>>, vector<1x8x32xf32>
    %797 = vector.shape_cast %796 : vector<1x8x32xf32> to vector<8x32xf32>
    %798 = vector.shape_cast %790 : vector<8x32xf32> to vector<1x8x32xf32>
    tpu.vector_store %arg12[%795, %c0_277, %c32_278], %798 {strides = array<i32>} : memref<8x8x64xf32, #tpu.memory_space<vmem>>, vector<1x8x32xf32>,
    %799 = tpu.concatenate %759, %790 in 1 : vector<8x32xf32>, vector<8x32xf32> -> vector<8x64xf32>
    %800 = arith.truncf %799 : vector<8x64xf32> to vector<8x64xbf16>
    %c1_i32_279 = arith.constant 1 : i32
    %c7_i32_280 = arith.constant 7 : i32
    %801 = arith.subi %c7_i32_280, %c1_i32_279 : i32
    %cst_281 = arith.constant dense<0.000000e+00> : vector<8x256xf32>
    %802 = tpu.matmul %800, %712, %cst_281 {dimension_numbers = #tpu.dot_dimension_numbers<[1], [0], [0], [1], [0, 0, 1, 1], [], []>} : vector<8x64xbf16>, vector<64x256xbf16>, vector<8x256xf32> -> vector<8x256xf32>
    %803 = arith.index_cast %c1_i32_279 : i32 to index
    %c0_282 = arith.constant 0 : index
    %c0_283 = arith.constant 0 : index
    %804 = vector.load %arg11[%803, %c0_282, %c0_283] : memref<8x8x256xbf16, #tpu.memory_space<vmem>>, vector<1x8x128xbf16>
    %805 = vector.shape_cast %804 : vector<1x8x128xbf16> to vector<8x128xbf16>
    %806 = arith.extf %805 : vector<8x128xbf16> to vector<8x128xf32>
    %807 = vector.extract_strided_slice %802 {offsets = [0, 0], sizes = [8, 128], strides = [1, 1]} : vector<8x256xf32> to vector<8x128xf32>
    %808 = arith.addf %806, %807 : vector<8x128xf32>
    %809 = arith.index_cast %801 : i32 to index
    %c0_284 = arith.constant 0 : index
    %c128_285 = arith.constant 128 : index
    %810 = vector.load %arg11[%809, %c0_284, %c128_285] : memref<8x8x256xbf16, #tpu.memory_space<vmem>>, vector<1x8x128xbf16>
    %811 = vector.shape_cast %810 : vector<1x8x128xbf16> to vector<8x128xbf16>
    %812 = arith.extf %811 : vector<8x128xbf16> to vector<8x128xf32>
    %813 = vector.extract_strided_slice %802 {offsets = [0, 128], sizes = [8, 128], strides = [1, 1]} : vector<8x256xf32> to vector<8x128xf32>
    %814 = arith.addf %812, %813 : vector<8x128xf32>
    %815 = vector.extract_strided_slice %808 {offsets = [0, 0], sizes = [8, 32], strides = [1, 1]} : vector<8x128xf32> to vector<8x32xf32>
    %cst_286 = arith.constant 5.000000e-01 : f32
    %816 = vector.broadcast %cst_286 : f32 to vector<8x32xf32>
    %817 = arith.mulf %816, %815 : vector<8x32xf32>
    %818 = math.tanh %817 : vector<8x32xf32>
    %cst_287 = arith.constant 1.000000e+00 : f32
    %819 = vector.broadcast %cst_287 : f32 to vector<8x32xf32>
    %820 = arith.addf %818, %819 : vector<8x32xf32>
    %cst_288 = arith.constant 5.000000e-01 : f32
    %821 = vector.broadcast %cst_288 : f32 to vector<8x32xf32>
    %822 = arith.mulf %821, %820 : vector<8x32xf32>
    %823 = vector.extract_strided_slice %808 {offsets = [0, 32], sizes = [8, 32], strides = [1, 1]} : vector<8x128xf32> to vector<8x32xf32>
    %cst_289 = arith.constant 5.000000e-01 : f32
    %824 = vector.broadcast %cst_289 : f32 to vector<8x32xf32>
    %825 = arith.mulf %824, %823 : vector<8x32xf32>
    %826 = math.tanh %825 : vector<8x32xf32>
    %cst_290 = arith.constant 1.000000e+00 : f32
    %827 = vector.broadcast %cst_290 : f32 to vector<8x32xf32>
    %828 = arith.addf %826, %827 : vector<8x32xf32>
    %cst_291 = arith.constant 5.000000e-01 : f32
    %829 = vector.broadcast %cst_291 : f32 to vector<8x32xf32>
    %830 = arith.mulf %829, %828 : vector<8x32xf32>
    %831 = vector.extract_strided_slice %808 {offsets = [0, 64], sizes = [8, 32], strides = [1, 1]} : vector<8x128xf32> to vector<8x32xf32>
    %832 = math.tanh %831 : vector<8x32xf32>
    %833 = vector.extract_strided_slice %808 {offsets = [0, 96], sizes = [8, 32], strides = [1, 1]} : vector<8x128xf32> to vector<8x32xf32>
    %cst_292 = arith.constant 5.000000e-01 : f32
    %834 = vector.broadcast %cst_292 : f32 to vector<8x32xf32>
    %835 = arith.mulf %834, %833 : vector<8x32xf32>
    %836 = math.tanh %835 : vector<8x32xf32>
    %cst_293 = arith.constant 1.000000e+00 : f32
    %837 = vector.broadcast %cst_293 : f32 to vector<8x32xf32>
    %838 = arith.addf %836, %837 : vector<8x32xf32>
    %cst_294 = arith.constant 5.000000e-01 : f32
    %839 = vector.broadcast %cst_294 : f32 to vector<8x32xf32>
    %840 = arith.mulf %839, %838 : vector<8x32xf32>
    %841 = arith.mulf %830, %757 : vector<8x32xf32>
    %842 = arith.mulf %822, %832 : vector<8x32xf32>
    %843 = arith.addf %841, %842 : vector<8x32xf32>
    %844 = math.tanh %843 : vector<8x32xf32>
    %845 = arith.mulf %840, %844 : vector<8x32xf32>
    %846 = vector.extract_strided_slice %814 {offsets = [0, 0], sizes = [8, 32], strides = [1, 1]} : vector<8x128xf32> to vector<8x32xf32>
    %cst_295 = arith.constant 5.000000e-01 : f32
    %847 = vector.broadcast %cst_295 : f32 to vector<8x32xf32>
    %848 = arith.mulf %847, %846 : vector<8x32xf32>
    %849 = math.tanh %848 : vector<8x32xf32>
    %cst_296 = arith.constant 1.000000e+00 : f32
    %850 = vector.broadcast %cst_296 : f32 to vector<8x32xf32>
    %851 = arith.addf %849, %850 : vector<8x32xf32>
    %cst_297 = arith.constant 5.000000e-01 : f32
    %852 = vector.broadcast %cst_297 : f32 to vector<8x32xf32>
    %853 = arith.mulf %852, %851 : vector<8x32xf32>
    %854 = vector.extract_strided_slice %814 {offsets = [0, 32], sizes = [8, 32], strides = [1, 1]} : vector<8x128xf32> to vector<8x32xf32>
    %cst_298 = arith.constant 5.000000e-01 : f32
    %855 = vector.broadcast %cst_298 : f32 to vector<8x32xf32>
    %856 = arith.mulf %855, %854 : vector<8x32xf32>
    %857 = math.tanh %856 : vector<8x32xf32>
    %cst_299 = arith.constant 1.000000e+00 : f32
    %858 = vector.broadcast %cst_299 : f32 to vector<8x32xf32>
    %859 = arith.addf %857, %858 : vector<8x32xf32>
    %cst_300 = arith.constant 5.000000e-01 : f32
    %860 = vector.broadcast %cst_300 : f32 to vector<8x32xf32>
    %861 = arith.mulf %860, %859 : vector<8x32xf32>
    %862 = vector.extract_strided_slice %814 {offsets = [0, 64], sizes = [8, 32], strides = [1, 1]} : vector<8x128xf32> to vector<8x32xf32>
    %863 = math.tanh %862 : vector<8x32xf32>
    %864 = vector.extract_strided_slice %814 {offsets = [0, 96], sizes = [8, 32], strides = [1, 1]} : vector<8x128xf32> to vector<8x32xf32>
    %cst_301 = arith.constant 5.000000e-01 : f32
    %865 = vector.broadcast %cst_301 : f32 to vector<8x32xf32>
    %866 = arith.mulf %865, %864 : vector<8x32xf32>
    %867 = math.tanh %866 : vector<8x32xf32>
    %cst_302 = arith.constant 1.000000e+00 : f32
    %868 = vector.broadcast %cst_302 : f32 to vector<8x32xf32>
    %869 = arith.addf %867, %868 : vector<8x32xf32>
    %cst_303 = arith.constant 5.000000e-01 : f32
    %870 = vector.broadcast %cst_303 : f32 to vector<8x32xf32>
    %871 = arith.mulf %870, %869 : vector<8x32xf32>
    %872 = arith.mulf %861, %788 : vector<8x32xf32>
    %873 = arith.mulf %853, %863 : vector<8x32xf32>
    %874 = arith.addf %872, %873 : vector<8x32xf32>
    %875 = math.tanh %874 : vector<8x32xf32>
    %876 = arith.mulf %871, %875 : vector<8x32xf32>
    %877 = arith.index_cast %c1_i32_279 : i32 to index
    %c0_304 = arith.constant 0 : index
    %c0_305 = arith.constant 0 : index
    %878 = vector.load %arg12[%877, %c0_304, %c0_305] : memref<8x8x64xf32, #tpu.memory_space<vmem>>, vector<1x8x32xf32>
    %879 = vector.shape_cast %878 : vector<1x8x32xf32> to vector<8x32xf32>
    %880 = vector.shape_cast %845 : vector<8x32xf32> to vector<1x8x32xf32>
    tpu.vector_store %arg12[%877, %c0_304, %c0_305], %880 {strides = array<i32>} : memref<8x8x64xf32, #tpu.memory_space<vmem>>, vector<1x8x32xf32>,
    %881 = arith.index_cast %801 : i32 to index
    %c0_306 = arith.constant 0 : index
    %c32_307 = arith.constant 32 : index
    %882 = vector.load %arg12[%881, %c0_306, %c32_307] : memref<8x8x64xf32, #tpu.memory_space<vmem>>, vector<1x8x32xf32>
    %883 = vector.shape_cast %882 : vector<1x8x32xf32> to vector<8x32xf32>
    %884 = vector.shape_cast %876 : vector<8x32xf32> to vector<1x8x32xf32>
    tpu.vector_store %arg12[%881, %c0_306, %c32_307], %884 {strides = array<i32>} : memref<8x8x64xf32, #tpu.memory_space<vmem>>, vector<1x8x32xf32>,
    %885 = tpu.concatenate %845, %876 in 1 : vector<8x32xf32>, vector<8x32xf32> -> vector<8x64xf32>
    %886 = arith.truncf %885 : vector<8x64xf32> to vector<8x64xbf16>
    %c2_i32_308 = arith.constant 2 : i32
    %c7_i32_309 = arith.constant 7 : i32
    %887 = arith.subi %c7_i32_309, %c2_i32_308 : i32
    %cst_310 = arith.constant dense<0.000000e+00> : vector<8x256xf32>
    %888 = tpu.matmul %886, %712, %cst_310 {dimension_numbers = #tpu.dot_dimension_numbers<[1], [0], [0], [1], [0, 0, 1, 1], [], []>} : vector<8x64xbf16>, vector<64x256xbf16>, vector<8x256xf32> -> vector<8x256xf32>
    %889 = arith.index_cast %c2_i32_308 : i32 to index
    %c0_311 = arith.constant 0 : index
    %c0_312 = arith.constant 0 : index
    %890 = vector.load %arg11[%889, %c0_311, %c0_312] : memref<8x8x256xbf16, #tpu.memory_space<vmem>>, vector<1x8x128xbf16>
    %891 = vector.shape_cast %890 : vector<1x8x128xbf16> to vector<8x128xbf16>
    %892 = arith.extf %891 : vector<8x128xbf16> to vector<8x128xf32>
    %893 = vector.extract_strided_slice %888 {offsets = [0, 0], sizes = [8, 128], strides = [1, 1]} : vector<8x256xf32> to vector<8x128xf32>
    %894 = arith.addf %892, %893 : vector<8x128xf32>
    %895 = arith.index_cast %887 : i32 to index
    %c0_313 = arith.constant 0 : index
    %c128_314 = arith.constant 128 : index
    %896 = vector.load %arg11[%895, %c0_313, %c128_314] : memref<8x8x256xbf16, #tpu.memory_space<vmem>>, vector<1x8x128xbf16>
    %897 = vector.shape_cast %896 : vector<1x8x128xbf16> to vector<8x128xbf16>
    %898 = arith.extf %897 : vector<8x128xbf16> to vector<8x128xf32>
    %899 = vector.extract_strided_slice %888 {offsets = [0, 128], sizes = [8, 128], strides = [1, 1]} : vector<8x256xf32> to vector<8x128xf32>
    %900 = arith.addf %898, %899 : vector<8x128xf32>
    %901 = vector.extract_strided_slice %894 {offsets = [0, 0], sizes = [8, 32], strides = [1, 1]} : vector<8x128xf32> to vector<8x32xf32>
    %cst_315 = arith.constant 5.000000e-01 : f32
    %902 = vector.broadcast %cst_315 : f32 to vector<8x32xf32>
    %903 = arith.mulf %902, %901 : vector<8x32xf32>
    %904 = math.tanh %903 : vector<8x32xf32>
    %cst_316 = arith.constant 1.000000e+00 : f32
    %905 = vector.broadcast %cst_316 : f32 to vector<8x32xf32>
    %906 = arith.addf %904, %905 : vector<8x32xf32>
    %cst_317 = arith.constant 5.000000e-01 : f32
    %907 = vector.broadcast %cst_317 : f32 to vector<8x32xf32>
    %908 = arith.mulf %907, %906 : vector<8x32xf32>
    %909 = vector.extract_strided_slice %894 {offsets = [0, 32], sizes = [8, 32], strides = [1, 1]} : vector<8x128xf32> to vector<8x32xf32>
    %cst_318 = arith.constant 5.000000e-01 : f32
    %910 = vector.broadcast %cst_318 : f32 to vector<8x32xf32>
    %911 = arith.mulf %910, %909 : vector<8x32xf32>
    %912 = math.tanh %911 : vector<8x32xf32>
    %cst_319 = arith.constant 1.000000e+00 : f32
    %913 = vector.broadcast %cst_319 : f32 to vector<8x32xf32>
    %914 = arith.addf %912, %913 : vector<8x32xf32>
    %cst_320 = arith.constant 5.000000e-01 : f32
    %915 = vector.broadcast %cst_320 : f32 to vector<8x32xf32>
    %916 = arith.mulf %915, %914 : vector<8x32xf32>
    %917 = vector.extract_strided_slice %894 {offsets = [0, 64], sizes = [8, 32], strides = [1, 1]} : vector<8x128xf32> to vector<8x32xf32>
    %918 = math.tanh %917 : vector<8x32xf32>
    %919 = vector.extract_strided_slice %894 {offsets = [0, 96], sizes = [8, 32], strides = [1, 1]} : vector<8x128xf32> to vector<8x32xf32>
    %cst_321 = arith.constant 5.000000e-01 : f32
    %920 = vector.broadcast %cst_321 : f32 to vector<8x32xf32>
    %921 = arith.mulf %920, %919 : vector<8x32xf32>
    %922 = math.tanh %921 : vector<8x32xf32>
    %cst_322 = arith.constant 1.000000e+00 : f32
    %923 = vector.broadcast %cst_322 : f32 to vector<8x32xf32>
    %924 = arith.addf %922, %923 : vector<8x32xf32>
    %cst_323 = arith.constant 5.000000e-01 : f32
    %925 = vector.broadcast %cst_323 : f32 to vector<8x32xf32>
    %926 = arith.mulf %925, %924 : vector<8x32xf32>
    %927 = arith.mulf %916, %843 : vector<8x32xf32>
    %928 = arith.mulf %908, %918 : vector<8x32xf32>
    %929 = arith.addf %927, %928 : vector<8x32xf32>
    %930 = math.tanh %929 : vector<8x32xf32>
    %931 = arith.mulf %926, %930 : vector<8x32xf32>
    %932 = vector.extract_strided_slice %900 {offsets = [0, 0], sizes = [8, 32], strides = [1, 1]} : vector<8x128xf32> to vector<8x32xf32>
    %cst_324 = arith.constant 5.000000e-01 : f32
    %933 = vector.broadcast %cst_324 : f32 to vector<8x32xf32>
    %934 = arith.mulf %933, %932 : vector<8x32xf32>
    %935 = math.tanh %934 : vector<8x32xf32>
    %cst_325 = arith.constant 1.000000e+00 : f32
    %936 = vector.broadcast %cst_325 : f32 to vector<8x32xf32>
    %937 = arith.addf %935, %936 : vector<8x32xf32>
    %cst_326 = arith.constant 5.000000e-01 : f32
    %938 = vector.broadcast %cst_326 : f32 to vector<8x32xf32>
    %939 = arith.mulf %938, %937 : vector<8x32xf32>
    %940 = vector.extract_strided_slice %900 {offsets = [0, 32], sizes = [8, 32], strides = [1, 1]} : vector<8x128xf32> to vector<8x32xf32>
    %cst_327 = arith.constant 5.000000e-01 : f32
    %941 = vector.broadcast %cst_327 : f32 to vector<8x32xf32>
    %942 = arith.mulf %941, %940 : vector<8x32xf32>
    %943 = math.tanh %942 : vector<8x32xf32>
    %cst_328 = arith.constant 1.000000e+00 : f32
    %944 = vector.broadcast %cst_328 : f32 to vector<8x32xf32>
    %945 = arith.addf %943, %944 : vector<8x32xf32>
    %cst_329 = arith.constant 5.000000e-01 : f32
    %946 = vector.broadcast %cst_329 : f32 to vector<8x32xf32>
    %947 = arith.mulf %946, %945 : vector<8x32xf32>
    %948 = vector.extract_strided_slice %900 {offsets = [0, 64], sizes = [8, 32], strides = [1, 1]} : vector<8x128xf32> to vector<8x32xf32>
    %949 = math.tanh %948 : vector<8x32xf32>
    %950 = vector.extract_strided_slice %900 {offsets = [0, 96], sizes = [8, 32], strides = [1, 1]} : vector<8x128xf32> to vector<8x32xf32>
    %cst_330 = arith.constant 5.000000e-01 : f32
    %951 = vector.broadcast %cst_330 : f32 to vector<8x32xf32>
    %952 = arith.mulf %951, %950 : vector<8x32xf32>
    %953 = math.tanh %952 : vector<8x32xf32>
    %cst_331 = arith.constant 1.000000e+00 : f32
    %954 = vector.broadcast %cst_331 : f32 to vector<8x32xf32>
    %955 = arith.addf %953, %954 : vector<8x32xf32>
    %cst_332 = arith.constant 5.000000e-01 : f32
    %956 = vector.broadcast %cst_332 : f32 to vector<8x32xf32>
    %957 = arith.mulf %956, %955 : vector<8x32xf32>
    %958 = arith.mulf %947, %874 : vector<8x32xf32>
    %959 = arith.mulf %939, %949 : vector<8x32xf32>
    %960 = arith.addf %958, %959 : vector<8x32xf32>
    %961 = math.tanh %960 : vector<8x32xf32>
    %962 = arith.mulf %957, %961 : vector<8x32xf32>
    %963 = arith.index_cast %c2_i32_308 : i32 to index
    %c0_333 = arith.constant 0 : index
    %c0_334 = arith.constant 0 : index
    %964 = vector.load %arg12[%963, %c0_333, %c0_334] : memref<8x8x64xf32, #tpu.memory_space<vmem>>, vector<1x8x32xf32>
    %965 = vector.shape_cast %964 : vector<1x8x32xf32> to vector<8x32xf32>
    %966 = vector.shape_cast %931 : vector<8x32xf32> to vector<1x8x32xf32>
    tpu.vector_store %arg12[%963, %c0_333, %c0_334], %966 {strides = array<i32>} : memref<8x8x64xf32, #tpu.memory_space<vmem>>, vector<1x8x32xf32>,
    %967 = arith.index_cast %887 : i32 to index
    %c0_335 = arith.constant 0 : index
    %c32_336 = arith.constant 32 : index
    %968 = vector.load %arg12[%967, %c0_335, %c32_336] : memref<8x8x64xf32, #tpu.memory_space<vmem>>, vector<1x8x32xf32>
    %969 = vector.shape_cast %968 : vector<1x8x32xf32> to vector<8x32xf32>
    %970 = vector.shape_cast %962 : vector<8x32xf32> to vector<1x8x32xf32>
    tpu.vector_store %arg12[%967, %c0_335, %c32_336], %970 {strides = array<i32>} : memref<8x8x64xf32, #tpu.memory_space<vmem>>, vector<1x8x32xf32>,
    %971 = tpu.concatenate %931, %962 in 1 : vector<8x32xf32>, vector<8x32xf32> -> vector<8x64xf32>
    %972 = arith.truncf %971 : vector<8x64xf32> to vector<8x64xbf16>
    %c3_i32_337 = arith.constant 3 : i32
    %c7_i32_338 = arith.constant 7 : i32
    %973 = arith.subi %c7_i32_338, %c3_i32_337 : i32
    %cst_339 = arith.constant dense<0.000000e+00> : vector<8x256xf32>
    %974 = tpu.matmul %972, %712, %cst_339 {dimension_numbers = #tpu.dot_dimension_numbers<[1], [0], [0], [1], [0, 0, 1, 1], [], []>} : vector<8x64xbf16>, vector<64x256xbf16>, vector<8x256xf32> -> vector<8x256xf32>
    %975 = arith.index_cast %c3_i32_337 : i32 to index
    %c0_340 = arith.constant 0 : index
    %c0_341 = arith.constant 0 : index
    %976 = vector.load %arg11[%975, %c0_340, %c0_341] : memref<8x8x256xbf16, #tpu.memory_space<vmem>>, vector<1x8x128xbf16>
    %977 = vector.shape_cast %976 : vector<1x8x128xbf16> to vector<8x128xbf16>
    %978 = arith.extf %977 : vector<8x128xbf16> to vector<8x128xf32>
    %979 = vector.extract_strided_slice %974 {offsets = [0, 0], sizes = [8, 128], strides = [1, 1]} : vector<8x256xf32> to vector<8x128xf32>
    %980 = arith.addf %978, %979 : vector<8x128xf32>
    %981 = arith.index_cast %973 : i32 to index
    %c0_342 = arith.constant 0 : index
    %c128_343 = arith.constant 128 : index
    %982 = vector.load %arg11[%981, %c0_342, %c128_343] : memref<8x8x256xbf16, #tpu.memory_space<vmem>>, vector<1x8x128xbf16>
    %983 = vector.shape_cast %982 : vector<1x8x128xbf16> to vector<8x128xbf16>
    %984 = arith.extf %983 : vector<8x128xbf16> to vector<8x128xf32>
    %985 = vector.extract_strided_slice %974 {offsets = [0, 128], sizes = [8, 128], strides = [1, 1]} : vector<8x256xf32> to vector<8x128xf32>
    %986 = arith.addf %984, %985 : vector<8x128xf32>
    %987 = vector.extract_strided_slice %980 {offsets = [0, 0], sizes = [8, 32], strides = [1, 1]} : vector<8x128xf32> to vector<8x32xf32>
    %cst_344 = arith.constant 5.000000e-01 : f32
    %988 = vector.broadcast %cst_344 : f32 to vector<8x32xf32>
    %989 = arith.mulf %988, %987 : vector<8x32xf32>
    %990 = math.tanh %989 : vector<8x32xf32>
    %cst_345 = arith.constant 1.000000e+00 : f32
    %991 = vector.broadcast %cst_345 : f32 to vector<8x32xf32>
    %992 = arith.addf %990, %991 : vector<8x32xf32>
    %cst_346 = arith.constant 5.000000e-01 : f32
    %993 = vector.broadcast %cst_346 : f32 to vector<8x32xf32>
    %994 = arith.mulf %993, %992 : vector<8x32xf32>
    %995 = vector.extract_strided_slice %980 {offsets = [0, 32], sizes = [8, 32], strides = [1, 1]} : vector<8x128xf32> to vector<8x32xf32>
    %cst_347 = arith.constant 5.000000e-01 : f32
    %996 = vector.broadcast %cst_347 : f32 to vector<8x32xf32>
    %997 = arith.mulf %996, %995 : vector<8x32xf32>
    %998 = math.tanh %997 : vector<8x32xf32>
    %cst_348 = arith.constant 1.000000e+00 : f32
    %999 = vector.broadcast %cst_348 : f32 to vector<8x32xf32>
    %1000 = arith.addf %998, %999 : vector<8x32xf32>
    %cst_349 = arith.constant 5.000000e-01 : f32
    %1001 = vector.broadcast %cst_349 : f32 to vector<8x32xf32>
    %1002 = arith.mulf %1001, %1000 : vector<8x32xf32>
    %1003 = vector.extract_strided_slice %980 {offsets = [0, 64], sizes = [8, 32], strides = [1, 1]} : vector<8x128xf32> to vector<8x32xf32>
    %1004 = math.tanh %1003 : vector<8x32xf32>
    %1005 = vector.extract_strided_slice %980 {offsets = [0, 96], sizes = [8, 32], strides = [1, 1]} : vector<8x128xf32> to vector<8x32xf32>
    %cst_350 = arith.constant 5.000000e-01 : f32
    %1006 = vector.broadcast %cst_350 : f32 to vector<8x32xf32>
    %1007 = arith.mulf %1006, %1005 : vector<8x32xf32>
    %1008 = math.tanh %1007 : vector<8x32xf32>
    %cst_351 = arith.constant 1.000000e+00 : f32
    %1009 = vector.broadcast %cst_351 : f32 to vector<8x32xf32>
    %1010 = arith.addf %1008, %1009 : vector<8x32xf32>
    %cst_352 = arith.constant 5.000000e-01 : f32
    %1011 = vector.broadcast %cst_352 : f32 to vector<8x32xf32>
    %1012 = arith.mulf %1011, %1010 : vector<8x32xf32>
    %1013 = arith.mulf %1002, %929 : vector<8x32xf32>
    %1014 = arith.mulf %994, %1004 : vector<8x32xf32>
    %1015 = arith.addf %1013, %1014 : vector<8x32xf32>
    %1016 = math.tanh %1015 : vector<8x32xf32>
    %1017 = arith.mulf %1012, %1016 : vector<8x32xf32>
    %1018 = vector.extract_strided_slice %986 {offsets = [0, 0], sizes = [8, 32], strides = [1, 1]} : vector<8x128xf32> to vector<8x32xf32>
    %cst_353 = arith.constant 5.000000e-01 : f32
    %1019 = vector.broadcast %cst_353 : f32 to vector<8x32xf32>
    %1020 = arith.mulf %1019, %1018 : vector<8x32xf32>
    %1021 = math.tanh %1020 : vector<8x32xf32>
    %cst_354 = arith.constant 1.000000e+00 : f32
    %1022 = vector.broadcast %cst_354 : f32 to vector<8x32xf32>
    %1023 = arith.addf %1021, %1022 : vector<8x32xf32>
    %cst_355 = arith.constant 5.000000e-01 : f32
    %1024 = vector.broadcast %cst_355 : f32 to vector<8x32xf32>
    %1025 = arith.mulf %1024, %1023 : vector<8x32xf32>
    %1026 = vector.extract_strided_slice %986 {offsets = [0, 32], sizes = [8, 32], strides = [1, 1]} : vector<8x128xf32> to vector<8x32xf32>
    %cst_356 = arith.constant 5.000000e-01 : f32
    %1027 = vector.broadcast %cst_356 : f32 to vector<8x32xf32>
    %1028 = arith.mulf %1027, %1026 : vector<8x32xf32>
    %1029 = math.tanh %1028 : vector<8x32xf32>
    %cst_357 = arith.constant 1.000000e+00 : f32
    %1030 = vector.broadcast %cst_357 : f32 to vector<8x32xf32>
    %1031 = arith.addf %1029, %1030 : vector<8x32xf32>
    %cst_358 = arith.constant 5.000000e-01 : f32
    %1032 = vector.broadcast %cst_358 : f32 to vector<8x32xf32>
    %1033 = arith.mulf %1032, %1031 : vector<8x32xf32>
    %1034 = vector.extract_strided_slice %986 {offsets = [0, 64], sizes = [8, 32], strides = [1, 1]} : vector<8x128xf32> to vector<8x32xf32>
    %1035 = math.tanh %1034 : vector<8x32xf32>
    %1036 = vector.extract_strided_slice %986 {offsets = [0, 96], sizes = [8, 32], strides = [1, 1]} : vector<8x128xf32> to vector<8x32xf32>
    %cst_359 = arith.constant 5.000000e-01 : f32
    %1037 = vector.broadcast %cst_359 : f32 to vector<8x32xf32>
    %1038 = arith.mulf %1037, %1036 : vector<8x32xf32>
    %1039 = math.tanh %1038 : vector<8x32xf32>
    %cst_360 = arith.constant 1.000000e+00 : f32
    %1040 = vector.broadcast %cst_360 : f32 to vector<8x32xf32>
    %1041 = arith.addf %1039, %1040 : vector<8x32xf32>
    %cst_361 = arith.constant 5.000000e-01 : f32
    %1042 = vector.broadcast %cst_361 : f32 to vector<8x32xf32>
    %1043 = arith.mulf %1042, %1041 : vector<8x32xf32>
    %1044 = arith.mulf %1033, %960 : vector<8x32xf32>
    %1045 = arith.mulf %1025, %1035 : vector<8x32xf32>
    %1046 = arith.addf %1044, %1045 : vector<8x32xf32>
    %1047 = math.tanh %1046 : vector<8x32xf32>
    %1048 = arith.mulf %1043, %1047 : vector<8x32xf32>
    %1049 = arith.index_cast %c3_i32_337 : i32 to index
    %c0_362 = arith.constant 0 : index
    %c0_363 = arith.constant 0 : index
    %1050 = vector.load %arg12[%1049, %c0_362, %c0_363] : memref<8x8x64xf32, #tpu.memory_space<vmem>>, vector<1x8x32xf32>
    %1051 = vector.shape_cast %1050 : vector<1x8x32xf32> to vector<8x32xf32>
    %1052 = vector.shape_cast %1017 : vector<8x32xf32> to vector<1x8x32xf32>
    tpu.vector_store %arg12[%1049, %c0_362, %c0_363], %1052 {strides = array<i32>} : memref<8x8x64xf32, #tpu.memory_space<vmem>>, vector<1x8x32xf32>,
    %1053 = arith.index_cast %973 : i32 to index
    %c0_364 = arith.constant 0 : index
    %c32_365 = arith.constant 32 : index
    %1054 = vector.load %arg12[%1053, %c0_364, %c32_365] : memref<8x8x64xf32, #tpu.memory_space<vmem>>, vector<1x8x32xf32>
    %1055 = vector.shape_cast %1054 : vector<1x8x32xf32> to vector<8x32xf32>
    %1056 = vector.shape_cast %1048 : vector<8x32xf32> to vector<1x8x32xf32>
    tpu.vector_store %arg12[%1053, %c0_364, %c32_365], %1056 {strides = array<i32>} : memref<8x8x64xf32, #tpu.memory_space<vmem>>, vector<1x8x32xf32>,
    %1057 = tpu.concatenate %1017, %1048 in 1 : vector<8x32xf32>, vector<8x32xf32> -> vector<8x64xf32>
    %1058 = arith.truncf %1057 : vector<8x64xf32> to vector<8x64xbf16>
    %c4_i32_366 = arith.constant 4 : i32
    %c7_i32_367 = arith.constant 7 : i32
    %1059 = arith.subi %c7_i32_367, %c4_i32_366 : i32
    %cst_368 = arith.constant dense<0.000000e+00> : vector<8x256xf32>
    %1060 = tpu.matmul %1058, %712, %cst_368 {dimension_numbers = #tpu.dot_dimension_numbers<[1], [0], [0], [1], [0, 0, 1, 1], [], []>} : vector<8x64xbf16>, vector<64x256xbf16>, vector<8x256xf32> -> vector<8x256xf32>
    %1061 = arith.index_cast %c4_i32_366 : i32 to index
    %c0_369 = arith.constant 0 : index
    %c0_370 = arith.constant 0 : index
    %1062 = vector.load %arg11[%1061, %c0_369, %c0_370] : memref<8x8x256xbf16, #tpu.memory_space<vmem>>, vector<1x8x128xbf16>
    %1063 = vector.shape_cast %1062 : vector<1x8x128xbf16> to vector<8x128xbf16>
    %1064 = arith.extf %1063 : vector<8x128xbf16> to vector<8x128xf32>
    %1065 = vector.extract_strided_slice %1060 {offsets = [0, 0], sizes = [8, 128], strides = [1, 1]} : vector<8x256xf32> to vector<8x128xf32>
    %1066 = arith.addf %1064, %1065 : vector<8x128xf32>
    %1067 = arith.index_cast %1059 : i32 to index
    %c0_371 = arith.constant 0 : index
    %c128_372 = arith.constant 128 : index
    %1068 = vector.load %arg11[%1067, %c0_371, %c128_372] : memref<8x8x256xbf16, #tpu.memory_space<vmem>>, vector<1x8x128xbf16>
    %1069 = vector.shape_cast %1068 : vector<1x8x128xbf16> to vector<8x128xbf16>
    %1070 = arith.extf %1069 : vector<8x128xbf16> to vector<8x128xf32>
    %1071 = vector.extract_strided_slice %1060 {offsets = [0, 128], sizes = [8, 128], strides = [1, 1]} : vector<8x256xf32> to vector<8x128xf32>
    %1072 = arith.addf %1070, %1071 : vector<8x128xf32>
    %1073 = vector.extract_strided_slice %1066 {offsets = [0, 0], sizes = [8, 32], strides = [1, 1]} : vector<8x128xf32> to vector<8x32xf32>
    %cst_373 = arith.constant 5.000000e-01 : f32
    %1074 = vector.broadcast %cst_373 : f32 to vector<8x32xf32>
    %1075 = arith.mulf %1074, %1073 : vector<8x32xf32>
    %1076 = math.tanh %1075 : vector<8x32xf32>
    %cst_374 = arith.constant 1.000000e+00 : f32
    %1077 = vector.broadcast %cst_374 : f32 to vector<8x32xf32>
    %1078 = arith.addf %1076, %1077 : vector<8x32xf32>
    %cst_375 = arith.constant 5.000000e-01 : f32
    %1079 = vector.broadcast %cst_375 : f32 to vector<8x32xf32>
    %1080 = arith.mulf %1079, %1078 : vector<8x32xf32>
    %1081 = vector.extract_strided_slice %1066 {offsets = [0, 32], sizes = [8, 32], strides = [1, 1]} : vector<8x128xf32> to vector<8x32xf32>
    %cst_376 = arith.constant 5.000000e-01 : f32
    %1082 = vector.broadcast %cst_376 : f32 to vector<8x32xf32>
    %1083 = arith.mulf %1082, %1081 : vector<8x32xf32>
    %1084 = math.tanh %1083 : vector<8x32xf32>
    %cst_377 = arith.constant 1.000000e+00 : f32
    %1085 = vector.broadcast %cst_377 : f32 to vector<8x32xf32>
    %1086 = arith.addf %1084, %1085 : vector<8x32xf32>
    %cst_378 = arith.constant 5.000000e-01 : f32
    %1087 = vector.broadcast %cst_378 : f32 to vector<8x32xf32>
    %1088 = arith.mulf %1087, %1086 : vector<8x32xf32>
    %1089 = vector.extract_strided_slice %1066 {offsets = [0, 64], sizes = [8, 32], strides = [1, 1]} : vector<8x128xf32> to vector<8x32xf32>
    %1090 = math.tanh %1089 : vector<8x32xf32>
    %1091 = vector.extract_strided_slice %1066 {offsets = [0, 96], sizes = [8, 32], strides = [1, 1]} : vector<8x128xf32> to vector<8x32xf32>
    %cst_379 = arith.constant 5.000000e-01 : f32
    %1092 = vector.broadcast %cst_379 : f32 to vector<8x32xf32>
    %1093 = arith.mulf %1092, %1091 : vector<8x32xf32>
    %1094 = math.tanh %1093 : vector<8x32xf32>
    %cst_380 = arith.constant 1.000000e+00 : f32
    %1095 = vector.broadcast %cst_380 : f32 to vector<8x32xf32>
    %1096 = arith.addf %1094, %1095 : vector<8x32xf32>
    %cst_381 = arith.constant 5.000000e-01 : f32
    %1097 = vector.broadcast %cst_381 : f32 to vector<8x32xf32>
    %1098 = arith.mulf %1097, %1096 : vector<8x32xf32>
    %1099 = arith.mulf %1088, %1015 : vector<8x32xf32>
    %1100 = arith.mulf %1080, %1090 : vector<8x32xf32>
    %1101 = arith.addf %1099, %1100 : vector<8x32xf32>
    %1102 = math.tanh %1101 : vector<8x32xf32>
    %1103 = arith.mulf %1098, %1102 : vector<8x32xf32>
    %1104 = vector.extract_strided_slice %1072 {offsets = [0, 0], sizes = [8, 32], strides = [1, 1]} : vector<8x128xf32> to vector<8x32xf32>
    %cst_382 = arith.constant 5.000000e-01 : f32
    %1105 = vector.broadcast %cst_382 : f32 to vector<8x32xf32>
    %1106 = arith.mulf %1105, %1104 : vector<8x32xf32>
    %1107 = math.tanh %1106 : vector<8x32xf32>
    %cst_383 = arith.constant 1.000000e+00 : f32
    %1108 = vector.broadcast %cst_383 : f32 to vector<8x32xf32>
    %1109 = arith.addf %1107, %1108 : vector<8x32xf32>
    %cst_384 = arith.constant 5.000000e-01 : f32
    %1110 = vector.broadcast %cst_384 : f32 to vector<8x32xf32>
    %1111 = arith.mulf %1110, %1109 : vector<8x32xf32>
    %1112 = vector.extract_strided_slice %1072 {offsets = [0, 32], sizes = [8, 32], strides = [1, 1]} : vector<8x128xf32> to vector<8x32xf32>
    %cst_385 = arith.constant 5.000000e-01 : f32
    %1113 = vector.broadcast %cst_385 : f32 to vector<8x32xf32>
    %1114 = arith.mulf %1113, %1112 : vector<8x32xf32>
    %1115 = math.tanh %1114 : vector<8x32xf32>
    %cst_386 = arith.constant 1.000000e+00 : f32
    %1116 = vector.broadcast %cst_386 : f32 to vector<8x32xf32>
    %1117 = arith.addf %1115, %1116 : vector<8x32xf32>
    %cst_387 = arith.constant 5.000000e-01 : f32
    %1118 = vector.broadcast %cst_387 : f32 to vector<8x32xf32>
    %1119 = arith.mulf %1118, %1117 : vector<8x32xf32>
    %1120 = vector.extract_strided_slice %1072 {offsets = [0, 64], sizes = [8, 32], strides = [1, 1]} : vector<8x128xf32> to vector<8x32xf32>
    %1121 = math.tanh %1120 : vector<8x32xf32>
    %1122 = vector.extract_strided_slice %1072 {offsets = [0, 96], sizes = [8, 32], strides = [1, 1]} : vector<8x128xf32> to vector<8x32xf32>
    %cst_388 = arith.constant 5.000000e-01 : f32
    %1123 = vector.broadcast %cst_388 : f32 to vector<8x32xf32>
    %1124 = arith.mulf %1123, %1122 : vector<8x32xf32>
    %1125 = math.tanh %1124 : vector<8x32xf32>
    %cst_389 = arith.constant 1.000000e+00 : f32
    %1126 = vector.broadcast %cst_389 : f32 to vector<8x32xf32>
    %1127 = arith.addf %1125, %1126 : vector<8x32xf32>
    %cst_390 = arith.constant 5.000000e-01 : f32
    %1128 = vector.broadcast %cst_390 : f32 to vector<8x32xf32>
    %1129 = arith.mulf %1128, %1127 : vector<8x32xf32>
    %1130 = arith.mulf %1119, %1046 : vector<8x32xf32>
    %1131 = arith.mulf %1111, %1121 : vector<8x32xf32>
    %1132 = arith.addf %1130, %1131 : vector<8x32xf32>
    %1133 = math.tanh %1132 : vector<8x32xf32>
    %1134 = arith.mulf %1129, %1133 : vector<8x32xf32>
    %1135 = arith.index_cast %c4_i32_366 : i32 to index
    %c0_391 = arith.constant 0 : index
    %c0_392 = arith.constant 0 : index
    %1136 = vector.load %arg12[%1135, %c0_391, %c0_392] : memref<8x8x64xf32, #tpu.memory_space<vmem>>, vector<1x8x32xf32>
    %1137 = vector.shape_cast %1136 : vector<1x8x32xf32> to vector<8x32xf32>
    %1138 = vector.shape_cast %1103 : vector<8x32xf32> to vector<1x8x32xf32>
    tpu.vector_store %arg12[%1135, %c0_391, %c0_392], %1138 {strides = array<i32>} : memref<8x8x64xf32, #tpu.memory_space<vmem>>, vector<1x8x32xf32>,
    %1139 = arith.index_cast %1059 : i32 to index
    %c0_393 = arith.constant 0 : index
    %c32_394 = arith.constant 32 : index
    %1140 = vector.load %arg12[%1139, %c0_393, %c32_394] : memref<8x8x64xf32, #tpu.memory_space<vmem>>, vector<1x8x32xf32>
    %1141 = vector.shape_cast %1140 : vector<1x8x32xf32> to vector<8x32xf32>
    %1142 = vector.shape_cast %1134 : vector<8x32xf32> to vector<1x8x32xf32>
    tpu.vector_store %arg12[%1139, %c0_393, %c32_394], %1142 {strides = array<i32>} : memref<8x8x64xf32, #tpu.memory_space<vmem>>, vector<1x8x32xf32>,
    %1143 = tpu.concatenate %1103, %1134 in 1 : vector<8x32xf32>, vector<8x32xf32> -> vector<8x64xf32>
    %1144 = arith.truncf %1143 : vector<8x64xf32> to vector<8x64xbf16>
    %c5_i32_395 = arith.constant 5 : i32
    %c7_i32_396 = arith.constant 7 : i32
    %1145 = arith.subi %c7_i32_396, %c5_i32_395 : i32
    %cst_397 = arith.constant dense<0.000000e+00> : vector<8x256xf32>
    %1146 = tpu.matmul %1144, %712, %cst_397 {dimension_numbers = #tpu.dot_dimension_numbers<[1], [0], [0], [1], [0, 0, 1, 1], [], []>} : vector<8x64xbf16>, vector<64x256xbf16>, vector<8x256xf32> -> vector<8x256xf32>
    %1147 = arith.index_cast %c5_i32_395 : i32 to index
    %c0_398 = arith.constant 0 : index
    %c0_399 = arith.constant 0 : index
    %1148 = vector.load %arg11[%1147, %c0_398, %c0_399] : memref<8x8x256xbf16, #tpu.memory_space<vmem>>, vector<1x8x128xbf16>
    %1149 = vector.shape_cast %1148 : vector<1x8x128xbf16> to vector<8x128xbf16>
    %1150 = arith.extf %1149 : vector<8x128xbf16> to vector<8x128xf32>
    %1151 = vector.extract_strided_slice %1146 {offsets = [0, 0], sizes = [8, 128], strides = [1, 1]} : vector<8x256xf32> to vector<8x128xf32>
    %1152 = arith.addf %1150, %1151 : vector<8x128xf32>
    %1153 = arith.index_cast %1145 : i32 to index
    %c0_400 = arith.constant 0 : index
    %c128_401 = arith.constant 128 : index
    %1154 = vector.load %arg11[%1153, %c0_400, %c128_401] : memref<8x8x256xbf16, #tpu.memory_space<vmem>>, vector<1x8x128xbf16>
    %1155 = vector.shape_cast %1154 : vector<1x8x128xbf16> to vector<8x128xbf16>
    %1156 = arith.extf %1155 : vector<8x128xbf16> to vector<8x128xf32>
    %1157 = vector.extract_strided_slice %1146 {offsets = [0, 128], sizes = [8, 128], strides = [1, 1]} : vector<8x256xf32> to vector<8x128xf32>
    %1158 = arith.addf %1156, %1157 : vector<8x128xf32>
    %1159 = vector.extract_strided_slice %1152 {offsets = [0, 0], sizes = [8, 32], strides = [1, 1]} : vector<8x128xf32> to vector<8x32xf32>
    %cst_402 = arith.constant 5.000000e-01 : f32
    %1160 = vector.broadcast %cst_402 : f32 to vector<8x32xf32>
    %1161 = arith.mulf %1160, %1159 : vector<8x32xf32>
    %1162 = math.tanh %1161 : vector<8x32xf32>
    %cst_403 = arith.constant 1.000000e+00 : f32
    %1163 = vector.broadcast %cst_403 : f32 to vector<8x32xf32>
    %1164 = arith.addf %1162, %1163 : vector<8x32xf32>
    %cst_404 = arith.constant 5.000000e-01 : f32
    %1165 = vector.broadcast %cst_404 : f32 to vector<8x32xf32>
    %1166 = arith.mulf %1165, %1164 : vector<8x32xf32>
    %1167 = vector.extract_strided_slice %1152 {offsets = [0, 32], sizes = [8, 32], strides = [1, 1]} : vector<8x128xf32> to vector<8x32xf32>
    %cst_405 = arith.constant 5.000000e-01 : f32
    %1168 = vector.broadcast %cst_405 : f32 to vector<8x32xf32>
    %1169 = arith.mulf %1168, %1167 : vector<8x32xf32>
    %1170 = math.tanh %1169 : vector<8x32xf32>
    %cst_406 = arith.constant 1.000000e+00 : f32
    %1171 = vector.broadcast %cst_406 : f32 to vector<8x32xf32>
    %1172 = arith.addf %1170, %1171 : vector<8x32xf32>
    %cst_407 = arith.constant 5.000000e-01 : f32
    %1173 = vector.broadcast %cst_407 : f32 to vector<8x32xf32>
    %1174 = arith.mulf %1173, %1172 : vector<8x32xf32>
    %1175 = vector.extract_strided_slice %1152 {offsets = [0, 64], sizes = [8, 32], strides = [1, 1]} : vector<8x128xf32> to vector<8x32xf32>
    %1176 = math.tanh %1175 : vector<8x32xf32>
    %1177 = vector.extract_strided_slice %1152 {offsets = [0, 96], sizes = [8, 32], strides = [1, 1]} : vector<8x128xf32> to vector<8x32xf32>
    %cst_408 = arith.constant 5.000000e-01 : f32
    %1178 = vector.broadcast %cst_408 : f32 to vector<8x32xf32>
    %1179 = arith.mulf %1178, %1177 : vector<8x32xf32>
    %1180 = math.tanh %1179 : vector<8x32xf32>
    %cst_409 = arith.constant 1.000000e+00 : f32
    %1181 = vector.broadcast %cst_409 : f32 to vector<8x32xf32>
    %1182 = arith.addf %1180, %1181 : vector<8x32xf32>
    %cst_410 = arith.constant 5.000000e-01 : f32
    %1183 = vector.broadcast %cst_410 : f32 to vector<8x32xf32>
    %1184 = arith.mulf %1183, %1182 : vector<8x32xf32>
    %1185 = arith.mulf %1174, %1101 : vector<8x32xf32>
    %1186 = arith.mulf %1166, %1176 : vector<8x32xf32>
    %1187 = arith.addf %1185, %1186 : vector<8x32xf32>
    %1188 = math.tanh %1187 : vector<8x32xf32>
    %1189 = arith.mulf %1184, %1188 : vector<8x32xf32>
    %1190 = vector.extract_strided_slice %1158 {offsets = [0, 0], sizes = [8, 32], strides = [1, 1]} : vector<8x128xf32> to vector<8x32xf32>
    %cst_411 = arith.constant 5.000000e-01 : f32
    %1191 = vector.broadcast %cst_411 : f32 to vector<8x32xf32>
    %1192 = arith.mulf %1191, %1190 : vector<8x32xf32>
    %1193 = math.tanh %1192 : vector<8x32xf32>
    %cst_412 = arith.constant 1.000000e+00 : f32
    %1194 = vector.broadcast %cst_412 : f32 to vector<8x32xf32>
    %1195 = arith.addf %1193, %1194 : vector<8x32xf32>
    %cst_413 = arith.constant 5.000000e-01 : f32
    %1196 = vector.broadcast %cst_413 : f32 to vector<8x32xf32>
    %1197 = arith.mulf %1196, %1195 : vector<8x32xf32>
    %1198 = vector.extract_strided_slice %1158 {offsets = [0, 32], sizes = [8, 32], strides = [1, 1]} : vector<8x128xf32> to vector<8x32xf32>
    %cst_414 = arith.constant 5.000000e-01 : f32
    %1199 = vector.broadcast %cst_414 : f32 to vector<8x32xf32>
    %1200 = arith.mulf %1199, %1198 : vector<8x32xf32>
    %1201 = math.tanh %1200 : vector<8x32xf32>
    %cst_415 = arith.constant 1.000000e+00 : f32
    %1202 = vector.broadcast %cst_415 : f32 to vector<8x32xf32>
    %1203 = arith.addf %1201, %1202 : vector<8x32xf32>
    %cst_416 = arith.constant 5.000000e-01 : f32
    %1204 = vector.broadcast %cst_416 : f32 to vector<8x32xf32>
    %1205 = arith.mulf %1204, %1203 : vector<8x32xf32>
    %1206 = vector.extract_strided_slice %1158 {offsets = [0, 64], sizes = [8, 32], strides = [1, 1]} : vector<8x128xf32> to vector<8x32xf32>
    %1207 = math.tanh %1206 : vector<8x32xf32>
    %1208 = vector.extract_strided_slice %1158 {offsets = [0, 96], sizes = [8, 32], strides = [1, 1]} : vector<8x128xf32> to vector<8x32xf32>
    %cst_417 = arith.constant 5.000000e-01 : f32
    %1209 = vector.broadcast %cst_417 : f32 to vector<8x32xf32>
    %1210 = arith.mulf %1209, %1208 : vector<8x32xf32>
    %1211 = math.tanh %1210 : vector<8x32xf32>
    %cst_418 = arith.constant 1.000000e+00 : f32
    %1212 = vector.broadcast %cst_418 : f32 to vector<8x32xf32>
    %1213 = arith.addf %1211, %1212 : vector<8x32xf32>
    %cst_419 = arith.constant 5.000000e-01 : f32
    %1214 = vector.broadcast %cst_419 : f32 to vector<8x32xf32>
    %1215 = arith.mulf %1214, %1213 : vector<8x32xf32>
    %1216 = arith.mulf %1205, %1132 : vector<8x32xf32>
    %1217 = arith.mulf %1197, %1207 : vector<8x32xf32>
    %1218 = arith.addf %1216, %1217 : vector<8x32xf32>
    %1219 = math.tanh %1218 : vector<8x32xf32>
    %1220 = arith.mulf %1215, %1219 : vector<8x32xf32>
    %1221 = arith.index_cast %c5_i32_395 : i32 to index
    %c0_420 = arith.constant 0 : index
    %c0_421 = arith.constant 0 : index
    %1222 = vector.load %arg12[%1221, %c0_420, %c0_421] : memref<8x8x64xf32, #tpu.memory_space<vmem>>, vector<1x8x32xf32>
    %1223 = vector.shape_cast %1222 : vector<1x8x32xf32> to vector<8x32xf32>
    %1224 = vector.shape_cast %1189 : vector<8x32xf32> to vector<1x8x32xf32>
    tpu.vector_store %arg12[%1221, %c0_420, %c0_421], %1224 {strides = array<i32>} : memref<8x8x64xf32, #tpu.memory_space<vmem>>, vector<1x8x32xf32>,
    %1225 = arith.index_cast %1145 : i32 to index
    %c0_422 = arith.constant 0 : index
    %c32_423 = arith.constant 32 : index
    %1226 = vector.load %arg12[%1225, %c0_422, %c32_423] : memref<8x8x64xf32, #tpu.memory_space<vmem>>, vector<1x8x32xf32>
    %1227 = vector.shape_cast %1226 : vector<1x8x32xf32> to vector<8x32xf32>
    %1228 = vector.shape_cast %1220 : vector<8x32xf32> to vector<1x8x32xf32>
    tpu.vector_store %arg12[%1225, %c0_422, %c32_423], %1228 {strides = array<i32>} : memref<8x8x64xf32, #tpu.memory_space<vmem>>, vector<1x8x32xf32>,
    %1229 = tpu.concatenate %1189, %1220 in 1 : vector<8x32xf32>, vector<8x32xf32> -> vector<8x64xf32>
    %1230 = arith.truncf %1229 : vector<8x64xf32> to vector<8x64xbf16>
    %c6_i32_424 = arith.constant 6 : i32
    %c7_i32_425 = arith.constant 7 : i32
    %1231 = arith.subi %c7_i32_425, %c6_i32_424 : i32
    %cst_426 = arith.constant dense<0.000000e+00> : vector<8x256xf32>
    %1232 = tpu.matmul %1230, %712, %cst_426 {dimension_numbers = #tpu.dot_dimension_numbers<[1], [0], [0], [1], [0, 0, 1, 1], [], []>} : vector<8x64xbf16>, vector<64x256xbf16>, vector<8x256xf32> -> vector<8x256xf32>
    %1233 = arith.index_cast %c6_i32_424 : i32 to index
    %c0_427 = arith.constant 0 : index
    %c0_428 = arith.constant 0 : index
    %1234 = vector.load %arg11[%1233, %c0_427, %c0_428] : memref<8x8x256xbf16, #tpu.memory_space<vmem>>, vector<1x8x128xbf16>
    %1235 = vector.shape_cast %1234 : vector<1x8x128xbf16> to vector<8x128xbf16>
    %1236 = arith.extf %1235 : vector<8x128xbf16> to vector<8x128xf32>
    %1237 = vector.extract_strided_slice %1232 {offsets = [0, 0], sizes = [8, 128], strides = [1, 1]} : vector<8x256xf32> to vector<8x128xf32>
    %1238 = arith.addf %1236, %1237 : vector<8x128xf32>
    %1239 = arith.index_cast %1231 : i32 to index
    %c0_429 = arith.constant 0 : index
    %c128_430 = arith.constant 128 : index
    %1240 = vector.load %arg11[%1239, %c0_429, %c128_430] : memref<8x8x256xbf16, #tpu.memory_space<vmem>>, vector<1x8x128xbf16>
    %1241 = vector.shape_cast %1240 : vector<1x8x128xbf16> to vector<8x128xbf16>
    %1242 = arith.extf %1241 : vector<8x128xbf16> to vector<8x128xf32>
    %1243 = vector.extract_strided_slice %1232 {offsets = [0, 128], sizes = [8, 128], strides = [1, 1]} : vector<8x256xf32> to vector<8x128xf32>
    %1244 = arith.addf %1242, %1243 : vector<8x128xf32>
    %1245 = vector.extract_strided_slice %1238 {offsets = [0, 0], sizes = [8, 32], strides = [1, 1]} : vector<8x128xf32> to vector<8x32xf32>
    %cst_431 = arith.constant 5.000000e-01 : f32
    %1246 = vector.broadcast %cst_431 : f32 to vector<8x32xf32>
    %1247 = arith.mulf %1246, %1245 : vector<8x32xf32>
    %1248 = math.tanh %1247 : vector<8x32xf32>
    %cst_432 = arith.constant 1.000000e+00 : f32
    %1249 = vector.broadcast %cst_432 : f32 to vector<8x32xf32>
    %1250 = arith.addf %1248, %1249 : vector<8x32xf32>
    %cst_433 = arith.constant 5.000000e-01 : f32
    %1251 = vector.broadcast %cst_433 : f32 to vector<8x32xf32>
    %1252 = arith.mulf %1251, %1250 : vector<8x32xf32>
    %1253 = vector.extract_strided_slice %1238 {offsets = [0, 32], sizes = [8, 32], strides = [1, 1]} : vector<8x128xf32> to vector<8x32xf32>
    %cst_434 = arith.constant 5.000000e-01 : f32
    %1254 = vector.broadcast %cst_434 : f32 to vector<8x32xf32>
    %1255 = arith.mulf %1254, %1253 : vector<8x32xf32>
    %1256 = math.tanh %1255 : vector<8x32xf32>
    %cst_435 = arith.constant 1.000000e+00 : f32
    %1257 = vector.broadcast %cst_435 : f32 to vector<8x32xf32>
    %1258 = arith.addf %1256, %1257 : vector<8x32xf32>
    %cst_436 = arith.constant 5.000000e-01 : f32
    %1259 = vector.broadcast %cst_436 : f32 to vector<8x32xf32>
    %1260 = arith.mulf %1259, %1258 : vector<8x32xf32>
    %1261 = vector.extract_strided_slice %1238 {offsets = [0, 64], sizes = [8, 32], strides = [1, 1]} : vector<8x128xf32> to vector<8x32xf32>
    %1262 = math.tanh %1261 : vector<8x32xf32>
    %1263 = vector.extract_strided_slice %1238 {offsets = [0, 96], sizes = [8, 32], strides = [1, 1]} : vector<8x128xf32> to vector<8x32xf32>
    %cst_437 = arith.constant 5.000000e-01 : f32
    %1264 = vector.broadcast %cst_437 : f32 to vector<8x32xf32>
    %1265 = arith.mulf %1264, %1263 : vector<8x32xf32>
    %1266 = math.tanh %1265 : vector<8x32xf32>
    %cst_438 = arith.constant 1.000000e+00 : f32
    %1267 = vector.broadcast %cst_438 : f32 to vector<8x32xf32>
    %1268 = arith.addf %1266, %1267 : vector<8x32xf32>
    %cst_439 = arith.constant 5.000000e-01 : f32
    %1269 = vector.broadcast %cst_439 : f32 to vector<8x32xf32>
    %1270 = arith.mulf %1269, %1268 : vector<8x32xf32>
    %1271 = arith.mulf %1260, %1187 : vector<8x32xf32>
    %1272 = arith.mulf %1252, %1262 : vector<8x32xf32>
    %1273 = arith.addf %1271, %1272 : vector<8x32xf32>
    %1274 = math.tanh %1273 : vector<8x32xf32>
    %1275 = arith.mulf %1270, %1274 : vector<8x32xf32>
    %1276 = vector.extract_strided_slice %1244 {offsets = [0, 0], sizes = [8, 32], strides = [1, 1]} : vector<8x128xf32> to vector<8x32xf32>
    %cst_440 = arith.constant 5.000000e-01 : f32
    %1277 = vector.broadcast %cst_440 : f32 to vector<8x32xf32>
    %1278 = arith.mulf %1277, %1276 : vector<8x32xf32>
    %1279 = math.tanh %1278 : vector<8x32xf32>
    %cst_441 = arith.constant 1.000000e+00 : f32
    %1280 = vector.broadcast %cst_441 : f32 to vector<8x32xf32>
    %1281 = arith.addf %1279, %1280 : vector<8x32xf32>
    %cst_442 = arith.constant 5.000000e-01 : f32
    %1282 = vector.broadcast %cst_442 : f32 to vector<8x32xf32>
    %1283 = arith.mulf %1282, %1281 : vector<8x32xf32>
    %1284 = vector.extract_strided_slice %1244 {offsets = [0, 32], sizes = [8, 32], strides = [1, 1]} : vector<8x128xf32> to vector<8x32xf32>
    %cst_443 = arith.constant 5.000000e-01 : f32
    %1285 = vector.broadcast %cst_443 : f32 to vector<8x32xf32>
    %1286 = arith.mulf %1285, %1284 : vector<8x32xf32>
    %1287 = math.tanh %1286 : vector<8x32xf32>
    %cst_444 = arith.constant 1.000000e+00 : f32
    %1288 = vector.broadcast %cst_444 : f32 to vector<8x32xf32>
    %1289 = arith.addf %1287, %1288 : vector<8x32xf32>
    %cst_445 = arith.constant 5.000000e-01 : f32
    %1290 = vector.broadcast %cst_445 : f32 to vector<8x32xf32>
    %1291 = arith.mulf %1290, %1289 : vector<8x32xf32>
    %1292 = vector.extract_strided_slice %1244 {offsets = [0, 64], sizes = [8, 32], strides = [1, 1]} : vector<8x128xf32> to vector<8x32xf32>
    %1293 = math.tanh %1292 : vector<8x32xf32>
    %1294 = vector.extract_strided_slice %1244 {offsets = [0, 96], sizes = [8, 32], strides = [1, 1]} : vector<8x128xf32> to vector<8x32xf32>
    %cst_446 = arith.constant 5.000000e-01 : f32
    %1295 = vector.broadcast %cst_446 : f32 to vector<8x32xf32>
    %1296 = arith.mulf %1295, %1294 : vector<8x32xf32>
    %1297 = math.tanh %1296 : vector<8x32xf32>
    %cst_447 = arith.constant 1.000000e+00 : f32
    %1298 = vector.broadcast %cst_447 : f32 to vector<8x32xf32>
    %1299 = arith.addf %1297, %1298 : vector<8x32xf32>
    %cst_448 = arith.constant 5.000000e-01 : f32
    %1300 = vector.broadcast %cst_448 : f32 to vector<8x32xf32>
    %1301 = arith.mulf %1300, %1299 : vector<8x32xf32>
    %1302 = arith.mulf %1291, %1218 : vector<8x32xf32>
    %1303 = arith.mulf %1283, %1293 : vector<8x32xf32>
    %1304 = arith.addf %1302, %1303 : vector<8x32xf32>
    %1305 = math.tanh %1304 : vector<8x32xf32>
    %1306 = arith.mulf %1301, %1305 : vector<8x32xf32>
    %1307 = arith.index_cast %c6_i32_424 : i32 to index
    %c0_449 = arith.constant 0 : index
    %c0_450 = arith.constant 0 : index
    %1308 = vector.load %arg12[%1307, %c0_449, %c0_450] : memref<8x8x64xf32, #tpu.memory_space<vmem>>, vector<1x8x32xf32>
    %1309 = vector.shape_cast %1308 : vector<1x8x32xf32> to vector<8x32xf32>
    %1310 = vector.shape_cast %1275 : vector<8x32xf32> to vector<1x8x32xf32>
    tpu.vector_store %arg12[%1307, %c0_449, %c0_450], %1310 {strides = array<i32>} : memref<8x8x64xf32, #tpu.memory_space<vmem>>, vector<1x8x32xf32>,
    %1311 = arith.index_cast %1231 : i32 to index
    %c0_451 = arith.constant 0 : index
    %c32_452 = arith.constant 32 : index
    %1312 = vector.load %arg12[%1311, %c0_451, %c32_452] : memref<8x8x64xf32, #tpu.memory_space<vmem>>, vector<1x8x32xf32>
    %1313 = vector.shape_cast %1312 : vector<1x8x32xf32> to vector<8x32xf32>
    %1314 = vector.shape_cast %1306 : vector<8x32xf32> to vector<1x8x32xf32>
    tpu.vector_store %arg12[%1311, %c0_451, %c32_452], %1314 {strides = array<i32>} : memref<8x8x64xf32, #tpu.memory_space<vmem>>, vector<1x8x32xf32>,
    %1315 = tpu.concatenate %1275, %1306 in 1 : vector<8x32xf32>, vector<8x32xf32> -> vector<8x64xf32>
    %1316 = arith.truncf %1315 : vector<8x64xf32> to vector<8x64xbf16>
    %c7_i32_453 = arith.constant 7 : i32
    %c7_i32_454 = arith.constant 7 : i32
    %1317 = arith.subi %c7_i32_454, %c7_i32_453 : i32
    %cst_455 = arith.constant dense<0.000000e+00> : vector<8x256xf32>
    %1318 = tpu.matmul %1316, %712, %cst_455 {dimension_numbers = #tpu.dot_dimension_numbers<[1], [0], [0], [1], [0, 0, 1, 1], [], []>} : vector<8x64xbf16>, vector<64x256xbf16>, vector<8x256xf32> -> vector<8x256xf32>
    %1319 = arith.index_cast %c7_i32_453 : i32 to index
    %c0_456 = arith.constant 0 : index
    %c0_457 = arith.constant 0 : index
    %1320 = vector.load %arg11[%1319, %c0_456, %c0_457] : memref<8x8x256xbf16, #tpu.memory_space<vmem>>, vector<1x8x128xbf16>
    %1321 = vector.shape_cast %1320 : vector<1x8x128xbf16> to vector<8x128xbf16>
    %1322 = arith.extf %1321 : vector<8x128xbf16> to vector<8x128xf32>
    %1323 = vector.extract_strided_slice %1318 {offsets = [0, 0], sizes = [8, 128], strides = [1, 1]} : vector<8x256xf32> to vector<8x128xf32>
    %1324 = arith.addf %1322, %1323 : vector<8x128xf32>
    %1325 = arith.index_cast %1317 : i32 to index
    %c0_458 = arith.constant 0 : index
    %c128_459 = arith.constant 128 : index
    %1326 = vector.load %arg11[%1325, %c0_458, %c128_459] : memref<8x8x256xbf16, #tpu.memory_space<vmem>>, vector<1x8x128xbf16>
    %1327 = vector.shape_cast %1326 : vector<1x8x128xbf16> to vector<8x128xbf16>
    %1328 = arith.extf %1327 : vector<8x128xbf16> to vector<8x128xf32>
    %1329 = vector.extract_strided_slice %1318 {offsets = [0, 128], sizes = [8, 128], strides = [1, 1]} : vector<8x256xf32> to vector<8x128xf32>
    %1330 = arith.addf %1328, %1329 : vector<8x128xf32>
    %1331 = vector.extract_strided_slice %1324 {offsets = [0, 0], sizes = [8, 32], strides = [1, 1]} : vector<8x128xf32> to vector<8x32xf32>
    %cst_460 = arith.constant 5.000000e-01 : f32
    %1332 = vector.broadcast %cst_460 : f32 to vector<8x32xf32>
    %1333 = arith.mulf %1332, %1331 : vector<8x32xf32>
    %1334 = math.tanh %1333 : vector<8x32xf32>
    %cst_461 = arith.constant 1.000000e+00 : f32
    %1335 = vector.broadcast %cst_461 : f32 to vector<8x32xf32>
    %1336 = arith.addf %1334, %1335 : vector<8x32xf32>
    %cst_462 = arith.constant 5.000000e-01 : f32
    %1337 = vector.broadcast %cst_462 : f32 to vector<8x32xf32>
    %1338 = arith.mulf %1337, %1336 : vector<8x32xf32>
    %1339 = vector.extract_strided_slice %1324 {offsets = [0, 32], sizes = [8, 32], strides = [1, 1]} : vector<8x128xf32> to vector<8x32xf32>
    %cst_463 = arith.constant 5.000000e-01 : f32
    %1340 = vector.broadcast %cst_463 : f32 to vector<8x32xf32>
    %1341 = arith.mulf %1340, %1339 : vector<8x32xf32>
    %1342 = math.tanh %1341 : vector<8x32xf32>
    %cst_464 = arith.constant 1.000000e+00 : f32
    %1343 = vector.broadcast %cst_464 : f32 to vector<8x32xf32>
    %1344 = arith.addf %1342, %1343 : vector<8x32xf32>
    %cst_465 = arith.constant 5.000000e-01 : f32
    %1345 = vector.broadcast %cst_465 : f32 to vector<8x32xf32>
    %1346 = arith.mulf %1345, %1344 : vector<8x32xf32>
    %1347 = vector.extract_strided_slice %1324 {offsets = [0, 64], sizes = [8, 32], strides = [1, 1]} : vector<8x128xf32> to vector<8x32xf32>
    %1348 = math.tanh %1347 : vector<8x32xf32>
    %1349 = vector.extract_strided_slice %1324 {offsets = [0, 96], sizes = [8, 32], strides = [1, 1]} : vector<8x128xf32> to vector<8x32xf32>
    %cst_466 = arith.constant 5.000000e-01 : f32
    %1350 = vector.broadcast %cst_466 : f32 to vector<8x32xf32>
    %1351 = arith.mulf %1350, %1349 : vector<8x32xf32>
    %1352 = math.tanh %1351 : vector<8x32xf32>
    %cst_467 = arith.constant 1.000000e+00 : f32
    %1353 = vector.broadcast %cst_467 : f32 to vector<8x32xf32>
    %1354 = arith.addf %1352, %1353 : vector<8x32xf32>
    %cst_468 = arith.constant 5.000000e-01 : f32
    %1355 = vector.broadcast %cst_468 : f32 to vector<8x32xf32>
    %1356 = arith.mulf %1355, %1354 : vector<8x32xf32>
    %1357 = arith.mulf %1346, %1273 : vector<8x32xf32>
    %1358 = arith.mulf %1338, %1348 : vector<8x32xf32>
    %1359 = arith.addf %1357, %1358 : vector<8x32xf32>
    %1360 = math.tanh %1359 : vector<8x32xf32>
    %1361 = arith.mulf %1356, %1360 : vector<8x32xf32>
    %1362 = vector.extract_strided_slice %1330 {offsets = [0, 0], sizes = [8, 32], strides = [1, 1]} : vector<8x128xf32> to vector<8x32xf32>
    %cst_469 = arith.constant 5.000000e-01 : f32
    %1363 = vector.broadcast %cst_469 : f32 to vector<8x32xf32>
    %1364 = arith.mulf %1363, %1362 : vector<8x32xf32>
    %1365 = math.tanh %1364 : vector<8x32xf32>
    %cst_470 = arith.constant 1.000000e+00 : f32
    %1366 = vector.broadcast %cst_470 : f32 to vector<8x32xf32>
    %1367 = arith.addf %1365, %1366 : vector<8x32xf32>
    %cst_471 = arith.constant 5.000000e-01 : f32
    %1368 = vector.broadcast %cst_471 : f32 to vector<8x32xf32>
    %1369 = arith.mulf %1368, %1367 : vector<8x32xf32>
    %1370 = vector.extract_strided_slice %1330 {offsets = [0, 32], sizes = [8, 32], strides = [1, 1]} : vector<8x128xf32> to vector<8x32xf32>
    %cst_472 = arith.constant 5.000000e-01 : f32
    %1371 = vector.broadcast %cst_472 : f32 to vector<8x32xf32>
    %1372 = arith.mulf %1371, %1370 : vector<8x32xf32>
    %1373 = math.tanh %1372 : vector<8x32xf32>
    %cst_473 = arith.constant 1.000000e+00 : f32
    %1374 = vector.broadcast %cst_473 : f32 to vector<8x32xf32>
    %1375 = arith.addf %1373, %1374 : vector<8x32xf32>
    %cst_474 = arith.constant 5.000000e-01 : f32
    %1376 = vector.broadcast %cst_474 : f32 to vector<8x32xf32>
    %1377 = arith.mulf %1376, %1375 : vector<8x32xf32>
    %1378 = vector.extract_strided_slice %1330 {offsets = [0, 64], sizes = [8, 32], strides = [1, 1]} : vector<8x128xf32> to vector<8x32xf32>
    %1379 = math.tanh %1378 : vector<8x32xf32>
    %1380 = vector.extract_strided_slice %1330 {offsets = [0, 96], sizes = [8, 32], strides = [1, 1]} : vector<8x128xf32> to vector<8x32xf32>
    %cst_475 = arith.constant 5.000000e-01 : f32
    %1381 = vector.broadcast %cst_475 : f32 to vector<8x32xf32>
    %1382 = arith.mulf %1381, %1380 : vector<8x32xf32>
    %1383 = math.tanh %1382 : vector<8x32xf32>
    %cst_476 = arith.constant 1.000000e+00 : f32
    %1384 = vector.broadcast %cst_476 : f32 to vector<8x32xf32>
    %1385 = arith.addf %1383, %1384 : vector<8x32xf32>
    %cst_477 = arith.constant 5.000000e-01 : f32
    %1386 = vector.broadcast %cst_477 : f32 to vector<8x32xf32>
    %1387 = arith.mulf %1386, %1385 : vector<8x32xf32>
    %1388 = arith.mulf %1377, %1304 : vector<8x32xf32>
    %1389 = arith.mulf %1369, %1379 : vector<8x32xf32>
    %1390 = arith.addf %1388, %1389 : vector<8x32xf32>
    %1391 = math.tanh %1390 : vector<8x32xf32>
    %1392 = arith.mulf %1387, %1391 : vector<8x32xf32>
    %1393 = arith.index_cast %c7_i32_453 : i32 to index
    %c0_478 = arith.constant 0 : index
    %c0_479 = arith.constant 0 : index
    %1394 = vector.load %arg12[%1393, %c0_478, %c0_479] : memref<8x8x64xf32, #tpu.memory_space<vmem>>, vector<1x8x32xf32>
    %1395 = vector.shape_cast %1394 : vector<1x8x32xf32> to vector<8x32xf32>
    %1396 = vector.shape_cast %1361 : vector<8x32xf32> to vector<1x8x32xf32>
    tpu.vector_store %arg12[%1393, %c0_478, %c0_479], %1396 {strides = array<i32>} : memref<8x8x64xf32, #tpu.memory_space<vmem>>, vector<1x8x32xf32>,
    %1397 = arith.index_cast %1317 : i32 to index
    %c0_480 = arith.constant 0 : index
    %c32_481 = arith.constant 32 : index
    %1398 = vector.load %arg12[%1397, %c0_480, %c32_481] : memref<8x8x64xf32, #tpu.memory_space<vmem>>, vector<1x8x32xf32>
    %1399 = vector.shape_cast %1398 : vector<1x8x32xf32> to vector<8x32xf32>
    %1400 = vector.shape_cast %1392 : vector<8x32xf32> to vector<1x8x32xf32>
    tpu.vector_store %arg12[%1397, %c0_480, %c32_481], %1400 {strides = array<i32>} : memref<8x8x64xf32, #tpu.memory_space<vmem>>, vector<1x8x32xf32>,
    %1401 = tpu.concatenate %1361, %1392 in 1 : vector<8x32xf32>, vector<8x32xf32> -> vector<8x64xf32>
    %1402 = arith.truncf %1401 : vector<8x64xf32> to vector<8x64xbf16>
    %c8_i32_482 = arith.constant 8 : i32
    %c0_483 = arith.constant 0 : index
    %c0_484 = arith.constant 0 : index
    %c0_485 = arith.constant 0 : index
    %1403 = vector.load %arg12[%c0_483, %c0_484, %c0_485] : memref<8x8x64xf32, #tpu.memory_space<vmem>>, vector<8x8x64xf32>
    %1404 = vector.shape_cast %1403 : vector<8x8x64xf32> to vector<64x64xf32>
    %1405 = arith.truncf %1404 : vector<64x64xf32> to vector<64x64xbf16>
    %c0_486 = arith.constant 0 : index
    %c0_487 = arith.constant 0 : index
    %1406 = vector.load %arg8[%c0_486, %c0_487] : memref<64x128xbf16, #tpu.memory_space<vmem>>, vector<64x128xbf16>
    %cst_488 = arith.constant dense<0.000000e+00> : vector<64x128xf32>
    %1407 = tpu.matmul %1405, %1406, %cst_488 {dimension_numbers = #tpu.dot_dimension_numbers<[1], [0], [0], [1], [0, 0, 1, 1], [], []>} : vector<64x64xbf16>, vector<64x128xbf16>, vector<64x128xf32> -> vector<64x128xf32>
    %c0_489 = arith.constant 0 : index
    %c0_490 = arith.constant 0 : index
    %1408 = vector.load %arg9[%c0_489, %c0_490] : memref<1x128xf32, #tpu.memory_space<vmem>>, vector<1x128xf32>
    %1409 = vector.broadcast %1408 : vector<1x128xf32> to vector<64x128xf32>
    %1410 = arith.addf %1407, %1409 : vector<64x128xf32>
    %1411 = arith.truncf %1410 : vector<64x128xf32> to vector<64x128xbf16>
    %1412 = vector.shape_cast %1411 : vector<64x128xbf16> to vector<8x8x128xbf16>
    %c0_491 = arith.constant 0 : index
    %c0_492 = arith.constant 0 : index
    %c0_493 = arith.constant 0 : index
    %1413 = vector.load %arg10[%c0_491, %c0_492, %c0_493] : memref<8x8x128xbf16, #tpu.memory_space<vmem>>, vector<8x8x128xbf16>
    tpu.vector_store %arg10[%c0_491, %c0_492, %c0_493], %1412 {strides = array<i32>} : memref<8x8x128xbf16, #tpu.memory_space<vmem>>, vector<8x8x128xbf16>,
    return
  }
  func.func @transform_0(%arg0: i32) -> (i32, i32, i32) {
    %c0_i32 = arith.constant 0 : i32
    %c0_i32_0 = arith.constant 0 : i32
    %c0_i32_1 = arith.constant 0 : i32
    return %c0_i32, %arg0, %c0_i32_0 : i32, i32, i32
  }
  func.func @transform_1(%arg0: i32) -> (i32, i32) {
    %c0_i32 = arith.constant 0 : i32
    %c0_i32_0 = arith.constant 0 : i32
    %c0_i32_1 = arith.constant 0 : i32
    return %c0_i32, %c0_i32_0 : i32, i32
  }
  func.func @transform_2(%arg0: i32) -> (i32, i32) {
    %c0_i32 = arith.constant 0 : i32
    %c0_i32_0 = arith.constant 0 : i32
    %c0_i32_1 = arith.constant 0 : i32
    return %c0_i32, %c0_i32_0 : i32, i32
  }
  func.func @transform_3(%arg0: i32) -> (i32, i32) {
    %c0_i32 = arith.constant 0 : i32
    %c0_i32_0 = arith.constant 0 : i32
    %c0_i32_1 = arith.constant 0 : i32
    return %c0_i32, %c0_i32_0 : i32, i32
  }
  func.func @transform_4(%arg0: i32) -> (i32, i32) {
    %c0_i32 = arith.constant 0 : i32
    %c0_i32_0 = arith.constant 0 : i32
    %c0_i32_1 = arith.constant 0 : i32
    return %c0_i32, %c0_i32_0 : i32, i32
  }
  func.func @transform_5(%arg0: i32) -> (i32, i32) {
    %c0_i32 = arith.constant 0 : i32
    %c0_i32_0 = arith.constant 0 : i32
    %c0_i32_1 = arith.constant 0 : i32
    return %c0_i32, %c0_i32_0 : i32, i32
  }
  func.func @transform_6(%arg0: i32) -> (i32, i32) {
    %c0_i32 = arith.constant 0 : i32
    %c0_i32_0 = arith.constant 0 : i32
    %c0_i32_1 = arith.constant 0 : i32
    return %c0_i32, %c0_i32_0 : i32, i32
  }
  func.func @transform_7(%arg0: i32) -> (i32, i32) {
    %c0_i32 = arith.constant 0 : i32
    %c0_i32_0 = arith.constant 0 : i32
    %c0_i32_1 = arith.constant 0 : i32
    return %c0_i32, %c0_i32_0 : i32, i32
  }
  func.func @transform_8(%arg0: i32) -> (i32, i32) {
    %c0_i32 = arith.constant 0 : i32
    %c0_i32_0 = arith.constant 0 : i32
    %c0_i32_1 = arith.constant 0 : i32
    return %c0_i32, %c0_i32_0 : i32, i32
  }
  func.func @transform_9(%arg0: i32) -> (i32, i32, i32) {
    %c0_i32 = arith.constant 0 : i32
    %c0_i32_0 = arith.constant 0 : i32
    %c0_i32_1 = arith.constant 0 : i32
    return %c0_i32, %arg0, %c0_i32_0 : i32, i32, i32
  }
}

module attributes {stable_mosaic.version = 11 : i64} {
  func.func @kernel(%arg0: i32, %arg1: memref<8x8x48xbf16, #tpu.memory_space<vmem>>, %arg2: memref<48x256xbf16, #tpu.memory_space<vmem>>, %arg3: memref<1x256xf32, #tpu.memory_space<vmem>>, %arg4: memref<64x256xbf16, #tpu.memory_space<vmem>>, %arg5: memref<64x256xbf16, #tpu.memory_space<vmem>>, %arg6: memref<1x256xf32, #tpu.memory_space<vmem>>, %arg7: memref<64x256xbf16, #tpu.memory_space<vmem>>, %arg8: memref<64x128xbf16, #tpu.memory_space<vmem>>, %arg9: memref<1x128xf32, #tpu.memory_space<vmem>>, %arg10: memref<8x8x128xbf16, #tpu.memory_space<vmem>>, %arg11: memref<8x8x256xbf16, #tpu.memory_space<vmem>>, %arg12: memref<8x8x64xf32, #tpu.memory_space<vmem>>) attributes {dimension_semantics = [#tpu.dimension_semantics<parallel>], iteration_bounds = array<i64: 1>, scalar_prefetch = 0 : i64, scratch_operands = 2 : i64, tpu.core_type = #tpu.core_type<tc>, window_params = [{transform_indices = @transform_0, window_bounds = array<i64: 8, 8, 48>}, {pipeline_mode = #tpu.pipeline_mode<synchronous>, transform_indices = @transform_1, window_bounds = array<i64: 48, 256>}, {pipeline_mode = #tpu.pipeline_mode<synchronous>, transform_indices = @transform_2, window_bounds = array<i64: 1, 256>}, {pipeline_mode = #tpu.pipeline_mode<synchronous>, transform_indices = @transform_3, window_bounds = array<i64: 64, 256>}, {pipeline_mode = #tpu.pipeline_mode<synchronous>, transform_indices = @transform_4, window_bounds = array<i64: 64, 256>}, {pipeline_mode = #tpu.pipeline_mode<synchronous>, transform_indices = @transform_5, window_bounds = array<i64: 1, 256>}, {pipeline_mode = #tpu.pipeline_mode<synchronous>, transform_indices = @transform_6, window_bounds = array<i64: 64, 256>}, {pipeline_mode = #tpu.pipeline_mode<synchronous>, transform_indices = @transform_7, window_bounds = array<i64: 64, 128>}, {pipeline_mode = #tpu.pipeline_mode<synchronous>, transform_indices = @transform_8, window_bounds = array<i64: 1, 128>}, {transform_indices = @transform_9, window_bounds = array<i64: 8, 8, 128>}]} {
    %c0 = arith.constant 0 : index
    %c0_0 = arith.constant 0 : index
    %c0_1 = arith.constant 0 : index
    %0 = vector.load %arg1[%c0, %c0_0, %c0_1] : memref<8x8x48xbf16, #tpu.memory_space<vmem>>, vector<8x8x48xbf16>
    %1 = vector.shape_cast %0 : vector<8x8x48xbf16> to vector<64x48xbf16>
    %c0_2 = arith.constant 0 : index
    %c0_3 = arith.constant 0 : index
    %2 = vector.load %arg2[%c0_2, %c0_3] : memref<48x256xbf16, #tpu.memory_space<vmem>>, vector<48x256xbf16>
    %cst = arith.constant dense<0.000000e+00> : vector<64x256xf32>
    %3 = tpu.matmul %1, %2, %cst {dimension_numbers = #tpu.dot_dimension_numbers<[1], [0], [0], [1], [0, 0, 1, 1], [], []>} : vector<64x48xbf16>, vector<48x256xbf16>, vector<64x256xf32> -> vector<64x256xf32>
    %c0_4 = arith.constant 0 : index
    %c0_5 = arith.constant 0 : index
    %4 = vector.load %arg3[%c0_4, %c0_5] : memref<1x256xf32, #tpu.memory_space<vmem>>, vector<1x256xf32>
    %5 = vector.broadcast %4 : vector<1x256xf32> to vector<64x256xf32>
    %6 = arith.addf %3, %5 : vector<64x256xf32>
    %7 = arith.truncf %6 : vector<64x256xf32> to vector<64x256xbf16>
    %8 = vector.shape_cast %7 : vector<64x256xbf16> to vector<8x8x256xbf16>
    %c0_6 = arith.constant 0 : index
    %c0_7 = arith.constant 0 : index
    %c0_8 = arith.constant 0 : index
    %9 = vector.load %arg11[%c0_6, %c0_7, %c0_8] : memref<8x8x256xbf16, #tpu.memory_space<vmem>>, vector<8x8x256xbf16>
    tpu.vector_store %arg11[%c0_6, %c0_7, %c0_8], %8 {strides = array<i32>} : memref<8x8x256xbf16, #tpu.memory_space<vmem>>, vector<8x8x256xbf16>,
    %c0_9 = arith.constant 0 : index
    %c0_10 = arith.constant 0 : index
    %10 = vector.load %arg4[%c0_9, %c0_10] : memref<64x256xbf16, #tpu.memory_space<vmem>>, vector<64x256xbf16>
    %cst_11 = arith.constant 0.000000e+00 : f32
    %11 = vector.broadcast %cst_11 : f32 to vector<8x32xf32>
    %cst_12 = arith.constant 0.000000e+00 : bf16
    %12 = vector.broadcast %cst_12 : bf16 to vector<8x64xbf16>
    %c0_i32 = arith.constant 0 : i32
    %c7_i32 = arith.constant 7 : i32
    %13 = arith.subi %c7_i32, %c0_i32 : i32
    %cst_13 = arith.constant dense<0.000000e+00> : vector<8x256xf32>
    %14 = tpu.matmul %12, %10, %cst_13 {dimension_numbers = #tpu.dot_dimension_numbers<[1], [0], [0], [1], [0, 0, 1, 1], [], []>} : vector<8x64xbf16>, vector<64x256xbf16>, vector<8x256xf32> -> vector<8x256xf32>
    %15 = arith.index_cast %c0_i32 : i32 to index
    %c0_14 = arith.constant 0 : index
    %c0_15 = arith.constant 0 : index
    %16 = vector.load %arg11[%15, %c0_14, %c0_15] : memref<8x8x256xbf16, #tpu.memory_space<vmem>>, vector<1x8x128xbf16>
    %17 = vector.shape_cast %16 : vector<1x8x128xbf16> to vector<8x128xbf16>
    %18 = arith.extf %17 : vector<8x128xbf16> to vector<8x128xf32>
    %19 = vector.extract_strided_slice %14 {offsets = [0, 0], sizes = [8, 128], strides = [1, 1]} : vector<8x256xf32> to vector<8x128xf32>
    %20 = arith.addf %18, %19 : vector<8x128xf32>
    %21 = arith.index_cast %13 : i32 to index
    %c0_16 = arith.constant 0 : index
    %c128 = arith.constant 128 : index
    %22 = vector.load %arg11[%21, %c0_16, %c128] : memref<8x8x256xbf16, #tpu.memory_space<vmem>>, vector<1x8x128xbf16>
    %23 = vector.shape_cast %22 : vector<1x8x128xbf16> to vector<8x128xbf16>
    %24 = arith.extf %23 : vector<8x128xbf16> to vector<8x128xf32>
    %25 = vector.extract_strided_slice %14 {offsets = [0, 128], sizes = [8, 128], strides = [1, 1]} : vector<8x256xf32> to vector<8x128xf32>
    %26 = arith.addf %24, %25 : vector<8x128xf32>
    %27 = vector.extract_strided_slice %20 {offsets = [0, 0], sizes = [8, 32], strides = [1, 1]} : vector<8x128xf32> to vector<8x32xf32>
    %cst_17 = arith.constant 5.000000e-01 : f32
    %28 = vector.broadcast %cst_17 : f32 to vector<8x32xf32>
    %29 = arith.mulf %28, %27 : vector<8x32xf32>
    %30 = math.tanh %29 : vector<8x32xf32>
    %cst_18 = arith.constant 1.000000e+00 : f32
    %31 = vector.broadcast %cst_18 : f32 to vector<8x32xf32>
    %32 = arith.addf %30, %31 : vector<8x32xf32>
    %cst_19 = arith.constant 5.000000e-01 : f32
    %33 = vector.broadcast %cst_19 : f32 to vector<8x32xf32>
    %34 = arith.mulf %33, %32 : vector<8x32xf32>
    %35 = vector.extract_strided_slice %20 {offsets = [0, 32], sizes = [8, 32], strides = [1, 1]} : vector<8x128xf32> to vector<8x32xf32>
    %cst_20 = arith.constant 5.000000e-01 : f32
    %36 = vector.broadcast %cst_20 : f32 to vector<8x32xf32>
    %37 = arith.mulf %36, %35 : vector<8x32xf32>
    %38 = math.tanh %37 : vector<8x32xf32>
    %cst_21 = arith.constant 1.000000e+00 : f32
    %39 = vector.broadcast %cst_21 : f32 to vector<8x32xf32>
    %40 = arith.addf %38, %39 : vector<8x32xf32>
    %cst_22 = arith.constant 5.000000e-01 : f32
    %41 = vector.broadcast %cst_22 : f32 to vector<8x32xf32>
    %42 = arith.mulf %41, %40 : vector<8x32xf32>
    %43 = vector.extract_strided_slice %20 {offsets = [0, 64], sizes = [8, 32], strides = [1, 1]} : vector<8x128xf32> to vector<8x32xf32>
    %44 = math.tanh %43 : vector<8x32xf32>
    %45 = vector.extract_strided_slice %20 {offsets = [0, 96], sizes = [8, 32], strides = [1, 1]} : vector<8x128xf32> to vector<8x32xf32>
    %cst_23 = arith.constant 5.000000e-01 : f32
    %46 = vector.broadcast %cst_23 : f32 to vector<8x32xf32>
    %47 = arith.mulf %46, %45 : vector<8x32xf32>
    %48 = math.tanh %47 : vector<8x32xf32>
    %cst_24 = arith.constant 1.000000e+00 : f32
    %49 = vector.broadcast %cst_24 : f32 to vector<8x32xf32>
    %50 = arith.addf %48, %49 : vector<8x32xf32>
    %cst_25 = arith.constant 5.000000e-01 : f32
    %51 = vector.broadcast %cst_25 : f32 to vector<8x32xf32>
    %52 = arith.mulf %51, %50 : vector<8x32xf32>
    %53 = arith.mulf %42, %11 : vector<8x32xf32>
    %54 = arith.mulf %34, %44 : vector<8x32xf32>
    %55 = arith.addf %53, %54 : vector<8x32xf32>
    %56 = math.tanh %55 : vector<8x32xf32>
    %57 = arith.mulf %52, %56 : vector<8x32xf32>
    %58 = vector.extract_strided_slice %26 {offsets = [0, 0], sizes = [8, 32], strides = [1, 1]} : vector<8x128xf32> to vector<8x32xf32>
    %cst_26 = arith.constant 5.000000e-01 : f32
    %59 = vector.broadcast %cst_26 : f32 to vector<8x32xf32>
    %60 = arith.mulf %59, %58 : vector<8x32xf32>
    %61 = math.tanh %60 : vector<8x32xf32>
    %cst_27 = arith.constant 1.000000e+00 : f32
    %62 = vector.broadcast %cst_27 : f32 to vector<8x32xf32>
    %63 = arith.addf %61, %62 : vector<8x32xf32>
    %cst_28 = arith.constant 5.000000e-01 : f32
    %64 = vector.broadcast %cst_28 : f32 to vector<8x32xf32>
    %65 = arith.mulf %64, %63 : vector<8x32xf32>
    %66 = vector.extract_strided_slice %26 {offsets = [0, 32], sizes = [8, 32], strides = [1, 1]} : vector<8x128xf32> to vector<8x32xf32>
    %cst_29 = arith.constant 5.000000e-01 : f32
    %67 = vector.broadcast %cst_29 : f32 to vector<8x32xf32>
    %68 = arith.mulf %67, %66 : vector<8x32xf32>
    %69 = math.tanh %68 : vector<8x32xf32>
    %cst_30 = arith.constant 1.000000e+00 : f32
    %70 = vector.broadcast %cst_30 : f32 to vector<8x32xf32>
    %71 = arith.addf %69, %70 : vector<8x32xf32>
    %cst_31 = arith.constant 5.000000e-01 : f32
    %72 = vector.broadcast %cst_31 : f32 to vector<8x32xf32>
    %73 = arith.mulf %72, %71 : vector<8x32xf32>
    %74 = vector.extract_strided_slice %26 {offsets = [0, 64], sizes = [8, 32], strides = [1, 1]} : vector<8x128xf32> to vector<8x32xf32>
    %75 = math.tanh %74 : vector<8x32xf32>
    %76 = vector.extract_strided_slice %26 {offsets = [0, 96], sizes = [8, 32], strides = [1, 1]} : vector<8x128xf32> to vector<8x32xf32>
    %cst_32 = arith.constant 5.000000e-01 : f32
    %77 = vector.broadcast %cst_32 : f32 to vector<8x32xf32>
    %78 = arith.mulf %77, %76 : vector<8x32xf32>
    %79 = math.tanh %78 : vector<8x32xf32>
    %cst_33 = arith.constant 1.000000e+00 : f32
    %80 = vector.broadcast %cst_33 : f32 to vector<8x32xf32>
    %81 = arith.addf %79, %80 : vector<8x32xf32>
    %cst_34 = arith.constant 5.000000e-01 : f32
    %82 = vector.broadcast %cst_34 : f32 to vector<8x32xf32>
    %83 = arith.mulf %82, %81 : vector<8x32xf32>
    %84 = arith.mulf %73, %11 : vector<8x32xf32>
    %85 = arith.mulf %65, %75 : vector<8x32xf32>
    %86 = arith.addf %84, %85 : vector<8x32xf32>
    %87 = math.tanh %86 : vector<8x32xf32>
    %88 = arith.mulf %83, %87 : vector<8x32xf32>
    %89 = arith.index_cast %c0_i32 : i32 to index
    %c0_35 = arith.constant 0 : index
    %c0_36 = arith.constant 0 : index
    %90 = vector.load %arg12[%89, %c0_35, %c0_36] : memref<8x8x64xf32, #tpu.memory_space<vmem>>, vector<1x8x32xf32>
    %91 = vector.shape_cast %90 : vector<1x8x32xf32> to vector<8x32xf32>
    %92 = vector.shape_cast %57 : vector<8x32xf32> to vector<1x8x32xf32>
    tpu.vector_store %arg12[%89, %c0_35, %c0_36], %92 {strides = array<i32>} : memref<8x8x64xf32, #tpu.memory_space<vmem>>, vector<1x8x32xf32>,
    %93 = arith.index_cast %13 : i32 to index
    %c0_37 = arith.constant 0 : index
    %c32 = arith.constant 32 : index
    %94 = vector.load %arg12[%93, %c0_37, %c32] : memref<8x8x64xf32, #tpu.memory_space<vmem>>, vector<1x8x32xf32>
    %95 = vector.shape_cast %94 : vector<1x8x32xf32> to vector<8x32xf32>
    %96 = vector.shape_cast %88 : vector<8x32xf32> to vector<1x8x32xf32>
    tpu.vector_store %arg12[%93, %c0_37, %c32], %96 {strides = array<i32>} : memref<8x8x64xf32, #tpu.memory_space<vmem>>, vector<1x8x32xf32>,
    %97 = tpu.concatenate %57, %88 in 1 : vector<8x32xf32>, vector<8x32xf32> -> vector<8x64xf32>
    %98 = arith.truncf %97 : vector<8x64xf32> to vector<8x64xbf16>
    %c1_i32 = arith.constant 1 : i32
    %c7_i32_38 = arith.constant 7 : i32
    %99 = arith.subi %c7_i32_38, %c1_i32 : i32
    %cst_39 = arith.constant dense<0.000000e+00> : vector<8x256xf32>
    %100 = tpu.matmul %98, %10, %cst_39 {dimension_numbers = #tpu.dot_dimension_numbers<[1], [0], [0], [1], [0, 0, 1, 1], [], []>} : vector<8x64xbf16>, vector<64x256xbf16>, vector<8x256xf32> -> vector<8x256xf32>
    %101 = arith.index_cast %c1_i32 : i32 to index
    %c0_40 = arith.constant 0 : index
    %c0_41 = arith.constant 0 : index
    %102 = vector.load %arg11[%101, %c0_40, %c0_41] : memref<8x8x256xbf16, #tpu.memory_space<vmem>>, vector<1x8x128xbf16>
    %103 = vector.shape_cast %102 : vector<1x8x128xbf16> to vector<8x128xbf16>
    %104 = arith.extf %103 : vector<8x128xbf16> to vector<8x128xf32>
    %105 = vector.extract_strided_slice %100 {offsets = [0, 0], sizes = [8, 128], strides = [1, 1]} : vector<8x256xf32> to vector<8x128xf32>
    %106 = arith.addf %104, %105 : vector<8x128xf32>
    %107 = arith.index_cast %99 : i32 to index
    %c0_42 = arith.constant 0 : index
    %c128_43 = arith.constant 128 : index
    %108 = vector.load %arg11[%107, %c0_42, %c128_43] : memref<8x8x256xbf16, #tpu.memory_space<vmem>>, vector<1x8x128xbf16>
    %109 = vector.shape_cast %108 : vector<1x8x128xbf16> to vector<8x128xbf16>
    %110 = arith.extf %109 : vector<8x128xbf16> to vector<8x128xf32>
    %111 = vector.extract_strided_slice %100 {offsets = [0, 128], sizes = [8, 128], strides = [1, 1]} : vector<8x256xf32> to vector<8x128xf32>
    %112 = arith.addf %110, %111 : vector<8x128xf32>
    %113 = vector.extract_strided_slice %106 {offsets = [0, 0], sizes = [8, 32], strides = [1, 1]} : vector<8x128xf32> to vector<8x32xf32>
    %cst_44 = arith.constant 5.000000e-01 : f32
    %114 = vector.broadcast %cst_44 : f32 to vector<8x32xf32>
    %115 = arith.mulf %114, %113 : vector<8x32xf32>
    %116 = math.tanh %115 : vector<8x32xf32>
    %cst_45 = arith.constant 1.000000e+00 : f32
    %117 = vector.broadcast %cst_45 : f32 to vector<8x32xf32>
    %118 = arith.addf %116, %117 : vector<8x32xf32>
    %cst_46 = arith.constant 5.000000e-01 : f32
    %119 = vector.broadcast %cst_46 : f32 to vector<8x32xf32>
    %120 = arith.mulf %119, %118 : vector<8x32xf32>
    %121 = vector.extract_strided_slice %106 {offsets = [0, 32], sizes = [8, 32], strides = [1, 1]} : vector<8x128xf32> to vector<8x32xf32>
    %cst_47 = arith.constant 5.000000e-01 : f32
    %122 = vector.broadcast %cst_47 : f32 to vector<8x32xf32>
    %123 = arith.mulf %122, %121 : vector<8x32xf32>
    %124 = math.tanh %123 : vector<8x32xf32>
    %cst_48 = arith.constant 1.000000e+00 : f32
    %125 = vector.broadcast %cst_48 : f32 to vector<8x32xf32>
    %126 = arith.addf %124, %125 : vector<8x32xf32>
    %cst_49 = arith.constant 5.000000e-01 : f32
    %127 = vector.broadcast %cst_49 : f32 to vector<8x32xf32>
    %128 = arith.mulf %127, %126 : vector<8x32xf32>
    %129 = vector.extract_strided_slice %106 {offsets = [0, 64], sizes = [8, 32], strides = [1, 1]} : vector<8x128xf32> to vector<8x32xf32>
    %130 = math.tanh %129 : vector<8x32xf32>
    %131 = vector.extract_strided_slice %106 {offsets = [0, 96], sizes = [8, 32], strides = [1, 1]} : vector<8x128xf32> to vector<8x32xf32>
    %cst_50 = arith.constant 5.000000e-01 : f32
    %132 = vector.broadcast %cst_50 : f32 to vector<8x32xf32>
    %133 = arith.mulf %132, %131 : vector<8x32xf32>
    %134 = math.tanh %133 : vector<8x32xf32>
    %cst_51 = arith.constant 1.000000e+00 : f32
    %135 = vector.broadcast %cst_51 : f32 to vector<8x32xf32>
    %136 = arith.addf %134, %135 : vector<8x32xf32>
    %cst_52 = arith.constant 5.000000e-01 : f32
    %137 = vector.broadcast %cst_52 : f32 to vector<8x32xf32>
    %138 = arith.mulf %137, %136 : vector<8x32xf32>
    %139 = arith.mulf %128, %55 : vector<8x32xf32>
    %140 = arith.mulf %120, %130 : vector<8x32xf32>
    %141 = arith.addf %139, %140 : vector<8x32xf32>
    %142 = math.tanh %141 : vector<8x32xf32>
    %143 = arith.mulf %138, %142 : vector<8x32xf32>
    %144 = vector.extract_strided_slice %112 {offsets = [0, 0], sizes = [8, 32], strides = [1, 1]} : vector<8x128xf32> to vector<8x32xf32>
    %cst_53 = arith.constant 5.000000e-01 : f32
    %145 = vector.broadcast %cst_53 : f32 to vector<8x32xf32>
    %146 = arith.mulf %145, %144 : vector<8x32xf32>
    %147 = math.tanh %146 : vector<8x32xf32>
    %cst_54 = arith.constant 1.000000e+00 : f32
    %148 = vector.broadcast %cst_54 : f32 to vector<8x32xf32>
    %149 = arith.addf %147, %148 : vector<8x32xf32>
    %cst_55 = arith.constant 5.000000e-01 : f32
    %150 = vector.broadcast %cst_55 : f32 to vector<8x32xf32>
    %151 = arith.mulf %150, %149 : vector<8x32xf32>
    %152 = vector.extract_strided_slice %112 {offsets = [0, 32], sizes = [8, 32], strides = [1, 1]} : vector<8x128xf32> to vector<8x32xf32>
    %cst_56 = arith.constant 5.000000e-01 : f32
    %153 = vector.broadcast %cst_56 : f32 to vector<8x32xf32>
    %154 = arith.mulf %153, %152 : vector<8x32xf32>
    %155 = math.tanh %154 : vector<8x32xf32>
    %cst_57 = arith.constant 1.000000e+00 : f32
    %156 = vector.broadcast %cst_57 : f32 to vector<8x32xf32>
    %157 = arith.addf %155, %156 : vector<8x32xf32>
    %cst_58 = arith.constant 5.000000e-01 : f32
    %158 = vector.broadcast %cst_58 : f32 to vector<8x32xf32>
    %159 = arith.mulf %158, %157 : vector<8x32xf32>
    %160 = vector.extract_strided_slice %112 {offsets = [0, 64], sizes = [8, 32], strides = [1, 1]} : vector<8x128xf32> to vector<8x32xf32>
    %161 = math.tanh %160 : vector<8x32xf32>
    %162 = vector.extract_strided_slice %112 {offsets = [0, 96], sizes = [8, 32], strides = [1, 1]} : vector<8x128xf32> to vector<8x32xf32>
    %cst_59 = arith.constant 5.000000e-01 : f32
    %163 = vector.broadcast %cst_59 : f32 to vector<8x32xf32>
    %164 = arith.mulf %163, %162 : vector<8x32xf32>
    %165 = math.tanh %164 : vector<8x32xf32>
    %cst_60 = arith.constant 1.000000e+00 : f32
    %166 = vector.broadcast %cst_60 : f32 to vector<8x32xf32>
    %167 = arith.addf %165, %166 : vector<8x32xf32>
    %cst_61 = arith.constant 5.000000e-01 : f32
    %168 = vector.broadcast %cst_61 : f32 to vector<8x32xf32>
    %169 = arith.mulf %168, %167 : vector<8x32xf32>
    %170 = arith.mulf %159, %86 : vector<8x32xf32>
    %171 = arith.mulf %151, %161 : vector<8x32xf32>
    %172 = arith.addf %170, %171 : vector<8x32xf32>
    %173 = math.tanh %172 : vector<8x32xf32>
    %174 = arith.mulf %169, %173 : vector<8x32xf32>
    %175 = arith.index_cast %c1_i32 : i32 to index
    %c0_62 = arith.constant 0 : index
    %c0_63 = arith.constant 0 : index
    %176 = vector.load %arg12[%175, %c0_62, %c0_63] : memref<8x8x64xf32, #tpu.memory_space<vmem>>, vector<1x8x32xf32>
    %177 = vector.shape_cast %176 : vector<1x8x32xf32> to vector<8x32xf32>
    %178 = vector.shape_cast %143 : vector<8x32xf32> to vector<1x8x32xf32>
    tpu.vector_store %arg12[%175, %c0_62, %c0_63], %178 {strides = array<i32>} : memref<8x8x64xf32, #tpu.memory_space<vmem>>, vector<1x8x32xf32>,
    %179 = arith.index_cast %99 : i32 to index
    %c0_64 = arith.constant 0 : index
    %c32_65 = arith.constant 32 : index
    %180 = vector.load %arg12[%179, %c0_64, %c32_65] : memref<8x8x64xf32, #tpu.memory_space<vmem>>, vector<1x8x32xf32>
    %181 = vector.shape_cast %180 : vector<1x8x32xf32> to vector<8x32xf32>
    %182 = vector.shape_cast %174 : vector<8x32xf32> to vector<1x8x32xf32>
    tpu.vector_store %arg12[%179, %c0_64, %c32_65], %182 {strides = array<i32>} : memref<8x8x64xf32, #tpu.memory_space<vmem>>, vector<1x8x32xf32>,
    %183 = tpu.concatenate %143, %174 in 1 : vector<8x32xf32>, vector<8x32xf32> -> vector<8x64xf32>
    %184 = arith.truncf %183 : vector<8x64xf32> to vector<8x64xbf16>
    %c2_i32 = arith.constant 2 : i32
    %c7_i32_66 = arith.constant 7 : i32
    %185 = arith.subi %c7_i32_66, %c2_i32 : i32
    %cst_67 = arith.constant dense<0.000000e+00> : vector<8x256xf32>
    %186 = tpu.matmul %184, %10, %cst_67 {dimension_numbers = #tpu.dot_dimension_numbers<[1], [0], [0], [1], [0, 0, 1, 1], [], []>} : vector<8x64xbf16>, vector<64x256xbf16>, vector<8x256xf32> -> vector<8x256xf32>
    %187 = arith.index_cast %c2_i32 : i32 to index
    %c0_68 = arith.constant 0 : index
    %c0_69 = arith.constant 0 : index
    %188 = vector.load %arg11[%187, %c0_68, %c0_69] : memref<8x8x256xbf16, #tpu.memory_space<vmem>>, vector<1x8x128xbf16>
    %189 = vector.shape_cast %188 : vector<1x8x128xbf16> to vector<8x128xbf16>
    %190 = arith.extf %189 : vector<8x128xbf16> to vector<8x128xf32>
    %191 = vector.extract_strided_slice %186 {offsets = [0, 0], sizes = [8, 128], strides = [1, 1]} : vector<8x256xf32> to vector<8x128xf32>
    %192 = arith.addf %190, %191 : vector<8x128xf32>
    %193 = arith.index_cast %185 : i32 to index
    %c0_70 = arith.constant 0 : index
    %c128_71 = arith.constant 128 : index
    %194 = vector.load %arg11[%193, %c0_70, %c128_71] : memref<8x8x256xbf16, #tpu.memory_space<vmem>>, vector<1x8x128xbf16>
    %195 = vector.shape_cast %194 : vector<1x8x128xbf16> to vector<8x128xbf16>
    %196 = arith.extf %195 : vector<8x128xbf16> to vector<8x128xf32>
    %197 = vector.extract_strided_slice %186 {offsets = [0, 128], sizes = [8, 128], strides = [1, 1]} : vector<8x256xf32> to vector<8x128xf32>
    %198 = arith.addf %196, %197 : vector<8x128xf32>
    %199 = vector.extract_strided_slice %192 {offsets = [0, 0], sizes = [8, 32], strides = [1, 1]} : vector<8x128xf32> to vector<8x32xf32>
    %cst_72 = arith.constant 5.000000e-01 : f32
    %200 = vector.broadcast %cst_72 : f32 to vector<8x32xf32>
    %201 = arith.mulf %200, %199 : vector<8x32xf32>
    %202 = math.tanh %201 : vector<8x32xf32>
    %cst_73 = arith.constant 1.000000e+00 : f32
    %203 = vector.broadcast %cst_73 : f32 to vector<8x32xf32>
    %204 = arith.addf %202, %203 : vector<8x32xf32>
    %cst_74 = arith.constant 5.000000e-01 : f32
    %205 = vector.broadcast %cst_74 : f32 to vector<8x32xf32>
    %206 = arith.mulf %205, %204 : vector<8x32xf32>
    %207 = vector.extract_strided_slice %192 {offsets = [0, 32], sizes = [8, 32], strides = [1, 1]} : vector<8x128xf32> to vector<8x32xf32>
    %cst_75 = arith.constant 5.000000e-01 : f32
    %208 = vector.broadcast %cst_75 : f32 to vector<8x32xf32>
    %209 = arith.mulf %208, %207 : vector<8x32xf32>
    %210 = math.tanh %209 : vector<8x32xf32>
    %cst_76 = arith.constant 1.000000e+00 : f32
    %211 = vector.broadcast %cst_76 : f32 to vector<8x32xf32>
    %212 = arith.addf %210, %211 : vector<8x32xf32>
    %cst_77 = arith.constant 5.000000e-01 : f32
    %213 = vector.broadcast %cst_77 : f32 to vector<8x32xf32>
    %214 = arith.mulf %213, %212 : vector<8x32xf32>
    %215 = vector.extract_strided_slice %192 {offsets = [0, 64], sizes = [8, 32], strides = [1, 1]} : vector<8x128xf32> to vector<8x32xf32>
    %216 = math.tanh %215 : vector<8x32xf32>
    %217 = vector.extract_strided_slice %192 {offsets = [0, 96], sizes = [8, 32], strides = [1, 1]} : vector<8x128xf32> to vector<8x32xf32>
    %cst_78 = arith.constant 5.000000e-01 : f32
    %218 = vector.broadcast %cst_78 : f32 to vector<8x32xf32>
    %219 = arith.mulf %218, %217 : vector<8x32xf32>
    %220 = math.tanh %219 : vector<8x32xf32>
    %cst_79 = arith.constant 1.000000e+00 : f32
    %221 = vector.broadcast %cst_79 : f32 to vector<8x32xf32>
    %222 = arith.addf %220, %221 : vector<8x32xf32>
    %cst_80 = arith.constant 5.000000e-01 : f32
    %223 = vector.broadcast %cst_80 : f32 to vector<8x32xf32>
    %224 = arith.mulf %223, %222 : vector<8x32xf32>
    %225 = arith.mulf %214, %141 : vector<8x32xf32>
    %226 = arith.mulf %206, %216 : vector<8x32xf32>
    %227 = arith.addf %225, %226 : vector<8x32xf32>
    %228 = math.tanh %227 : vector<8x32xf32>
    %229 = arith.mulf %224, %228 : vector<8x32xf32>
    %230 = vector.extract_strided_slice %198 {offsets = [0, 0], sizes = [8, 32], strides = [1, 1]} : vector<8x128xf32> to vector<8x32xf32>
    %cst_81 = arith.constant 5.000000e-01 : f32
    %231 = vector.broadcast %cst_81 : f32 to vector<8x32xf32>
    %232 = arith.mulf %231, %230 : vector<8x32xf32>
    %233 = math.tanh %232 : vector<8x32xf32>
    %cst_82 = arith.constant 1.000000e+00 : f32
    %234 = vector.broadcast %cst_82 : f32 to vector<8x32xf32>
    %235 = arith.addf %233, %234 : vector<8x32xf32>
    %cst_83 = arith.constant 5.000000e-01 : f32
    %236 = vector.broadcast %cst_83 : f32 to vector<8x32xf32>
    %237 = arith.mulf %236, %235 : vector<8x32xf32>
    %238 = vector.extract_strided_slice %198 {offsets = [0, 32], sizes = [8, 32], strides = [1, 1]} : vector<8x128xf32> to vector<8x32xf32>
    %cst_84 = arith.constant 5.000000e-01 : f32
    %239 = vector.broadcast %cst_84 : f32 to vector<8x32xf32>
    %240 = arith.mulf %239, %238 : vector<8x32xf32>
    %241 = math.tanh %240 : vector<8x32xf32>
    %cst_85 = arith.constant 1.000000e+00 : f32
    %242 = vector.broadcast %cst_85 : f32 to vector<8x32xf32>
    %243 = arith.addf %241, %242 : vector<8x32xf32>
    %cst_86 = arith.constant 5.000000e-01 : f32
    %244 = vector.broadcast %cst_86 : f32 to vector<8x32xf32>
    %245 = arith.mulf %244, %243 : vector<8x32xf32>
    %246 = vector.extract_strided_slice %198 {offsets = [0, 64], sizes = [8, 32], strides = [1, 1]} : vector<8x128xf32> to vector<8x32xf32>
    %247 = math.tanh %246 : vector<8x32xf32>
    %248 = vector.extract_strided_slice %198 {offsets = [0, 96], sizes = [8, 32], strides = [1, 1]} : vector<8x128xf32> to vector<8x32xf32>
    %cst_87 = arith.constant 5.000000e-01 : f32
    %249 = vector.broadcast %cst_87 : f32 to vector<8x32xf32>
    %250 = arith.mulf %249, %248 : vector<8x32xf32>
    %251 = math.tanh %250 : vector<8x32xf32>
    %cst_88 = arith.constant 1.000000e+00 : f32
    %252 = vector.broadcast %cst_88 : f32 to vector<8x32xf32>
    %253 = arith.addf %251, %252 : vector<8x32xf32>
    %cst_89 = arith.constant 5.000000e-01 : f32
    %254 = vector.broadcast %cst_89 : f32 to vector<8x32xf32>
    %255 = arith.mulf %254, %253 : vector<8x32xf32>
    %256 = arith.mulf %245, %172 : vector<8x32xf32>
    %257 = arith.mulf %237, %247 : vector<8x32xf32>
    %258 = arith.addf %256, %257 : vector<8x32xf32>
    %259 = math.tanh %258 : vector<8x32xf32>
    %260 = arith.mulf %255, %259 : vector<8x32xf32>
    %261 = arith.index_cast %c2_i32 : i32 to index
    %c0_90 = arith.constant 0 : index
    %c0_91 = arith.constant 0 : index
    %262 = vector.load %arg12[%261, %c0_90, %c0_91] : memref<8x8x64xf32, #tpu.memory_space<vmem>>, vector<1x8x32xf32>
    %263 = vector.shape_cast %262 : vector<1x8x32xf32> to vector<8x32xf32>
    %264 = vector.shape_cast %229 : vector<8x32xf32> to vector<1x8x32xf32>
    tpu.vector_store %arg12[%261, %c0_90, %c0_91], %264 {strides = array<i32>} : memref<8x8x64xf32, #tpu.memory_space<vmem>>, vector<1x8x32xf32>,
    %265 = arith.index_cast %185 : i32 to index
    %c0_92 = arith.constant 0 : index
    %c32_93 = arith.constant 32 : index
    %266 = vector.load %arg12[%265, %c0_92, %c32_93] : memref<8x8x64xf32, #tpu.memory_space<vmem>>, vector<1x8x32xf32>
    %267 = vector.shape_cast %266 : vector<1x8x32xf32> to vector<8x32xf32>
    %268 = vector.shape_cast %260 : vector<8x32xf32> to vector<1x8x32xf32>
    tpu.vector_store %arg12[%265, %c0_92, %c32_93], %268 {strides = array<i32>} : memref<8x8x64xf32, #tpu.memory_space<vmem>>, vector<1x8x32xf32>,
    %269 = tpu.concatenate %229, %260 in 1 : vector<8x32xf32>, vector<8x32xf32> -> vector<8x64xf32>
    %270 = arith.truncf %269 : vector<8x64xf32> to vector<8x64xbf16>
    %c3_i32 = arith.constant 3 : i32
    %c7_i32_94 = arith.constant 7 : i32
    %271 = arith.subi %c7_i32_94, %c3_i32 : i32
    %cst_95 = arith.constant dense<0.000000e+00> : vector<8x256xf32>
    %272 = tpu.matmul %270, %10, %cst_95 {dimension_numbers = #tpu.dot_dimension_numbers<[1], [0], [0], [1], [0, 0, 1, 1], [], []>} : vector<8x64xbf16>, vector<64x256xbf16>, vector<8x256xf32> -> vector<8x256xf32>
    %273 = arith.index_cast %c3_i32 : i32 to index
    %c0_96 = arith.constant 0 : index
    %c0_97 = arith.constant 0 : index
    %274 = vector.load %arg11[%273, %c0_96, %c0_97] : memref<8x8x256xbf16, #tpu.memory_space<vmem>>, vector<1x8x128xbf16>
    %275 = vector.shape_cast %274 : vector<1x8x128xbf16> to vector<8x128xbf16>
    %276 = arith.extf %275 : vector<8x128xbf16> to vector<8x128xf32>
    %277 = vector.extract_strided_slice %272 {offsets = [0, 0], sizes = [8, 128], strides = [1, 1]} : vector<8x256xf32> to vector<8x128xf32>
    %278 = arith.addf %276, %277 : vector<8x128xf32>
    %279 = arith.index_cast %271 : i32 to index
    %c0_98 = arith.constant 0 : index
    %c128_99 = arith.constant 128 : index
    %280 = vector.load %arg11[%279, %c0_98, %c128_99] : memref<8x8x256xbf16, #tpu.memory_space<vmem>>, vector<1x8x128xbf16>
    %281 = vector.shape_cast %280 : vector<1x8x128xbf16> to vector<8x128xbf16>
    %282 = arith.extf %281 : vector<8x128xbf16> to vector<8x128xf32>
    %283 = vector.extract_strided_slice %272 {offsets = [0, 128], sizes = [8, 128], strides = [1, 1]} : vector<8x256xf32> to vector<8x128xf32>
    %284 = arith.addf %282, %283 : vector<8x128xf32>
    %285 = vector.extract_strided_slice %278 {offsets = [0, 0], sizes = [8, 32], strides = [1, 1]} : vector<8x128xf32> to vector<8x32xf32>
    %cst_100 = arith.constant 5.000000e-01 : f32
    %286 = vector.broadcast %cst_100 : f32 to vector<8x32xf32>
    %287 = arith.mulf %286, %285 : vector<8x32xf32>
    %288 = math.tanh %287 : vector<8x32xf32>
    %cst_101 = arith.constant 1.000000e+00 : f32
    %289 = vector.broadcast %cst_101 : f32 to vector<8x32xf32>
    %290 = arith.addf %288, %289 : vector<8x32xf32>
    %cst_102 = arith.constant 5.000000e-01 : f32
    %291 = vector.broadcast %cst_102 : f32 to vector<8x32xf32>
    %292 = arith.mulf %291, %290 : vector<8x32xf32>
    %293 = vector.extract_strided_slice %278 {offsets = [0, 32], sizes = [8, 32], strides = [1, 1]} : vector<8x128xf32> to vector<8x32xf32>
    %cst_103 = arith.constant 5.000000e-01 : f32
    %294 = vector.broadcast %cst_103 : f32 to vector<8x32xf32>
    %295 = arith.mulf %294, %293 : vector<8x32xf32>
    %296 = math.tanh %295 : vector<8x32xf32>
    %cst_104 = arith.constant 1.000000e+00 : f32
    %297 = vector.broadcast %cst_104 : f32 to vector<8x32xf32>
    %298 = arith.addf %296, %297 : vector<8x32xf32>
    %cst_105 = arith.constant 5.000000e-01 : f32
    %299 = vector.broadcast %cst_105 : f32 to vector<8x32xf32>
    %300 = arith.mulf %299, %298 : vector<8x32xf32>
    %301 = vector.extract_strided_slice %278 {offsets = [0, 64], sizes = [8, 32], strides = [1, 1]} : vector<8x128xf32> to vector<8x32xf32>
    %302 = math.tanh %301 : vector<8x32xf32>
    %303 = vector.extract_strided_slice %278 {offsets = [0, 96], sizes = [8, 32], strides = [1, 1]} : vector<8x128xf32> to vector<8x32xf32>
    %cst_106 = arith.constant 5.000000e-01 : f32
    %304 = vector.broadcast %cst_106 : f32 to vector<8x32xf32>
    %305 = arith.mulf %304, %303 : vector<8x32xf32>
    %306 = math.tanh %305 : vector<8x32xf32>
    %cst_107 = arith.constant 1.000000e+00 : f32
    %307 = vector.broadcast %cst_107 : f32 to vector<8x32xf32>
    %308 = arith.addf %306, %307 : vector<8x32xf32>
    %cst_108 = arith.constant 5.000000e-01 : f32
    %309 = vector.broadcast %cst_108 : f32 to vector<8x32xf32>
    %310 = arith.mulf %309, %308 : vector<8x32xf32>
    %311 = arith.mulf %300, %227 : vector<8x32xf32>
    %312 = arith.mulf %292, %302 : vector<8x32xf32>
    %313 = arith.addf %311, %312 : vector<8x32xf32>
    %314 = math.tanh %313 : vector<8x32xf32>
    %315 = arith.mulf %310, %314 : vector<8x32xf32>
    %316 = vector.extract_strided_slice %284 {offsets = [0, 0], sizes = [8, 32], strides = [1, 1]} : vector<8x128xf32> to vector<8x32xf32>
    %cst_109 = arith.constant 5.000000e-01 : f32
    %317 = vector.broadcast %cst_109 : f32 to vector<8x32xf32>
    %318 = arith.mulf %317, %316 : vector<8x32xf32>
    %319 = math.tanh %318 : vector<8x32xf32>
    %cst_110 = arith.constant 1.000000e+00 : f32
    %320 = vector.broadcast %cst_110 : f32 to vector<8x32xf32>
    %321 = arith.addf %319, %320 : vector<8x32xf32>
    %cst_111 = arith.constant 5.000000e-01 : f32
    %322 = vector.broadcast %cst_111 : f32 to vector<8x32xf32>
    %323 = arith.mulf %322, %321 : vector<8x32xf32>
    %324 = vector.extract_strided_slice %284 {offsets = [0, 32], sizes = [8, 32], strides = [1, 1]} : vector<8x128xf32> to vector<8x32xf32>
    %cst_112 = arith.constant 5.000000e-01 : f32
    %325 = vector.broadcast %cst_112 : f32 to vector<8x32xf32>
    %326 = arith.mulf %325, %324 : vector<8x32xf32>
    %327 = math.tanh %326 : vector<8x32xf32>
    %cst_113 = arith.constant 1.000000e+00 : f32
    %328 = vector.broadcast %cst_113 : f32 to vector<8x32xf32>
    %329 = arith.addf %327, %328 : vector<8x32xf32>
    %cst_114 = arith.constant 5.000000e-01 : f32
    %330 = vector.broadcast %cst_114 : f32 to vector<8x32xf32>
    %331 = arith.mulf %330, %329 : vector<8x32xf32>
    %332 = vector.extract_strided_slice %284 {offsets = [0, 64], sizes = [8, 32], strides = [1, 1]} : vector<8x128xf32> to vector<8x32xf32>
    %333 = math.tanh %332 : vector<8x32xf32>
    %334 = vector.extract_strided_slice %284 {offsets = [0, 96], sizes = [8, 32], strides = [1, 1]} : vector<8x128xf32> to vector<8x32xf32>
    %cst_115 = arith.constant 5.000000e-01 : f32
    %335 = vector.broadcast %cst_115 : f32 to vector<8x32xf32>
    %336 = arith.mulf %335, %334 : vector<8x32xf32>
    %337 = math.tanh %336 : vector<8x32xf32>
    %cst_116 = arith.constant 1.000000e+00 : f32
    %338 = vector.broadcast %cst_116 : f32 to vector<8x32xf32>
    %339 = arith.addf %337, %338 : vector<8x32xf32>
    %cst_117 = arith.constant 5.000000e-01 : f32
    %340 = vector.broadcast %cst_117 : f32 to vector<8x32xf32>
    %341 = arith.mulf %340, %339 : vector<8x32xf32>
    %342 = arith.mulf %331, %258 : vector<8x32xf32>
    %343 = arith.mulf %323, %333 : vector<8x32xf32>
    %344 = arith.addf %342, %343 : vector<8x32xf32>
    %345 = math.tanh %344 : vector<8x32xf32>
    %346 = arith.mulf %341, %345 : vector<8x32xf32>
    %347 = arith.index_cast %c3_i32 : i32 to index
    %c0_118 = arith.constant 0 : index
    %c0_119 = arith.constant 0 : index
    %348 = vector.load %arg12[%347, %c0_118, %c0_119] : memref<8x8x64xf32, #tpu.memory_space<vmem>>, vector<1x8x32xf32>
    %349 = vector.shape_cast %348 : vector<1x8x32xf32> to vector<8x32xf32>
    %350 = vector.shape_cast %315 : vector<8x32xf32> to vector<1x8x32xf32>
    tpu.vector_store %arg12[%347, %c0_118, %c0_119], %350 {strides = array<i32>} : memref<8x8x64xf32, #tpu.memory_space<vmem>>, vector<1x8x32xf32>,
    %351 = arith.index_cast %271 : i32 to index
    %c0_120 = arith.constant 0 : index
    %c32_121 = arith.constant 32 : index
    %352 = vector.load %arg12[%351, %c0_120, %c32_121] : memref<8x8x64xf32, #tpu.memory_space<vmem>>, vector<1x8x32xf32>
    %353 = vector.shape_cast %352 : vector<1x8x32xf32> to vector<8x32xf32>
    %354 = vector.shape_cast %346 : vector<8x32xf32> to vector<1x8x32xf32>
    tpu.vector_store %arg12[%351, %c0_120, %c32_121], %354 {strides = array<i32>} : memref<8x8x64xf32, #tpu.memory_space<vmem>>, vector<1x8x32xf32>,
    %355 = tpu.concatenate %315, %346 in 1 : vector<8x32xf32>, vector<8x32xf32> -> vector<8x64xf32>
    %356 = arith.truncf %355 : vector<8x64xf32> to vector<8x64xbf16>
    %c4_i32 = arith.constant 4 : i32
    %c7_i32_122 = arith.constant 7 : i32
    %357 = arith.subi %c7_i32_122, %c4_i32 : i32
    %cst_123 = arith.constant dense<0.000000e+00> : vector<8x256xf32>
    %358 = tpu.matmul %356, %10, %cst_123 {dimension_numbers = #tpu.dot_dimension_numbers<[1], [0], [0], [1], [0, 0, 1, 1], [], []>} : vector<8x64xbf16>, vector<64x256xbf16>, vector<8x256xf32> -> vector<8x256xf32>
    %359 = arith.index_cast %c4_i32 : i32 to index
    %c0_124 = arith.constant 0 : index
    %c0_125 = arith.constant 0 : index
    %360 = vector.load %arg11[%359, %c0_124, %c0_125] : memref<8x8x256xbf16, #tpu.memory_space<vmem>>, vector<1x8x128xbf16>
    %361 = vector.shape_cast %360 : vector<1x8x128xbf16> to vector<8x128xbf16>
    %362 = arith.extf %361 : vector<8x128xbf16> to vector<8x128xf32>
    %363 = vector.extract_strided_slice %358 {offsets = [0, 0], sizes = [8, 128], strides = [1, 1]} : vector<8x256xf32> to vector<8x128xf32>
    %364 = arith.addf %362, %363 : vector<8x128xf32>
    %365 = arith.index_cast %357 : i32 to index
    %c0_126 = arith.constant 0 : index
    %c128_127 = arith.constant 128 : index
    %366 = vector.load %arg11[%365, %c0_126, %c128_127] : memref<8x8x256xbf16, #tpu.memory_space<vmem>>, vector<1x8x128xbf16>
    %367 = vector.shape_cast %366 : vector<1x8x128xbf16> to vector<8x128xbf16>
    %368 = arith.extf %367 : vector<8x128xbf16> to vector<8x128xf32>
    %369 = vector.extract_strided_slice %358 {offsets = [0, 128], sizes = [8, 128], strides = [1, 1]} : vector<8x256xf32> to vector<8x128xf32>
    %370 = arith.addf %368, %369 : vector<8x128xf32>
    %371 = vector.extract_strided_slice %364 {offsets = [0, 0], sizes = [8, 32], strides = [1, 1]} : vector<8x128xf32> to vector<8x32xf32>
    %cst_128 = arith.constant 5.000000e-01 : f32
    %372 = vector.broadcast %cst_128 : f32 to vector<8x32xf32>
    %373 = arith.mulf %372, %371 : vector<8x32xf32>
    %374 = math.tanh %373 : vector<8x32xf32>
    %cst_129 = arith.constant 1.000000e+00 : f32
    %375 = vector.broadcast %cst_129 : f32 to vector<8x32xf32>
    %376 = arith.addf %374, %375 : vector<8x32xf32>
    %cst_130 = arith.constant 5.000000e-01 : f32
    %377 = vector.broadcast %cst_130 : f32 to vector<8x32xf32>
    %378 = arith.mulf %377, %376 : vector<8x32xf32>
    %379 = vector.extract_strided_slice %364 {offsets = [0, 32], sizes = [8, 32], strides = [1, 1]} : vector<8x128xf32> to vector<8x32xf32>
    %cst_131 = arith.constant 5.000000e-01 : f32
    %380 = vector.broadcast %cst_131 : f32 to vector<8x32xf32>
    %381 = arith.mulf %380, %379 : vector<8x32xf32>
    %382 = math.tanh %381 : vector<8x32xf32>
    %cst_132 = arith.constant 1.000000e+00 : f32
    %383 = vector.broadcast %cst_132 : f32 to vector<8x32xf32>
    %384 = arith.addf %382, %383 : vector<8x32xf32>
    %cst_133 = arith.constant 5.000000e-01 : f32
    %385 = vector.broadcast %cst_133 : f32 to vector<8x32xf32>
    %386 = arith.mulf %385, %384 : vector<8x32xf32>
    %387 = vector.extract_strided_slice %364 {offsets = [0, 64], sizes = [8, 32], strides = [1, 1]} : vector<8x128xf32> to vector<8x32xf32>
    %388 = math.tanh %387 : vector<8x32xf32>
    %389 = vector.extract_strided_slice %364 {offsets = [0, 96], sizes = [8, 32], strides = [1, 1]} : vector<8x128xf32> to vector<8x32xf32>
    %cst_134 = arith.constant 5.000000e-01 : f32
    %390 = vector.broadcast %cst_134 : f32 to vector<8x32xf32>
    %391 = arith.mulf %390, %389 : vector<8x32xf32>
    %392 = math.tanh %391 : vector<8x32xf32>
    %cst_135 = arith.constant 1.000000e+00 : f32
    %393 = vector.broadcast %cst_135 : f32 to vector<8x32xf32>
    %394 = arith.addf %392, %393 : vector<8x32xf32>
    %cst_136 = arith.constant 5.000000e-01 : f32
    %395 = vector.broadcast %cst_136 : f32 to vector<8x32xf32>
    %396 = arith.mulf %395, %394 : vector<8x32xf32>
    %397 = arith.mulf %386, %313 : vector<8x32xf32>
    %398 = arith.mulf %378, %388 : vector<8x32xf32>
    %399 = arith.addf %397, %398 : vector<8x32xf32>
    %400 = math.tanh %399 : vector<8x32xf32>
    %401 = arith.mulf %396, %400 : vector<8x32xf32>
    %402 = vector.extract_strided_slice %370 {offsets = [0, 0], sizes = [8, 32], strides = [1, 1]} : vector<8x128xf32> to vector<8x32xf32>
    %cst_137 = arith.constant 5.000000e-01 : f32
    %403 = vector.broadcast %cst_137 : f32 to vector<8x32xf32>
    %404 = arith.mulf %403, %402 : vector<8x32xf32>
    %405 = math.tanh %404 : vector<8x32xf32>
    %cst_138 = arith.constant 1.000000e+00 : f32
    %406 = vector.broadcast %cst_138 : f32 to vector<8x32xf32>
    %407 = arith.addf %405, %406 : vector<8x32xf32>
    %cst_139 = arith.constant 5.000000e-01 : f32
    %408 = vector.broadcast %cst_139 : f32 to vector<8x32xf32>
    %409 = arith.mulf %408, %407 : vector<8x32xf32>
    %410 = vector.extract_strided_slice %370 {offsets = [0, 32], sizes = [8, 32], strides = [1, 1]} : vector<8x128xf32> to vector<8x32xf32>
    %cst_140 = arith.constant 5.000000e-01 : f32
    %411 = vector.broadcast %cst_140 : f32 to vector<8x32xf32>
    %412 = arith.mulf %411, %410 : vector<8x32xf32>
    %413 = math.tanh %412 : vector<8x32xf32>
    %cst_141 = arith.constant 1.000000e+00 : f32
    %414 = vector.broadcast %cst_141 : f32 to vector<8x32xf32>
    %415 = arith.addf %413, %414 : vector<8x32xf32>
    %cst_142 = arith.constant 5.000000e-01 : f32
    %416 = vector.broadcast %cst_142 : f32 to vector<8x32xf32>
    %417 = arith.mulf %416, %415 : vector<8x32xf32>
    %418 = vector.extract_strided_slice %370 {offsets = [0, 64], sizes = [8, 32], strides = [1, 1]} : vector<8x128xf32> to vector<8x32xf32>
    %419 = math.tanh %418 : vector<8x32xf32>
    %420 = vector.extract_strided_slice %370 {offsets = [0, 96], sizes = [8, 32], strides = [1, 1]} : vector<8x128xf32> to vector<8x32xf32>
    %cst_143 = arith.constant 5.000000e-01 : f32
    %421 = vector.broadcast %cst_143 : f32 to vector<8x32xf32>
    %422 = arith.mulf %421, %420 : vector<8x32xf32>
    %423 = math.tanh %422 : vector<8x32xf32>
    %cst_144 = arith.constant 1.000000e+00 : f32
    %424 = vector.broadcast %cst_144 : f32 to vector<8x32xf32>
    %425 = arith.addf %423, %424 : vector<8x32xf32>
    %cst_145 = arith.constant 5.000000e-01 : f32
    %426 = vector.broadcast %cst_145 : f32 to vector<8x32xf32>
    %427 = arith.mulf %426, %425 : vector<8x32xf32>
    %428 = arith.mulf %417, %344 : vector<8x32xf32>
    %429 = arith.mulf %409, %419 : vector<8x32xf32>
    %430 = arith.addf %428, %429 : vector<8x32xf32>
    %431 = math.tanh %430 : vector<8x32xf32>
    %432 = arith.mulf %427, %431 : vector<8x32xf32>
    %433 = arith.index_cast %c4_i32 : i32 to index
    %c0_146 = arith.constant 0 : index
    %c0_147 = arith.constant 0 : index
    %434 = vector.load %arg12[%433, %c0_146, %c0_147] : memref<8x8x64xf32, #tpu.memory_space<vmem>>, vector<1x8x32xf32>
    %435 = vector.shape_cast %434 : vector<1x8x32xf32> to vector<8x32xf32>
    %436 = vector.shape_cast %401 : vector<8x32xf32> to vector<1x8x32xf32>
    tpu.vector_store %arg12[%433, %c0_146, %c0_147], %436 {strides = array<i32>} : memref<8x8x64xf32, #tpu.memory_space<vmem>>, vector<1x8x32xf32>,
    %437 = arith.index_cast %357 : i32 to index
    %c0_148 = arith.constant 0 : index
    %c32_149 = arith.constant 32 : index
    %438 = vector.load %arg12[%437, %c0_148, %c32_149] : memref<8x8x64xf32, #tpu.memory_space<vmem>>, vector<1x8x32xf32>
    %439 = vector.shape_cast %438 : vector<1x8x32xf32> to vector<8x32xf32>
    %440 = vector.shape_cast %432 : vector<8x32xf32> to vector<1x8x32xf32>
    tpu.vector_store %arg12[%437, %c0_148, %c32_149], %440 {strides = array<i32>} : memref<8x8x64xf32, #tpu.memory_space<vmem>>, vector<1x8x32xf32>,
    %441 = tpu.concatenate %401, %432 in 1 : vector<8x32xf32>, vector<8x32xf32> -> vector<8x64xf32>
    %442 = arith.truncf %441 : vector<8x64xf32> to vector<8x64xbf16>
    %c5_i32 = arith.constant 5 : i32
    %c7_i32_150 = arith.constant 7 : i32
    %443 = arith.subi %c7_i32_150, %c5_i32 : i32
    %cst_151 = arith.constant dense<0.000000e+00> : vector<8x256xf32>
    %444 = tpu.matmul %442, %10, %cst_151 {dimension_numbers = #tpu.dot_dimension_numbers<[1], [0], [0], [1], [0, 0, 1, 1], [], []>} : vector<8x64xbf16>, vector<64x256xbf16>, vector<8x256xf32> -> vector<8x256xf32>
    %445 = arith.index_cast %c5_i32 : i32 to index
    %c0_152 = arith.constant 0 : index
    %c0_153 = arith.constant 0 : index
    %446 = vector.load %arg11[%445, %c0_152, %c0_153] : memref<8x8x256xbf16, #tpu.memory_space<vmem>>, vector<1x8x128xbf16>
    %447 = vector.shape_cast %446 : vector<1x8x128xbf16> to vector<8x128xbf16>
    %448 = arith.extf %447 : vector<8x128xbf16> to vector<8x128xf32>
    %449 = vector.extract_strided_slice %444 {offsets = [0, 0], sizes = [8, 128], strides = [1, 1]} : vector<8x256xf32> to vector<8x128xf32>
    %450 = arith.addf %448, %449 : vector<8x128xf32>
    %451 = arith.index_cast %443 : i32 to index
    %c0_154 = arith.constant 0 : index
    %c128_155 = arith.constant 128 : index
    %452 = vector.load %arg11[%451, %c0_154, %c128_155] : memref<8x8x256xbf16, #tpu.memory_space<vmem>>, vector<1x8x128xbf16>
    %453 = vector.shape_cast %452 : vector<1x8x128xbf16> to vector<8x128xbf16>
    %454 = arith.extf %453 : vector<8x128xbf16> to vector<8x128xf32>
    %455 = vector.extract_strided_slice %444 {offsets = [0, 128], sizes = [8, 128], strides = [1, 1]} : vector<8x256xf32> to vector<8x128xf32>
    %456 = arith.addf %454, %455 : vector<8x128xf32>
    %457 = vector.extract_strided_slice %450 {offsets = [0, 0], sizes = [8, 32], strides = [1, 1]} : vector<8x128xf32> to vector<8x32xf32>
    %cst_156 = arith.constant 5.000000e-01 : f32
    %458 = vector.broadcast %cst_156 : f32 to vector<8x32xf32>
    %459 = arith.mulf %458, %457 : vector<8x32xf32>
    %460 = math.tanh %459 : vector<8x32xf32>
    %cst_157 = arith.constant 1.000000e+00 : f32
    %461 = vector.broadcast %cst_157 : f32 to vector<8x32xf32>
    %462 = arith.addf %460, %461 : vector<8x32xf32>
    %cst_158 = arith.constant 5.000000e-01 : f32
    %463 = vector.broadcast %cst_158 : f32 to vector<8x32xf32>
    %464 = arith.mulf %463, %462 : vector<8x32xf32>
    %465 = vector.extract_strided_slice %450 {offsets = [0, 32], sizes = [8, 32], strides = [1, 1]} : vector<8x128xf32> to vector<8x32xf32>
    %cst_159 = arith.constant 5.000000e-01 : f32
    %466 = vector.broadcast %cst_159 : f32 to vector<8x32xf32>
    %467 = arith.mulf %466, %465 : vector<8x32xf32>
    %468 = math.tanh %467 : vector<8x32xf32>
    %cst_160 = arith.constant 1.000000e+00 : f32
    %469 = vector.broadcast %cst_160 : f32 to vector<8x32xf32>
    %470 = arith.addf %468, %469 : vector<8x32xf32>
    %cst_161 = arith.constant 5.000000e-01 : f32
    %471 = vector.broadcast %cst_161 : f32 to vector<8x32xf32>
    %472 = arith.mulf %471, %470 : vector<8x32xf32>
    %473 = vector.extract_strided_slice %450 {offsets = [0, 64], sizes = [8, 32], strides = [1, 1]} : vector<8x128xf32> to vector<8x32xf32>
    %474 = math.tanh %473 : vector<8x32xf32>
    %475 = vector.extract_strided_slice %450 {offsets = [0, 96], sizes = [8, 32], strides = [1, 1]} : vector<8x128xf32> to vector<8x32xf32>
    %cst_162 = arith.constant 5.000000e-01 : f32
    %476 = vector.broadcast %cst_162 : f32 to vector<8x32xf32>
    %477 = arith.mulf %476, %475 : vector<8x32xf32>
    %478 = math.tanh %477 : vector<8x32xf32>
    %cst_163 = arith.constant 1.000000e+00 : f32
    %479 = vector.broadcast %cst_163 : f32 to vector<8x32xf32>
    %480 = arith.addf %478, %479 : vector<8x32xf32>
    %cst_164 = arith.constant 5.000000e-01 : f32
    %481 = vector.broadcast %cst_164 : f32 to vector<8x32xf32>
    %482 = arith.mulf %481, %480 : vector<8x32xf32>
    %483 = arith.mulf %472, %399 : vector<8x32xf32>
    %484 = arith.mulf %464, %474 : vector<8x32xf32>
    %485 = arith.addf %483, %484 : vector<8x32xf32>
    %486 = math.tanh %485 : vector<8x32xf32>
    %487 = arith.mulf %482, %486 : vector<8x32xf32>
    %488 = vector.extract_strided_slice %456 {offsets = [0, 0], sizes = [8, 32], strides = [1, 1]} : vector<8x128xf32> to vector<8x32xf32>
    %cst_165 = arith.constant 5.000000e-01 : f32
    %489 = vector.broadcast %cst_165 : f32 to vector<8x32xf32>
    %490 = arith.mulf %489, %488 : vector<8x32xf32>
    %491 = math.tanh %490 : vector<8x32xf32>
    %cst_166 = arith.constant 1.000000e+00 : f32
    %492 = vector.broadcast %cst_166 : f32 to vector<8x32xf32>
    %493 = arith.addf %491, %492 : vector<8x32xf32>
    %cst_167 = arith.constant 5.000000e-01 : f32
    %494 = vector.broadcast %cst_167 : f32 to vector<8x32xf32>
    %495 = arith.mulf %494, %493 : vector<8x32xf32>
    %496 = vector.extract_strided_slice %456 {offsets = [0, 32], sizes = [8, 32], strides = [1, 1]} : vector<8x128xf32> to vector<8x32xf32>
    %cst_168 = arith.constant 5.000000e-01 : f32
    %497 = vector.broadcast %cst_168 : f32 to vector<8x32xf32>
    %498 = arith.mulf %497, %496 : vector<8x32xf32>
    %499 = math.tanh %498 : vector<8x32xf32>
    %cst_169 = arith.constant 1.000000e+00 : f32
    %500 = vector.broadcast %cst_169 : f32 to vector<8x32xf32>
    %501 = arith.addf %499, %500 : vector<8x32xf32>
    %cst_170 = arith.constant 5.000000e-01 : f32
    %502 = vector.broadcast %cst_170 : f32 to vector<8x32xf32>
    %503 = arith.mulf %502, %501 : vector<8x32xf32>
    %504 = vector.extract_strided_slice %456 {offsets = [0, 64], sizes = [8, 32], strides = [1, 1]} : vector<8x128xf32> to vector<8x32xf32>
    %505 = math.tanh %504 : vector<8x32xf32>
    %506 = vector.extract_strided_slice %456 {offsets = [0, 96], sizes = [8, 32], strides = [1, 1]} : vector<8x128xf32> to vector<8x32xf32>
    %cst_171 = arith.constant 5.000000e-01 : f32
    %507 = vector.broadcast %cst_171 : f32 to vector<8x32xf32>
    %508 = arith.mulf %507, %506 : vector<8x32xf32>
    %509 = math.tanh %508 : vector<8x32xf32>
    %cst_172 = arith.constant 1.000000e+00 : f32
    %510 = vector.broadcast %cst_172 : f32 to vector<8x32xf32>
    %511 = arith.addf %509, %510 : vector<8x32xf32>
    %cst_173 = arith.constant 5.000000e-01 : f32
    %512 = vector.broadcast %cst_173 : f32 to vector<8x32xf32>
    %513 = arith.mulf %512, %511 : vector<8x32xf32>
    %514 = arith.mulf %503, %430 : vector<8x32xf32>
    %515 = arith.mulf %495, %505 : vector<8x32xf32>
    %516 = arith.addf %514, %515 : vector<8x32xf32>
    %517 = math.tanh %516 : vector<8x32xf32>
    %518 = arith.mulf %513, %517 : vector<8x32xf32>
    %519 = arith.index_cast %c5_i32 : i32 to index
    %c0_174 = arith.constant 0 : index
    %c0_175 = arith.constant 0 : index
    %520 = vector.load %arg12[%519, %c0_174, %c0_175] : memref<8x8x64xf32, #tpu.memory_space<vmem>>, vector<1x8x32xf32>
    %521 = vector.shape_cast %520 : vector<1x8x32xf32> to vector<8x32xf32>
    %522 = vector.shape_cast %487 : vector<8x32xf32> to vector<1x8x32xf32>
    tpu.vector_store %arg12[%519, %c0_174, %c0_175], %522 {strides = array<i32>} : memref<8x8x64xf32, #tpu.memory_space<vmem>>, vector<1x8x32xf32>,
    %523 = arith.index_cast %443 : i32 to index
    %c0_176 = arith.constant 0 : index
    %c32_177 = arith.constant 32 : index
    %524 = vector.load %arg12[%523, %c0_176, %c32_177] : memref<8x8x64xf32, #tpu.memory_space<vmem>>, vector<1x8x32xf32>
    %525 = vector.shape_cast %524 : vector<1x8x32xf32> to vector<8x32xf32>
    %526 = vector.shape_cast %518 : vector<8x32xf32> to vector<1x8x32xf32>
    tpu.vector_store %arg12[%523, %c0_176, %c32_177], %526 {strides = array<i32>} : memref<8x8x64xf32, #tpu.memory_space<vmem>>, vector<1x8x32xf32>,
    %527 = tpu.concatenate %487, %518 in 1 : vector<8x32xf32>, vector<8x32xf32> -> vector<8x64xf32>
    %528 = arith.truncf %527 : vector<8x64xf32> to vector<8x64xbf16>
    %c6_i32 = arith.constant 6 : i32
    %c7_i32_178 = arith.constant 7 : i32
    %529 = arith.subi %c7_i32_178, %c6_i32 : i32
    %cst_179 = arith.constant dense<0.000000e+00> : vector<8x256xf32>
    %530 = tpu.matmul %528, %10, %cst_179 {dimension_numbers = #tpu.dot_dimension_numbers<[1], [0], [0], [1], [0, 0, 1, 1], [], []>} : vector<8x64xbf16>, vector<64x256xbf16>, vector<8x256xf32> -> vector<8x256xf32>
    %531 = arith.index_cast %c6_i32 : i32 to index
    %c0_180 = arith.constant 0 : index
    %c0_181 = arith.constant 0 : index
    %532 = vector.load %arg11[%531, %c0_180, %c0_181] : memref<8x8x256xbf16, #tpu.memory_space<vmem>>, vector<1x8x128xbf16>
    %533 = vector.shape_cast %532 : vector<1x8x128xbf16> to vector<8x128xbf16>
    %534 = arith.extf %533 : vector<8x128xbf16> to vector<8x128xf32>
    %535 = vector.extract_strided_slice %530 {offsets = [0, 0], sizes = [8, 128], strides = [1, 1]} : vector<8x256xf32> to vector<8x128xf32>
    %536 = arith.addf %534, %535 : vector<8x128xf32>
    %537 = arith.index_cast %529 : i32 to index
    %c0_182 = arith.constant 0 : index
    %c128_183 = arith.constant 128 : index
    %538 = vector.load %arg11[%537, %c0_182, %c128_183] : memref<8x8x256xbf16, #tpu.memory_space<vmem>>, vector<1x8x128xbf16>
    %539 = vector.shape_cast %538 : vector<1x8x128xbf16> to vector<8x128xbf16>
    %540 = arith.extf %539 : vector<8x128xbf16> to vector<8x128xf32>
    %541 = vector.extract_strided_slice %530 {offsets = [0, 128], sizes = [8, 128], strides = [1, 1]} : vector<8x256xf32> to vector<8x128xf32>
    %542 = arith.addf %540, %541 : vector<8x128xf32>
    %543 = vector.extract_strided_slice %536 {offsets = [0, 0], sizes = [8, 32], strides = [1, 1]} : vector<8x128xf32> to vector<8x32xf32>
    %cst_184 = arith.constant 5.000000e-01 : f32
    %544 = vector.broadcast %cst_184 : f32 to vector<8x32xf32>
    %545 = arith.mulf %544, %543 : vector<8x32xf32>
    %546 = math.tanh %545 : vector<8x32xf32>
    %cst_185 = arith.constant 1.000000e+00 : f32
    %547 = vector.broadcast %cst_185 : f32 to vector<8x32xf32>
    %548 = arith.addf %546, %547 : vector<8x32xf32>
    %cst_186 = arith.constant 5.000000e-01 : f32
    %549 = vector.broadcast %cst_186 : f32 to vector<8x32xf32>
    %550 = arith.mulf %549, %548 : vector<8x32xf32>
    %551 = vector.extract_strided_slice %536 {offsets = [0, 32], sizes = [8, 32], strides = [1, 1]} : vector<8x128xf32> to vector<8x32xf32>
    %cst_187 = arith.constant 5.000000e-01 : f32
    %552 = vector.broadcast %cst_187 : f32 to vector<8x32xf32>
    %553 = arith.mulf %552, %551 : vector<8x32xf32>
    %554 = math.tanh %553 : vector<8x32xf32>
    %cst_188 = arith.constant 1.000000e+00 : f32
    %555 = vector.broadcast %cst_188 : f32 to vector<8x32xf32>
    %556 = arith.addf %554, %555 : vector<8x32xf32>
    %cst_189 = arith.constant 5.000000e-01 : f32
    %557 = vector.broadcast %cst_189 : f32 to vector<8x32xf32>
    %558 = arith.mulf %557, %556 : vector<8x32xf32>
    %559 = vector.extract_strided_slice %536 {offsets = [0, 64], sizes = [8, 32], strides = [1, 1]} : vector<8x128xf32> to vector<8x32xf32>
    %560 = math.tanh %559 : vector<8x32xf32>
    %561 = vector.extract_strided_slice %536 {offsets = [0, 96], sizes = [8, 32], strides = [1, 1]} : vector<8x128xf32> to vector<8x32xf32>
    %cst_190 = arith.constant 5.000000e-01 : f32
    %562 = vector.broadcast %cst_190 : f32 to vector<8x32xf32>
    %563 = arith.mulf %562, %561 : vector<8x32xf32>
    %564 = math.tanh %563 : vector<8x32xf32>
    %cst_191 = arith.constant 1.000000e+00 : f32
    %565 = vector.broadcast %cst_191 : f32 to vector<8x32xf32>
    %566 = arith.addf %564, %565 : vector<8x32xf32>
    %cst_192 = arith.constant 5.000000e-01 : f32
    %567 = vector.broadcast %cst_192 : f32 to vector<8x32xf32>
    %568 = arith.mulf %567, %566 : vector<8x32xf32>
    %569 = arith.mulf %558, %485 : vector<8x32xf32>
    %570 = arith.mulf %550, %560 : vector<8x32xf32>
    %571 = arith.addf %569, %570 : vector<8x32xf32>
    %572 = math.tanh %571 : vector<8x32xf32>
    %573 = arith.mulf %568, %572 : vector<8x32xf32>
    %574 = vector.extract_strided_slice %542 {offsets = [0, 0], sizes = [8, 32], strides = [1, 1]} : vector<8x128xf32> to vector<8x32xf32>
    %cst_193 = arith.constant 5.000000e-01 : f32
    %575 = vector.broadcast %cst_193 : f32 to vector<8x32xf32>
    %576 = arith.mulf %575, %574 : vector<8x32xf32>
    %577 = math.tanh %576 : vector<8x32xf32>
    %cst_194 = arith.constant 1.000000e+00 : f32
    %578 = vector.broadcast %cst_194 : f32 to vector<8x32xf32>
    %579 = arith.addf %577, %578 : vector<8x32xf32>
    %cst_195 = arith.constant 5.000000e-01 : f32
    %580 = vector.broadcast %cst_195 : f32 to vector<8x32xf32>
    %581 = arith.mulf %580, %579 : vector<8x32xf32>
    %582 = vector.extract_strided_slice %542 {offsets = [0, 32], sizes = [8, 32], strides = [1, 1]} : vector<8x128xf32> to vector<8x32xf32>
    %cst_196 = arith.constant 5.000000e-01 : f32
    %583 = vector.broadcast %cst_196 : f32 to vector<8x32xf32>
    %584 = arith.mulf %583, %582 : vector<8x32xf32>
    %585 = math.tanh %584 : vector<8x32xf32>
    %cst_197 = arith.constant 1.000000e+00 : f32
    %586 = vector.broadcast %cst_197 : f32 to vector<8x32xf32>
    %587 = arith.addf %585, %586 : vector<8x32xf32>
    %cst_198 = arith.constant 5.000000e-01 : f32
    %588 = vector.broadcast %cst_198 : f32 to vector<8x32xf32>
    %589 = arith.mulf %588, %587 : vector<8x32xf32>
    %590 = vector.extract_strided_slice %542 {offsets = [0, 64], sizes = [8, 32], strides = [1, 1]} : vector<8x128xf32> to vector<8x32xf32>
    %591 = math.tanh %590 : vector<8x32xf32>
    %592 = vector.extract_strided_slice %542 {offsets = [0, 96], sizes = [8, 32], strides = [1, 1]} : vector<8x128xf32> to vector<8x32xf32>
    %cst_199 = arith.constant 5.000000e-01 : f32
    %593 = vector.broadcast %cst_199 : f32 to vector<8x32xf32>
    %594 = arith.mulf %593, %592 : vector<8x32xf32>
    %595 = math.tanh %594 : vector<8x32xf32>
    %cst_200 = arith.constant 1.000000e+00 : f32
    %596 = vector.broadcast %cst_200 : f32 to vector<8x32xf32>
    %597 = arith.addf %595, %596 : vector<8x32xf32>
    %cst_201 = arith.constant 5.000000e-01 : f32
    %598 = vector.broadcast %cst_201 : f32 to vector<8x32xf32>
    %599 = arith.mulf %598, %597 : vector<8x32xf32>
    %600 = arith.mulf %589, %516 : vector<8x32xf32>
    %601 = arith.mulf %581, %591 : vector<8x32xf32>
    %602 = arith.addf %600, %601 : vector<8x32xf32>
    %603 = math.tanh %602 : vector<8x32xf32>
    %604 = arith.mulf %599, %603 : vector<8x32xf32>
    %605 = arith.index_cast %c6_i32 : i32 to index
    %c0_202 = arith.constant 0 : index
    %c0_203 = arith.constant 0 : index
    %606 = vector.load %arg12[%605, %c0_202, %c0_203] : memref<8x8x64xf32, #tpu.memory_space<vmem>>, vector<1x8x32xf32>
    %607 = vector.shape_cast %606 : vector<1x8x32xf32> to vector<8x32xf32>
    %608 = vector.shape_cast %573 : vector<8x32xf32> to vector<1x8x32xf32>
    tpu.vector_store %arg12[%605, %c0_202, %c0_203], %608 {strides = array<i32>} : memref<8x8x64xf32, #tpu.memory_space<vmem>>, vector<1x8x32xf32>,
    %609 = arith.index_cast %529 : i32 to index
    %c0_204 = arith.constant 0 : index
    %c32_205 = arith.constant 32 : index
    %610 = vector.load %arg12[%609, %c0_204, %c32_205] : memref<8x8x64xf32, #tpu.memory_space<vmem>>, vector<1x8x32xf32>
    %611 = vector.shape_cast %610 : vector<1x8x32xf32> to vector<8x32xf32>
    %612 = vector.shape_cast %604 : vector<8x32xf32> to vector<1x8x32xf32>
    tpu.vector_store %arg12[%609, %c0_204, %c32_205], %612 {strides = array<i32>} : memref<8x8x64xf32, #tpu.memory_space<vmem>>, vector<1x8x32xf32>,
    %613 = tpu.concatenate %573, %604 in 1 : vector<8x32xf32>, vector<8x32xf32> -> vector<8x64xf32>
    %614 = arith.truncf %613 : vector<8x64xf32> to vector<8x64xbf16>
    %c7_i32_206 = arith.constant 7 : i32
    %c7_i32_207 = arith.constant 7 : i32
    %615 = arith.subi %c7_i32_207, %c7_i32_206 : i32
    %cst_208 = arith.constant dense<0.000000e+00> : vector<8x256xf32>
    %616 = tpu.matmul %614, %10, %cst_208 {dimension_numbers = #tpu.dot_dimension_numbers<[1], [0], [0], [1], [0, 0, 1, 1], [], []>} : vector<8x64xbf16>, vector<64x256xbf16>, vector<8x256xf32> -> vector<8x256xf32>
    %617 = arith.index_cast %c7_i32_206 : i32 to index
    %c0_209 = arith.constant 0 : index
    %c0_210 = arith.constant 0 : index
    %618 = vector.load %arg11[%617, %c0_209, %c0_210] : memref<8x8x256xbf16, #tpu.memory_space<vmem>>, vector<1x8x128xbf16>
    %619 = vector.shape_cast %618 : vector<1x8x128xbf16> to vector<8x128xbf16>
    %620 = arith.extf %619 : vector<8x128xbf16> to vector<8x128xf32>
    %621 = vector.extract_strided_slice %616 {offsets = [0, 0], sizes = [8, 128], strides = [1, 1]} : vector<8x256xf32> to vector<8x128xf32>
    %622 = arith.addf %620, %621 : vector<8x128xf32>
    %623 = arith.index_cast %615 : i32 to index
    %c0_211 = arith.constant 0 : index
    %c128_212 = arith.constant 128 : index
    %624 = vector.load %arg11[%623, %c0_211, %c128_212] : memref<8x8x256xbf16, #tpu.memory_space<vmem>>, vector<1x8x128xbf16>
    %625 = vector.shape_cast %624 : vector<1x8x128xbf16> to vector<8x128xbf16>
    %626 = arith.extf %625 : vector<8x128xbf16> to vector<8x128xf32>
    %627 = vector.extract_strided_slice %616 {offsets = [0, 128], sizes = [8, 128], strides = [1, 1]} : vector<8x256xf32> to vector<8x128xf32>
    %628 = arith.addf %626, %627 : vector<8x128xf32>
    %629 = vector.extract_strided_slice %622 {offsets = [0, 0], sizes = [8, 32], strides = [1, 1]} : vector<8x128xf32> to vector<8x32xf32>
    %cst_213 = arith.constant 5.000000e-01 : f32
    %630 = vector.broadcast %cst_213 : f32 to vector<8x32xf32>
    %631 = arith.mulf %630, %629 : vector<8x32xf32>
    %632 = math.tanh %631 : vector<8x32xf32>
    %cst_214 = arith.constant 1.000000e+00 : f32
    %633 = vector.broadcast %cst_214 : f32 to vector<8x32xf32>
    %634 = arith.addf %632, %633 : vector<8x32xf32>
    %cst_215 = arith.constant 5.000000e-01 : f32
    %635 = vector.broadcast %cst_215 : f32 to vector<8x32xf32>
    %636 = arith.mulf %635, %634 : vector<8x32xf32>
    %637 = vector.extract_strided_slice %622 {offsets = [0, 32], sizes = [8, 32], strides = [1, 1]} : vector<8x128xf32> to vector<8x32xf32>
    %cst_216 = arith.constant 5.000000e-01 : f32
    %638 = vector.broadcast %cst_216 : f32 to vector<8x32xf32>
    %639 = arith.mulf %638, %637 : vector<8x32xf32>
    %640 = math.tanh %639 : vector<8x32xf32>
    %cst_217 = arith.constant 1.000000e+00 : f32
    %641 = vector.broadcast %cst_217 : f32 to vector<8x32xf32>
    %642 = arith.addf %640, %641 : vector<8x32xf32>
    %cst_218 = arith.constant 5.000000e-01 : f32
    %643 = vector.broadcast %cst_218 : f32 to vector<8x32xf32>
    %644 = arith.mulf %643, %642 : vector<8x32xf32>
    %645 = vector.extract_strided_slice %622 {offsets = [0, 64], sizes = [8, 32], strides = [1, 1]} : vector<8x128xf32> to vector<8x32xf32>
    %646 = math.tanh %645 : vector<8x32xf32>
    %647 = vector.extract_strided_slice %622 {offsets = [0, 96], sizes = [8, 32], strides = [1, 1]} : vector<8x128xf32> to vector<8x32xf32>
    %cst_219 = arith.constant 5.000000e-01 : f32
    %648 = vector.broadcast %cst_219 : f32 to vector<8x32xf32>
    %649 = arith.mulf %648, %647 : vector<8x32xf32>
    %650 = math.tanh %649 : vector<8x32xf32>
    %cst_220 = arith.constant 1.000000e+00 : f32
    %651 = vector.broadcast %cst_220 : f32 to vector<8x32xf32>
    %652 = arith.addf %650, %651 : vector<8x32xf32>
    %cst_221 = arith.constant 5.000000e-01 : f32
    %653 = vector.broadcast %cst_221 : f32 to vector<8x32xf32>
    %654 = arith.mulf %653, %652 : vector<8x32xf32>
    %655 = arith.mulf %644, %571 : vector<8x32xf32>
    %656 = arith.mulf %636, %646 : vector<8x32xf32>
    %657 = arith.addf %655, %656 : vector<8x32xf32>
    %658 = math.tanh %657 : vector<8x32xf32>
    %659 = arith.mulf %654, %658 : vector<8x32xf32>
    %660 = vector.extract_strided_slice %628 {offsets = [0, 0], sizes = [8, 32], strides = [1, 1]} : vector<8x128xf32> to vector<8x32xf32>
    %cst_222 = arith.constant 5.000000e-01 : f32
    %661 = vector.broadcast %cst_222 : f32 to vector<8x32xf32>
    %662 = arith.mulf %661, %660 : vector<8x32xf32>
    %663 = math.tanh %662 : vector<8x32xf32>
    %cst_223 = arith.constant 1.000000e+00 : f32
    %664 = vector.broadcast %cst_223 : f32 to vector<8x32xf32>
    %665 = arith.addf %663, %664 : vector<8x32xf32>
    %cst_224 = arith.constant 5.000000e-01 : f32
    %666 = vector.broadcast %cst_224 : f32 to vector<8x32xf32>
    %667 = arith.mulf %666, %665 : vector<8x32xf32>
    %668 = vector.extract_strided_slice %628 {offsets = [0, 32], sizes = [8, 32], strides = [1, 1]} : vector<8x128xf32> to vector<8x32xf32>
    %cst_225 = arith.constant 5.000000e-01 : f32
    %669 = vector.broadcast %cst_225 : f32 to vector<8x32xf32>
    %670 = arith.mulf %669, %668 : vector<8x32xf32>
    %671 = math.tanh %670 : vector<8x32xf32>
    %cst_226 = arith.constant 1.000000e+00 : f32
    %672 = vector.broadcast %cst_226 : f32 to vector<8x32xf32>
    %673 = arith.addf %671, %672 : vector<8x32xf32>
    %cst_227 = arith.constant 5.000000e-01 : f32
    %674 = vector.broadcast %cst_227 : f32 to vector<8x32xf32>
    %675 = arith.mulf %674, %673 : vector<8x32xf32>
    %676 = vector.extract_strided_slice %628 {offsets = [0, 64], sizes = [8, 32], strides = [1, 1]} : vector<8x128xf32> to vector<8x32xf32>
    %677 = math.tanh %676 : vector<8x32xf32>
    %678 = vector.extract_strided_slice %628 {offsets = [0, 96], sizes = [8, 32], strides = [1, 1]} : vector<8x128xf32> to vector<8x32xf32>
    %cst_228 = arith.constant 5.000000e-01 : f32
    %679 = vector.broadcast %cst_228 : f32 to vector<8x32xf32>
    %680 = arith.mulf %679, %678 : vector<8x32xf32>
    %681 = math.tanh %680 : vector<8x32xf32>
    %cst_229 = arith.constant 1.000000e+00 : f32
    %682 = vector.broadcast %cst_229 : f32 to vector<8x32xf32>
    %683 = arith.addf %681, %682 : vector<8x32xf32>
    %cst_230 = arith.constant 5.000000e-01 : f32
    %684 = vector.broadcast %cst_230 : f32 to vector<8x32xf32>
    %685 = arith.mulf %684, %683 : vector<8x32xf32>
    %686 = arith.mulf %675, %602 : vector<8x32xf32>
    %687 = arith.mulf %667, %677 : vector<8x32xf32>
    %688 = arith.addf %686, %687 : vector<8x32xf32>
    %689 = math.tanh %688 : vector<8x32xf32>
    %690 = arith.mulf %685, %689 : vector<8x32xf32>
    %691 = arith.index_cast %c7_i32_206 : i32 to index
    %c0_231 = arith.constant 0 : index
    %c0_232 = arith.constant 0 : index
    %692 = vector.load %arg12[%691, %c0_231, %c0_232] : memref<8x8x64xf32, #tpu.memory_space<vmem>>, vector<1x8x32xf32>
    %693 = vector.shape_cast %692 : vector<1x8x32xf32> to vector<8x32xf32>
    %694 = vector.shape_cast %659 : vector<8x32xf32> to vector<1x8x32xf32>
    tpu.vector_store %arg12[%691, %c0_231, %c0_232], %694 {strides = array<i32>} : memref<8x8x64xf32, #tpu.memory_space<vmem>>, vector<1x8x32xf32>,
    %695 = arith.index_cast %615 : i32 to index
    %c0_233 = arith.constant 0 : index
    %c32_234 = arith.constant 32 : index
    %696 = vector.load %arg12[%695, %c0_233, %c32_234] : memref<8x8x64xf32, #tpu.memory_space<vmem>>, vector<1x8x32xf32>
    %697 = vector.shape_cast %696 : vector<1x8x32xf32> to vector<8x32xf32>
    %698 = vector.shape_cast %690 : vector<8x32xf32> to vector<1x8x32xf32>
    tpu.vector_store %arg12[%695, %c0_233, %c32_234], %698 {strides = array<i32>} : memref<8x8x64xf32, #tpu.memory_space<vmem>>, vector<1x8x32xf32>,
    %699 = tpu.concatenate %659, %690 in 1 : vector<8x32xf32>, vector<8x32xf32> -> vector<8x64xf32>
    %700 = arith.truncf %699 : vector<8x64xf32> to vector<8x64xbf16>
    %c8_i32 = arith.constant 8 : i32
    %c0_235 = arith.constant 0 : index
    %c0_236 = arith.constant 0 : index
    %c0_237 = arith.constant 0 : index
    %701 = vector.load %arg12[%c0_235, %c0_236, %c0_237] : memref<8x8x64xf32, #tpu.memory_space<vmem>>, vector<8x8x64xf32>
    %702 = vector.shape_cast %701 : vector<8x8x64xf32> to vector<64x64xf32>
    %703 = arith.truncf %702 : vector<64x64xf32> to vector<64x64xbf16>
    %c0_238 = arith.constant 0 : index
    %c0_239 = arith.constant 0 : index
    %704 = vector.load %arg5[%c0_238, %c0_239] : memref<64x256xbf16, #tpu.memory_space<vmem>>, vector<64x256xbf16>
    %cst_240 = arith.constant dense<0.000000e+00> : vector<64x256xf32>
    %705 = tpu.matmul %703, %704, %cst_240 {dimension_numbers = #tpu.dot_dimension_numbers<[1], [0], [0], [1], [0, 0, 1, 1], [], []>} : vector<64x64xbf16>, vector<64x256xbf16>, vector<64x256xf32> -> vector<64x256xf32>
    %c0_241 = arith.constant 0 : index
    %c0_242 = arith.constant 0 : index
    %706 = vector.load %arg6[%c0_241, %c0_242] : memref<1x256xf32, #tpu.memory_space<vmem>>, vector<1x256xf32>
    %707 = vector.broadcast %706 : vector<1x256xf32> to vector<64x256xf32>
    %708 = arith.addf %705, %707 : vector<64x256xf32>
    %709 = arith.truncf %708 : vector<64x256xf32> to vector<64x256xbf16>
    %710 = vector.shape_cast %709 : vector<64x256xbf16> to vector<8x8x256xbf16>
    %c0_243 = arith.constant 0 : index
    %c0_244 = arith.constant 0 : index
    %c0_245 = arith.constant 0 : index
    %711 = vector.load %arg11[%c0_243, %c0_244, %c0_245] : memref<8x8x256xbf16, #tpu.memory_space<vmem>>, vector<8x8x256xbf16>
    tpu.vector_store %arg11[%c0_243, %c0_244, %c0_245], %710 {strides = array<i32>} : memref<8x8x256xbf16, #tpu.memory_space<vmem>>, vector<8x8x256xbf16>,
    %c0_246 = arith.constant 0 : index
    %c0_247 = arith.constant 0 : index
    %712 = vector.load %arg7[%c0_246, %c0_247] : memref<64x256xbf16, #tpu.memory_space<vmem>>, vector<64x256xbf16>
    %cst_248 = arith.constant 0.000000e+00 : f32
    %713 = vector.broadcast %cst_248 : f32 to vector<8x32xf32>
    %cst_249 = arith.constant 0.000000e+00 : bf16
    %714 = vector.broadcast %cst_249 : bf16 to vector<8x64xbf16>
    %c0_i32_250 = arith.constant 0 : i32
    %c7_i32_251 = arith.constant 7 : i32
    %715 = arith.subi %c7_i32_251, %c0_i32_250 : i32
    %cst_252 = arith.constant dense<0.000000e+00> : vector<8x256xf32>
    %716 = tpu.matmul %714, %712, %cst_252 {dimension_numbers = #tpu.dot_dimension_numbers<[1], [0], [0], [1], [0, 0, 1, 1], [], []>} : vector<8x64xbf16>, vector<64x256xbf16>, vector<8x256xf32> -> vector<8x256xf32>
    %717 = arith.index_cast %c0_i32_250 : i32 to index
    %c0_253 = arith.constant 0 : index
    %c0_254 = arith.constant 0 : index
    %718 = vector.load %arg11[%717, %c0_253, %c0_254] : memref<8x8x256xbf16, #tpu.memory_space<vmem>>, vector<1x8x128xbf16>
    %719 = vector.shape_cast %718 : vector<1x8x128xbf16> to vector<8x128xbf16>
    %720 = arith.extf %719 : vector<8x128xbf16> to vector<8x128xf32>
    %721 = vector.extract_strided_slice %716 {offsets = [0, 0], sizes = [8, 128], strides = [1, 1]} : vector<8x256xf32> to vector<8x128xf32>
    %722 = arith.addf %720, %721 : vector<8x128xf32>
    %723 = arith.index_cast %715 : i32 to index
    %c0_255 = arith.constant 0 : index
    %c128_256 = arith.constant 128 : index
    %724 = vector.load %arg11[%723, %c0_255, %c128_256] : memref<8x8x256xbf16, #tpu.memory_space<vmem>>, vector<1x8x128xbf16>
    %725 = vector.shape_cast %724 : vector<1x8x128xbf16> to vector<8x128xbf16>
    %726 = arith.extf %725 : vector<8x128xbf16> to vector<8x128xf32>
    %727 = vector.extract_strided_slice %716 {offsets = [0, 128], sizes = [8, 128], strides = [1, 1]} : vector<8x256xf32> to vector<8x128xf32>
    %728 = arith.addf %726, %727 : vector<8x128xf32>
    %729 = vector.extract_strided_slice %722 {offsets = [0, 0], sizes = [8, 32], strides = [1, 1]} : vector<8x128xf32> to vector<8x32xf32>
    %cst_257 = arith.constant 5.000000e-01 : f32
    %730 = vector.broadcast %cst_257 : f32 to vector<8x32xf32>
    %731 = arith.mulf %730, %729 : vector<8x32xf32>
    %732 = math.tanh %731 : vector<8x32xf32>
    %cst_258 = arith.constant 1.000000e+00 : f32
    %733 = vector.broadcast %cst_258 : f32 to vector<8x32xf32>
    %734 = arith.addf %732, %733 : vector<8x32xf32>
    %cst_259 = arith.constant 5.000000e-01 : f32
    %735 = vector.broadcast %cst_259 : f32 to vector<8x32xf32>
    %736 = arith.mulf %735, %734 : vector<8x32xf32>
    %737 = vector.extract_strided_slice %722 {offsets = [0, 32], sizes = [8, 32], strides = [1, 1]} : vector<8x128xf32> to vector<8x32xf32>
    %cst_260 = arith.constant 5.000000e-01 : f32
    %738 = vector.broadcast %cst_260 : f32 to vector<8x32xf32>
    %739 = arith.mulf %738, %737 : vector<8x32xf32>
    %740 = math.tanh %739 : vector<8x32xf32>
    %cst_261 = arith.constant 1.000000e+00 : f32
    %741 = vector.broadcast %cst_261 : f32 to vector<8x32xf32>
    %742 = arith.addf %740, %741 : vector<8x32xf32>
    %cst_262 = arith.constant 5.000000e-01 : f32
    %743 = vector.broadcast %cst_262 : f32 to vector<8x32xf32>
    %744 = arith.mulf %743, %742 : vector<8x32xf32>
    %745 = vector.extract_strided_slice %722 {offsets = [0, 64], sizes = [8, 32], strides = [1, 1]} : vector<8x128xf32> to vector<8x32xf32>
    %746 = math.tanh %745 : vector<8x32xf32>
    %747 = vector.extract_strided_slice %722 {offsets = [0, 96], sizes = [8, 32], strides = [1, 1]} : vector<8x128xf32> to vector<8x32xf32>
    %cst_263 = arith.constant 5.000000e-01 : f32
    %748 = vector.broadcast %cst_263 : f32 to vector<8x32xf32>
    %749 = arith.mulf %748, %747 : vector<8x32xf32>
    %750 = math.tanh %749 : vector<8x32xf32>
    %cst_264 = arith.constant 1.000000e+00 : f32
    %751 = vector.broadcast %cst_264 : f32 to vector<8x32xf32>
    %752 = arith.addf %750, %751 : vector<8x32xf32>
    %cst_265 = arith.constant 5.000000e-01 : f32
    %753 = vector.broadcast %cst_265 : f32 to vector<8x32xf32>
    %754 = arith.mulf %753, %752 : vector<8x32xf32>
    %755 = arith.mulf %744, %713 : vector<8x32xf32>
    %756 = arith.mulf %736, %746 : vector<8x32xf32>
    %757 = arith.addf %755, %756 : vector<8x32xf32>
    %758 = math.tanh %757 : vector<8x32xf32>
    %759 = arith.mulf %754, %758 : vector<8x32xf32>
    %760 = vector.extract_strided_slice %728 {offsets = [0, 0], sizes = [8, 32], strides = [1, 1]} : vector<8x128xf32> to vector<8x32xf32>
    %cst_266 = arith.constant 5.000000e-01 : f32
    %761 = vector.broadcast %cst_266 : f32 to vector<8x32xf32>
    %762 = arith.mulf %761, %760 : vector<8x32xf32>
    %763 = math.tanh %762 : vector<8x32xf32>
    %cst_267 = arith.constant 1.000000e+00 : f32
    %764 = vector.broadcast %cst_267 : f32 to vector<8x32xf32>
    %765 = arith.addf %763, %764 : vector<8x32xf32>
    %cst_268 = arith.constant 5.000000e-01 : f32
    %766 = vector.broadcast %cst_268 : f32 to vector<8x32xf32>
    %767 = arith.mulf %766, %765 : vector<8x32xf32>
    %768 = vector.extract_strided_slice %728 {offsets = [0, 32], sizes = [8, 32], strides = [1, 1]} : vector<8x128xf32> to vector<8x32xf32>
    %cst_269 = arith.constant 5.000000e-01 : f32
    %769 = vector.broadcast %cst_269 : f32 to vector<8x32xf32>
    %770 = arith.mulf %769, %768 : vector<8x32xf32>
    %771 = math.tanh %770 : vector<8x32xf32>
    %cst_270 = arith.constant 1.000000e+00 : f32
    %772 = vector.broadcast %cst_270 : f32 to vector<8x32xf32>
    %773 = arith.addf %771, %772 : vector<8x32xf32>
    %cst_271 = arith.constant 5.000000e-01 : f32
    %774 = vector.broadcast %cst_271 : f32 to vector<8x32xf32>
    %775 = arith.mulf %774, %773 : vector<8x32xf32>
    %776 = vector.extract_strided_slice %728 {offsets = [0, 64], sizes = [8, 32], strides = [1, 1]} : vector<8x128xf32> to vector<8x32xf32>
    %777 = math.tanh %776 : vector<8x32xf32>
    %778 = vector.extract_strided_slice %728 {offsets = [0, 96], sizes = [8, 32], strides = [1, 1]} : vector<8x128xf32> to vector<8x32xf32>
    %cst_272 = arith.constant 5.000000e-01 : f32
    %779 = vector.broadcast %cst_272 : f32 to vector<8x32xf32>
    %780 = arith.mulf %779, %778 : vector<8x32xf32>
    %781 = math.tanh %780 : vector<8x32xf32>
    %cst_273 = arith.constant 1.000000e+00 : f32
    %782 = vector.broadcast %cst_273 : f32 to vector<8x32xf32>
    %783 = arith.addf %781, %782 : vector<8x32xf32>
    %cst_274 = arith.constant 5.000000e-01 : f32
    %784 = vector.broadcast %cst_274 : f32 to vector<8x32xf32>
    %785 = arith.mulf %784, %783 : vector<8x32xf32>
    %786 = arith.mulf %775, %713 : vector<8x32xf32>
    %787 = arith.mulf %767, %777 : vector<8x32xf32>
    %788 = arith.addf %786, %787 : vector<8x32xf32>
    %789 = math.tanh %788 : vector<8x32xf32>
    %790 = arith.mulf %785, %789 : vector<8x32xf32>
    %791 = arith.index_cast %c0_i32_250 : i32 to index
    %c0_275 = arith.constant 0 : index
    %c0_276 = arith.constant 0 : index
    %792 = vector.load %arg12[%791, %c0_275, %c0_276] : memref<8x8x64xf32, #tpu.memory_space<vmem>>, vector<1x8x32xf32>
    %793 = vector.shape_cast %792 : vector<1x8x32xf32> to vector<8x32xf32>
    %794 = vector.shape_cast %759 : vector<8x32xf32> to vector<1x8x32xf32>
    tpu.vector_store %arg12[%791, %c0_275, %c0_276], %794 {strides = array<i32>} : memref<8x8x64xf32, #tpu.memory_space<vmem>>, vector<1x8x32xf32>,
    %795 = arith.index_cast %715 : i32 to index
    %c0_277 = arith.constant 0 : index
    %c32_278 = arith.constant 32 : index
    %796 = vector.load %arg12[%795, %c0_277, %c32_278] : memref<8x8x64xf32, #tpu.memory_space<vmem>>, vector<1x8x32xf32>
    %797 = vector.shape_cast %796 : vector<1x8x32xf32> to vector<8x32xf32>
    %798 = vector.shape_cast %790 : vector<8x32xf32> to vector<1x8x32xf32>
    tpu.vector_store %arg12[%795, %c0_277, %c32_278], %798 {strides = array<i32>} : memref<8x8x64xf32, #tpu.memory_space<vmem>>, vector<1x8x32xf32>,
    %799 = tpu.concatenate %759, %790 in 1 : vector<8x32xf32>, vector<8x32xf32> -> vector<8x64xf32>
    %800 = arith.truncf %799 : vector<8x64xf32> to vector<8x64xbf16>
    %c1_i32_279 = arith.constant 1 : i32
    %c7_i32_280 = arith.constant 7 : i32
    %801 = arith.subi %c7_i32_280, %c1_i32_279 : i32
    %cst_281 = arith.constant dense<0.000000e+00> : vector<8x256xf32>
    %802 = tpu.matmul %800, %712, %cst_281 {dimension_numbers = #tpu.dot_dimension_numbers<[1], [0], [0], [1], [0, 0, 1, 1], [], []>} : vector<8x64xbf16>, vector<64x256xbf16>, vector<8x256xf32> -> vector<8x256xf32>
    %803 = arith.index_cast %c1_i32_279 : i32 to index
    %c0_282 = arith.constant 0 : index
    %c0_283 = arith.constant 0 : index
    %804 = vector.load %arg11[%803, %c0_282, %c0_283] : memref<8x8x256xbf16, #tpu.memory_space<vmem>>, vector<1x8x128xbf16>
    %805 = vector.shape_cast %804 : vector<1x8x128xbf16> to vector<8x128xbf16>
    %806 = arith.extf %805 : vector<8x128xbf16> to vector<8x128xf32>
    %807 = vector.extract_strided_slice %802 {offsets = [0, 0], sizes = [8, 128], strides = [1, 1]} : vector<8x256xf32> to vector<8x128xf32>
    %808 = arith.addf %806, %807 : vector<8x128xf32>
    %809 = arith.index_cast %801 : i32 to index
    %c0_284 = arith.constant 0 : index
    %c128_285 = arith.constant 128 : index
    %810 = vector.load %arg11[%809, %c0_284, %c128_285] : memref<8x8x256xbf16, #tpu.memory_space<vmem>>, vector<1x8x128xbf16>
    %811 = vector.shape_cast %810 : vector<1x8x128xbf16> to vector<8x128xbf16>
    %812 = arith.extf %811 : vector<8x128xbf16> to vector<8x128xf32>
    %813 = vector.extract_strided_slice %802 {offsets = [0, 128], sizes = [8, 128], strides = [1, 1]} : vector<8x256xf32> to vector<8x128xf32>
    %814 = arith.addf %812, %813 : vector<8x128xf32>
    %815 = vector.extract_strided_slice %808 {offsets = [0, 0], sizes = [8, 32], strides = [1, 1]} : vector<8x128xf32> to vector<8x32xf32>
    %cst_286 = arith.constant 5.000000e-01 : f32
    %816 = vector.broadcast %cst_286 : f32 to vector<8x32xf32>
    %817 = arith.mulf %816, %815 : vector<8x32xf32>
    %818 = math.tanh %817 : vector<8x32xf32>
    %cst_287 = arith.constant 1.000000e+00 : f32
    %819 = vector.broadcast %cst_287 : f32 to vector<8x32xf32>
    %820 = arith.addf %818, %819 : vector<8x32xf32>
    %cst_288 = arith.constant 5.000000e-01 : f32
    %821 = vector.broadcast %cst_288 : f32 to vector<8x32xf32>
    %822 = arith.mulf %821, %820 : vector<8x32xf32>
    %823 = vector.extract_strided_slice %808 {offsets = [0, 32], sizes = [8, 32], strides = [1, 1]} : vector<8x128xf32> to vector<8x32xf32>
    %cst_289 = arith.constant 5.000000e-01 : f32
    %824 = vector.broadcast %cst_289 : f32 to vector<8x32xf32>
    %825 = arith.mulf %824, %823 : vector<8x32xf32>
    %826 = math.tanh %825 : vector<8x32xf32>
    %cst_290 = arith.constant 1.000000e+00 : f32
    %827 = vector.broadcast %cst_290 : f32 to vector<8x32xf32>
    %828 = arith.addf %826, %827 : vector<8x32xf32>
    %cst_291 = arith.constant 5.000000e-01 : f32
    %829 = vector.broadcast %cst_291 : f32 to vector<8x32xf32>
    %830 = arith.mulf %829, %828 : vector<8x32xf32>
    %831 = vector.extract_strided_slice %808 {offsets = [0, 64], sizes = [8, 32], strides = [1, 1]} : vector<8x128xf32> to vector<8x32xf32>
    %832 = math.tanh %831 : vector<8x32xf32>
    %833 = vector.extract_strided_slice %808 {offsets = [0, 96], sizes = [8, 32], strides = [1, 1]} : vector<8x128xf32> to vector<8x32xf32>
    %cst_292 = arith.constant 5.000000e-01 : f32
    %834 = vector.broadcast %cst_292 : f32 to vector<8x32xf32>
    %835 = arith.mulf %834, %833 : vector<8x32xf32>
    %836 = math.tanh %835 : vector<8x32xf32>
    %cst_293 = arith.constant 1.000000e+00 : f32
    %837 = vector.broadcast %cst_293 : f32 to vector<8x32xf32>
    %838 = arith.addf %836, %837 : vector<8x32xf32>
    %cst_294 = arith.constant 5.000000e-01 : f32
    %839 = vector.broadcast %cst_294 : f32 to vector<8x32xf32>
    %840 = arith.mulf %839, %838 : vector<8x32xf32>
    %841 = arith.mulf %830, %757 : vector<8x32xf32>
    %842 = arith.mulf %822, %832 : vector<8x32xf32>
    %843 = arith.addf %841, %842 : vector<8x32xf32>
    %844 = math.tanh %843 : vector<8x32xf32>
    %845 = arith.mulf %840, %844 : vector<8x32xf32>
    %846 = vector.extract_strided_slice %814 {offsets = [0, 0], sizes = [8, 32], strides = [1, 1]} : vector<8x128xf32> to vector<8x32xf32>
    %cst_295 = arith.constant 5.000000e-01 : f32
    %847 = vector.broadcast %cst_295 : f32 to vector<8x32xf32>
    %848 = arith.mulf %847, %846 : vector<8x32xf32>
    %849 = math.tanh %848 : vector<8x32xf32>
    %cst_296 = arith.constant 1.000000e+00 : f32
    %850 = vector.broadcast %cst_296 : f32 to vector<8x32xf32>
    %851 = arith.addf %849, %850 : vector<8x32xf32>
    %cst_297 = arith.constant 5.000000e-01 : f32
    %852 = vector.broadcast %cst_297 : f32 to vector<8x32xf32>
    %853 = arith.mulf %852, %851 : vector<8x32xf32>
    %854 = vector.extract_strided_slice %814 {offsets = [0, 32], sizes = [8, 32], strides = [1, 1]} : vector<8x128xf32> to vector<8x32xf32>
    %cst_298 = arith.constant 5.000000e-01 : f32
    %855 = vector.broadcast %cst_298 : f32 to vector<8x32xf32>
    %856 = arith.mulf %855, %854 : vector<8x32xf32>
    %857 = math.tanh %856 : vector<8x32xf32>
    %cst_299 = arith.constant 1.000000e+00 : f32
    %858 = vector.broadcast %cst_299 : f32 to vector<8x32xf32>
    %859 = arith.addf %857, %858 : vector<8x32xf32>
    %cst_300 = arith.constant 5.000000e-01 : f32
    %860 = vector.broadcast %cst_300 : f32 to vector<8x32xf32>
    %861 = arith.mulf %860, %859 : vector<8x32xf32>
    %862 = vector.extract_strided_slice %814 {offsets = [0, 64], sizes = [8, 32], strides = [1, 1]} : vector<8x128xf32> to vector<8x32xf32>
    %863 = math.tanh %862 : vector<8x32xf32>
    %864 = vector.extract_strided_slice %814 {offsets = [0, 96], sizes = [8, 32], strides = [1, 1]} : vector<8x128xf32> to vector<8x32xf32>
    %cst_301 = arith.constant 5.000000e-01 : f32
    %865 = vector.broadcast %cst_301 : f32 to vector<8x32xf32>
    %866 = arith.mulf %865, %864 : vector<8x32xf32>
    %867 = math.tanh %866 : vector<8x32xf32>
    %cst_302 = arith.constant 1.000000e+00 : f32
    %868 = vector.broadcast %cst_302 : f32 to vector<8x32xf32>
    %869 = arith.addf %867, %868 : vector<8x32xf32>
    %cst_303 = arith.constant 5.000000e-01 : f32
    %870 = vector.broadcast %cst_303 : f32 to vector<8x32xf32>
    %871 = arith.mulf %870, %869 : vector<8x32xf32>
    %872 = arith.mulf %861, %788 : vector<8x32xf32>
    %873 = arith.mulf %853, %863 : vector<8x32xf32>
    %874 = arith.addf %872, %873 : vector<8x32xf32>
    %875 = math.tanh %874 : vector<8x32xf32>
    %876 = arith.mulf %871, %875 : vector<8x32xf32>
    %877 = arith.index_cast %c1_i32_279 : i32 to index
    %c0_304 = arith.constant 0 : index
    %c0_305 = arith.constant 0 : index
    %878 = vector.load %arg12[%877, %c0_304, %c0_305] : memref<8x8x64xf32, #tpu.memory_space<vmem>>, vector<1x8x32xf32>
    %879 = vector.shape_cast %878 : vector<1x8x32xf32> to vector<8x32xf32>
    %880 = vector.shape_cast %845 : vector<8x32xf32> to vector<1x8x32xf32>
    tpu.vector_store %arg12[%877, %c0_304, %c0_305], %880 {strides = array<i32>} : memref<8x8x64xf32, #tpu.memory_space<vmem>>, vector<1x8x32xf32>,
    %881 = arith.index_cast %801 : i32 to index
    %c0_306 = arith.constant 0 : index
    %c32_307 = arith.constant 32 : index
    %882 = vector.load %arg12[%881, %c0_306, %c32_307] : memref<8x8x64xf32, #tpu.memory_space<vmem>>, vector<1x8x32xf32>
    %883 = vector.shape_cast %882 : vector<1x8x32xf32> to vector<8x32xf32>
    %884 = vector.shape_cast %876 : vector<8x32xf32> to vector<1x8x32xf32>
    tpu.vector_store %arg12[%881, %c0_306, %c32_307], %884 {strides = array<i32>} : memref<8x8x64xf32, #tpu.memory_space<vmem>>, vector<1x8x32xf32>,
    %885 = tpu.concatenate %845, %876 in 1 : vector<8x32xf32>, vector<8x32xf32> -> vector<8x64xf32>
    %886 = arith.truncf %885 : vector<8x64xf32> to vector<8x64xbf16>
    %c2_i32_308 = arith.constant 2 : i32
    %c7_i32_309 = arith.constant 7 : i32
    %887 = arith.subi %c7_i32_309, %c2_i32_308 : i32
    %cst_310 = arith.constant dense<0.000000e+00> : vector<8x256xf32>
    %888 = tpu.matmul %886, %712, %cst_310 {dimension_numbers = #tpu.dot_dimension_numbers<[1], [0], [0], [1], [0, 0, 1, 1], [], []>} : vector<8x64xbf16>, vector<64x256xbf16>, vector<8x256xf32> -> vector<8x256xf32>
    %889 = arith.index_cast %c2_i32_308 : i32 to index
    %c0_311 = arith.constant 0 : index
    %c0_312 = arith.constant 0 : index
    %890 = vector.load %arg11[%889, %c0_311, %c0_312] : memref<8x8x256xbf16, #tpu.memory_space<vmem>>, vector<1x8x128xbf16>
    %891 = vector.shape_cast %890 : vector<1x8x128xbf16> to vector<8x128xbf16>
    %892 = arith.extf %891 : vector<8x128xbf16> to vector<8x128xf32>
    %893 = vector.extract_strided_slice %888 {offsets = [0, 0], sizes = [8, 128], strides = [1, 1]} : vector<8x256xf32> to vector<8x128xf32>
    %894 = arith.addf %892, %893 : vector<8x128xf32>
    %895 = arith.index_cast %887 : i32 to index
    %c0_313 = arith.constant 0 : index
    %c128_314 = arith.constant 128 : index
    %896 = vector.load %arg11[%895, %c0_313, %c128_314] : memref<8x8x256xbf16, #tpu.memory_space<vmem>>, vector<1x8x128xbf16>
    %897 = vector.shape_cast %896 : vector<1x8x128xbf16> to vector<8x128xbf16>
    %898 = arith.extf %897 : vector<8x128xbf16> to vector<8x128xf32>
    %899 = vector.extract_strided_slice %888 {offsets = [0, 128], sizes = [8, 128], strides = [1, 1]} : vector<8x256xf32> to vector<8x128xf32>
    %900 = arith.addf %898, %899 : vector<8x128xf32>
    %901 = vector.extract_strided_slice %894 {offsets = [0, 0], sizes = [8, 32], strides = [1, 1]} : vector<8x128xf32> to vector<8x32xf32>
    %cst_315 = arith.constant 5.000000e-01 : f32
    %902 = vector.broadcast %cst_315 : f32 to vector<8x32xf32>
    %903 = arith.mulf %902, %901 : vector<8x32xf32>
    %904 = math.tanh %903 : vector<8x32xf32>
    %cst_316 = arith.constant 1.000000e+00 : f32
    %905 = vector.broadcast %cst_316 : f32 to vector<8x32xf32>
    %906 = arith.addf %904, %905 : vector<8x32xf32>
    %cst_317 = arith.constant 5.000000e-01 : f32
    %907 = vector.broadcast %cst_317 : f32 to vector<8x32xf32>
    %908 = arith.mulf %907, %906 : vector<8x32xf32>
    %909 = vector.extract_strided_slice %894 {offsets = [0, 32], sizes = [8, 32], strides = [1, 1]} : vector<8x128xf32> to vector<8x32xf32>
    %cst_318 = arith.constant 5.000000e-01 : f32
    %910 = vector.broadcast %cst_318 : f32 to vector<8x32xf32>
    %911 = arith.mulf %910, %909 : vector<8x32xf32>
    %912 = math.tanh %911 : vector<8x32xf32>
    %cst_319 = arith.constant 1.000000e+00 : f32
    %913 = vector.broadcast %cst_319 : f32 to vector<8x32xf32>
    %914 = arith.addf %912, %913 : vector<8x32xf32>
    %cst_320 = arith.constant 5.000000e-01 : f32
    %915 = vector.broadcast %cst_320 : f32 to vector<8x32xf32>
    %916 = arith.mulf %915, %914 : vector<8x32xf32>
    %917 = vector.extract_strided_slice %894 {offsets = [0, 64], sizes = [8, 32], strides = [1, 1]} : vector<8x128xf32> to vector<8x32xf32>
    %918 = math.tanh %917 : vector<8x32xf32>
    %919 = vector.extract_strided_slice %894 {offsets = [0, 96], sizes = [8, 32], strides = [1, 1]} : vector<8x128xf32> to vector<8x32xf32>
    %cst_321 = arith.constant 5.000000e-01 : f32
    %920 = vector.broadcast %cst_321 : f32 to vector<8x32xf32>
    %921 = arith.mulf %920, %919 : vector<8x32xf32>
    %922 = math.tanh %921 : vector<8x32xf32>
    %cst_322 = arith.constant 1.000000e+00 : f32
    %923 = vector.broadcast %cst_322 : f32 to vector<8x32xf32>
    %924 = arith.addf %922, %923 : vector<8x32xf32>
    %cst_323 = arith.constant 5.000000e-01 : f32
    %925 = vector.broadcast %cst_323 : f32 to vector<8x32xf32>
    %926 = arith.mulf %925, %924 : vector<8x32xf32>
    %927 = arith.mulf %916, %843 : vector<8x32xf32>
    %928 = arith.mulf %908, %918 : vector<8x32xf32>
    %929 = arith.addf %927, %928 : vector<8x32xf32>
    %930 = math.tanh %929 : vector<8x32xf32>
    %931 = arith.mulf %926, %930 : vector<8x32xf32>
    %932 = vector.extract_strided_slice %900 {offsets = [0, 0], sizes = [8, 32], strides = [1, 1]} : vector<8x128xf32> to vector<8x32xf32>
    %cst_324 = arith.constant 5.000000e-01 : f32
    %933 = vector.broadcast %cst_324 : f32 to vector<8x32xf32>
    %934 = arith.mulf %933, %932 : vector<8x32xf32>
    %935 = math.tanh %934 : vector<8x32xf32>
    %cst_325 = arith.constant 1.000000e+00 : f32
    %936 = vector.broadcast %cst_325 : f32 to vector<8x32xf32>
    %937 = arith.addf %935, %936 : vector<8x32xf32>
    %cst_326 = arith.constant 5.000000e-01 : f32
    %938 = vector.broadcast %cst_326 : f32 to vector<8x32xf32>
    %939 = arith.mulf %938, %937 : vector<8x32xf32>
    %940 = vector.extract_strided_slice %900 {offsets = [0, 32], sizes = [8, 32], strides = [1, 1]} : vector<8x128xf32> to vector<8x32xf32>
    %cst_327 = arith.constant 5.000000e-01 : f32
    %941 = vector.broadcast %cst_327 : f32 to vector<8x32xf32>
    %942 = arith.mulf %941, %940 : vector<8x32xf32>
    %943 = math.tanh %942 : vector<8x32xf32>
    %cst_328 = arith.constant 1.000000e+00 : f32
    %944 = vector.broadcast %cst_328 : f32 to vector<8x32xf32>
    %945 = arith.addf %943, %944 : vector<8x32xf32>
    %cst_329 = arith.constant 5.000000e-01 : f32
    %946 = vector.broadcast %cst_329 : f32 to vector<8x32xf32>
    %947 = arith.mulf %946, %945 : vector<8x32xf32>
    %948 = vector.extract_strided_slice %900 {offsets = [0, 64], sizes = [8, 32], strides = [1, 1]} : vector<8x128xf32> to vector<8x32xf32>
    %949 = math.tanh %948 : vector<8x32xf32>
    %950 = vector.extract_strided_slice %900 {offsets = [0, 96], sizes = [8, 32], strides = [1, 1]} : vector<8x128xf32> to vector<8x32xf32>
    %cst_330 = arith.constant 5.000000e-01 : f32
    %951 = vector.broadcast %cst_330 : f32 to vector<8x32xf32>
    %952 = arith.mulf %951, %950 : vector<8x32xf32>
    %953 = math.tanh %952 : vector<8x32xf32>
    %cst_331 = arith.constant 1.000000e+00 : f32
    %954 = vector.broadcast %cst_331 : f32 to vector<8x32xf32>
    %955 = arith.addf %953, %954 : vector<8x32xf32>
    %cst_332 = arith.constant 5.000000e-01 : f32
    %956 = vector.broadcast %cst_332 : f32 to vector<8x32xf32>
    %957 = arith.mulf %956, %955 : vector<8x32xf32>
    %958 = arith.mulf %947, %874 : vector<8x32xf32>
    %959 = arith.mulf %939, %949 : vector<8x32xf32>
    %960 = arith.addf %958, %959 : vector<8x32xf32>
    %961 = math.tanh %960 : vector<8x32xf32>
    %962 = arith.mulf %957, %961 : vector<8x32xf32>
    %963 = arith.index_cast %c2_i32_308 : i32 to index
    %c0_333 = arith.constant 0 : index
    %c0_334 = arith.constant 0 : index
    %964 = vector.load %arg12[%963, %c0_333, %c0_334] : memref<8x8x64xf32, #tpu.memory_space<vmem>>, vector<1x8x32xf32>
    %965 = vector.shape_cast %964 : vector<1x8x32xf32> to vector<8x32xf32>
    %966 = vector.shape_cast %931 : vector<8x32xf32> to vector<1x8x32xf32>
    tpu.vector_store %arg12[%963, %c0_333, %c0_334], %966 {strides = array<i32>} : memref<8x8x64xf32, #tpu.memory_space<vmem>>, vector<1x8x32xf32>,
    %967 = arith.index_cast %887 : i32 to index
    %c0_335 = arith.constant 0 : index
    %c32_336 = arith.constant 32 : index
    %968 = vector.load %arg12[%967, %c0_335, %c32_336] : memref<8x8x64xf32, #tpu.memory_space<vmem>>, vector<1x8x32xf32>
    %969 = vector.shape_cast %968 : vector<1x8x32xf32> to vector<8x32xf32>
    %970 = vector.shape_cast %962 : vector<8x32xf32> to vector<1x8x32xf32>
    tpu.vector_store %arg12[%967, %c0_335, %c32_336], %970 {strides = array<i32>} : memref<8x8x64xf32, #tpu.memory_space<vmem>>, vector<1x8x32xf32>,
    %971 = tpu.concatenate %931, %962 in 1 : vector<8x32xf32>, vector<8x32xf32> -> vector<8x64xf32>
    %972 = arith.truncf %971 : vector<8x64xf32> to vector<8x64xbf16>
    %c3_i32_337 = arith.constant 3 : i32
    %c7_i32_338 = arith.constant 7 : i32
    %973 = arith.subi %c7_i32_338, %c3_i32_337 : i32
    %cst_339 = arith.constant dense<0.000000e+00> : vector<8x256xf32>
    %974 = tpu.matmul %972, %712, %cst_339 {dimension_numbers = #tpu.dot_dimension_numbers<[1], [0], [0], [1], [0, 0, 1, 1], [], []>} : vector<8x64xbf16>, vector<64x256xbf16>, vector<8x256xf32> -> vector<8x256xf32>
    %975 = arith.index_cast %c3_i32_337 : i32 to index
    %c0_340 = arith.constant 0 : index
    %c0_341 = arith.constant 0 : index
    %976 = vector.load %arg11[%975, %c0_340, %c0_341] : memref<8x8x256xbf16, #tpu.memory_space<vmem>>, vector<1x8x128xbf16>
    %977 = vector.shape_cast %976 : vector<1x8x128xbf16> to vector<8x128xbf16>
    %978 = arith.extf %977 : vector<8x128xbf16> to vector<8x128xf32>
    %979 = vector.extract_strided_slice %974 {offsets = [0, 0], sizes = [8, 128], strides = [1, 1]} : vector<8x256xf32> to vector<8x128xf32>
    %980 = arith.addf %978, %979 : vector<8x128xf32>
    %981 = arith.index_cast %973 : i32 to index
    %c0_342 = arith.constant 0 : index
    %c128_343 = arith.constant 128 : index
    %982 = vector.load %arg11[%981, %c0_342, %c128_343] : memref<8x8x256xbf16, #tpu.memory_space<vmem>>, vector<1x8x128xbf16>
    %983 = vector.shape_cast %982 : vector<1x8x128xbf16> to vector<8x128xbf16>
    %984 = arith.extf %983 : vector<8x128xbf16> to vector<8x128xf32>
    %985 = vector.extract_strided_slice %974 {offsets = [0, 128], sizes = [8, 128], strides = [1, 1]} : vector<8x256xf32> to vector<8x128xf32>
    %986 = arith.addf %984, %985 : vector<8x128xf32>
    %987 = vector.extract_strided_slice %980 {offsets = [0, 0], sizes = [8, 32], strides = [1, 1]} : vector<8x128xf32> to vector<8x32xf32>
    %cst_344 = arith.constant 5.000000e-01 : f32
    %988 = vector.broadcast %cst_344 : f32 to vector<8x32xf32>
    %989 = arith.mulf %988, %987 : vector<8x32xf32>
    %990 = math.tanh %989 : vector<8x32xf32>
    %cst_345 = arith.constant 1.000000e+00 : f32
    %991 = vector.broadcast %cst_345 : f32 to vector<8x32xf32>
    %992 = arith.addf %990, %991 : vector<8x32xf32>
    %cst_346 = arith.constant 5.000000e-01 : f32
    %993 = vector.broadcast %cst_346 : f32 to vector<8x32xf32>
    %994 = arith.mulf %993, %992 : vector<8x32xf32>
    %995 = vector.extract_strided_slice %980 {offsets = [0, 32], sizes = [8, 32], strides = [1, 1]} : vector<8x128xf32> to vector<8x32xf32>
    %cst_347 = arith.constant 5.000000e-01 : f32
    %996 = vector.broadcast %cst_347 : f32 to vector<8x32xf32>
    %997 = arith.mulf %996, %995 : vector<8x32xf32>
    %998 = math.tanh %997 : vector<8x32xf32>
    %cst_348 = arith.constant 1.000000e+00 : f32
    %999 = vector.broadcast %cst_348 : f32 to vector<8x32xf32>
    %1000 = arith.addf %998, %999 : vector<8x32xf32>
    %cst_349 = arith.constant 5.000000e-01 : f32
    %1001 = vector.broadcast %cst_349 : f32 to vector<8x32xf32>
    %1002 = arith.mulf %1001, %1000 : vector<8x32xf32>
    %1003 = vector.extract_strided_slice %980 {offsets = [0, 64], sizes = [8, 32], strides = [1, 1]} : vector<8x128xf32> to vector<8x32xf32>
    %1004 = math.tanh %1003 : vector<8x32xf32>
    %1005 = vector.extract_strided_slice %980 {offsets = [0, 96], sizes = [8, 32], strides = [1, 1]} : vector<8x128xf32> to vector<8x32xf32>
    %cst_350 = arith.constant 5.000000e-01 : f32
    %1006 = vector.broadcast %cst_350 : f32 to vector<8x32xf32>
    %1007 = arith.mulf %1006, %1005 : vector<8x32xf32>
    %1008 = math.tanh %1007 : vector<8x32xf32>
    %cst_351 = arith.constant 1.000000e+00 : f32
    %1009 = vector.broadcast %cst_351 : f32 to vector<8x32xf32>
    %1010 = arith.addf %1008, %1009 : vector<8x32xf32>
    %cst_352 = arith.constant 5.000000e-01 : f32
    %1011 = vector.broadcast %cst_352 : f32 to vector<8x32xf32>
    %1012 = arith.mulf %1011, %1010 : vector<8x32xf32>
    %1013 = arith.mulf %1002, %929 : vector<8x32xf32>
    %1014 = arith.mulf %994, %1004 : vector<8x32xf32>
    %1015 = arith.addf %1013, %1014 : vector<8x32xf32>
    %1016 = math.tanh %1015 : vector<8x32xf32>
    %1017 = arith.mulf %1012, %1016 : vector<8x32xf32>
    %1018 = vector.extract_strided_slice %986 {offsets = [0, 0], sizes = [8, 32], strides = [1, 1]} : vector<8x128xf32> to vector<8x32xf32>
    %cst_353 = arith.constant 5.000000e-01 : f32
    %1019 = vector.broadcast %cst_353 : f32 to vector<8x32xf32>
    %1020 = arith.mulf %1019, %1018 : vector<8x32xf32>
    %1021 = math.tanh %1020 : vector<8x32xf32>
    %cst_354 = arith.constant 1.000000e+00 : f32
    %1022 = vector.broadcast %cst_354 : f32 to vector<8x32xf32>
    %1023 = arith.addf %1021, %1022 : vector<8x32xf32>
    %cst_355 = arith.constant 5.000000e-01 : f32
    %1024 = vector.broadcast %cst_355 : f32 to vector<8x32xf32>
    %1025 = arith.mulf %1024, %1023 : vector<8x32xf32>
    %1026 = vector.extract_strided_slice %986 {offsets = [0, 32], sizes = [8, 32], strides = [1, 1]} : vector<8x128xf32> to vector<8x32xf32>
    %cst_356 = arith.constant 5.000000e-01 : f32
    %1027 = vector.broadcast %cst_356 : f32 to vector<8x32xf32>
    %1028 = arith.mulf %1027, %1026 : vector<8x32xf32>
    %1029 = math.tanh %1028 : vector<8x32xf32>
    %cst_357 = arith.constant 1.000000e+00 : f32
    %1030 = vector.broadcast %cst_357 : f32 to vector<8x32xf32>
    %1031 = arith.addf %1029, %1030 : vector<8x32xf32>
    %cst_358 = arith.constant 5.000000e-01 : f32
    %1032 = vector.broadcast %cst_358 : f32 to vector<8x32xf32>
    %1033 = arith.mulf %1032, %1031 : vector<8x32xf32>
    %1034 = vector.extract_strided_slice %986 {offsets = [0, 64], sizes = [8, 32], strides = [1, 1]} : vector<8x128xf32> to vector<8x32xf32>
    %1035 = math.tanh %1034 : vector<8x32xf32>
    %1036 = vector.extract_strided_slice %986 {offsets = [0, 96], sizes = [8, 32], strides = [1, 1]} : vector<8x128xf32> to vector<8x32xf32>
    %cst_359 = arith.constant 5.000000e-01 : f32
    %1037 = vector.broadcast %cst_359 : f32 to vector<8x32xf32>
    %1038 = arith.mulf %1037, %1036 : vector<8x32xf32>
    %1039 = math.tanh %1038 : vector<8x32xf32>
    %cst_360 = arith.constant 1.000000e+00 : f32
    %1040 = vector.broadcast %cst_360 : f32 to vector<8x32xf32>
    %1041 = arith.addf %1039, %1040 : vector<8x32xf32>
    %cst_361 = arith.constant 5.000000e-01 : f32
    %1042 = vector.broadcast %cst_361 : f32 to vector<8x32xf32>
    %1043 = arith.mulf %1042, %1041 : vector<8x32xf32>
    %1044 = arith.mulf %1033, %960 : vector<8x32xf32>
    %1045 = arith.mulf %1025, %1035 : vector<8x32xf32>
    %1046 = arith.addf %1044, %1045 : vector<8x32xf32>
    %1047 = math.tanh %1046 : vector<8x32xf32>
    %1048 = arith.mulf %1043, %1047 : vector<8x32xf32>
    %1049 = arith.index_cast %c3_i32_337 : i32 to index
    %c0_362 = arith.constant 0 : index
    %c0_363 = arith.constant 0 : index
    %1050 = vector.load %arg12[%1049, %c0_362, %c0_363] : memref<8x8x64xf32, #tpu.memory_space<vmem>>, vector<1x8x32xf32>
    %1051 = vector.shape_cast %1050 : vector<1x8x32xf32> to vector<8x32xf32>
    %1052 = vector.shape_cast %1017 : vector<8x32xf32> to vector<1x8x32xf32>
    tpu.vector_store %arg12[%1049, %c0_362, %c0_363], %1052 {strides = array<i32>} : memref<8x8x64xf32, #tpu.memory_space<vmem>>, vector<1x8x32xf32>,
    %1053 = arith.index_cast %973 : i32 to index
    %c0_364 = arith.constant 0 : index
    %c32_365 = arith.constant 32 : index
    %1054 = vector.load %arg12[%1053, %c0_364, %c32_365] : memref<8x8x64xf32, #tpu.memory_space<vmem>>, vector<1x8x32xf32>
    %1055 = vector.shape_cast %1054 : vector<1x8x32xf32> to vector<8x32xf32>
    %1056 = vector.shape_cast %1048 : vector<8x32xf32> to vector<1x8x32xf32>
    tpu.vector_store %arg12[%1053, %c0_364, %c32_365], %1056 {strides = array<i32>} : memref<8x8x64xf32, #tpu.memory_space<vmem>>, vector<1x8x32xf32>,
    %1057 = tpu.concatenate %1017, %1048 in 1 : vector<8x32xf32>, vector<8x32xf32> -> vector<8x64xf32>
    %1058 = arith.truncf %1057 : vector<8x64xf32> to vector<8x64xbf16>
    %c4_i32_366 = arith.constant 4 : i32
    %c7_i32_367 = arith.constant 7 : i32
    %1059 = arith.subi %c7_i32_367, %c4_i32_366 : i32
    %cst_368 = arith.constant dense<0.000000e+00> : vector<8x256xf32>
    %1060 = tpu.matmul %1058, %712, %cst_368 {dimension_numbers = #tpu.dot_dimension_numbers<[1], [0], [0], [1], [0, 0, 1, 1], [], []>} : vector<8x64xbf16>, vector<64x256xbf16>, vector<8x256xf32> -> vector<8x256xf32>
    %1061 = arith.index_cast %c4_i32_366 : i32 to index
    %c0_369 = arith.constant 0 : index
    %c0_370 = arith.constant 0 : index
    %1062 = vector.load %arg11[%1061, %c0_369, %c0_370] : memref<8x8x256xbf16, #tpu.memory_space<vmem>>, vector<1x8x128xbf16>
    %1063 = vector.shape_cast %1062 : vector<1x8x128xbf16> to vector<8x128xbf16>
    %1064 = arith.extf %1063 : vector<8x128xbf16> to vector<8x128xf32>
    %1065 = vector.extract_strided_slice %1060 {offsets = [0, 0], sizes = [8, 128], strides = [1, 1]} : vector<8x256xf32> to vector<8x128xf32>
    %1066 = arith.addf %1064, %1065 : vector<8x128xf32>
    %1067 = arith.index_cast %1059 : i32 to index
    %c0_371 = arith.constant 0 : index
    %c128_372 = arith.constant 128 : index
    %1068 = vector.load %arg11[%1067, %c0_371, %c128_372] : memref<8x8x256xbf16, #tpu.memory_space<vmem>>, vector<1x8x128xbf16>
    %1069 = vector.shape_cast %1068 : vector<1x8x128xbf16> to vector<8x128xbf16>
    %1070 = arith.extf %1069 : vector<8x128xbf16> to vector<8x128xf32>
    %1071 = vector.extract_strided_slice %1060 {offsets = [0, 128], sizes = [8, 128], strides = [1, 1]} : vector<8x256xf32> to vector<8x128xf32>
    %1072 = arith.addf %1070, %1071 : vector<8x128xf32>
    %1073 = vector.extract_strided_slice %1066 {offsets = [0, 0], sizes = [8, 32], strides = [1, 1]} : vector<8x128xf32> to vector<8x32xf32>
    %cst_373 = arith.constant 5.000000e-01 : f32
    %1074 = vector.broadcast %cst_373 : f32 to vector<8x32xf32>
    %1075 = arith.mulf %1074, %1073 : vector<8x32xf32>
    %1076 = math.tanh %1075 : vector<8x32xf32>
    %cst_374 = arith.constant 1.000000e+00 : f32
    %1077 = vector.broadcast %cst_374 : f32 to vector<8x32xf32>
    %1078 = arith.addf %1076, %1077 : vector<8x32xf32>
    %cst_375 = arith.constant 5.000000e-01 : f32
    %1079 = vector.broadcast %cst_375 : f32 to vector<8x32xf32>
    %1080 = arith.mulf %1079, %1078 : vector<8x32xf32>
    %1081 = vector.extract_strided_slice %1066 {offsets = [0, 32], sizes = [8, 32], strides = [1, 1]} : vector<8x128xf32> to vector<8x32xf32>
    %cst_376 = arith.constant 5.000000e-01 : f32
    %1082 = vector.broadcast %cst_376 : f32 to vector<8x32xf32>
    %1083 = arith.mulf %1082, %1081 : vector<8x32xf32>
    %1084 = math.tanh %1083 : vector<8x32xf32>
    %cst_377 = arith.constant 1.000000e+00 : f32
    %1085 = vector.broadcast %cst_377 : f32 to vector<8x32xf32>
    %1086 = arith.addf %1084, %1085 : vector<8x32xf32>
    %cst_378 = arith.constant 5.000000e-01 : f32
    %1087 = vector.broadcast %cst_378 : f32 to vector<8x32xf32>
    %1088 = arith.mulf %1087, %1086 : vector<8x32xf32>
    %1089 = vector.extract_strided_slice %1066 {offsets = [0, 64], sizes = [8, 32], strides = [1, 1]} : vector<8x128xf32> to vector<8x32xf32>
    %1090 = math.tanh %1089 : vector<8x32xf32>
    %1091 = vector.extract_strided_slice %1066 {offsets = [0, 96], sizes = [8, 32], strides = [1, 1]} : vector<8x128xf32> to vector<8x32xf32>
    %cst_379 = arith.constant 5.000000e-01 : f32
    %1092 = vector.broadcast %cst_379 : f32 to vector<8x32xf32>
    %1093 = arith.mulf %1092, %1091 : vector<8x32xf32>
    %1094 = math.tanh %1093 : vector<8x32xf32>
    %cst_380 = arith.constant 1.000000e+00 : f32
    %1095 = vector.broadcast %cst_380 : f32 to vector<8x32xf32>
    %1096 = arith.addf %1094, %1095 : vector<8x32xf32>
    %cst_381 = arith.constant 5.000000e-01 : f32
    %1097 = vector.broadcast %cst_381 : f32 to vector<8x32xf32>
    %1098 = arith.mulf %1097, %1096 : vector<8x32xf32>
    %1099 = arith.mulf %1088, %1015 : vector<8x32xf32>
    %1100 = arith.mulf %1080, %1090 : vector<8x32xf32>
    %1101 = arith.addf %1099, %1100 : vector<8x32xf32>
    %1102 = math.tanh %1101 : vector<8x32xf32>
    %1103 = arith.mulf %1098, %1102 : vector<8x32xf32>
    %1104 = vector.extract_strided_slice %1072 {offsets = [0, 0], sizes = [8, 32], strides = [1, 1]} : vector<8x128xf32> to vector<8x32xf32>
    %cst_382 = arith.constant 5.000000e-01 : f32
    %1105 = vector.broadcast %cst_382 : f32 to vector<8x32xf32>
    %1106 = arith.mulf %1105, %1104 : vector<8x32xf32>
    %1107 = math.tanh %1106 : vector<8x32xf32>
    %cst_383 = arith.constant 1.000000e+00 : f32
    %1108 = vector.broadcast %cst_383 : f32 to vector<8x32xf32>
    %1109 = arith.addf %1107, %1108 : vector<8x32xf32>
    %cst_384 = arith.constant 5.000000e-01 : f32
    %1110 = vector.broadcast %cst_384 : f32 to vector<8x32xf32>
    %1111 = arith.mulf %1110, %1109 : vector<8x32xf32>
    %1112 = vector.extract_strided_slice %1072 {offsets = [0, 32], sizes = [8, 32], strides = [1, 1]} : vector<8x128xf32> to vector<8x32xf32>
    %cst_385 = arith.constant 5.000000e-01 : f32
    %1113 = vector.broadcast %cst_385 : f32 to vector<8x32xf32>
    %1114 = arith.mulf %1113, %1112 : vector<8x32xf32>
    %1115 = math.tanh %1114 : vector<8x32xf32>
    %cst_386 = arith.constant 1.000000e+00 : f32
    %1116 = vector.broadcast %cst_386 : f32 to vector<8x32xf32>
    %1117 = arith.addf %1115, %1116 : vector<8x32xf32>
    %cst_387 = arith.constant 5.000000e-01 : f32
    %1118 = vector.broadcast %cst_387 : f32 to vector<8x32xf32>
    %1119 = arith.mulf %1118, %1117 : vector<8x32xf32>
    %1120 = vector.extract_strided_slice %1072 {offsets = [0, 64], sizes = [8, 32], strides = [1, 1]} : vector<8x128xf32> to vector<8x32xf32>
    %1121 = math.tanh %1120 : vector<8x32xf32>
    %1122 = vector.extract_strided_slice %1072 {offsets = [0, 96], sizes = [8, 32], strides = [1, 1]} : vector<8x128xf32> to vector<8x32xf32>
    %cst_388 = arith.constant 5.000000e-01 : f32
    %1123 = vector.broadcast %cst_388 : f32 to vector<8x32xf32>
    %1124 = arith.mulf %1123, %1122 : vector<8x32xf32>
    %1125 = math.tanh %1124 : vector<8x32xf32>
    %cst_389 = arith.constant 1.000000e+00 : f32
    %1126 = vector.broadcast %cst_389 : f32 to vector<8x32xf32>
    %1127 = arith.addf %1125, %1126 : vector<8x32xf32>
    %cst_390 = arith.constant 5.000000e-01 : f32
    %1128 = vector.broadcast %cst_390 : f32 to vector<8x32xf32>
    %1129 = arith.mulf %1128, %1127 : vector<8x32xf32>
    %1130 = arith.mulf %1119, %1046 : vector<8x32xf32>
    %1131 = arith.mulf %1111, %1121 : vector<8x32xf32>
    %1132 = arith.addf %1130, %1131 : vector<8x32xf32>
    %1133 = math.tanh %1132 : vector<8x32xf32>
    %1134 = arith.mulf %1129, %1133 : vector<8x32xf32>
    %1135 = arith.index_cast %c4_i32_366 : i32 to index
    %c0_391 = arith.constant 0 : index
    %c0_392 = arith.constant 0 : index
    %1136 = vector.load %arg12[%1135, %c0_391, %c0_392] : memref<8x8x64xf32, #tpu.memory_space<vmem>>, vector<1x8x32xf32>
    %1137 = vector.shape_cast %1136 : vector<1x8x32xf32> to vector<8x32xf32>
    %1138 = vector.shape_cast %1103 : vector<8x32xf32> to vector<1x8x32xf32>
    tpu.vector_store %arg12[%1135, %c0_391, %c0_392], %1138 {strides = array<i32>} : memref<8x8x64xf32, #tpu.memory_space<vmem>>, vector<1x8x32xf32>,
    %1139 = arith.index_cast %1059 : i32 to index
    %c0_393 = arith.constant 0 : index
    %c32_394 = arith.constant 32 : index
    %1140 = vector.load %arg12[%1139, %c0_393, %c32_394] : memref<8x8x64xf32, #tpu.memory_space<vmem>>, vector<1x8x32xf32>
    %1141 = vector.shape_cast %1140 : vector<1x8x32xf32> to vector<8x32xf32>
    %1142 = vector.shape_cast %1134 : vector<8x32xf32> to vector<1x8x32xf32>
    tpu.vector_store %arg12[%1139, %c0_393, %c32_394], %1142 {strides = array<i32>} : memref<8x8x64xf32, #tpu.memory_space<vmem>>, vector<1x8x32xf32>,
    %1143 = tpu.concatenate %1103, %1134 in 1 : vector<8x32xf32>, vector<8x32xf32> -> vector<8x64xf32>
    %1144 = arith.truncf %1143 : vector<8x64xf32> to vector<8x64xbf16>
    %c5_i32_395 = arith.constant 5 : i32
    %c7_i32_396 = arith.constant 7 : i32
    %1145 = arith.subi %c7_i32_396, %c5_i32_395 : i32
    %cst_397 = arith.constant dense<0.000000e+00> : vector<8x256xf32>
    %1146 = tpu.matmul %1144, %712, %cst_397 {dimension_numbers = #tpu.dot_dimension_numbers<[1], [0], [0], [1], [0, 0, 1, 1], [], []>} : vector<8x64xbf16>, vector<64x256xbf16>, vector<8x256xf32> -> vector<8x256xf32>
    %1147 = arith.index_cast %c5_i32_395 : i32 to index
    %c0_398 = arith.constant 0 : index
    %c0_399 = arith.constant 0 : index
    %1148 = vector.load %arg11[%1147, %c0_398, %c0_399] : memref<8x8x256xbf16, #tpu.memory_space<vmem>>, vector<1x8x128xbf16>
    %1149 = vector.shape_cast %1148 : vector<1x8x128xbf16> to vector<8x128xbf16>
    %1150 = arith.extf %1149 : vector<8x128xbf16> to vector<8x128xf32>
    %1151 = vector.extract_strided_slice %1146 {offsets = [0, 0], sizes = [8, 128], strides = [1, 1]} : vector<8x256xf32> to vector<8x128xf32>
    %1152 = arith.addf %1150, %1151 : vector<8x128xf32>
    %1153 = arith.index_cast %1145 : i32 to index
    %c0_400 = arith.constant 0 : index
    %c128_401 = arith.constant 128 : index
    %1154 = vector.load %arg11[%1153, %c0_400, %c128_401] : memref<8x8x256xbf16, #tpu.memory_space<vmem>>, vector<1x8x128xbf16>
    %1155 = vector.shape_cast %1154 : vector<1x8x128xbf16> to vector<8x128xbf16>
    %1156 = arith.extf %1155 : vector<8x128xbf16> to vector<8x128xf32>
    %1157 = vector.extract_strided_slice %1146 {offsets = [0, 128], sizes = [8, 128], strides = [1, 1]} : vector<8x256xf32> to vector<8x128xf32>
    %1158 = arith.addf %1156, %1157 : vector<8x128xf32>
    %1159 = vector.extract_strided_slice %1152 {offsets = [0, 0], sizes = [8, 32], strides = [1, 1]} : vector<8x128xf32> to vector<8x32xf32>
    %cst_402 = arith.constant 5.000000e-01 : f32
    %1160 = vector.broadcast %cst_402 : f32 to vector<8x32xf32>
    %1161 = arith.mulf %1160, %1159 : vector<8x32xf32>
    %1162 = math.tanh %1161 : vector<8x32xf32>
    %cst_403 = arith.constant 1.000000e+00 : f32
    %1163 = vector.broadcast %cst_403 : f32 to vector<8x32xf32>
    %1164 = arith.addf %1162, %1163 : vector<8x32xf32>
    %cst_404 = arith.constant 5.000000e-01 : f32
    %1165 = vector.broadcast %cst_404 : f32 to vector<8x32xf32>
    %1166 = arith.mulf %1165, %1164 : vector<8x32xf32>
    %1167 = vector.extract_strided_slice %1152 {offsets = [0, 32], sizes = [8, 32], strides = [1, 1]} : vector<8x128xf32> to vector<8x32xf32>
    %cst_405 = arith.constant 5.000000e-01 : f32
    %1168 = vector.broadcast %cst_405 : f32 to vector<8x32xf32>
    %1169 = arith.mulf %1168, %1167 : vector<8x32xf32>
    %1170 = math.tanh %1169 : vector<8x32xf32>
    %cst_406 = arith.constant 1.000000e+00 : f32
    %1171 = vector.broadcast %cst_406 : f32 to vector<8x32xf32>
    %1172 = arith.addf %1170, %1171 : vector<8x32xf32>
    %cst_407 = arith.constant 5.000000e-01 : f32
    %1173 = vector.broadcast %cst_407 : f32 to vector<8x32xf32>
    %1174 = arith.mulf %1173, %1172 : vector<8x32xf32>
    %1175 = vector.extract_strided_slice %1152 {offsets = [0, 64], sizes = [8, 32], strides = [1, 1]} : vector<8x128xf32> to vector<8x32xf32>
    %1176 = math.tanh %1175 : vector<8x32xf32>
    %1177 = vector.extract_strided_slice %1152 {offsets = [0, 96], sizes = [8, 32], strides = [1, 1]} : vector<8x128xf32> to vector<8x32xf32>
    %cst_408 = arith.constant 5.000000e-01 : f32
    %1178 = vector.broadcast %cst_408 : f32 to vector<8x32xf32>
    %1179 = arith.mulf %1178, %1177 : vector<8x32xf32>
    %1180 = math.tanh %1179 : vector<8x32xf32>
    %cst_409 = arith.constant 1.000000e+00 : f32
    %1181 = vector.broadcast %cst_409 : f32 to vector<8x32xf32>
    %1182 = arith.addf %1180, %1181 : vector<8x32xf32>
    %cst_410 = arith.constant 5.000000e-01 : f32
    %1183 = vector.broadcast %cst_410 : f32 to vector<8x32xf32>
    %1184 = arith.mulf %1183, %1182 : vector<8x32xf32>
    %1185 = arith.mulf %1174, %1101 : vector<8x32xf32>
    %1186 = arith.mulf %1166, %1176 : vector<8x32xf32>
    %1187 = arith.addf %1185, %1186 : vector<8x32xf32>
    %1188 = math.tanh %1187 : vector<8x32xf32>
    %1189 = arith.mulf %1184, %1188 : vector<8x32xf32>
    %1190 = vector.extract_strided_slice %1158 {offsets = [0, 0], sizes = [8, 32], strides = [1, 1]} : vector<8x128xf32> to vector<8x32xf32>
    %cst_411 = arith.constant 5.000000e-01 : f32
    %1191 = vector.broadcast %cst_411 : f32 to vector<8x32xf32>
    %1192 = arith.mulf %1191, %1190 : vector<8x32xf32>
    %1193 = math.tanh %1192 : vector<8x32xf32>
    %cst_412 = arith.constant 1.000000e+00 : f32
    %1194 = vector.broadcast %cst_412 : f32 to vector<8x32xf32>
    %1195 = arith.addf %1193, %1194 : vector<8x32xf32>
    %cst_413 = arith.constant 5.000000e-01 : f32
    %1196 = vector.broadcast %cst_413 : f32 to vector<8x32xf32>
    %1197 = arith.mulf %1196, %1195 : vector<8x32xf32>
    %1198 = vector.extract_strided_slice %1158 {offsets = [0, 32], sizes = [8, 32], strides = [1, 1]} : vector<8x128xf32> to vector<8x32xf32>
    %cst_414 = arith.constant 5.000000e-01 : f32
    %1199 = vector.broadcast %cst_414 : f32 to vector<8x32xf32>
    %1200 = arith.mulf %1199, %1198 : vector<8x32xf32>
    %1201 = math.tanh %1200 : vector<8x32xf32>
    %cst_415 = arith.constant 1.000000e+00 : f32
    %1202 = vector.broadcast %cst_415 : f32 to vector<8x32xf32>
    %1203 = arith.addf %1201, %1202 : vector<8x32xf32>
    %cst_416 = arith.constant 5.000000e-01 : f32
    %1204 = vector.broadcast %cst_416 : f32 to vector<8x32xf32>
    %1205 = arith.mulf %1204, %1203 : vector<8x32xf32>
    %1206 = vector.extract_strided_slice %1158 {offsets = [0, 64], sizes = [8, 32], strides = [1, 1]} : vector<8x128xf32> to vector<8x32xf32>
    %1207 = math.tanh %1206 : vector<8x32xf32>
    %1208 = vector.extract_strided_slice %1158 {offsets = [0, 96], sizes = [8, 32], strides = [1, 1]} : vector<8x128xf32> to vector<8x32xf32>
    %cst_417 = arith.constant 5.000000e-01 : f32
    %1209 = vector.broadcast %cst_417 : f32 to vector<8x32xf32>
    %1210 = arith.mulf %1209, %1208 : vector<8x32xf32>
    %1211 = math.tanh %1210 : vector<8x32xf32>
    %cst_418 = arith.constant 1.000000e+00 : f32
    %1212 = vector.broadcast %cst_418 : f32 to vector<8x32xf32>
    %1213 = arith.addf %1211, %1212 : vector<8x32xf32>
    %cst_419 = arith.constant 5.000000e-01 : f32
    %1214 = vector.broadcast %cst_419 : f32 to vector<8x32xf32>
    %1215 = arith.mulf %1214, %1213 : vector<8x32xf32>
    %1216 = arith.mulf %1205, %1132 : vector<8x32xf32>
    %1217 = arith.mulf %1197, %1207 : vector<8x32xf32>
    %1218 = arith.addf %1216, %1217 : vector<8x32xf32>
    %1219 = math.tanh %1218 : vector<8x32xf32>
    %1220 = arith.mulf %1215, %1219 : vector<8x32xf32>
    %1221 = arith.index_cast %c5_i32_395 : i32 to index
    %c0_420 = arith.constant 0 : index
    %c0_421 = arith.constant 0 : index
    %1222 = vector.load %arg12[%1221, %c0_420, %c0_421] : memref<8x8x64xf32, #tpu.memory_space<vmem>>, vector<1x8x32xf32>
    %1223 = vector.shape_cast %1222 : vector<1x8x32xf32> to vector<8x32xf32>
    %1224 = vector.shape_cast %1189 : vector<8x32xf32> to vector<1x8x32xf32>
    tpu.vector_store %arg12[%1221, %c0_420, %c0_421], %1224 {strides = array<i32>} : memref<8x8x64xf32, #tpu.memory_space<vmem>>, vector<1x8x32xf32>,
    %1225 = arith.index_cast %1145 : i32 to index
    %c0_422 = arith.constant 0 : index
    %c32_423 = arith.constant 32 : index
    %1226 = vector.load %arg12[%1225, %c0_422, %c32_423] : memref<8x8x64xf32, #tpu.memory_space<vmem>>, vector<1x8x32xf32>
    %1227 = vector.shape_cast %1226 : vector<1x8x32xf32> to vector<8x32xf32>
    %1228 = vector.shape_cast %1220 : vector<8x32xf32> to vector<1x8x32xf32>
    tpu.vector_store %arg12[%1225, %c0_422, %c32_423], %1228 {strides = array<i32>} : memref<8x8x64xf32, #tpu.memory_space<vmem>>, vector<1x8x32xf32>,
    %1229 = tpu.concatenate %1189, %1220 in 1 : vector<8x32xf32>, vector<8x32xf32> -> vector<8x64xf32>
    %1230 = arith.truncf %1229 : vector<8x64xf32> to vector<8x64xbf16>
    %c6_i32_424 = arith.constant 6 : i32
    %c7_i32_425 = arith.constant 7 : i32
    %1231 = arith.subi %c7_i32_425, %c6_i32_424 : i32
    %cst_426 = arith.constant dense<0.000000e+00> : vector<8x256xf32>
    %1232 = tpu.matmul %1230, %712, %cst_426 {dimension_numbers = #tpu.dot_dimension_numbers<[1], [0], [0], [1], [0, 0, 1, 1], [], []>} : vector<8x64xbf16>, vector<64x256xbf16>, vector<8x256xf32> -> vector<8x256xf32>
    %1233 = arith.index_cast %c6_i32_424 : i32 to index
    %c0_427 = arith.constant 0 : index
    %c0_428 = arith.constant 0 : index
    %1234 = vector.load %arg11[%1233, %c0_427, %c0_428] : memref<8x8x256xbf16, #tpu.memory_space<vmem>>, vector<1x8x128xbf16>
    %1235 = vector.shape_cast %1234 : vector<1x8x128xbf16> to vector<8x128xbf16>
    %1236 = arith.extf %1235 : vector<8x128xbf16> to vector<8x128xf32>
    %1237 = vector.extract_strided_slice %1232 {offsets = [0, 0], sizes = [8, 128], strides = [1, 1]} : vector<8x256xf32> to vector<8x128xf32>
    %1238 = arith.addf %1236, %1237 : vector<8x128xf32>
    %1239 = arith.index_cast %1231 : i32 to index
    %c0_429 = arith.constant 0 : index
    %c128_430 = arith.constant 128 : index
    %1240 = vector.load %arg11[%1239, %c0_429, %c128_430] : memref<8x8x256xbf16, #tpu.memory_space<vmem>>, vector<1x8x128xbf16>
    %1241 = vector.shape_cast %1240 : vector<1x8x128xbf16> to vector<8x128xbf16>
    %1242 = arith.extf %1241 : vector<8x128xbf16> to vector<8x128xf32>
    %1243 = vector.extract_strided_slice %1232 {offsets = [0, 128], sizes = [8, 128], strides = [1, 1]} : vector<8x256xf32> to vector<8x128xf32>
    %1244 = arith.addf %1242, %1243 : vector<8x128xf32>
    %1245 = vector.extract_strided_slice %1238 {offsets = [0, 0], sizes = [8, 32], strides = [1, 1]} : vector<8x128xf32> to vector<8x32xf32>
    %cst_431 = arith.constant 5.000000e-01 : f32
    %1246 = vector.broadcast %cst_431 : f32 to vector<8x32xf32>
    %1247 = arith.mulf %1246, %1245 : vector<8x32xf32>
    %1248 = math.tanh %1247 : vector<8x32xf32>
    %cst_432 = arith.constant 1.000000e+00 : f32
    %1249 = vector.broadcast %cst_432 : f32 to vector<8x32xf32>
    %1250 = arith.addf %1248, %1249 : vector<8x32xf32>
    %cst_433 = arith.constant 5.000000e-01 : f32
    %1251 = vector.broadcast %cst_433 : f32 to vector<8x32xf32>
    %1252 = arith.mulf %1251, %1250 : vector<8x32xf32>
    %1253 = vector.extract_strided_slice %1238 {offsets = [0, 32], sizes = [8, 32], strides = [1, 1]} : vector<8x128xf32> to vector<8x32xf32>
    %cst_434 = arith.constant 5.000000e-01 : f32
    %1254 = vector.broadcast %cst_434 : f32 to vector<8x32xf32>
    %1255 = arith.mulf %1254, %1253 : vector<8x32xf32>
    %1256 = math.tanh %1255 : vector<8x32xf32>
    %cst_435 = arith.constant 1.000000e+00 : f32
    %1257 = vector.broadcast %cst_435 : f32 to vector<8x32xf32>
    %1258 = arith.addf %1256, %1257 : vector<8x32xf32>
    %cst_436 = arith.constant 5.000000e-01 : f32
    %1259 = vector.broadcast %cst_436 : f32 to vector<8x32xf32>
    %1260 = arith.mulf %1259, %1258 : vector<8x32xf32>
    %1261 = vector.extract_strided_slice %1238 {offsets = [0, 64], sizes = [8, 32], strides = [1, 1]} : vector<8x128xf32> to vector<8x32xf32>
    %1262 = math.tanh %1261 : vector<8x32xf32>
    %1263 = vector.extract_strided_slice %1238 {offsets = [0, 96], sizes = [8, 32], strides = [1, 1]} : vector<8x128xf32> to vector<8x32xf32>
    %cst_437 = arith.constant 5.000000e-01 : f32
    %1264 = vector.broadcast %cst_437 : f32 to vector<8x32xf32>
    %1265 = arith.mulf %1264, %1263 : vector<8x32xf32>
    %1266 = math.tanh %1265 : vector<8x32xf32>
    %cst_438 = arith.constant 1.000000e+00 : f32
    %1267 = vector.broadcast %cst_438 : f32 to vector<8x32xf32>
    %1268 = arith.addf %1266, %1267 : vector<8x32xf32>
    %cst_439 = arith.constant 5.000000e-01 : f32
    %1269 = vector.broadcast %cst_439 : f32 to vector<8x32xf32>
    %1270 = arith.mulf %1269, %1268 : vector<8x32xf32>
    %1271 = arith.mulf %1260, %1187 : vector<8x32xf32>
    %1272 = arith.mulf %1252, %1262 : vector<8x32xf32>
    %1273 = arith.addf %1271, %1272 : vector<8x32xf32>
    %1274 = math.tanh %1273 : vector<8x32xf32>
    %1275 = arith.mulf %1270, %1274 : vector<8x32xf32>
    %1276 = vector.extract_strided_slice %1244 {offsets = [0, 0], sizes = [8, 32], strides = [1, 1]} : vector<8x128xf32> to vector<8x32xf32>
    %cst_440 = arith.constant 5.000000e-01 : f32
    %1277 = vector.broadcast %cst_440 : f32 to vector<8x32xf32>
    %1278 = arith.mulf %1277, %1276 : vector<8x32xf32>
    %1279 = math.tanh %1278 : vector<8x32xf32>
    %cst_441 = arith.constant 1.000000e+00 : f32
    %1280 = vector.broadcast %cst_441 : f32 to vector<8x32xf32>
    %1281 = arith.addf %1279, %1280 : vector<8x32xf32>
    %cst_442 = arith.constant 5.000000e-01 : f32
    %1282 = vector.broadcast %cst_442 : f32 to vector<8x32xf32>
    %1283 = arith.mulf %1282, %1281 : vector<8x32xf32>
    %1284 = vector.extract_strided_slice %1244 {offsets = [0, 32], sizes = [8, 32], strides = [1, 1]} : vector<8x128xf32> to vector<8x32xf32>
    %cst_443 = arith.constant 5.000000e-01 : f32
    %1285 = vector.broadcast %cst_443 : f32 to vector<8x32xf32>
    %1286 = arith.mulf %1285, %1284 : vector<8x32xf32>
    %1287 = math.tanh %1286 : vector<8x32xf32>
    %cst_444 = arith.constant 1.000000e+00 : f32
    %1288 = vector.broadcast %cst_444 : f32 to vector<8x32xf32>
    %1289 = arith.addf %1287, %1288 : vector<8x32xf32>
    %cst_445 = arith.constant 5.000000e-01 : f32
    %1290 = vector.broadcast %cst_445 : f32 to vector<8x32xf32>
    %1291 = arith.mulf %1290, %1289 : vector<8x32xf32>
    %1292 = vector.extract_strided_slice %1244 {offsets = [0, 64], sizes = [8, 32], strides = [1, 1]} : vector<8x128xf32> to vector<8x32xf32>
    %1293 = math.tanh %1292 : vector<8x32xf32>
    %1294 = vector.extract_strided_slice %1244 {offsets = [0, 96], sizes = [8, 32], strides = [1, 1]} : vector<8x128xf32> to vector<8x32xf32>
    %cst_446 = arith.constant 5.000000e-01 : f32
    %1295 = vector.broadcast %cst_446 : f32 to vector<8x32xf32>
    %1296 = arith.mulf %1295, %1294 : vector<8x32xf32>
    %1297 = math.tanh %1296 : vector<8x32xf32>
    %cst_447 = arith.constant 1.000000e+00 : f32
    %1298 = vector.broadcast %cst_447 : f32 to vector<8x32xf32>
    %1299 = arith.addf %1297, %1298 : vector<8x32xf32>
    %cst_448 = arith.constant 5.000000e-01 : f32
    %1300 = vector.broadcast %cst_448 : f32 to vector<8x32xf32>
    %1301 = arith.mulf %1300, %1299 : vector<8x32xf32>
    %1302 = arith.mulf %1291, %1218 : vector<8x32xf32>
    %1303 = arith.mulf %1283, %1293 : vector<8x32xf32>
    %1304 = arith.addf %1302, %1303 : vector<8x32xf32>
    %1305 = math.tanh %1304 : vector<8x32xf32>
    %1306 = arith.mulf %1301, %1305 : vector<8x32xf32>
    %1307 = arith.index_cast %c6_i32_424 : i32 to index
    %c0_449 = arith.constant 0 : index
    %c0_450 = arith.constant 0 : index
    %1308 = vector.load %arg12[%1307, %c0_449, %c0_450] : memref<8x8x64xf32, #tpu.memory_space<vmem>>, vector<1x8x32xf32>
    %1309 = vector.shape_cast %1308 : vector<1x8x32xf32> to vector<8x32xf32>
    %1310 = vector.shape_cast %1275 : vector<8x32xf32> to vector<1x8x32xf32>
    tpu.vector_store %arg12[%1307, %c0_449, %c0_450], %1310 {strides = array<i32>} : memref<8x8x64xf32, #tpu.memory_space<vmem>>, vector<1x8x32xf32>,
    %1311 = arith.index_cast %1231 : i32 to index
    %c0_451 = arith.constant 0 : index
    %c32_452 = arith.constant 32 : index
    %1312 = vector.load %arg12[%1311, %c0_451, %c32_452] : memref<8x8x64xf32, #tpu.memory_space<vmem>>, vector<1x8x32xf32>
    %1313 = vector.shape_cast %1312 : vector<1x8x32xf32> to vector<8x32xf32>
    %1314 = vector.shape_cast %1306 : vector<8x32xf32> to vector<1x8x32xf32>
    tpu.vector_store %arg12[%1311, %c0_451, %c32_452], %1314 {strides = array<i32>} : memref<8x8x64xf32, #tpu.memory_space<vmem>>, vector<1x8x32xf32>,
    %1315 = tpu.concatenate %1275, %1306 in 1 : vector<8x32xf32>, vector<8x32xf32> -> vector<8x64xf32>
    %1316 = arith.truncf %1315 : vector<8x64xf32> to vector<8x64xbf16>
    %c7_i32_453 = arith.constant 7 : i32
    %c7_i32_454 = arith.constant 7 : i32
    %1317 = arith.subi %c7_i32_454, %c7_i32_453 : i32
    %cst_455 = arith.constant dense<0.000000e+00> : vector<8x256xf32>
    %1318 = tpu.matmul %1316, %712, %cst_455 {dimension_numbers = #tpu.dot_dimension_numbers<[1], [0], [0], [1], [0, 0, 1, 1], [], []>} : vector<8x64xbf16>, vector<64x256xbf16>, vector<8x256xf32> -> vector<8x256xf32>
    %1319 = arith.index_cast %c7_i32_453 : i32 to index
    %c0_456 = arith.constant 0 : index
    %c0_457 = arith.constant 0 : index
    %1320 = vector.load %arg11[%1319, %c0_456, %c0_457] : memref<8x8x256xbf16, #tpu.memory_space<vmem>>, vector<1x8x128xbf16>
    %1321 = vector.shape_cast %1320 : vector<1x8x128xbf16> to vector<8x128xbf16>
    %1322 = arith.extf %1321 : vector<8x128xbf16> to vector<8x128xf32>
    %1323 = vector.extract_strided_slice %1318 {offsets = [0, 0], sizes = [8, 128], strides = [1, 1]} : vector<8x256xf32> to vector<8x128xf32>
    %1324 = arith.addf %1322, %1323 : vector<8x128xf32>
    %1325 = arith.index_cast %1317 : i32 to index
    %c0_458 = arith.constant 0 : index
    %c128_459 = arith.constant 128 : index
    %1326 = vector.load %arg11[%1325, %c0_458, %c128_459] : memref<8x8x256xbf16, #tpu.memory_space<vmem>>, vector<1x8x128xbf16>
    %1327 = vector.shape_cast %1326 : vector<1x8x128xbf16> to vector<8x128xbf16>
    %1328 = arith.extf %1327 : vector<8x128xbf16> to vector<8x128xf32>
    %1329 = vector.extract_strided_slice %1318 {offsets = [0, 128], sizes = [8, 128], strides = [1, 1]} : vector<8x256xf32> to vector<8x128xf32>
    %1330 = arith.addf %1328, %1329 : vector<8x128xf32>
    %1331 = vector.extract_strided_slice %1324 {offsets = [0, 0], sizes = [8, 32], strides = [1, 1]} : vector<8x128xf32> to vector<8x32xf32>
    %cst_460 = arith.constant 5.000000e-01 : f32
    %1332 = vector.broadcast %cst_460 : f32 to vector<8x32xf32>
    %1333 = arith.mulf %1332, %1331 : vector<8x32xf32>
    %1334 = math.tanh %1333 : vector<8x32xf32>
    %cst_461 = arith.constant 1.000000e+00 : f32
    %1335 = vector.broadcast %cst_461 : f32 to vector<8x32xf32>
    %1336 = arith.addf %1334, %1335 : vector<8x32xf32>
    %cst_462 = arith.constant 5.000000e-01 : f32
    %1337 = vector.broadcast %cst_462 : f32 to vector<8x32xf32>
    %1338 = arith.mulf %1337, %1336 : vector<8x32xf32>
    %1339 = vector.extract_strided_slice %1324 {offsets = [0, 32], sizes = [8, 32], strides = [1, 1]} : vector<8x128xf32> to vector<8x32xf32>
    %cst_463 = arith.constant 5.000000e-01 : f32
    %1340 = vector.broadcast %cst_463 : f32 to vector<8x32xf32>
    %1341 = arith.mulf %1340, %1339 : vector<8x32xf32>
    %1342 = math.tanh %1341 : vector<8x32xf32>
    %cst_464 = arith.constant 1.000000e+00 : f32
    %1343 = vector.broadcast %cst_464 : f32 to vector<8x32xf32>
    %1344 = arith.addf %1342, %1343 : vector<8x32xf32>
    %cst_465 = arith.constant 5.000000e-01 : f32
    %1345 = vector.broadcast %cst_465 : f32 to vector<8x32xf32>
    %1346 = arith.mulf %1345, %1344 : vector<8x32xf32>
    %1347 = vector.extract_strided_slice %1324 {offsets = [0, 64], sizes = [8, 32], strides = [1, 1]} : vector<8x128xf32> to vector<8x32xf32>
    %1348 = math.tanh %1347 : vector<8x32xf32>
    %1349 = vector.extract_strided_slice %1324 {offsets = [0, 96], sizes = [8, 32], strides = [1, 1]} : vector<8x128xf32> to vector<8x32xf32>
    %cst_466 = arith.constant 5.000000e-01 : f32
    %1350 = vector.broadcast %cst_466 : f32 to vector<8x32xf32>
    %1351 = arith.mulf %1350, %1349 : vector<8x32xf32>
    %1352 = math.tanh %1351 : vector<8x32xf32>
    %cst_467 = arith.constant 1.000000e+00 : f32
    %1353 = vector.broadcast %cst_467 : f32 to vector<8x32xf32>
    %1354 = arith.addf %1352, %1353 : vector<8x32xf32>
    %cst_468 = arith.constant 5.000000e-01 : f32
    %1355 = vector.broadcast %cst_468 : f32 to vector<8x32xf32>
    %1356 = arith.mulf %1355, %1354 : vector<8x32xf32>
    %1357 = arith.mulf %1346, %1273 : vector<8x32xf32>
    %1358 = arith.mulf %1338, %1348 : vector<8x32xf32>
    %1359 = arith.addf %1357, %1358 : vector<8x32xf32>
    %1360 = math.tanh %1359 : vector<8x32xf32>
    %1361 = arith.mulf %1356, %1360 : vector<8x32xf32>
    %1362 = vector.extract_strided_slice %1330 {offsets = [0, 0], sizes = [8, 32], strides = [1, 1]} : vector<8x128xf32> to vector<8x32xf32>
    %cst_469 = arith.constant 5.000000e-01 : f32
    %1363 = vector.broadcast %cst_469 : f32 to vector<8x32xf32>
    %1364 = arith.mulf %1363, %1362 : vector<8x32xf32>
    %1365 = math.tanh %1364 : vector<8x32xf32>
    %cst_470 = arith.constant 1.000000e+00 : f32
    %1366 = vector.broadcast %cst_470 : f32 to vector<8x32xf32>
    %1367 = arith.addf %1365, %1366 : vector<8x32xf32>
    %cst_471 = arith.constant 5.000000e-01 : f32
    %1368 = vector.broadcast %cst_471 : f32 to vector<8x32xf32>
    %1369 = arith.mulf %1368, %1367 : vector<8x32xf32>
    %1370 = vector.extract_strided_slice %1330 {offsets = [0, 32], sizes = [8, 32], strides = [1, 1]} : vector<8x128xf32> to vector<8x32xf32>
    %cst_472 = arith.constant 5.000000e-01 : f32
    %1371 = vector.broadcast %cst_472 : f32 to vector<8x32xf32>
    %1372 = arith.mulf %1371, %1370 : vector<8x32xf32>
    %1373 = math.tanh %1372 : vector<8x32xf32>
    %cst_473 = arith.constant 1.000000e+00 : f32
    %1374 = vector.broadcast %cst_473 : f32 to vector<8x32xf32>
    %1375 = arith.addf %1373, %1374 : vector<8x32xf32>
    %cst_474 = arith.constant 5.000000e-01 : f32
    %1376 = vector.broadcast %cst_474 : f32 to vector<8x32xf32>
    %1377 = arith.mulf %1376, %1375 : vector<8x32xf32>
    %1378 = vector.extract_strided_slice %1330 {offsets = [0, 64], sizes = [8, 32], strides = [1, 1]} : vector<8x128xf32> to vector<8x32xf32>
    %1379 = math.tanh %1378 : vector<8x32xf32>
    %1380 = vector.extract_strided_slice %1330 {offsets = [0, 96], sizes = [8, 32], strides = [1, 1]} : vector<8x128xf32> to vector<8x32xf32>
    %cst_475 = arith.constant 5.000000e-01 : f32
    %1381 = vector.broadcast %cst_475 : f32 to vector<8x32xf32>
    %1382 = arith.mulf %1381, %1380 : vector<8x32xf32>
    %1383 = math.tanh %1382 : vector<8x32xf32>
    %cst_476 = arith.constant 1.000000e+00 : f32
    %1384 = vector.broadcast %cst_476 : f32 to vector<8x32xf32>
    %1385 = arith.addf %1383, %1384 : vector<8x32xf32>
    %cst_477 = arith.constant 5.000000e-01 : f32
    %1386 = vector.broadcast %cst_477 : f32 to vector<8x32xf32>
    %1387 = arith.mulf %1386, %1385 : vector<8x32xf32>
    %1388 = arith.mulf %1377, %1304 : vector<8x32xf32>
    %1389 = arith.mulf %1369, %1379 : vector<8x32xf32>
    %1390 = arith.addf %1388, %1389 : vector<8x32xf32>
    %1391 = math.tanh %1390 : vector<8x32xf32>
    %1392 = arith.mulf %1387, %1391 : vector<8x32xf32>
    %1393 = arith.index_cast %c7_i32_453 : i32 to index
    %c0_478 = arith.constant 0 : index
    %c0_479 = arith.constant 0 : index
    %1394 = vector.load %arg12[%1393, %c0_478, %c0_479] : memref<8x8x64xf32, #tpu.memory_space<vmem>>, vector<1x8x32xf32>
    %1395 = vector.shape_cast %1394 : vector<1x8x32xf32> to vector<8x32xf32>
    %1396 = vector.shape_cast %1361 : vector<8x32xf32> to vector<1x8x32xf32>
    tpu.vector_store %arg12[%1393, %c0_478, %c0_479], %1396 {strides = array<i32>} : memref<8x8x64xf32, #tpu.memory_space<vmem>>, vector<1x8x32xf32>,
    %1397 = arith.index_cast %1317 : i32 to index
    %c0_480 = arith.constant 0 : index
    %c32_481 = arith.constant 32 : index
    %1398 = vector.load %arg12[%1397, %c0_480, %c32_481] : memref<8x8x64xf32, #tpu.memory_space<vmem>>, vector<1x8x32xf32>
    %1399 = vector.shape_cast %1398 : vector<1x8x32xf32> to vector<8x32xf32>
    %1400 = vector.shape_cast %1392 : vector<8x32xf32> to vector<1x8x32xf32>
    tpu.vector_store %arg12[%1397, %c0_480, %c32_481], %1400 {strides = array<i32>} : memref<8x8x64xf32, #tpu.memory_space<vmem>>, vector<1x8x32xf32>,
    %1401 = tpu.concatenate %1361, %1392 in 1 : vector<8x32xf32>, vector<8x32xf32> -> vector<8x64xf32>
    %1402 = arith.truncf %1401 : vector<8x64xf32> to vector<8x64xbf16>
    %c8_i32_482 = arith.constant 8 : i32
    %c0_483 = arith.constant 0 : index
    %c0_484 = arith.constant 0 : index
    %c0_485 = arith.constant 0 : index
    %1403 = vector.load %arg12[%c0_483, %c0_484, %c0_485] : memref<8x8x64xf32, #tpu.memory_space<vmem>>, vector<8x8x64xf32>
    %1404 = vector.shape_cast %1403 : vector<8x8x64xf32> to vector<64x64xf32>
    %1405 = arith.truncf %1404 : vector<64x64xf32> to vector<64x64xbf16>
    %c0_486 = arith.constant 0 : index
    %c0_487 = arith.constant 0 : index
    %1406 = vector.load %arg8[%c0_486, %c0_487] : memref<64x128xbf16, #tpu.memory_space<vmem>>, vector<64x128xbf16>
    %cst_488 = arith.constant dense<0.000000e+00> : vector<64x128xf32>
    %1407 = tpu.matmul %1405, %1406, %cst_488 {dimension_numbers = #tpu.dot_dimension_numbers<[1], [0], [0], [1], [0, 0, 1, 1], [], []>} : vector<64x64xbf16>, vector<64x128xbf16>, vector<64x128xf32> -> vector<64x128xf32>
    %c0_489 = arith.constant 0 : index
    %c0_490 = arith.constant 0 : index
    %1408 = vector.load %arg9[%c0_489, %c0_490] : memref<1x128xf32, #tpu.memory_space<vmem>>, vector<1x128xf32>
    %1409 = vector.broadcast %1408 : vector<1x128xf32> to vector<64x128xf32>
    %1410 = arith.addf %1407, %1409 : vector<64x128xf32>
    %1411 = arith.truncf %1410 : vector<64x128xf32> to vector<64x128xbf16>
    %1412 = vector.shape_cast %1411 : vector<64x128xbf16> to vector<8x8x128xbf16>
    %c0_491 = arith.constant 0 : index
    %c0_492 = arith.constant 0 : index
    %c0_493 = arith.constant 0 : index
    %1413 = vector.load %arg10[%c0_491, %c0_492, %c0_493] : memref<8x8x128xbf16, #tpu.memory_space<vmem>>, vector<8x8x128xbf16>
    tpu.vector_store %arg10[%c0_491, %c0_492, %c0_493], %1412 {strides = array<i32>} : memref<8x8x128xbf16, #tpu.memory_space<vmem>>, vector<8x8x128xbf16>,
    return
  }
  func.func @transform_0(%arg0: i32) -> (i32, i32, i32) {
    %c0_i32 = arith.constant 0 : i32
    %c0_i32_0 = arith.constant 0 : i32
    %c0_i32_1 = arith.constant 0 : i32
    return %c0_i32, %arg0, %c0_i32_0 : i32, i32, i32
  }
  func.func @transform_1(%arg0: i32) -> (i32, i32) {
    %c0_i32 = arith.constant 0 : i32
    %c0_i32_0 = arith.constant 0 : i32
    %c0_i32_1 = arith.constant 0 : i32
    return %c0_i32, %c0_i32_0 : i32, i32
  }
  func.func @transform_2(%arg0: i32) -> (i32, i32) {
    %c0_i32 = arith.constant 0 : i32
    %c0_i32_0 = arith.constant 0 : i32
    %c0_i32_1 = arith.constant 0 : i32
    return %c0_i32, %c0_i32_0 : i32, i32
  }
  func.func @transform_3(%arg0: i32) -> (i32, i32) {
    %c0_i32 = arith.constant 0 : i32
    %c0_i32_0 = arith.constant 0 : i32
    %c0_i32_1 = arith.constant 0 : i32
    return %c0_i32, %c0_i32_0 : i32, i32
  }
  func.func @transform_4(%arg0: i32) -> (i32, i32) {
    %c0_i32 = arith.constant 0 : i32
    %c0_i32_0 = arith.constant 0 : i32
    %c0_i32_1 = arith.constant 0 : i32
    return %c0_i32, %c0_i32_0 : i32, i32
  }
  func.func @transform_5(%arg0: i32) -> (i32, i32) {
    %c0_i32 = arith.constant 0 : i32
    %c0_i32_0 = arith.constant 0 : i32
    %c0_i32_1 = arith.constant 0 : i32
    return %c0_i32, %c0_i32_0 : i32, i32
  }
  func.func @transform_6(%arg0: i32) -> (i32, i32) {
    %c0_i32 = arith.constant 0 : i32
    %c0_i32_0 = arith.constant 0 : i32
    %c0_i32_1 = arith.constant 0 : i32
    return %c0_i32, %c0_i32_0 : i32, i32
  }
  func.func @transform_7(%arg0: i32) -> (i32, i32) {
    %c0_i32 = arith.constant 0 : i32
    %c0_i32_0 = arith.constant 0 : i32
    %c0_i32_1 = arith.constant 0 : i32
    return %c0_i32, %c0_i32_0 : i32, i32
  }
  func.func @transform_8(%arg0: i32) -> (i32, i32) {
    %c0_i32 = arith.constant 0 : i32
    %c0_i32_0 = arith.constant 0 : i32
    %c0_i32_1 = arith.constant 0 : i32
    return %c0_i32, %c0_i32_0 : i32, i32
  }
  func.func @transform_9(%arg0: i32) -> (i32, i32, i32) {
    %c0_i32 = arith.constant 0 : i32
    %c0_i32_0 = arith.constant 0 : i32
    %c0_i32_1 = arith.constant 0 : i32
    return %c0_i32, %arg0, %c0_i32_0 : i32, i32, i32
  }
}

</mosaic_0001>

<bundles_post_ra>
// kernel: tpu_custom_call.1
= control target key start
LH: loop header
LB: loop body
LE: loop exit
PB: predicated region body
PF: predicated region fallthrough
CT: control target
= control target key end

     0   :  { %14 = vsyncpa [#allocation5], 0  ;;  %s3804_s0 = inlined_call_operand.hbm [shape: bf16[8,8,48], index: 0, kind: input, shape index: {}]   ;;  %s3805_s1 = inlined_call_operand.hbm [shape: bf16[48,256], index: 1, kind: input, shape index: {}]   ;;  %s3806_s2 = inlined_call_operand.vmem [shape: f32[1,256], index: 2, kind: input, shape index: {}]   ;;  %s3807_s3 = inlined_call_operand.hbm [shape: bf16[64,256], index: 3, kind: input, shape index: {}]   ;;  %s3808_s4 = inlined_call_operand.hbm [shape: bf16[64,256], index: 4, kind: input, shape index: {}]   ;;  %s3809_s5 = inlined_call_operand.vmem [shape: f32[1,256], index: 5, kind: input, shape index: {}]   ;;  %s3810_s6 = inlined_call_operand.hbm [shape: bf16[64,256], index: 6, kind: input, shape index: {}]   ;;  %s3811_s7 = inlined_call_operand.hbm [shape: bf16[64,128], index: 7, kind: input, shape index: {}]   ;;  %s3812_s8 = inlined_call_operand.vmem [shape: f32[1,128], index: 8, kind: input, shape index: {}]   ;;  %s3813_s9 = inlined_call_operand.hbm [shape: bf16[8,8,128], index: 9, kind: output, shape index: {}]  }
   0x1   :  { %15 = vsyncpa [#allocation8], 0 }
   0x2   :  { %16 = vsyncpa [#allocation11], 0 }
   0x3   :  { %17 = vsyncpa [#allocation14], 0 }
   0x4   :  { %18 = vsyncpa [#allocation6], 0  ;;  %s3125_s30 = smov [#allocation7]   ;;  %s2961_s13 = scalar_lea.hbm %s3805_s1, 768 }
   0x5   :  { %s36_s10 = sshll.u32 %s3125_s30, 4  ;;  %p2962_p0 = scmp.ne.s32.totalorder %s3805_s1, %s2961_s13  ;;  %s37_s10 = int_to_ptr.vmem [resolvable:$true] %s36_s10 }
   0x6   :  { %p2965_p1 = scmp.lt.u32.totalorder %s2961_s13, %s3805_s1 }
   0x8   :  { %p2967_p2 = pnand %p2965_p1, %p2962_p0 }
   0xa   :  { %2970 = shalt.err (!%p2967_p2)
}
   0xb   :  { %s2971_s18 = scalar_lea.vmem %s37_s10, 768  ;;  %p2976_p4 = scmp.lt.s32.totalorder %s37_s10, %s37_s10 }
   0xc   :  { %p2972_p3 = scmp.ne.s32.totalorder %s37_s10, %s2971_s18  ;;  %p2977_p5 = scmp.lt.s32.totalorder %s2971_s18, %s2971_s18 }
   0xe   :  { %p2978_p6 = por %p2977_p5, %p2976_p4 }
  0x10   :  { %p2979_p7 = pnand %p2978_p6, %p2972_p3 }
  0x12   :  { %2982 = shalt.err (!%p2979_p7)
}
  0x13   :  { %s3126_s19 = smov 128   ;;  %s3127_s20 = smov 8  }
  0x14   :  { %42 = dma.hbm_to_vmem [thread:$0]  %s3805_s1, 768, %s37_s10, [#allocation8], %s3126_s19, %s3126_s19, %s3127_s20  }
  0x15   :  { %s3128_s23 = smov [#allocation10]   ;;  %s3129_s25 = smov [#allocation4]  }
  0x16   :  { %s62_s24 = sshll.u32 %s3128_s23, 4  ;;  %s24_s26 = sshll.u32 %s3129_s25, 4  ;;  %s63_s24 = int_to_ptr.vmem [resolvable:$true] %s62_s24  ;;  %s25_s26 = int_to_ptr.vmem [resolvable:$true] %s24_s26 }
  0x17   :  { %s2983_s29 = scalar_lea.hbm %s3808_s4, 1024 }
  0x18   :  { %p2984_p8 = scmp.ne.s32.totalorder %s3808_s4, %s2983_s29  ;;  %p2987_p9 = scmp.lt.u32.totalorder %s2983_s29, %s3808_s4 }
  0x1a   :  { %p2989_p10 = pnand %p2987_p9, %p2984_p8 }
  0x1c   :  { %2992 = shalt.err (!%p2989_p10)
}
  0x1d   :  { %s2993_s1 = scalar_lea.vmem %s63_s24, 1024  ;;  %p2998_p12 = scmp.lt.s32.totalorder %s63_s24, %s63_s24 }
  0x1e   :  { %p2994_p11 = scmp.ne.s32.totalorder %s63_s24, %s2993_s1  ;;  %p2999_p13 = scmp.lt.s32.totalorder %s2993_s1, %s2993_s1 }
  0x20   :  { %p3000_p0 = por %p2999_p13, %p2998_p12 }
  0x22   :  { %p3001_p1 = pnand %p3000_p0, %p2994_p11 }
  0x24   :  { %3004 = shalt.err (!%p3001_p1)
}
  0x25   :  { %68 = dma.hbm_to_vmem [thread:$0]  %s3808_s4, 1024, %s63_s24, [#allocation11], %s3126_s19, %s3126_s19, %s3127_s20  }
  0x26   :  { %s3005_s17 = scalar_lea.hbm %s3804_s0, 512 }
  0x27   :  { %p3006_p2 = scmp.ne.s32.totalorder %s3804_s0, %s3005_s17  ;;  %p3009_p3 = scmp.lt.u32.totalorder %s3005_s17, %s3804_s0 }
  0x29   :  { %p3011_p4 = pnand %p3009_p3, %p3006_p2 }
  0x2b   :  { %3014 = shalt.err (!%p3011_p4)
}
  0x2c   :  { %s3015_s25 = scalar_lea.vmem %s25_s26, 512  ;;  %p3020_p6 = scmp.lt.s32.totalorder %s25_s26, %s25_s26 }
  0x2d   :  { %p3016_p5 = scmp.ne.s32.totalorder %s25_s26, %s3015_s25  ;;  %p3021_p7 = scmp.lt.s32.totalorder %s3015_s25, %s3015_s25 }
  0x2f   :  { %p3022_p8 = por %p3021_p7, %p3020_p6 }
  0x31   :  { %p3023_p9 = pnand %p3022_p8, %p3016_p5 }
  0x33   :  { %3026 = shalt.err (!%p3023_p9)
}
  0x34   :  { %s3130_s4 = smov 64   ;;  %s3131_s24 = smov 4  }
  0x35   :  { %30 = dma.hbm_to_vmem [thread:$0]  %s3804_s0, 512, %s25_s26, [#allocation5], %s3130_s4, %s3130_s4, %s3131_s24  }
  0x36   :  { %s3132_s29 = smov [#allocation9]   ;;  %s3133_s11 = smov [#allocation12]  }
  0x37   :  { %s50_s30 = sshll.u32 %s3132_s29, 4  ;;  %s76_s12 = sshll.u32 %s3133_s11, 4  ;;  %s51_s30 = int_to_ptr.vmem [resolvable:$true] %s50_s30  ;;  %s77_s12 = int_to_ptr.vmem [resolvable:$true] %s76_s12 }
  0x38   :  { %s3027_s10 = scalar_lea.hbm %s3807_s3, 1024 }
  0x39   :  { %p3028_p10 = scmp.ne.s32.totalorder %s3807_s3, %s3027_s10  ;;  %p3031_p11 = scmp.lt.u32.totalorder %s3027_s10, %s3807_s3 }
  0x3b   :  { %p3033_p12 = pnand %p3031_p11, %p3028_p10 }
  0x3d   :  { %3036 = shalt.err (!%p3033_p12)
}
  0x3e   :  { %s3037_s0 = scalar_lea.vmem %s51_s30, 1024  ;;  %p3042_p0 = scmp.lt.s32.totalorder %s51_s30, %s51_s30 }
  0x3f   :  { %p3038_p13 = scmp.ne.s32.totalorder %s51_s30, %s3037_s0  ;;  %p3043_p1 = scmp.lt.s32.totalorder %s3037_s0, %s3037_s0 }
  0x41   :  { %p3044_p2 = por %p3043_p1, %p3042_p0 }
  0x43   :  { %p3045_p3 = pnand %p3044_p2, %p3038_p13 }
  0x45   :  { %3048 = shalt.err (!%p3045_p3)
}
  0x46   :  { %56 = dma.hbm_to_vmem [thread:$0]  %s3807_s3, 1024, %s51_s30, [#allocation8], %s3126_s19, %s3126_s19, %s3127_s20  }
  0x47   :  { %s3049_s23 = scalar_lea.hbm %s3810_s6, 1024 }
  0x48   :  { %p3050_p4 = scmp.ne.s32.totalorder %s3810_s6, %s3049_s23  ;;  %p3053_p5 = scmp.lt.u32.totalorder %s3049_s23, %s3810_s6 }
  0x4a   :  { %p3055_p6 = pnand %p3053_p5, %p3050_p4 }
  0x4c   :  { %3058 = shalt.err (!%p3055_p6)
}
  0x4d   :  { %s3059_s11 = scalar_lea.vmem %s77_s12, 1024  ;;  %p3064_p8 = scmp.lt.s32.totalorder %s77_s12, %s77_s12 }
  0x4e   :  { %p3060_p7 = scmp.ne.s32.totalorder %s77_s12, %s3059_s11  ;;  %p3065_p9 = scmp.lt.s32.totalorder %s3059_s11, %s3059_s11 }
  0x50   :  { %p3066_p10 = por %p3065_p9, %p3064_p8 }
  0x52   :  { %p3067_p11 = pnand %p3066_p10, %p3060_p7 }
  0x54   :  { %3070 = shalt.err (!%p3067_p11)
}
  0x55   :  { %82 = dma.hbm_to_vmem [thread:$0]  %s3810_s6, 1024, %s77_s12, [#allocation11], %s3126_s19, %s3126_s19, %s3127_s20  }
  0x56   :  { %s3134_s13 = smov [#allocation13]   ;;  %s3071_s15 = scalar_lea.hbm %s3811_s7, 512 }
  0x57   :  { %s88_s1 = sshll.u32 %s3134_s13, 4  ;;  %p3072_p12 = scmp.ne.s32.totalorder %s3811_s7, %s3071_s15  ;;  %s89_s1 = int_to_ptr.vmem [resolvable:$true] %s88_s1 }
  0x58   :  { %p3075_p13 = scmp.lt.u32.totalorder %s3071_s15, %s3811_s7 }
  0x5a   :  { %p3077_p0 = pnand %p3075_p13, %p3072_p12 }
  0x5c   :  { %3080 = shalt.err (!%p3077_p0)
}
  0x5d   :  { %s3081_s18 = scalar_lea.vmem %s89_s1, 512  ;;  %p3086_p2 = scmp.lt.s32.totalorder %s89_s1, %s89_s1 }
  0x5e   :  { %p3082_p1 = scmp.ne.s32.totalorder %s89_s1, %s3081_s18  ;;  %p3087_p3 = scmp.lt.s32.totalorder %s3081_s18, %s3081_s18 }
  0x60   :  { %p3088_p4 = por %p3087_p3, %p3086_p2 }
  0x62   :  { %p3089_p5 = pnand %p3088_p4, %p3082_p1 }
  0x64   :  { %3092 = shalt.err (!%p3089_p5)
}
  0x65   :  { %94 = dma.hbm_to_vmem [thread:$0]  %s3811_s7, 512, %s89_s1, [#allocation14], %s3130_s4, %s3130_s4, %s3131_s24  }
  0x66   :  { %3115 = dma.done.wait [#allocation5], 512  }
  0x67   :  { %3116 = vsyncadd [#allocation5], 4294966784 }
  0x68   :  { %3117 = dma.done.wait [#allocation8], 1792  }
  0x69   :  { %3118 = vsyncadd [#allocation8], 4294965504 }
  0x6a   :  { %3119 = dma.done.wait [#allocation11], 2048  }
  0x6b   :  { %3120 = vsyncadd [#allocation11], 4294965248 }
  0x6c   :  { %3121 = dma.done.wait [#allocation14], 512  }
  0x6d   :  { %3122 = vsyncadd [#allocation14], 4294966784  ;;  %v3135_v0 = vmov 0   ;;  %v2716_v1 = vld [vmem:[#allocation7 + $0x4] ss:$8 sps:$4 sm:$0xff]   ;;  %v2725_v8 = vld [vmem:[#allocation4 + $0x10] sm:$0xff]   ;;  %v132_v18 = vlaneseq }
  0x6e   :  { %257 = vmatprep.mubr.bf16.mxu1 %v3135_v0  ;;  %237 = vmatprep.mubr.bf16.mxu0 %v3135_v0  ;;  %v2718_v2 = vld [vmem:[#allocation7] ss:$8 sps:$4 sm:$0xff]   ;;  %v2719_v3 = vld [vmem:[#allocation7 + $0x14] ss:$8 sps:$4 sm:$0xff]   ;;  %v2721_v4 = vld [vmem:[#allocation7 + $0x10] ss:$8 sps:$4 sm:$0xff]  }
  0x6f   :  { %2697 = vmatprep.subr.bf16.mxu1 %v2716_v1  ;;  %205 = vmatprep.subr.bf16.mxu0 %v2716_v1  ;;  %v2722_v5 = vld [vmem:[#allocation7 + $0x24] ss:$8 sps:$4 sm:$0xff]   ;;  %v2724_v6 = vld [vmem:[#allocation7 + $0x20] ss:$8 sps:$4 sm:$0xff]   ;;  %v3280_v7 = vld [vmem:[#allocation9 + $0x4] ss:$8 sps:$4 sm:$0xff]  }
  0x70   :  { %2700 = vmatpush1.bf16.msra.mxu1 %v2718_v2  ;;  %206 = vmatpush1.bf16.msra.mxu0 %v2718_v2  ;;  %v2728_v9 = vld [vmem:[#allocation4] sm:$0xff]   ;;  %vm192_vm0 = vcmask 392192   ;;  %v3282_v10 = vld [vmem:[#allocation9] ss:$8 sps:$4 sm:$0xff]   ;;  %v3292_v13 = vld [vmem:[#allocation9 + $0x24] ss:$8 sps:$4 sm:$0xff]  }
  0x71   :  { %2698 = vmatprep.subr.bf16.mxu1 %v2719_v3  ;;  %207 = vmatprep.subr.bf16.mxu0 %v2719_v3  ;;  %v3285_v11 = vld [vmem:[#allocation9 + $0x14] ss:$8 sps:$4 sm:$0xff]   ;;  %v3288_v12 = vld [vmem:[#allocation9 + $0x10] ss:$8 sps:$4 sm:$0xff]   ;;  %v2733_v14 = vld [vmem:[#allocation4 + $0x18] sm:$0xff]   ;;  %v3330_v19 = vshrl.u32 %v132_v18, 7 }
  0x72   :  { %v3298_v15 = vld [vmem:[#allocation9 + $0x20] ss:$8 sps:$4 sm:$0xff]   ;;  %v3301_v16 = vld [vmem:[#allocation9 + $0x34] ss:$8 sps:$4 sm:$0xff]   ;;  %v3310_v17 = vld [vmem:[#allocation9 + $0x30] ss:$8 sps:$4 sm:$0xff]  }
  0x73   :  { %v134_v20 = vsub.s32 0, %v3330_v19  ;;  %v130_v21 = vld [vmem:[%s3806_s2] sm:$0x3]  ;;  %v138_v22 = vsub.s32 1, %v3330_v19  ;;  %s3136_s2 = smov 32   ;;  %vm482_vm1 = vcmask 261120  }
  0x74   :  { %2701 = vmatpush1.bf16.msra.mxu1 %v2721_v4  ;;  %208 = vmatpush1.bf16.msra.mxu0 %v2721_v4  ;;  %vm489_vm2 = vcmask 523520   ;;  %vm382_vm3 = vcmask 523264   ;;  %s3137_s23 = smov [#allocation15]  }
  0x75   :  { %2699 = vmatprep.subr.bf16.mxu1 %v2722_v5  ;;  %209 = vmatprep.subr.bf16.mxu0 %v2722_v5  ;;  %v3339_v23 = vrot.slane %v130_v21, %v134_v20  ;;  %v3343_v24 = vrot.slane %v130_v21, %v138_v22  ;;  %s2522_s25 = sshll.u32 %s3137_s23, 4  ;;  %s2523_s25 = int_to_ptr.vmem [resolvable:$true] %s2522_s25 }
  0x76   :  { %p3098_p7 = scmp.lt.s32.totalorder %s2523_s25, %s2523_s25 }
  0x78   :  { %2702 = vmatpush1.bf16.msra.mxu1 %v2724_v6  ;;  %210 = vmatpush1.bf16.msra.mxu0 %v2724_v6 }
  0x79   :  { %386 = vmatprep.subr.bf16.mxu1 %v3280_v7  ;;  %606 = vmatprep.subr.bf16.mxu0 %v3280_v7 }
  0x7b   :  { %2549 = vmatmul.mubr.msk.bf16.vlgmr.msra.gmra.mrb[0].mxu1 %vm192_vm0, %v2725_v8  ;;  %2547 = vmatmul.mubr.msk.bf16.vlgmr.msra.gmra.mrb[0].mxu0 %vm192_vm0, %v2728_v9 }
  0x7c   :  { %387 = vmatpush1.bf16.msra.mxu1 %v3282_v10  ;;  %267 = vmatprep.mubr.bf16.mxu1 %v3135_v0 }
  0x7d   :  { %388 = vmatprep.subr.bf16.mxu1 %v3285_v11  ;;  %247 = vmatprep.mubr.bf16.mxu0 %v3135_v0 }
  0x7e   :  { %607 = vmatpush1.bf16.msra.mxu0 %v3282_v10 }
  0x7f   :  { %608 = vmatprep.subr.bf16.mxu0 %v3285_v11 }
  0x80   :  { %389 = vmatpush1.bf16.msra.mxu1 %v3288_v12 }
  0x81   :  { %390 = vmatprep.subr.bf16.mxu1 %v3292_v13 }
  0x82   :  { %609 = vmatpush1.bf16.msra.mxu0 %v3288_v12 }
  0x83   :  { %2550 = vmatmul.mubr.msk.bf16.gmra.mrb[4].mxu1 %vm192_vm0, %v2733_v14  ;;  %610 = vmatprep.subr.bf16.mxu0 %v3292_v13 }
  0x84   :  { %391 = vmatpush1.bf16.msra.mxu1 %v3298_v15  ;;  %418 = vmatprep.mubr.bf16.mxu1 %v3135_v0 }
  0x85   :  { %392 = vmatprep.subr.bf16.mxu1 %v3301_v16 }
  0x86   :  { %611 = vmatpush1.bf16.msra.mxu0 %v3298_v15 }
  0x87   :  { %612 = vmatprep.subr.bf16.mxu0 %v3301_v16 }
  0x88   :  { %393 = vmatpush1.bf16.msra.mxu1 %v3310_v17 }
  0x89   :  { %496 = vmatprep.subr.bf16.mxu1 %v3280_v7 }
  0x8a   :  { %613 = vmatpush1.bf16.msra.mxu0 %v3310_v17 }
  0x8b   :  { %419 = vmatmul.mubr.bf16.vlgmr.msra.gmra.mrb[8].mxu1 %v3135_v0  ;;  %826 = vmatprep.subr.bf16.mxu0 %v3280_v7 }
  0x8c   :  { %497 = vmatpush1.bf16.msra.mxu1 %v3282_v10  ;;  %528 = vmatprep.mubr.bf16.mxu1 %v3135_v0 }
  0x8d   :  { %498 = vmatprep.subr.bf16.mxu1 %v3285_v11 }
  0x90   :  { %499 = vmatpush1.bf16.msra.mxu1 %v3288_v12 }
  0x91   :  { %500 = vmatprep.subr.bf16.mxu1 %v3292_v13 }
  0x94   :  { %501 = vmatpush1.bf16.msra.mxu1 %v3298_v15 }
  0x95   :  { %502 = vmatprep.subr.bf16.mxu1 %v3301_v16 }
  0x98   :  { %503 = vmatpush1.bf16.msra.mxu1 %v3310_v17 }
  0x99   :  { %716 = vmatprep.subr.bf16.mxu1 %v3280_v7 }
 0x14e   :  { %v259_v25 = vpop.f32.mrb[0].mxu1  ;;  %v239_v26 = vpop.f32.mrb[0].mxu0 }
 0x14f   :  { %v260_v27 = vadd.f32 %v259_v25, %v3339_v23  ;;  %v240_v28 = vadd.f32 %v239_v26, %v3339_v23  ;;  %v261_v29 = vpop.f32.mrb[1].mxu1  ;;  %v241_v30 = vpop.f32.mrb[1].mxu0 }
 0x150   :  { %v262_v31 = vadd.f32 %v261_v29, %v3343_v24  ;;  %v242_v32 = vadd.f32 %v241_v30, %v3343_v24  ;;  %v263_v33 = vpop.f32.mrb[2].mxu1  ;;  %v243_v34 = vpop.f32.mrb[2].mxu0 }
 0x151   :  { %v264_v35 = vadd.f32 %v263_v33, %v3339_v23  ;;  %v265_v36 = vpop.f32.mrb[3].mxu1  ;;  %v244_v37 = vadd.f32 %v243_v34, %v3339_v23  ;;  %v245_v38 = vpop.f32.mrb[3].mxu0 }
 0x152   :  { %v2630_v39 = vpack.c.bf16 %v262_v31, %v260_v27  ;;  %v2626_v40 = vpack.c.bf16 %v242_v32, %v240_v28  ;;  %v266_v41 = vadd.f32 %v265_v36, %v3343_v24  ;;  %v246_v42 = vadd.f32 %v245_v38, %v3343_v24 }
 0x154   :  { %330 = vst [vmem:[#allocation2 + $0x20] sm:$0xff] %v2630_v39  ;;  %326 = vst [vmem:[#allocation2] sm:$0xff] %v2626_v40  ;;  %v2631_v43 = vpack.c.bf16 %v266_v41, %v264_v35  ;;  %v2627_v44 = vpack.c.bf16 %v246_v42, %v244_v37 }
 0x156   :  { %331 = vst [vmem:[#allocation2 + $0x28] sm:$0xff] %v2631_v43  ;;  %327 = vst [vmem:[#allocation2 + $0x8] sm:$0xff] %v2627_v44  ;;  %v269_v45 = vpop.f32.mrb[4].mxu1 }
 0x157   :  { %v270_v46 = vadd.f32 %v269_v45, %v3339_v23  ;;  %v271_v47 = vpop.f32.mrb[5].mxu1 }
 0x158   :  { %v272_v48 = vadd.f32 %v271_v47, %v3343_v24  ;;  %v273_v49 = vpop.f32.mrb[6].mxu1 }
 0x159   :  { %v274_v50 = vadd.f32 %v273_v49, %v3339_v23  ;;  %v275_v51 = vpop.f32.mrb[7].mxu1 }
 0x15a   :  { %v2632_v52 = vpack.c.bf16 %v272_v48, %v270_v46  ;;  %v276_v53 = vadd.f32 %v275_v51, %v3343_v24 }
 0x15c   :  { %332 = vst [vmem:[#allocation2 + $0x30] sm:$0xff] %v2632_v52  ;;  %v2633_v54 = vpack.c.bf16 %v276_v53, %v274_v50 }
 0x15e   :  { %333 = vst [vmem:[#allocation2 + $0x38] sm:$0xff] %v2633_v54  ;;  %v420_v55 = vpop.f32.mrb[8].mxu1 }
 0x15f   :  { %v422_v56 = vpop.f32.mrb[9].mxu1 }
 0x160   :  { %v424_v57 = vpop.f32.mrb[10].mxu1 }
 0x161   :  { %v425_v58 = vpop.f32.mrb[11].mxu1 }
 0x163   :  { %v538_v44 = vld [vmem:[#allocation2 + $0x8] ss:$44 sps:$4 sm:$0xff]  }
 0x164   :  { %v539_v45 = vunpack.c.l.bf16 %v538_v44  ;;  %v543_v47 = vunpack.c.h.bf16 %v538_v44  ;;  %v3422_v44 = vld [vmem:[#allocation2 + $0x2c] sm:$0xff]  }
 0x165   :  { %v427_v59 = vld [vmem:[#allocation2] ss:$60 sps:$4 sm:$0xff]  }
 0x166   :  { %v428_v60 = vunpack.c.l.bf16 %v427_v59  ;;  %v432_v61 = vunpack.c.h.bf16 %v427_v59 }
 0x168   :  { %v429_v62 = vadd.f32 %v428_v60, %v420_v55  ;;  %v433_v63 = vadd.f32 %v432_v61, %v422_v56 }
 0x16a   :  { %2769 = vtanh.f32 %v429_v62  ;;  %v434_v3 = vmul.f32 0.5, %v429_v62  ;;  %v456_v4 = vmul.f32 0.5, %v433_v63 }
 0x16b   :  { %2771 = vtanh.f32 %v433_v63 }
 0x16c   :  { %2773 = vtanh.f32 %v434_v3 }
 0x16d   :  { %2775 = vtanh.f32 %v456_v4 }
 0x174   :  { %v2770_v1 = vpop.eup %2769 }
 0x175   :  { %441 = vrot.lane.b32.xlu0 %v2770_v1, %s3130_s4  ;;  %v2772_v2 = vpop.eup %2771 }
 0x176   :  { %v2774_v5 = vpop.eup %2773 }
 0x177   :  { %v436_v6 = vadd.f32 1.0, %v2774_v5  ;;  %v2776_v8 = vpop.eup %2775 }
 0x178   :  { %v458_v9 = vadd.f32 1.0, %v2776_v8 }
 0x179   :  { %463 = vrot.lane.b32.xlu0 %v2772_v2, %s3130_s4  ;;  %v437_v14 = vmul.f32 0.5, %v436_v6 }
 0x17a   :  { %v459_v25 = vmul.f32 0.5, %v458_v9 }
 0x17b   :  { %v439_v28 = vmul.f32 0.0, %v437_v14 }
 0x17c   :  { %v461_v31 = vmul.f32 0.0, %v459_v25 }
 0x1e7   :  { %v442_v18 = vpop.permute.xlu0 %441 }
 0x1e8   :  { %v444_v21 = vmul.f32 %v442_v18, %v437_v14  ;;  %v2740_v18 = vld [vmem:[#allocation4 + $0x8] sm:$0xff]  }
 0x1e9   :  { %2548 = vmatmul.mubr.msk.bf16.gmra.mrb[4].mxu0 %vm192_vm0, %v2740_v18 }
 0x1ea   :  { %446 = vrot.lane.b32.xlu1 %v444_v21, %s3136_s2  ;;  %638 = vmatprep.mubr.bf16.mxu0 %v3135_v0 }
 0x1eb   :  { %v464_v26 = vpop.permute.xlu0 %463 }
 0x1ec   :  { %v466_v27 = vmul.f32 %v464_v26, %v459_v25 }
 0x1ee   :  { %468 = vrot.lane.b32.xlu1 %v466_v27, %s3136_s2 }
 0x25c   :  { %v447_v29 = vpop.permute.xlu1 %446 }
 0x25d   :  { %v3361_v30 = vadd.f32 %v447_v29, %v439_v28 }
 0x25f   :  { %2777 = vtanh.f32 %v3361_v30 }
 0x260   :  { %v469_v32 = vpop.permute.xlu1 %468 }
 0x261   :  { %v3364_v33 = vadd.f32 %v469_v32, %v461_v31 }
 0x263   :  { %2779 = vtanh.f32 %v3364_v33 }
 0x269   :  { %v2778_v34 = vpop.eup %2777 }
 0x26a   :  { %452 = vrot.lane.b32.xlu0 %v2778_v34, %s3130_s4 }
 0x26d   :  { %v2780_v35 = vpop.eup %2779 }
 0x26e   :  { %474 = vrot.lane.b32.xlu1 %v2780_v35, %s3130_s4 }
 0x2dc   :  { %v453_v36 = vpop.permute.xlu0 %452 }
 0x2dd   :  { %v455_v37 = vmul.f32 %v453_v36, %v437_v14 }
 0x2df   :  { %479 = vrot.lane.b32.xlu0 %v455_v37, %s3136_s2 }
 0x2e0   :  { %v475_v38 = vpop.permute.xlu1 %474 }
 0x2e1   :  { %v477_v39 = vmul.f32 %v475_v38, %v459_v25 }
 0x2e3   :  { %485 = vrot.lane.b32.xlu1 %v477_v39, %s3130_s4 }
 0x351   :  { %v480_v40 = vpop.permute.xlu0 %479 }
 0x352   :  { %483 = vst.msk [vmem:[#allocation3] sm:$0xff] %vm482_vm1, %v480_v40 }
 0x355   :  { %v486_v41 = vpop.permute.xlu1 %485 }
 0x356   :  { %490 = vst.msk [vmem:[#allocation3 + $0x38] sm:$0xff] %vm489_vm2, %v486_v41  ;;  %v491_v42 = vsel %vm482_vm1, %v480_v40, %v486_v41 }
 0x357   :  { %v492_v43 = vpack.c.bf16 %v491_v42, %v491_v42 }
 0x359   :  { %2567 = vmatmul.mubr.msk.bf16.vlgmr.msra.gmra.mrb[12].mxu1 %vm382_vm3, %v492_v43 }
 0x35a   :  { %717 = vmatpush1.bf16.msra.mxu1 %v3282_v10  ;;  %748 = vmatprep.mubr.bf16.mxu1 %v3135_v0 }
 0x35b   :  { %718 = vmatprep.subr.bf16.mxu1 %v3285_v11 }
 0x35e   :  { %719 = vmatpush1.bf16.msra.mxu1 %v3288_v12 }
 0x35f   :  { %720 = vmatprep.subr.bf16.mxu1 %v3292_v13 }
 0x362   :  { %721 = vmatpush1.bf16.msra.mxu1 %v3298_v15 }
 0x363   :  { %722 = vmatprep.subr.bf16.mxu1 %v3301_v16 }
 0x366   :  { %723 = vmatpush1.bf16.msra.mxu1 %v3310_v17 }
 0x367   :  { %932 = vmatprep.subr.bf16.mxu1 %v3280_v7 }
 0x42c   :  { %v530_v46 = vpop.f32.mrb[12].mxu1 }
 0x42d   :  { %v540_v48 = vadd.f32 %v539_v45, %v530_v46  ;;  %v532_v49 = vpop.f32.mrb[13].mxu1  ;;  %v653_v46 = vunpack.c.l.bf16 %v3422_v44 }
 0x42e   :  { %v544_v50 = vadd.f32 %v543_v47, %v532_v49  ;;  %v534_v51 = vpop.f32.mrb[14].mxu1 }
 0x42f   :  { %2781 = vtanh.f32 %v540_v48  ;;  %v535_v52 = vpop.f32.mrb[15].mxu1  ;;  %v545_v55 = vmul.f32 0.5, %v540_v48 }
 0x430   :  { %2783 = vtanh.f32 %v544_v50  ;;  %v567_v56 = vmul.f32 0.5, %v544_v50 }
 0x431   :  { %2785 = vtanh.f32 %v545_v55 }
 0x432   :  { %2787 = vtanh.f32 %v567_v56 }
 0x439   :  { %v2782_v53 = vpop.eup %2781 }
 0x43a   :  { %v2784_v54 = vpop.eup %2783  ;;  %552 = vrot.lane.b32.xlu0 %v2782_v53, %s3130_s4 }
 0x43b   :  { %574 = vrot.lane.b32.xlu1 %v2784_v54, %s3130_s4  ;;  %v2786_v57 = vpop.eup %2785 }
 0x43c   :  { %v2788_v58 = vpop.eup %2787  ;;  %v547_v59 = vadd.f32 1.0, %v2786_v57 }
 0x43d   :  { %v569_v60 = vadd.f32 1.0, %v2788_v58 }
 0x43e   :  { %v548_v61 = vmul.f32 0.5, %v547_v59 }
 0x43f   :  { %v570_v63 = vmul.f32 0.5, %v569_v60 }
 0x440   :  { %v550_v4 = vmul.f32 %v548_v61, %v3361_v30  ;;  %v249_v30 = vpop.f32.mrb[4].mxu0 }
 0x441   :  { %v572_v6 = vmul.f32 %v570_v63, %v3364_v33  ;;  %v250_v31 = vadd.f32 %v249_v30, %v3339_v23  ;;  %v251_v32 = vpop.f32.mrb[5].mxu0 }
 0x442   :  { %v252_v33 = vadd.f32 %v251_v32, %v3343_v24  ;;  %v253_v34 = vpop.f32.mrb[6].mxu0 }
 0x443   :  { %v254_v35 = vadd.f32 %v253_v34, %v3339_v23  ;;  %v255_v36 = vpop.f32.mrb[7].mxu0 }
 0x444   :  { %v2628_v37 = vpack.c.bf16 %v252_v33, %v250_v31  ;;  %v256_v38 = vadd.f32 %v255_v36, %v3343_v24  ;;  %v3456_v33 = vld [vmem:[#allocation2 + $0x24] sm:$0xff]  }
 0x445   :  { %v763_v36 = vunpack.c.l.bf16 %v3456_v33 }
 0x446   :  { %328 = vst [vmem:[#allocation2 + $0x10] sm:$0xff] %v2628_v37  ;;  %v2629_v39 = vpack.c.bf16 %v256_v38, %v254_v35 }
 0x448   :  { %329 = vst [vmem:[#allocation2 + $0x18] sm:$0xff] %v2629_v39 }
 0x44d   :  { %v3419_v23 = vld [vmem:[#allocation2 + $0x10] sm:$0xff]  }
 0x44e   :  { %v649_v24 = vunpack.c.l.bf16 %v3419_v23 }
 0x44f   :  { %v3454_v32 = vld [vmem:[#allocation2 + $0x18] sm:$0xff]  }
 0x450   :  { %v759_v34 = vunpack.c.l.bf16 %v3454_v32 }
 0x4ac   :  { %v553_v62 = vpop.permute.xlu0 %552 }
 0x4ad   :  { %v555_v1 = vmul.f32 %v553_v62, %v548_v61  ;;  %v575_v2 = vpop.permute.xlu1 %574 }
 0x4ae   :  { %v577_v3 = vmul.f32 %v575_v2, %v570_v63 }
 0x4af   :  { %557 = vrot.lane.b32.xlu0 %v555_v1, %s3136_s2 }
 0x4b0   :  { %579 = vrot.lane.b32.xlu1 %v577_v3, %s3136_s2 }
 0x521   :  { %v558_v5 = vpop.permute.xlu0 %557 }
 0x522   :  { %v3390_v8 = vadd.f32 %v558_v5, %v550_v4  ;;  %v580_v9 = vpop.permute.xlu1 %579 }
 0x523   :  { %v3392_v14 = vadd.f32 %v580_v9, %v572_v6 }
 0x524   :  { %2789 = vtanh.f32 %v3390_v8 }
 0x525   :  { %2791 = vtanh.f32 %v3392_v14 }
 0x52e   :  { %v2790_v21 = vpop.eup %2789 }
 0x52f   :  { %v2792_v25 = vpop.eup %2791  ;;  %563 = vrot.lane.b32.xlu0 %v2790_v21, %s3130_s4 }
 0x530   :  { %585 = vrot.lane.b32.xlu1 %v2792_v25, %s3130_s4 }
 0x5a1   :  { %v564_v26 = vpop.permute.xlu0 %563 }
 0x5a2   :  { %v566_v27 = vmul.f32 %v564_v26, %v548_v61  ;;  %v586_v28 = vpop.permute.xlu1 %585 }
 0x5a3   :  { %v588_v29 = vmul.f32 %v586_v28, %v570_v63 }
 0x5a4   :  { %590 = vrot.lane.b32.xlu0 %v566_v27, %s3136_s2 }
 0x5a5   :  { %596 = vrot.lane.b32.xlu1 %v588_v29, %s3130_s4 }
 0x616   :  { %v591_v40 = vpop.permute.xlu0 %590 }
 0x617   :  { %594 = vst.msk [vmem:[#allocation3 + $0x8] sm:$0xff] %vm482_vm1, %v591_v40  ;;  %v597_v41 = vpop.permute.xlu1 %596 }
 0x618   :  { %600 = vst.msk [vmem:[#allocation3 + $0x30] sm:$0xff] %vm489_vm2, %v597_v41  ;;  %v601_v42 = vsel %vm482_vm1, %v591_v40, %v597_v41 }
 0x619   :  { %v602_v43 = vpack.c.bf16 %v601_v42, %v601_v42 }
 0x61b   :  { %2568 = vmatmul.mubr.msk.bf16.vlgmr.msra.gmra.mrb[8].mxu0 %vm382_vm3, %v602_v43 }
 0x61c   :  { %827 = vmatpush1.bf16.msra.mxu0 %v3282_v10  ;;  %858 = vmatprep.mubr.bf16.mxu0 %v3135_v0 }
 0x61d   :  { %828 = vmatprep.subr.bf16.mxu0 %v3285_v11 }
 0x620   :  { %829 = vmatpush1.bf16.msra.mxu0 %v3288_v12 }
 0x621   :  { %830 = vmatprep.subr.bf16.mxu0 %v3292_v13 }
 0x624   :  { %831 = vmatpush1.bf16.msra.mxu0 %v3298_v15 }
 0x625   :  { %832 = vmatprep.subr.bf16.mxu0 %v3301_v16 }
 0x628   :  { %833 = vmatpush1.bf16.msra.mxu0 %v3310_v17 }
 0x629   :  { %1038 = vmatprep.subr.bf16.mxu0 %v3280_v7 }
 0x6ee   :  { %v640_v45 = vpop.f32.mrb[8].mxu0 }
 0x6ef   :  { %v650_v47 = vadd.f32 %v649_v24, %v640_v45  ;;  %v642_v48 = vpop.f32.mrb[9].mxu0 }
 0x6f0   :  { %v654_v49 = vadd.f32 %v653_v46, %v642_v48  ;;  %v644_v50 = vpop.f32.mrb[10].mxu0 }
 0x6f1   :  { %2793 = vtanh.f32 %v650_v47  ;;  %v645_v51 = vpop.f32.mrb[11].mxu0  ;;  %v655_v54 = vmul.f32 0.5, %v650_v47 }
 0x6f2   :  { %2795 = vtanh.f32 %v654_v49  ;;  %v677_v55 = vmul.f32 0.5, %v654_v49 }
 0x6f3   :  { %2797 = vtanh.f32 %v655_v54 }
 0x6f4   :  { %2799 = vtanh.f32 %v677_v55 }
 0x6fb   :  { %v2794_v52 = vpop.eup %2793 }
 0x6fc   :  { %v2796_v53 = vpop.eup %2795  ;;  %662 = vrot.lane.b32.xlu0 %v2794_v52, %s3130_s4 }
 0x6fd   :  { %684 = vrot.lane.b32.xlu1 %v2796_v53, %s3130_s4  ;;  %v2798_v56 = vpop.eup %2797 }
 0x6fe   :  { %v2800_v57 = vpop.eup %2799  ;;  %v657_v58 = vadd.f32 1.0, %v2798_v56 }
 0x6ff   :  { %v679_v59 = vadd.f32 1.0, %v2800_v57 }
 0x700   :  { %v658_v60 = vmul.f32 0.5, %v657_v58 }
 0x701   :  { %v680_v62 = vmul.f32 0.5, %v679_v59 }
 0x702   :  { %v660_v3 = vmul.f32 %v658_v60, %v3390_v8 }
 0x703   :  { %v682_v5 = vmul.f32 %v680_v62, %v3392_v14 }
 0x76e   :  { %v663_v61 = vpop.permute.xlu0 %662 }
 0x76f   :  { %v665_v63 = vmul.f32 %v663_v61, %v658_v60  ;;  %v685_v1 = vpop.permute.xlu1 %684 }
 0x770   :  { %v687_v2 = vmul.f32 %v685_v1, %v680_v62 }
 0x771   :  { %667 = vrot.lane.b32.xlu0 %v665_v63, %s3136_s2 }
 0x772   :  { %689 = vrot.lane.b32.xlu1 %v687_v2, %s3136_s2 }
 0x7e3   :  { %v668_v4 = vpop.permute.xlu0 %667 }
 0x7e4   :  { %v3431_v6 = vadd.f32 %v668_v4, %v660_v3  ;;  %v690_v9 = vpop.permute.xlu1 %689 }
 0x7e5   :  { %v3433_v18 = vadd.f32 %v690_v9, %v682_v5 }
 0x7e6   :  { %2801 = vtanh.f32 %v3431_v6 }
 0x7e7   :  { %2803 = vtanh.f32 %v3433_v18 }
 0x7f0   :  { %v2802_v21 = vpop.eup %2801 }
 0x7f1   :  { %v2804_v25 = vpop.eup %2803  ;;  %673 = vrot.lane.b32.xlu0 %v2802_v21, %s3130_s4 }
 0x7f2   :  { %695 = vrot.lane.b32.xlu1 %v2804_v25, %s3130_s4 }
 0x863   :  { %v674_v26 = vpop.permute.xlu0 %673 }
 0x864   :  { %v676_v8 = vmul.f32 %v674_v26, %v658_v60  ;;  %v696_v27 = vpop.permute.xlu1 %695  ;;  %v871_v26 = vunpack.c.h.bf16 %v3454_v32 }
 0x865   :  { %v698_v28 = vmul.f32 %v696_v27, %v680_v62 }
 0x866   :  { %700 = vrot.lane.b32.xlu0 %v676_v8, %s3136_s2 }
 0x867   :  { %706 = vrot.lane.b32.xlu1 %v698_v28, %s3130_s4 }
 0x8d8   :  { %v701_v14 = vpop.permute.xlu0 %700 }
 0x8d9   :  { %704 = vst.msk [vmem:[#allocation3 + $0x10] sm:$0xff] %vm482_vm1, %v701_v14  ;;  %v707_v29 = vpop.permute.xlu1 %706 }
 0x8da   :  { %710 = vst.msk [vmem:[#allocation3 + $0x28] sm:$0xff] %vm489_vm2, %v707_v29  ;;  %v711_v30 = vsel %vm482_vm1, %v701_v14, %v707_v29 }
 0x8db   :  { %v712_v31 = vpack.c.bf16 %v711_v30, %v711_v30 }
 0x8dd   :  { %2569 = vmatmul.mubr.msk.bf16.vlgmr.msra.gmra.mrb[16].mxu1 %vm382_vm3, %v712_v31 }
 0x8de   :  { %933 = vmatpush1.bf16.msra.mxu1 %v3282_v10  ;;  %964 = vmatprep.mubr.bf16.mxu1 %v3135_v0 }
 0x8df   :  { %934 = vmatprep.subr.bf16.mxu1 %v3285_v11 }
 0x8e2   :  { %935 = vmatpush1.bf16.msra.mxu1 %v3288_v12 }
 0x8e3   :  { %936 = vmatprep.subr.bf16.mxu1 %v3292_v13 }
 0x8e6   :  { %937 = vmatpush1.bf16.msra.mxu1 %v3298_v15 }
 0x8e7   :  { %938 = vmatprep.subr.bf16.mxu1 %v3301_v16 }
 0x8ea   :  { %939 = vmatpush1.bf16.msra.mxu1 %v3310_v17 }
 0x8eb   :  { %1144 = vmatprep.subr.bf16.mxu1 %v3280_v7 }
 0x9b0   :  { %v750_v35 = vpop.f32.mrb[16].mxu1 }
 0x9b1   :  { %v760_v37 = vadd.f32 %v759_v34, %v750_v35  ;;  %v752_v38 = vpop.f32.mrb[17].mxu1 }
 0x9b2   :  { %v764_v39 = vadd.f32 %v763_v36, %v752_v38  ;;  %v754_v40 = vpop.f32.mrb[18].mxu1 }
 0x9b3   :  { %2805 = vtanh.f32 %v760_v37  ;;  %v755_v41 = vpop.f32.mrb[19].mxu1  ;;  %v765_v7 = vmul.f32 0.5, %v760_v37 }
 0x9b4   :  { %2807 = vtanh.f32 %v764_v39  ;;  %v787_v24 = vmul.f32 0.5, %v764_v39 }
 0x9b5   :  { %2809 = vtanh.f32 %v765_v7 }
 0x9b6   :  { %2811 = vtanh.f32 %v787_v24 }
 0x9bd   :  { %v2806_v42 = vpop.eup %2805 }
 0x9be   :  { %v2808_v43 = vpop.eup %2807  ;;  %772 = vrot.lane.b32.xlu0 %v2806_v42, %s3130_s4 }
 0x9bf   :  { %794 = vrot.lane.b32.xlu1 %v2808_v43, %s3130_s4  ;;  %v2810_v45 = vpop.eup %2809 }
 0x9c0   :  { %v2812_v46 = vpop.eup %2811  ;;  %v767_v47 = vadd.f32 1.0, %v2810_v45 }
 0x9c1   :  { %v789_v48 = vadd.f32 1.0, %v2812_v46 }
 0x9c2   :  { %v768_v49 = vmul.f32 0.5, %v767_v47 }
 0x9c3   :  { %v790_v51 = vmul.f32 0.5, %v789_v48 }
 0x9c4   :  { %v770_v55 = vmul.f32 %v768_v49, %v3431_v6 }
 0x9c5   :  { %v792_v57 = vmul.f32 %v790_v51, %v3433_v18  ;;  %v3482_v18 = vld [vmem:[#allocation2 + $0xc] ss:$20 sps:$4 sm:$0xff]  }
 0x9c6   :  { %v868_v21 = vunpack.c.h.bf16 %v3482_v18 }
 0xa30   :  { %v773_v50 = vpop.permute.xlu0 %772 }
 0xa31   :  { %v775_v52 = vmul.f32 %v773_v50, %v768_v49  ;;  %v795_v53 = vpop.permute.xlu1 %794 }
 0xa32   :  { %v797_v54 = vmul.f32 %v795_v53, %v790_v51 }
 0xa33   :  { %777 = vrot.lane.b32.xlu0 %v775_v52, %s3136_s2 }
 0xa34   :  { %799 = vrot.lane.b32.xlu1 %v797_v54, %s3136_s2 }
 0xaa5   :  { %v778_v56 = vpop.permute.xlu0 %777 }
 0xaa6   :  { %v780_v58 = vadd.f32 %v778_v56, %v770_v55  ;;  %v800_v59 = vpop.permute.xlu1 %799 }
 0xaa7   :  { %v802_v60 = vadd.f32 %v800_v59, %v792_v57 }
 0xaa8   :  { %2813 = vtanh.f32 %v780_v58 }
 0xaa9   :  { %2815 = vtanh.f32 %v802_v60 }
 0xab2   :  { %v2814_v61 = vpop.eup %2813 }
 0xab3   :  { %v2816_v62 = vpop.eup %2815  ;;  %783 = vrot.lane.b32.xlu0 %v2814_v61, %s3130_s4 }
 0xab4   :  { %805 = vrot.lane.b32.xlu1 %v2816_v62, %s3130_s4  ;;  %v977_v62 = vunpack.c.h.bf16 %v3419_v23 }
 0xb25   :  { %v784_v63 = vpop.permute.xlu0 %783 }
 0xb26   :  { %v786_v1 = vmul.f32 %v784_v63, %v768_v49  ;;  %v806_v2 = vpop.permute.xlu1 %805 }
 0xb27   :  { %v808_v3 = vmul.f32 %v806_v2, %v790_v51 }
 0xb28   :  { %810 = vrot.lane.b32.xlu0 %v786_v1, %s3136_s2 }
 0xb29   :  { %816 = vrot.lane.b32.xlu1 %v808_v3, %s3130_s4 }
 0xb9a   :  { %v811_v4 = vpop.permute.xlu0 %810 }
 0xb9b   :  { %814 = vst.msk [vmem:[#allocation3 + $0x18] sm:$0xff] %vm482_vm1, %v811_v4  ;;  %v817_v5 = vpop.permute.xlu1 %816 }
 0xb9c   :  { %820 = vst.msk [vmem:[#allocation3 + $0x20] sm:$0xff] %vm489_vm2, %v817_v5  ;;  %v821_v6 = vsel %vm482_vm1, %v811_v4, %v817_v5 }
 0xb9d   :  { %v822_v9 = vpack.c.bf16 %v821_v6, %v821_v6 }
 0xb9f   :  { %2570 = vmatmul.mubr.msk.bf16.vlgmr.msra.gmra.mrb[12].mxu0 %vm382_vm3, %v822_v9 }
 0xba0   :  { %1039 = vmatpush1.bf16.msra.mxu0 %v3282_v10  ;;  %1070 = vmatprep.mubr.bf16.mxu0 %v3135_v0 }
 0xba1   :  { %1040 = vmatprep.subr.bf16.mxu0 %v3285_v11 }
 0xba4   :  { %1041 = vmatpush1.bf16.msra.mxu0 %v3288_v12 }
 0xba5   :  { %1042 = vmatprep.subr.bf16.mxu0 %v3292_v13 }
 0xba8   :  { %1043 = vmatpush1.bf16.msra.mxu0 %v3298_v15 }
 0xba9   :  { %1044 = vmatprep.subr.bf16.mxu0 %v3301_v16 }
 0xbac   :  { %1045 = vmatpush1.bf16.msra.mxu0 %v3310_v17 }
 0xc72   :  { %v860_v25 = vpop.f32.mrb[12].mxu0 }
 0xc73   :  { %v869_v8 = vadd.f32 %v868_v21, %v860_v25  ;;  %v862_v27 = vpop.f32.mrb[13].mxu0 }
 0xc74   :  { %v872_v28 = vadd.f32 %v871_v26, %v862_v27  ;;  %v864_v14 = vpop.f32.mrb[14].mxu0 }
 0xc75   :  { %2817 = vtanh.f32 %v869_v8  ;;  %v865_v29 = vpop.f32.mrb[15].mxu0  ;;  %v873_v34 = vmul.f32 0.5, %v869_v8 }
 0xc76   :  { %2819 = vtanh.f32 %v872_v28  ;;  %v895_v35 = vmul.f32 0.5, %v872_v28 }
 0xc77   :  { %2821 = vtanh.f32 %v873_v34 }
 0xc78   :  { %2823 = vtanh.f32 %v895_v35 }
 0xc7f   :  { %v2818_v30 = vpop.eup %2817 }
 0xc80   :  { %v2820_v31 = vpop.eup %2819  ;;  %880 = vrot.lane.b32.xlu0 %v2818_v30, %s3130_s4 }
 0xc81   :  { %902 = vrot.lane.b32.xlu1 %v2820_v31, %s3130_s4  ;;  %v2822_v36 = vpop.eup %2821 }
 0xc82   :  { %v2824_v37 = vpop.eup %2823  ;;  %v875_v32 = vadd.f32 1.0, %v2822_v36 }
 0xc83   :  { %v897_v38 = vadd.f32 1.0, %v2824_v37 }
 0xc84   :  { %v876_v39 = vmul.f32 0.5, %v875_v32 }
 0xc85   :  { %v898_v41 = vmul.f32 0.5, %v897_v38 }
 0xc86   :  { %v878_v24 = vmul.f32 %v876_v39, %v780_v58 }
 0xc87   :  { %v900_v46 = vmul.f32 %v898_v41, %v802_v60  ;;  %v974_v60 = vunpack.c.h.bf16 %v3456_v33 }
 0xcf2   :  { %v881_v40 = vpop.permute.xlu0 %880 }
 0xcf3   :  { %v883_v42 = vmul.f32 %v881_v40, %v876_v39  ;;  %v903_v43 = vpop.permute.xlu1 %902 }
 0xcf4   :  { %v905_v7 = vmul.f32 %v903_v43, %v898_v41  ;;  %v1083_v43 = vunpack.c.l.bf16 %v3482_v18 }
 0xcf5   :  { %885 = vrot.lane.b32.xlu0 %v883_v42, %s3136_s2 }
 0xcf6   :  { %907 = vrot.lane.b32.xlu1 %v905_v7, %s3136_s2 }
 0xd67   :  { %v886_v45 = vpop.permute.xlu0 %885 }
 0xd68   :  { %v888_v47 = vadd.f32 %v886_v45, %v878_v24  ;;  %v908_v48 = vpop.permute.xlu1 %907 }
 0xd69   :  { %v910_v49 = vadd.f32 %v908_v48, %v900_v46 }
 0xd6a   :  { %2825 = vtanh.f32 %v888_v47 }
 0xd6b   :  { %2827 = vtanh.f32 %v910_v49 }
 0xd74   :  { %v2826_v50 = vpop.eup %2825 }
 0xd75   :  { %v2828_v51 = vpop.eup %2827  ;;  %891 = vrot.lane.b32.xlu0 %v2826_v50, %s3130_s4 }
 0xd76   :  { %913 = vrot.lane.b32.xlu1 %v2828_v51, %s3130_s4 }
 0xde7   :  { %v892_v52 = vpop.permute.xlu0 %891 }
 0xde8   :  { %v894_v53 = vmul.f32 %v892_v52, %v876_v39  ;;  %v914_v54 = vpop.permute.xlu1 %913 }
 0xde9   :  { %v916_v55 = vmul.f32 %v914_v54, %v898_v41  ;;  %v1080_v41 = vunpack.c.h.bf16 %v3422_v44 }
 0xdea   :  { %918 = vrot.lane.b32.xlu0 %v894_v53, %s3136_s2 }
 0xdeb   :  { %923 = vrot.lane.b32.xlu1 %v916_v55, %s3130_s4 }
 0xe5c   :  { %v919_v56 = vpop.permute.xlu0 %918 }
 0xe5d   :  { %921 = vst.msk [vmem:[#allocation3 + $0x20] sm:$0xff] %vm482_vm1, %v919_v56  ;;  %v924_v57 = vpop.permute.xlu1 %923 }
 0xe5e   :  { %926 = vst.msk [vmem:[#allocation3 + $0x18] sm:$0xff] %vm489_vm2, %v924_v57  ;;  %v927_v58 = vsel %vm482_vm1, %v919_v56, %v924_v57 }
 0xe5f   :  { %v928_v59 = vpack.c.bf16 %v927_v58, %v927_v58 }
 0xe61   :  { %2571 = vmatmul.mubr.msk.bf16.vlgmr.msra.gmra.mrb[20].mxu1 %vm382_vm3, %v928_v59 }
 0xe62   :  { %1145 = vmatpush1.bf16.msra.mxu1 %v3282_v10  ;;  %1176 = vmatprep.mubr.bf16.mxu1 %v3135_v0 }
 0xe63   :  { %1146 = vmatprep.subr.bf16.mxu1 %v3285_v11 }
 0xe66   :  { %1147 = vmatpush1.bf16.msra.mxu1 %v3288_v12 }
 0xe67   :  { %1148 = vmatprep.subr.bf16.mxu1 %v3292_v13 }
 0xe6a   :  { %1149 = vmatpush1.bf16.msra.mxu1 %v3298_v15 }
 0xe6b   :  { %1150 = vmatprep.subr.bf16.mxu1 %v3301_v16 }
 0xe6e   :  { %1151 = vmatpush1.bf16.msra.mxu1 %v3310_v17 }
 0xf34   :  { %v966_v61 = vpop.f32.mrb[20].mxu1 }
 0xf35   :  { %v975_v10 = vadd.f32 %v974_v60, %v966_v61  ;;  %v968_v63 = vpop.f32.mrb[21].mxu1 }
 0xf36   :  { %v978_v1 = vadd.f32 %v977_v62, %v968_v63  ;;  %v970_v2 = vpop.f32.mrb[22].mxu1 }
 0xf37   :  { %2829 = vtanh.f32 %v975_v10  ;;  %v971_v11 = vpop.f32.mrb[23].mxu1  ;;  %v979_v15 = vmul.f32 0.5, %v975_v10 }
 0xf38   :  { %2831 = vtanh.f32 %v978_v1  ;;  %v1001_v16 = vmul.f32 0.5, %v978_v1 }
 0xf39   :  { %2833 = vtanh.f32 %v979_v15 }
 0xf3a   :  { %2835 = vtanh.f32 %v1001_v16 }
 0xf41   :  { %v2830_v12 = vpop.eup %2829 }
 0xf42   :  { %v2832_v13 = vpop.eup %2831  ;;  %986 = vrot.lane.b32.xlu0 %v2830_v12, %s3130_s4 }
 0xf43   :  { %1008 = vrot.lane.b32.xlu1 %v2832_v13, %s3130_s4  ;;  %v2834_v17 = vpop.eup %2833 }
 0xf44   :  { %v2836_v33 = vpop.eup %2835  ;;  %v981_v23 = vadd.f32 1.0, %v2834_v17 }
 0xf45   :  { %v1003_v3 = vadd.f32 1.0, %v2836_v33 }
 0xf46   :  { %v982_v4 = vmul.f32 0.5, %v981_v23 }
 0xf47   :  { %v1004_v6 = vmul.f32 0.5, %v1003_v3 }
 0xf48   :  { %v984_v26 = vmul.f32 %v982_v4, %v888_v47 }
 0xf49   :  { %v1006_v27 = vmul.f32 %v1004_v6, %v910_v49 }
 0xfb4   :  { %v987_v5 = vpop.permute.xlu0 %986 }
 0xfb5   :  { %v989_v9 = vmul.f32 %v987_v5, %v982_v4  ;;  %v1009_v21 = vpop.permute.xlu1 %1008 }
 0xfb6   :  { %v1011_v25 = vmul.f32 %v1009_v21, %v1004_v6 }
 0xfb7   :  { %991 = vrot.lane.b32.xlu0 %v989_v9, %s3136_s2 }
 0xfb8   :  { %1013 = vrot.lane.b32.xlu1 %v1011_v25, %s3136_s2 }
0x1029   :  { %v992_v8 = vpop.permute.xlu0 %991 }
0x102a   :  { %v994_v28 = vadd.f32 %v992_v8, %v984_v26  ;;  %v1014_v14 = vpop.permute.xlu1 %1013 }
0x102b   :  { %v1016_v29 = vadd.f32 %v1014_v14, %v1006_v27 }
0x102c   :  { %2837 = vtanh.f32 %v994_v28 }
0x102d   :  { %2839 = vtanh.f32 %v1016_v29 }
0x1036   :  { %v2838_v30 = vpop.eup %2837 }
0x1037   :  { %v2840_v31 = vpop.eup %2839  ;;  %997 = vrot.lane.b32.xlu0 %v2838_v30, %s3130_s4 }
0x1038   :  { %1019 = vrot.lane.b32.xlu1 %v2840_v31, %s3130_s4 }
0x10a9   :  { %v998_v34 = vpop.permute.xlu0 %997 }
0x10aa   :  { %v1000_v35 = vmul.f32 %v998_v34, %v982_v4  ;;  %v1020_v36 = vpop.permute.xlu1 %1019  ;;  %v1185_v4 = vld [vmem:[#allocation2 + $0x4] ss:$52 sps:$4 sm:$0xff]  }
0x10ab   :  { %v1022_v37 = vmul.f32 %v1020_v36, %v1004_v6  ;;  %v1186_v5 = vunpack.c.h.bf16 %v1185_v4  ;;  %v1189_v9 = vunpack.c.l.bf16 %v1185_v4  ;;  %v1249_v4 = vld [vmem:[#allocation3 + $0x20] sm:$0xff] }
0x10ac   :  { %1024 = vrot.lane.b32.xlu0 %v1000_v35, %s3136_s2 }
0x10ad   :  { %1029 = vrot.lane.b32.xlu1 %v1022_v37, %s3130_s4 }
0x111e   :  { %v1025_v32 = vpop.permute.xlu0 %1024 }
0x111f   :  { %1027 = vst.msk [vmem:[#allocation3 + $0x28] sm:$0xff] %vm482_vm1, %v1025_v32  ;;  %v1030_v38 = vpop.permute.xlu1 %1029 }
0x1120   :  { %1032 = vst.msk [vmem:[#allocation3 + $0x10] sm:$0xff] %vm489_vm2, %v1030_v38  ;;  %v1033_v39 = vsel %vm482_vm1, %v1025_v32, %v1030_v38 }
0x1121   :  { %v1034_v40 = vpack.c.bf16 %v1033_v39, %v1033_v39 }
0x1123   :  { %2572 = vmatmul.mubr.msk.bf16.vlgmr.msra.gmra.mrb[16].mxu0 %vm382_vm3, %v1034_v40 }
0x1124   :  { %1361 = vmatprep.mubr.bf16.mxu0 %v3135_v0 }
0x11f6   :  { %v1072_v42 = vpop.f32.mrb[16].mxu0 }
0x11f7   :  { %v1081_v7 = vadd.f32 %v1080_v41, %v1072_v42  ;;  %v1074_v24 = vpop.f32.mrb[17].mxu0 }
0x11f8   :  { %v1084_v45 = vadd.f32 %v1083_v43, %v1074_v24  ;;  %v1076_v46 = vpop.f32.mrb[18].mxu0 }
0x11f9   :  { %2841 = vtanh.f32 %v1081_v7  ;;  %v1077_v47 = vpop.f32.mrb[19].mxu0  ;;  %v1085_v50 = vmul.f32 0.5, %v1081_v7 }
0x11fa   :  { %2843 = vtanh.f32 %v1084_v45  ;;  %v1107_v51 = vmul.f32 0.5, %v1084_v45  ;;  %v2741_v47 = vld [vmem:[#allocation10] ss:$8 sps:$4 sm:$0xff]  }
0x11fb   :  { %2845 = vtanh.f32 %v1085_v50  ;;  %v2744_v50 = vld [vmem:[#allocation10 + $0x10] ss:$8 sps:$4 sm:$0xff]  }
0x11fc   :  { %2847 = vtanh.f32 %v1107_v51 }
0x1203   :  { %v2842_v48 = vpop.eup %2841 }
0x1204   :  { %v2844_v49 = vpop.eup %2843  ;;  %1092 = vrot.lane.b32.xlu0 %v2842_v48, %s3130_s4  ;;  %v2743_v48 = vld [vmem:[#allocation10 + $0x4] ss:$8 sps:$4 sm:$0xff]  }
0x1205   :  { %1114 = vrot.lane.b32.xlu1 %v2844_v49, %s3130_s4  ;;  %v2846_v44 = vpop.eup %2845  ;;  %v2746_v49 = vld [vmem:[#allocation10 + $0x14] ss:$8 sps:$4 sm:$0xff]   ;;  %1329 = vmatprep.subr.bf16.mxu0 %v2743_v48 }
0x1206   :  { %v2848_v52 = vpop.eup %2847  ;;  %v1087_v18 = vadd.f32 1.0, %v2846_v44  ;;  %1330 = vmatpush1.bf16.msra.mxu0 %v2741_v47 }
0x1207   :  { %v1109_v53 = vadd.f32 1.0, %v2848_v52  ;;  %1331 = vmatprep.subr.bf16.mxu0 %v2746_v49  ;;  %v2747_v52 = vld [vmem:[#allocation10 + $0x20] ss:$8 sps:$4 sm:$0xff]  }
0x1208   :  { %v1088_v54 = vmul.f32 0.5, %v1087_v18  ;;  %v2749_v18 = vld [vmem:[#allocation10 + $0x24] ss:$8 sps:$4 sm:$0xff]  }
0x1209   :  { %v1110_v56 = vmul.f32 0.5, %v1109_v53  ;;  %v2752_v53 = vld [vmem:[#allocation10 + $0x34] ss:$8 sps:$4 sm:$0xff]  }
0x120a   :  { %v1090_v60 = vmul.f32 %v1088_v54, %v994_v28  ;;  %1332 = vmatpush1.bf16.msra.mxu0 %v2744_v50 }
0x120b   :  { %v1112_v62 = vmul.f32 %v1110_v56, %v1016_v29  ;;  %1333 = vmatprep.subr.bf16.mxu0 %v2749_v18 }
0x120e   :  { %1334 = vmatpush1.bf16.msra.mxu0 %v2747_v52 }
0x120f   :  { %1335 = vmatprep.subr.bf16.mxu0 %v2752_v53 }
0x1276   :  { %v1093_v55 = vpop.permute.xlu0 %1092 }
0x1277   :  { %v1095_v57 = vmul.f32 %v1093_v55, %v1088_v54  ;;  %v1115_v58 = vpop.permute.xlu1 %1114  ;;  %v2750_v55 = vld [vmem:[#allocation10 + $0x30] ss:$8 sps:$4 sm:$0xff]  }
0x1278   :  { %v1117_v59 = vmul.f32 %v1115_v58, %v1110_v56  ;;  %1336 = vmatpush1.bf16.msra.mxu0 %v2750_v55 }
0x1279   :  { %1097 = vrot.lane.b32.xlu0 %v1095_v57, %s3136_s2 }
0x127a   :  { %1119 = vrot.lane.b32.xlu1 %v1117_v59, %s3136_s2 }
0x12eb   :  { %v1098_v61 = vpop.permute.xlu0 %1097 }
0x12ec   :  { %v1100_v10 = vadd.f32 %v1098_v61, %v1090_v60  ;;  %v1120_v63 = vpop.permute.xlu1 %1119  ;;  %v3549_v60 = vld [vmem:[#allocation12 + $0x14] ss:$8 sps:$4 sm:$0xff]   ;;  %v3551_v61 = vld [vmem:[#allocation12 + $0x10] ss:$8 sps:$4 sm:$0xff]  }
0x12ed   :  { %v1122_v1 = vadd.f32 %v1120_v63, %v1112_v62  ;;  %v3560_v63 = vld [vmem:[#allocation12 + $0x20] ss:$8 sps:$4 sm:$0xff]  }
0x12ee   :  { %2849 = vtanh.f32 %v1100_v10 }
0x12ef   :  { %2851 = vtanh.f32 %v1122_v1 }
0x12f8   :  { %v2850_v2 = vpop.eup %2849 }
0x12f9   :  { %v2852_v11 = vpop.eup %2851  ;;  %1103 = vrot.lane.b32.xlu0 %v2850_v2, %s3130_s4  ;;  %v3565_v2 = vld [vmem:[#allocation12 + $0x30] ss:$8 sps:$4 sm:$0xff]  }
0x12fa   :  { %1125 = vrot.lane.b32.xlu1 %v2852_v11, %s3130_s4 }
0x136b   :  { %v1104_v12 = vpop.permute.xlu0 %1103 }
0x136c   :  { %v1106_v13 = vmul.f32 %v1104_v12, %v1088_v54  ;;  %v1126_v15 = vpop.permute.xlu1 %1125  ;;  %v3542_v54 = vld [vmem:[#allocation12 + $0x4] ss:$8 sps:$4 sm:$0xff]  }
0x136d   :  { %v1128_v16 = vmul.f32 %v1126_v15, %v1110_v56  ;;  %1506 = vmatprep.subr.bf16.mxu1 %v3542_v54  ;;  %v3545_v56 = vld [vmem:[#allocation12] ss:$8 sps:$4 sm:$0xff]   ;;  %1718 = vmatprep.subr.bf16.mxu0 %v3542_v54 }
0x136e   :  { %1130 = vrot.lane.b32.xlu0 %v1106_v13, %s3136_s2 }
0x136f   :  { %1135 = vrot.lane.b32.xlu1 %v1128_v16, %s3130_s4 }
0x13e0   :  { %v1131_v17 = vpop.permute.xlu0 %1130 }
0x13e1   :  { %1133 = vst.msk [vmem:[#allocation3 + $0x30] sm:$0xff] %vm482_vm1, %v1131_v17  ;;  %v1136_v33 = vpop.permute.xlu1 %1135 }
0x13e2   :  { %1138 = vst.msk [vmem:[#allocation3 + $0x8] sm:$0xff] %vm489_vm2, %v1136_v33  ;;  %v1139_v23 = vsel %vm482_vm1, %v1131_v17, %v1136_v33  ;;  %v1247_v17 = vld [vmem:[#allocation3 + $0x10] sm:$0xff]  ;;  %v1248_v33 = vld [vmem:[#allocation3 + $0x18] sm:$0xff] }
0x13e3   :  { %v1140_v3 = vpack.c.bf16 %v1139_v23, %v1139_v23  ;;  %v1254_v23 = vpack.c.bf16 %v1248_v33, %v1247_v17 }
0x13e5   :  { %2573 = vmatmul.mubr.msk.bf16.vlgmr.msra.gmra.mrb[24].mxu1 %vm382_vm3, %v1140_v3  ;;  %v1250_v3 = vld [vmem:[#allocation3 + $0x28] sm:$0xff] }
0x13e6   :  { %1538 = vmatprep.mubr.bf16.mxu1 %v3135_v0  ;;  %1507 = vmatpush1.bf16.msra.mxu1 %v3545_v56 }
0x13e7   :  { %1508 = vmatprep.subr.bf16.mxu1 %v3549_v60 }
0x13e9   :  { %v1246_v15 = vld [vmem:[#allocation3 + $0x8] sm:$0xff] }
0x13ea   :  { %1509 = vmatpush1.bf16.msra.mxu1 %v3551_v61 }
0x14b8   :  { %v1178_v6 = vpop.f32.mrb[24].mxu1 }
0x14b9   :  { %v1187_v21 = vadd.f32 %v1186_v5, %v1178_v6  ;;  %v1180_v25 = vpop.f32.mrb[25].mxu1  ;;  %v1255_v5 = vpack.c.bf16 %v1250_v3, %v1249_v4 }
0x14ba   :  { %v1190_v26 = vadd.f32 %v1189_v9, %v1180_v25  ;;  %v1182_v8 = vpop.f32.mrb[26].mxu1  ;;  %v1251_v9 = vld [vmem:[#allocation3 + $0x30] sm:$0xff] }
0x14bb   :  { %2853 = vtanh.f32 %v1187_v21  ;;  %v1183_v27 = vpop.f32.mrb[27].mxu1  ;;  %v1191_v29 = vmul.f32 0.5, %v1187_v21 }
0x14bc   :  { %2855 = vtanh.f32 %v1190_v26  ;;  %v1213_v30 = vmul.f32 0.5, %v1190_v26 }
0x14bd   :  { %2857 = vtanh.f32 %v1191_v29 }
0x14be   :  { %2859 = vtanh.f32 %v1213_v30 }
0x14c5   :  { %v2854_v28 = vpop.eup %2853 }
0x14c6   :  { %v2856_v14 = vpop.eup %2855  ;;  %1198 = vrot.lane.b32.xlu1 %v2854_v28, %s3130_s4  ;;  %v1265_v28 = vld [vmem:[%s3809_s5] sm:$0x3] }
0x14c7   :  { %1220 = vrot.lane.b32.xlu0 %v2856_v14, %s3130_s4  ;;  %v2858_v31 = vpop.eup %2857  ;;  %v1270_v14 = vrot.slane %v1265_v28, %v134_v20  ;;  %v1274_v29 = vrot.slane %v1265_v28, %v138_v22 }
0x14c8   :  { %v2860_v34 = vpop.eup %2859  ;;  %v1193_v35 = vadd.f32 1.0, %v2858_v31 }
0x14c9   :  { %v1215_v36 = vadd.f32 1.0, %v2860_v34 }
0x14ca   :  { %v1194_v37 = vmul.f32 0.5, %v1193_v35 }
0x14cb   :  { %v1216_v38 = vmul.f32 0.5, %v1215_v36 }
0x14cc   :  { %v1196_v42 = vmul.f32 %v1194_v37, %v1100_v10  ;;  %v3553_v10 = vld [vmem:[#allocation12 + $0x24] ss:$8 sps:$4 sm:$0xff]  }
0x14cd   :  { %v1218_v7 = vmul.f32 %v1216_v38, %v1122_v1  ;;  %1510 = vmatprep.subr.bf16.mxu1 %v3553_v10  ;;  %v3563_v1 = vld [vmem:[#allocation12 + $0x34] ss:$8 sps:$4 sm:$0xff]  }
0x14ce   :  { %1511 = vmatpush1.bf16.msra.mxu1 %v3560_v63 }
0x14cf   :  { %1512 = vmatprep.subr.bf16.mxu1 %v3563_v1 }
0x14d2   :  { %1513 = vmatpush1.bf16.msra.mxu1 %v3565_v2 }
0x14d3   :  { %1612 = vmatprep.subr.bf16.mxu1 %v3542_v54 }
0x14d5   :  { %1539 = vmatmul.mubr.bf16.vlgmr.msra.gmra.mrb[28].mxu1 %v3135_v0 }
0x14d6   :  { %1613 = vmatpush1.bf16.msra.mxu1 %v3545_v56  ;;  %1644 = vmatprep.mubr.bf16.mxu1 %v3135_v0 }
0x14d7   :  { %1614 = vmatprep.subr.bf16.mxu1 %v3549_v60 }
0x14da   :  { %1615 = vmatpush1.bf16.msra.mxu1 %v3551_v61 }
0x14db   :  { %1616 = vmatprep.subr.bf16.mxu1 %v3553_v10 }
0x14de   :  { %1617 = vmatpush1.bf16.msra.mxu1 %v3560_v63 }
0x14df   :  { %1618 = vmatprep.subr.bf16.mxu1 %v3563_v1 }
0x14e2   :  { %1619 = vmatpush1.bf16.msra.mxu1 %v3565_v2 }
0x14e3   :  { %1824 = vmatprep.subr.bf16.mxu1 %v3542_v54 }
0x1538   :  { %v1199_v32 = vpop.permute.xlu1 %1198 }
0x1539   :  { %v1201_v39 = vmul.f32 %v1199_v32, %v1194_v37  ;;  %v1221_v40 = vpop.permute.xlu0 %1220 }
0x153a   :  { %v1223_v41 = vmul.f32 %v1221_v40, %v1216_v38 }
0x153b   :  { %1203 = vrot.lane.b32.xlu1 %v1201_v39, %s3136_s2 }
0x153c   :  { %1225 = vrot.lane.b32.xlu0 %v1223_v41, %s3136_s2 }
0x15a8   :  { %v1540_v25 = vpop.f32.mrb[28].mxu1 }
0x15a9   :  { %v1542_v26 = vpop.f32.mrb[29].mxu1 }
0x15aa   :  { %v1544_v8 = vpop.f32.mrb[30].mxu1 }
0x15ab   :  { %v1545_v27 = vpop.f32.mrb[31].mxu1 }
0x15ad   :  { %v1204_v43 = vpop.permute.xlu1 %1203 }
0x15ae   :  { %v1206_v24 = vadd.f32 %v1204_v43, %v1196_v42  ;;  %v1226_v45 = vpop.permute.xlu0 %1225 }
0x15af   :  { %v1228_v46 = vadd.f32 %v1226_v45, %v1218_v7 }
0x15b0   :  { %2861 = vtanh.f32 %v1206_v24 }
0x15b1   :  { %2863 = vtanh.f32 %v1228_v46 }
0x15ba   :  { %v2862_v51 = vpop.eup %2861 }
0x15bb   :  { %v2864_v44 = vpop.eup %2863  ;;  %1209 = vrot.lane.b32.xlu1 %v2862_v51, %s3130_s4 }
0x15bc   :  { %1231 = vrot.lane.b32.xlu0 %v2864_v44, %s3130_s4 }
0x162d   :  { %v1210_v57 = vpop.permute.xlu1 %1209 }
0x162e   :  { %v1212_v58 = vmul.f32 %v1210_v57, %v1194_v37  ;;  %v1232_v59 = vpop.permute.xlu0 %1231 }
0x162f   :  { %v1234_v62 = vmul.f32 %v1232_v59, %v1216_v38 }
0x1630   :  { %1236 = vrot.lane.b32.xlu1 %v1212_v58, %s3136_s2 }
0x1631   :  { %1241 = vrot.lane.b32.xlu0 %v1234_v62, %s3130_s4 }
0x16a2   :  { %v1237_v11 = vpop.permute.xlu1 %1236 }
0x16a3   :  { %1239 = vst.msk [vmem:[#allocation3 + $0x38] sm:$0xff] %vm482_vm1, %v1237_v11  ;;  %v1242_v12 = vpop.permute.xlu0 %1241 }
0x16a4   :  { %1244 = vst.msk [vmem:[#allocation3] sm:$0xff] %vm489_vm2, %v1242_v12 }
0x16aa   :  { %v1252_v6 = vld [vmem:[#allocation3 + $0x38] sm:$0xff] }
0x16ab   :  { %v1245_v13 = vld [vmem:[#allocation3] sm:$0xff]  ;;  %v1256_v21 = vpack.c.bf16 %v1252_v6, %v1251_v9 }
0x16ac   :  { %v1253_v16 = vpack.c.bf16 %v1246_v15, %v1245_v13 }
0x16ae   :  { %2582 = vmatmul.mubr.msk.bf16.vlgmr.msra.gmra.mrb[20].mxu0 %vm382_vm3, %v1253_v16 }
0x16af   :  { %1371 = vmatprep.mubr.bf16.mxu0 %v3135_v0  ;;  %1719 = vmatpush1.bf16.msra.mxu0 %v3545_v56 }
0x16b0   :  { %1720 = vmatprep.subr.bf16.mxu0 %v3549_v60 }
0x16b3   :  { %1721 = vmatpush1.bf16.msra.mxu0 %v3551_v61 }
0x16b4   :  { %1722 = vmatprep.subr.bf16.mxu0 %v3553_v10 }
0x16b6   :  { %2583 = vmatmul.mubr.msk.bf16.gmra.mrb[24].mxu0 %vm382_vm3, %v1254_v23 }
0x16b7   :  { %1381 = vmatprep.mubr.bf16.mxu0 %v3135_v0  ;;  %1723 = vmatpush1.bf16.msra.mxu0 %v3560_v63 }
0x16b8   :  { %1724 = vmatprep.subr.bf16.mxu0 %v3563_v1 }
0x16bb   :  { %1725 = vmatpush1.bf16.msra.mxu0 %v3565_v2 }
0x16bc   :  { %1930 = vmatprep.subr.bf16.mxu0 %v3542_v54 }
0x16be   :  { %2584 = vmatmul.mubr.msk.bf16.gmra.mrb[28].mxu0 %vm382_vm3, %v1255_v5 }
0x16bf   :  { %1391 = vmatprep.mubr.bf16.mxu0 %v3135_v0 }
0x16c6   :  { %2585 = vmatmul.mubr.msk.bf16.gmra.mrb[32].mxu0 %vm382_vm3, %v1256_v21 }
0x16c7   :  { %1750 = vmatprep.mubr.bf16.mxu0 %v3135_v0 }
0x1781   :  { %v1363_v30 = vpop.f32.mrb[20].mxu0 }
0x1782   :  { %v1364_v31 = vadd.f32 %v1363_v30, %v1270_v14  ;;  %v1365_v34 = vpop.f32.mrb[21].mxu0 }
0x1783   :  { %v1366_v35 = vadd.f32 %v1365_v34, %v1274_v29  ;;  %v1367_v36 = vpop.f32.mrb[22].mxu0 }
0x1784   :  { %v1368_v37 = vadd.f32 %v1367_v36, %v1270_v14  ;;  %v1369_v32 = vpop.f32.mrb[23].mxu0 }
0x1785   :  { %v2634_v38 = vpack.c.bf16 %v1366_v35, %v1364_v31  ;;  %v1370_v39 = vadd.f32 %v1369_v32, %v1274_v29 }
0x1787   :  { %1450 = vst [vmem:[#allocation2] sm:$0xff] %v2634_v38  ;;  %v2635_v40 = vpack.c.bf16 %v1370_v39, %v1368_v37 }
0x1789   :  { %1451 = vst [vmem:[#allocation2 + $0x8] sm:$0xff] %v2635_v40  ;;  %v1373_v41 = vpop.f32.mrb[24].mxu0 }
0x178a   :  { %v1374_v42 = vadd.f32 %v1373_v41, %v1270_v14  ;;  %v1375_v43 = vpop.f32.mrb[25].mxu0 }
0x178b   :  { %v1376_v7 = vadd.f32 %v1375_v43, %v1274_v29  ;;  %v1377_v20 = vpop.f32.mrb[26].mxu0 }
0x178c   :  { %v1378_v24 = vadd.f32 %v1377_v20, %v1270_v14  ;;  %v1379_v19 = vpop.f32.mrb[27].mxu0 }
0x178d   :  { %v2636_v22 = vpack.c.bf16 %v1376_v7, %v1374_v42  ;;  %v1380_v45 = vadd.f32 %v1379_v19, %v1274_v29 }
0x178e   :  { %v1547_v46 = vld [vmem:[#allocation2] sm:$0xf] }
0x178f   :  { %1452 = vst [vmem:[#allocation2 + $0x10] sm:$0xff] %v2636_v22  ;;  %v2637_v47 = vpack.c.bf16 %v1380_v45, %v1378_v24  ;;  %v1548_v48 = vunpack.c.l.bf16 %v1547_v46 }
0x1791   :  { %1453 = vst [vmem:[#allocation2 + $0x18] sm:$0xff] %v2637_v47  ;;  %v1549_v49 = vadd.f32 %v1548_v48, %v1540_v25  ;;  %v1383_v50 = vpop.f32.mrb[28].mxu0 }
0x1792   :  { %v1384_v51 = vadd.f32 %v1383_v50, %v1270_v14  ;;  %v1385_v44 = vpop.f32.mrb[29].mxu0 }
0x1793   :  { %2865 = vtanh.f32 %v1549_v49  ;;  %v1386_v52 = vadd.f32 %v1385_v44, %v1274_v29  ;;  %v1387_v18 = vpop.f32.mrb[30].mxu0  ;;  %v1553_v25 = vmul.f32 0.5, %v1549_v49 }
0x1794   :  { %v1388_v53 = vadd.f32 %v1387_v18, %v1270_v14  ;;  %v1389_v55 = vpop.f32.mrb[31].mxu0 }
0x1795   :  { %v2638_v57 = vpack.c.bf16 %v1386_v52, %v1384_v51  ;;  %v1390_v58 = vadd.f32 %v1389_v55, %v1274_v29 }
0x1797   :  { %1454 = vst [vmem:[#allocation2 + $0x20] sm:$0xff] %v2638_v57  ;;  %v2639_v59 = vpack.c.bf16 %v1390_v58, %v1388_v53 }
0x1799   :  { %1455 = vst [vmem:[#allocation2 + $0x28] sm:$0xff] %v2639_v59  ;;  %v1393_v62 = vpop.f32.mrb[32].mxu0 }
0x179a   :  { %v1394_v11 = vadd.f32 %v1393_v62, %v1270_v14  ;;  %v1395_v12 = vpop.f32.mrb[33].mxu0 }
0x179b   :  { %v1396_v13 = vadd.f32 %v1395_v12, %v1274_v29  ;;  %v1397_v15 = vpop.f32.mrb[34].mxu0 }
0x179c   :  { %v1398_v16 = vadd.f32 %v1397_v15, %v1270_v14  ;;  %v1399_v17 = vpop.f32.mrb[35].mxu0 }
0x179d   :  { %v2866_v33 = vpop.eup %2865  ;;  %v2640_v23 = vpack.c.bf16 %v1396_v13, %v1394_v11  ;;  %v1400_v3 = vadd.f32 %v1399_v17, %v1274_v29 }
0x179e   :  { %1560 = vrot.lane.b32.xlu0 %v2866_v33, %s3130_s4 }
0x179f   :  { %1456 = vst [vmem:[#allocation2 + $0x30] sm:$0xff] %v2640_v23  ;;  %v2641_v4 = vpack.c.bf16 %v1400_v3, %v1398_v16 }
0x17a1   :  { %1457 = vst [vmem:[#allocation2 + $0x38] sm:$0xff] %v2641_v4 }
0x17a6   :  { %v3629_v48 = vld [vmem:[#allocation2 + $0x20] ss:$20 sps:$4 sm:$0xff]  }
0x17a7   :  { %v1657_v51 = vunpack.c.h.bf16 %v3629_v48 }
0x17a8   :  { %v1550_v5 = vld [vmem:[#allocation2 + $0x8] ss:$52 sps:$4 sm:$0xff]  }
0x17a9   :  { %v1551_v6 = vunpack.c.h.bf16 %v1550_v5  ;;  %v1654_v49 = vunpack.c.l.bf16 %v1550_v5 }
0x17ab   :  { %v1552_v9 = vadd.f32 %v1551_v6, %v1542_v26 }
0x17ad   :  { %2867 = vtanh.f32 %v1552_v9  ;;  %v1575_v29 = vmul.f32 0.5, %v1552_v9 }
0x17ae   :  { %2869 = vtanh.f32 %v1553_v25 }
0x17af   :  { %2871 = vtanh.f32 %v1575_v29 }
0x17b7   :  { %v2868_v21 = vpop.eup %2867 }
0x17b8   :  { %1582 = vrot.lane.b32.xlu1 %v2868_v21, %s3130_s4  ;;  %v2870_v8 = vpop.eup %2869 }
0x17b9   :  { %v1555_v27 = vadd.f32 1.0, %v2870_v8  ;;  %v2872_v31 = vpop.eup %2871 }
0x17ba   :  { %v1577_v34 = vadd.f32 1.0, %v2872_v31 }
0x17bb   :  { %v1556_v28 = vmul.f32 0.5, %v1555_v27 }
0x17bc   :  { %v1578_v35 = vmul.f32 0.5, %v1577_v34 }
0x17bd   :  { %v1558_v37 = vmul.f32 0.0, %v1556_v28 }
0x17be   :  { %v1580_v40 = vmul.f32 0.0, %v1578_v35 }
0x1810   :  { %v1561_v14 = vpop.permute.xlu0 %1560 }
0x1811   :  { %v1563_v30 = vmul.f32 %v1561_v14, %v1556_v28 }
0x1813   :  { %1565 = vrot.lane.b32.xlu0 %v1563_v30, %s3136_s2 }
0x182a   :  { %v1583_v36 = vpop.permute.xlu1 %1582 }
0x182b   :  { %v1585_v26 = vmul.f32 %v1583_v36, %v1578_v35 }
0x182d   :  { %1587 = vrot.lane.b32.xlu1 %v1585_v26, %s3136_s2 }
0x1885   :  { %v1566_v32 = vpop.permute.xlu0 %1565 }
0x1886   :  { %v3609_v38 = vadd.f32 %v1566_v32, %v1558_v37  ;;  %v3660_v37 = vld [vmem:[#allocation2 + $0x10] sm:$0xff]  }
0x1887   :  { %v3662_v32 = vld [vmem:[#allocation2 + $0x2c] sm:$0xff]  }
0x1888   :  { %2873 = vtanh.f32 %v3609_v38 }
0x1892   :  { %v2874_v39 = vpop.eup %2873 }
0x1893   :  { %1571 = vrot.lane.b32.xlu0 %v2874_v39, %s3130_s4 }
0x189f   :  { %v1588_v41 = vpop.permute.xlu1 %1587 }
0x18a0   :  { %v1590_v42 = vadd.f32 %v1588_v41, %v1580_v40  ;;  %v1763_v40 = vunpack.c.l.bf16 %v3662_v32 }
0x18a2   :  { %2875 = vtanh.f32 %v1590_v42 }
0x18ac   :  { %v2876_v43 = vpop.eup %2875 }
0x18ad   :  { %1593 = vrot.lane.b32.xlu1 %v2876_v43, %s3130_s4 }
0x1905   :  { %v1572_v7 = vpop.permute.xlu0 %1571 }
0x1906   :  { %v1574_v20 = vmul.f32 %v1572_v7, %v1556_v28 }
0x1908   :  { %1598 = vrot.lane.b32.xlu0 %v1574_v20, %s3136_s2 }
0x191f   :  { %v1594_v24 = vpop.permute.xlu1 %1593 }
0x1920   :  { %v1596_v19 = vmul.f32 %v1594_v24, %v1578_v35 }
0x1922   :  { %1603 = vrot.lane.b32.xlu1 %v1596_v19, %s3130_s4 }
0x197a   :  { %v1599_v22 = vpop.permute.xlu0 %1598 }
0x197b   :  { %1601 = vst.msk [vmem:[#allocation3] sm:$0xff] %vm482_vm1, %v1599_v22 }
0x1994   :  { %v1604_v45 = vpop.permute.xlu1 %1603 }
0x1995   :  { %1606 = vst.msk [vmem:[#allocation3 + $0x38] sm:$0xff] %vm489_vm2, %v1604_v45  ;;  %v1607_v46 = vsel %vm482_vm1, %v1599_v22, %v1604_v45 }
0x1996   :  { %v1608_v47 = vpack.c.bf16 %v1607_v46, %v1607_v46 }
0x1998   :  { %2602 = vmatmul.mubr.msk.bf16.vlgmr.msra.gmra.mrb[32].mxu1 %vm382_vm3, %v1608_v47 }
0x1999   :  { %1825 = vmatpush1.bf16.msra.mxu1 %v3545_v56  ;;  %1856 = vmatprep.mubr.bf16.mxu1 %v3135_v0 }
0x199a   :  { %1826 = vmatprep.subr.bf16.mxu1 %v3549_v60 }
0x199d   :  { %1827 = vmatpush1.bf16.msra.mxu1 %v3551_v61 }
0x199e   :  { %1828 = vmatprep.subr.bf16.mxu1 %v3553_v10 }
0x19a1   :  { %1829 = vmatpush1.bf16.msra.mxu1 %v3560_v63 }
0x19a2   :  { %1830 = vmatprep.subr.bf16.mxu1 %v3563_v1 }
0x19a5   :  { %1831 = vmatpush1.bf16.msra.mxu1 %v3565_v2 }
0x19a6   :  { %2036 = vmatprep.subr.bf16.mxu1 %v3542_v54 }
0x1a6b   :  { %v1646_v50 = vpop.f32.mrb[32].mxu1 }
0x1a6c   :  { %v1655_v44 = vadd.f32 %v1654_v49, %v1646_v50  ;;  %v1648_v52 = vpop.f32.mrb[33].mxu1 }
0x1a6d   :  { %v1658_v18 = vadd.f32 %v1657_v51, %v1648_v52  ;;  %v1650_v53 = vpop.f32.mrb[34].mxu1 }
0x1a6e   :  { %2877 = vtanh.f32 %v1655_v44  ;;  %v1651_v55 = vpop.f32.mrb[35].mxu1  ;;  %v1659_v59 = vmul.f32 0.5, %v1655_v44 }
0x1a6f   :  { %2879 = vtanh.f32 %v1658_v18  ;;  %v1681_v62 = vmul.f32 0.5, %v1658_v18 }
0x1a70   :  { %2881 = vtanh.f32 %v1659_v59 }
0x1a71   :  { %2883 = vtanh.f32 %v1681_v62 }
0x1a78   :  { %v2878_v57 = vpop.eup %2877 }
0x1a79   :  { %v2880_v58 = vpop.eup %2879  ;;  %1666 = vrot.lane.b32.xlu0 %v2878_v57, %s3130_s4 }
0x1a7a   :  { %1688 = vrot.lane.b32.xlu1 %v2880_v58, %s3130_s4  ;;  %v2882_v11 = vpop.eup %2881 }
0x1a7b   :  { %v2884_v12 = vpop.eup %2883  ;;  %v1661_v13 = vadd.f32 1.0, %v2882_v11 }
0x1a7c   :  { %v1683_v15 = vadd.f32 1.0, %v2884_v12 }
0x1a7d   :  { %v1662_v16 = vmul.f32 0.5, %v1661_v13 }
0x1a7e   :  { %v1684_v33 = vmul.f32 0.5, %v1683_v15 }
0x1a7f   :  { %v1664_v5 = vmul.f32 %v1662_v16, %v3609_v38  ;;  %v1760_v38 = vunpack.c.l.bf16 %v3660_v37 }
0x1a80   :  { %v1686_v9 = vmul.f32 %v1684_v33, %v1590_v42 }
0x1aeb   :  { %v1667_v17 = vpop.permute.xlu0 %1666 }
0x1aec   :  { %v1669_v23 = vmul.f32 %v1667_v17, %v1662_v16  ;;  %v1689_v3 = vpop.permute.xlu1 %1688 }
0x1aed   :  { %v1691_v4 = vmul.f32 %v1689_v3, %v1684_v33 }
0x1aee   :  { %1671 = vrot.lane.b32.xlu0 %v1669_v23, %s3136_s2 }
0x1aef   :  { %1693 = vrot.lane.b32.xlu1 %v1691_v4, %s3136_s2 }
0x1b60   :  { %v1672_v6 = vpop.permute.xlu0 %1671 }
0x1b61   :  { %v3637_v21 = vadd.f32 %v1672_v6, %v1664_v5  ;;  %v1694_v25 = vpop.permute.xlu1 %1693 }
0x1b62   :  { %v3639_v8 = vadd.f32 %v1694_v25, %v1686_v9  ;;  %v3695_v9 = vld [vmem:[#allocation2 + $0x18] sm:$0xff]  }
0x1b63   :  { %2885 = vtanh.f32 %v3637_v21  ;;  %v1866_v25 = vunpack.c.l.bf16 %v3695_v9 }
0x1b64   :  { %2887 = vtanh.f32 %v3639_v8 }
0x1b6d   :  { %v2886_v27 = vpop.eup %2885 }
0x1b6e   :  { %v2888_v28 = vpop.eup %2887  ;;  %1677 = vrot.lane.b32.xlu0 %v2886_v27, %s3130_s4 }
0x1b6f   :  { %1699 = vrot.lane.b32.xlu1 %v2888_v28, %s3130_s4 }
0x1be0   :  { %v1678_v14 = vpop.permute.xlu0 %1677 }
0x1be1   :  { %v1680_v30 = vmul.f32 %v1678_v14, %v1662_v16  ;;  %v1700_v29 = vpop.permute.xlu1 %1699 }
0x1be2   :  { %v1702_v31 = vmul.f32 %v1700_v29, %v1684_v33 }
0x1be3   :  { %1704 = vrot.lane.b32.xlu0 %v1680_v30, %s3136_s2 }
0x1be4   :  { %1709 = vrot.lane.b32.xlu1 %v1702_v31, %s3130_s4 }
0x1c55   :  { %v1705_v34 = vpop.permute.xlu0 %1704 }
0x1c56   :  { %1707 = vst.msk [vmem:[#allocation3 + $0x8] sm:$0xff] %vm482_vm1, %v1705_v34  ;;  %v1710_v35 = vpop.permute.xlu1 %1709 }
0x1c57   :  { %1712 = vst.msk [vmem:[#allocation3 + $0x30] sm:$0xff] %vm489_vm2, %v1710_v35  ;;  %v1713_v36 = vsel %vm482_vm1, %v1705_v34, %v1710_v35 }
0x1c58   :  { %v1714_v26 = vpack.c.bf16 %v1713_v36, %v1713_v36 }
0x1c5a   :  { %2603 = vmatmul.mubr.msk.bf16.vlgmr.msra.gmra.mrb[36].mxu0 %vm382_vm3, %v1714_v26 }
0x1c5b   :  { %1931 = vmatpush1.bf16.msra.mxu0 %v3545_v56  ;;  %1962 = vmatprep.mubr.bf16.mxu0 %v3135_v0 }
0x1c5c   :  { %1932 = vmatprep.subr.bf16.mxu0 %v3549_v60 }
0x1c5f   :  { %1933 = vmatpush1.bf16.msra.mxu0 %v3551_v61 }
0x1c60   :  { %1934 = vmatprep.subr.bf16.mxu0 %v3553_v10 }
0x1c63   :  { %1935 = vmatpush1.bf16.msra.mxu0 %v3560_v63 }
0x1c64   :  { %1936 = vmatprep.subr.bf16.mxu0 %v3563_v1 }
0x1c67   :  { %1937 = vmatpush1.bf16.msra.mxu0 %v3565_v2 }
0x1c68   :  { %2142 = vmatprep.subr.bf16.mxu0 %v3542_v54 }
0x1d2d   :  { %v1752_v39 = vpop.f32.mrb[36].mxu0 }
0x1d2e   :  { %v1761_v41 = vadd.f32 %v1760_v38, %v1752_v39  ;;  %v1754_v42 = vpop.f32.mrb[37].mxu0 }
0x1d2f   :  { %v1764_v43 = vadd.f32 %v1763_v40, %v1754_v42  ;;  %v1756_v7 = vpop.f32.mrb[38].mxu0 }
0x1d30   :  { %2889 = vtanh.f32 %v1761_v41  ;;  %v1757_v20 = vpop.f32.mrb[39].mxu0  ;;  %v1765_v22 = vmul.f32 0.5, %v1761_v41 }
0x1d31   :  { %2891 = vtanh.f32 %v1764_v43  ;;  %v1787_v45 = vmul.f32 0.5, %v1764_v43 }
0x1d32   :  { %2893 = vtanh.f32 %v1765_v22 }
0x1d33   :  { %2895 = vtanh.f32 %v1787_v45 }
0x1d3a   :  { %v2890_v24 = vpop.eup %2889 }
0x1d3b   :  { %v2892_v19 = vpop.eup %2891  ;;  %1772 = vrot.lane.b32.xlu0 %v2890_v24, %s3130_s4 }
0x1d3c   :  { %1794 = vrot.lane.b32.xlu1 %v2892_v19, %s3130_s4  ;;  %v2894_v46 = vpop.eup %2893 }
0x1d3d   :  { %v2896_v47 = vpop.eup %2895  ;;  %v1767_v49 = vadd.f32 1.0, %v2894_v46 }
0x1d3e   :  { %v1789_v50 = vadd.f32 1.0, %v2896_v47 }
0x1d3f   :  { %v1768_v51 = vmul.f32 0.5, %v1767_v49 }
0x1d40   :  { %v1790_v52 = vmul.f32 0.5, %v1789_v50 }
0x1d41   :  { %v1770_v57 = vmul.f32 %v1768_v51, %v3637_v21  ;;  %v3697_v21 = vld [vmem:[#allocation2 + $0x24] sm:$0xff]  }
0x1d42   :  { %v1792_v59 = vmul.f32 %v1790_v52, %v3639_v8  ;;  %v1869_v27 = vunpack.c.l.bf16 %v3697_v21 }
0x1dad   :  { %v1773_v44 = vpop.permute.xlu0 %1772 }
0x1dae   :  { %v1775_v18 = vmul.f32 %v1773_v44, %v1768_v51  ;;  %v1795_v53 = vpop.permute.xlu1 %1794 }
0x1daf   :  { %v1797_v55 = vmul.f32 %v1795_v53, %v1790_v52 }
0x1db0   :  { %1777 = vrot.lane.b32.xlu0 %v1775_v18, %s3136_s2 }
0x1db1   :  { %1799 = vrot.lane.b32.xlu1 %v1797_v55, %s3136_s2 }
0x1e22   :  { %v1778_v58 = vpop.permute.xlu0 %1777 }
0x1e23   :  { %v3672_v62 = vadd.f32 %v1778_v58, %v1770_v57  ;;  %v1800_v11 = vpop.permute.xlu1 %1799 }
0x1e24   :  { %v3674_v12 = vadd.f32 %v1800_v11, %v1792_v59 }
0x1e25   :  { %2897 = vtanh.f32 %v3672_v62 }
0x1e26   :  { %2899 = vtanh.f32 %v3674_v12 }
0x1e2f   :  { %v2898_v13 = vpop.eup %2897 }
0x1e30   :  { %v2900_v15 = vpop.eup %2899  ;;  %1783 = vrot.lane.b32.xlu0 %v2898_v13, %s3130_s4 }
0x1e31   :  { %1805 = vrot.lane.b32.xlu1 %v2900_v15, %s3130_s4 }
0x1ea2   :  { %v1784_v16 = vpop.permute.xlu0 %1783 }
0x1ea3   :  { %v1786_v17 = vmul.f32 %v1784_v16, %v1768_v51  ;;  %v1806_v33 = vpop.permute.xlu1 %1805 }
0x1ea4   :  { %v1808_v23 = vmul.f32 %v1806_v33, %v1790_v52 }
0x1ea5   :  { %1810 = vrot.lane.b32.xlu0 %v1786_v17, %s3136_s2 }
0x1ea6   :  { %1815 = vrot.lane.b32.xlu1 %v1808_v23, %s3130_s4 }
0x1f17   :  { %v1811_v3 = vpop.permute.xlu0 %1810 }
0x1f18   :  { %1813 = vst.msk [vmem:[#allocation3 + $0x10] sm:$0xff] %vm482_vm1, %v1811_v3  ;;  %v1816_v4 = vpop.permute.xlu1 %1815 }
0x1f19   :  { %1818 = vst.msk [vmem:[#allocation3 + $0x28] sm:$0xff] %vm489_vm2, %v1816_v4  ;;  %v1819_v5 = vsel %vm482_vm1, %v1811_v3, %v1816_v4 }
0x1f1a   :  { %v1820_v6 = vpack.c.bf16 %v1819_v5, %v1819_v5 }
0x1f1c   :  { %2604 = vmatmul.mubr.msk.bf16.vlgmr.msra.gmra.mrb[36].mxu1 %vm382_vm3, %v1820_v6 }
0x1f1d   :  { %2037 = vmatpush1.bf16.msra.mxu1 %v3545_v56  ;;  %2068 = vmatprep.mubr.bf16.mxu1 %v3135_v0 }
0x1f1e   :  { %2038 = vmatprep.subr.bf16.mxu1 %v3549_v60 }
0x1f21   :  { %2039 = vmatpush1.bf16.msra.mxu1 %v3551_v61 }
0x1f22   :  { %2040 = vmatprep.subr.bf16.mxu1 %v3553_v10 }
0x1f25   :  { %2041 = vmatpush1.bf16.msra.mxu1 %v3560_v63 }
0x1f26   :  { %2042 = vmatprep.subr.bf16.mxu1 %v3563_v1 }
0x1f29   :  { %2043 = vmatpush1.bf16.msra.mxu1 %v3565_v2 }
0x1f2a   :  { %2248 = vmatprep.subr.bf16.mxu1 %v3542_v54 }
0x1fef   :  { %v1858_v8 = vpop.f32.mrb[36].mxu1 }
0x1ff0   :  { %v1867_v28 = vadd.f32 %v1866_v25, %v1858_v8  ;;  %v1860_v14 = vpop.f32.mrb[37].mxu1 }
0x1ff1   :  { %v1870_v30 = vadd.f32 %v1869_v27, %v1860_v14  ;;  %v1862_v29 = vpop.f32.mrb[38].mxu1 }
0x1ff2   :  { %2901 = vtanh.f32 %v1867_v28  ;;  %v1863_v31 = vpop.f32.mrb[39].mxu1  ;;  %v1871_v54 = vmul.f32 0.5, %v1867_v28 }
0x1ff3   :  { %2903 = vtanh.f32 %v1870_v30  ;;  %v1893_v36 = vmul.f32 0.5, %v1870_v30 }
0x1ff4   :  { %2905 = vtanh.f32 %v1871_v54 }
0x1ff5   :  { %2907 = vtanh.f32 %v1893_v36 }
0x1ffc   :  { %v2902_v34 = vpop.eup %2901 }
0x1ffd   :  { %v2904_v35 = vpop.eup %2903  ;;  %1878 = vrot.lane.b32.xlu0 %v2902_v34, %s3130_s4 }
0x1ffe   :  { %1900 = vrot.lane.b32.xlu1 %v2904_v35, %s3130_s4  ;;  %v2906_v26 = vpop.eup %2905 }
0x1fff   :  { %v2908_v38 = vpop.eup %2907  ;;  %v1873_v39 = vadd.f32 1.0, %v2906_v26 }
0x2000   :  { %v1895_v40 = vadd.f32 1.0, %v2908_v38 }
0x2001   :  { %v1874_v41 = vmul.f32 0.5, %v1873_v39 }
0x2002   :  { %v1896_v43 = vmul.f32 0.5, %v1895_v40 }
0x2003   :  { %v1876_v19 = vmul.f32 %v1874_v41, %v3672_v62  ;;  %v1972_v62 = vunpack.c.l.bf16 %v3629_v48 }
0x2004   :  { %v1898_v45 = vmul.f32 %v1896_v43, %v3674_v12  ;;  %v1975_v12 = vunpack.c.h.bf16 %v3695_v9 }
0x206f   :  { %v1879_v42 = vpop.permute.xlu0 %1878 }
0x2070   :  { %v1881_v7 = vmul.f32 %v1879_v42, %v1874_v41  ;;  %v1901_v20 = vpop.permute.xlu1 %1900 }
0x2071   :  { %v1903_v24 = vmul.f32 %v1901_v20, %v1896_v43 }
0x2072   :  { %1883 = vrot.lane.b32.xlu0 %v1881_v7, %s3136_s2 }
0x2073   :  { %1905 = vrot.lane.b32.xlu1 %v1903_v24, %s3136_s2 }
0x20e4   :  { %v1884_v22 = vpop.permute.xlu0 %1883 }
0x20e5   :  { %v1886_v46 = vadd.f32 %v1884_v22, %v1876_v19  ;;  %v1906_v47 = vpop.permute.xlu1 %1905  ;;  %v2078_v22 = vunpack.c.h.bf16 %v3697_v21 }
0x20e6   :  { %v1908_v49 = vadd.f32 %v1906_v47, %v1898_v45 }
0x20e7   :  { %2909 = vtanh.f32 %v1886_v46 }
0x20e8   :  { %2911 = vtanh.f32 %v1908_v49 }
0x20f1   :  { %v2910_v50 = vpop.eup %2909 }
0x20f2   :  { %v2912_v51 = vpop.eup %2911  ;;  %1889 = vrot.lane.b32.xlu0 %v2910_v50, %s3130_s4 }
0x20f3   :  { %1911 = vrot.lane.b32.xlu1 %v2912_v51, %s3130_s4 }
0x2164   :  { %v1890_v44 = vpop.permute.xlu0 %1889 }
0x2165   :  { %v1892_v52 = vmul.f32 %v1890_v44, %v1874_v41  ;;  %v1912_v18 = vpop.permute.xlu1 %1911 }
0x2166   :  { %v1914_v53 = vmul.f32 %v1912_v18, %v1896_v43 }
0x2167   :  { %1916 = vrot.lane.b32.xlu0 %v1892_v52, %s3136_s2 }
0x2168   :  { %1921 = vrot.lane.b32.xlu1 %v1914_v53, %s3130_s4 }
0x21d9   :  { %v1917_v55 = vpop.permute.xlu0 %1916 }
0x21da   :  { %1919 = vst.msk [vmem:[#allocation3 + $0x18] sm:$0xff] %vm482_vm1, %v1917_v55  ;;  %v1922_v57 = vpop.permute.xlu1 %1921 }
0x21db   :  { %1924 = vst.msk [vmem:[#allocation3 + $0x20] sm:$0xff] %vm489_vm2, %v1922_v57  ;;  %v1925_v58 = vsel %vm482_vm1, %v1917_v55, %v1922_v57 }
0x21dc   :  { %v1926_v59 = vpack.c.bf16 %v1925_v58, %v1925_v58 }
0x21de   :  { %2605 = vmatmul.mubr.msk.bf16.vlgmr.msra.gmra.mrb[40].mxu0 %vm382_vm3, %v1926_v59 }
0x21df   :  { %2143 = vmatpush1.bf16.msra.mxu0 %v3545_v56  ;;  %2174 = vmatprep.mubr.bf16.mxu0 %v3135_v0 }
0x21e0   :  { %2144 = vmatprep.subr.bf16.mxu0 %v3549_v60 }
0x21e3   :  { %2145 = vmatpush1.bf16.msra.mxu0 %v3551_v61 }
0x21e4   :  { %2146 = vmatprep.subr.bf16.mxu0 %v3553_v10 }
0x21e7   :  { %2147 = vmatpush1.bf16.msra.mxu0 %v3560_v63 }
0x21e8   :  { %2148 = vmatprep.subr.bf16.mxu0 %v3563_v1 }
0x21eb   :  { %2149 = vmatpush1.bf16.msra.mxu0 %v3565_v2 }
0x22b1   :  { %v1964_v11 = vpop.f32.mrb[40].mxu0 }
0x22b2   :  { %v1973_v13 = vadd.f32 %v1972_v62, %v1964_v11  ;;  %v1966_v15 = vpop.f32.mrb[41].mxu0 }
0x22b3   :  { %v1976_v16 = vadd.f32 %v1975_v12, %v1966_v15  ;;  %v1968_v17 = vpop.f32.mrb[42].mxu0 }
0x22b4   :  { %2913 = vtanh.f32 %v1973_v13  ;;  %v1969_v33 = vpop.f32.mrb[43].mxu0  ;;  %v1977_v4 = vmul.f32 0.5, %v1973_v13 }
0x22b5   :  { %2915 = vtanh.f32 %v1976_v16  ;;  %v1999_v5 = vmul.f32 0.5, %v1976_v16 }
0x22b6   :  { %2917 = vtanh.f32 %v1977_v4 }
0x22b7   :  { %2919 = vtanh.f32 %v1999_v5 }
0x22be   :  { %v2914_v23 = vpop.eup %2913 }
0x22bf   :  { %v2916_v3 = vpop.eup %2915  ;;  %1984 = vrot.lane.b32.xlu0 %v2914_v23, %s3130_s4 }
0x22c0   :  { %2006 = vrot.lane.b32.xlu1 %v2916_v3, %s3130_s4  ;;  %v2918_v48 = vpop.eup %2917 }
0x22c1   :  { %v2920_v6 = vpop.eup %2919  ;;  %v1979_v9 = vadd.f32 1.0, %v2918_v48 }
0x22c2   :  { %v2001_v25 = vadd.f32 1.0, %v2920_v6  ;;  %v2186_v6 = vld [vmem:[#allocation2 + $0xc] ss:$44 sps:$4 sm:$0xff]  }
0x22c3   :  { %v1980_v8 = vmul.f32 0.5, %v1979_v9  ;;  %v2184_v9 = vunpack.c.h.bf16 %v3662_v32 }
0x22c4   :  { %v2002_v28 = vmul.f32 0.5, %v2001_v25 }
0x22c5   :  { %v1982_v31 = vmul.f32 %v1980_v8, %v1886_v46  ;;  %v2081_v46 = vunpack.c.h.bf16 %v3660_v37 }
0x22c6   :  { %v2004_v35 = vmul.f32 %v2002_v28, %v1908_v49 }
0x2331   :  { %v1985_v27 = vpop.permute.xlu0 %1984 }
0x2332   :  { %v1987_v14 = vmul.f32 %v1985_v27, %v1980_v8  ;;  %v2007_v30 = vpop.permute.xlu1 %2006 }
0x2333   :  { %v2009_v29 = vmul.f32 %v2007_v30, %v2002_v28 }
0x2334   :  { %1989 = vrot.lane.b32.xlu0 %v1987_v14, %s3136_s2 }
0x2335   :  { %2011 = vrot.lane.b32.xlu1 %v2009_v29, %s3136_s2 }
0x23a6   :  { %v1990_v34 = vpop.permute.xlu0 %1989 }
0x23a7   :  { %v1992_v54 = vadd.f32 %v1990_v34, %v1982_v31  ;;  %v2012_v36 = vpop.permute.xlu1 %2011 }
0x23a8   :  { %v2014_v26 = vadd.f32 %v2012_v36, %v2004_v35 }
0x23a9   :  { %2921 = vtanh.f32 %v1992_v54 }
0x23aa   :  { %2923 = vtanh.f32 %v2014_v26 }
0x23b3   :  { %v2922_v38 = vpop.eup %2921 }
0x23b4   :  { %v2924_v39 = vpop.eup %2923  ;;  %1995 = vrot.lane.b32.xlu0 %v2922_v38, %s3130_s4 }
0x23b5   :  { %2017 = vrot.lane.b32.xlu1 %v2924_v39, %s3130_s4 }
0x2426   :  { %v1996_v40 = vpop.permute.xlu0 %1995 }
0x2427   :  { %v1998_v41 = vmul.f32 %v1996_v40, %v1980_v8  ;;  %v2018_v42 = vpop.permute.xlu1 %2017  ;;  %v2187_v8 = vunpack.c.l.bf16 %v2186_v6 }
0x2428   :  { %v2020_v43 = vmul.f32 %v2018_v42, %v2002_v28 }
0x2429   :  { %2022 = vrot.lane.b32.xlu0 %v1998_v41, %s3136_s2 }
0x242a   :  { %2027 = vrot.lane.b32.xlu1 %v2020_v43, %s3130_s4 }
0x249b   :  { %v2023_v7 = vpop.permute.xlu0 %2022 }
0x249c   :  { %2025 = vst.msk [vmem:[#allocation3 + $0x20] sm:$0xff] %vm482_vm1, %v2023_v7  ;;  %v2028_v20 = vpop.permute.xlu1 %2027 }
0x249d   :  { %2030 = vst.msk [vmem:[#allocation3 + $0x18] sm:$0xff] %vm489_vm2, %v2028_v20  ;;  %v2031_v24 = vsel %vm482_vm1, %v2023_v7, %v2028_v20 }
0x249e   :  { %v2032_v19 = vpack.c.bf16 %v2031_v24, %v2031_v24 }
0x24a0   :  { %2606 = vmatmul.mubr.msk.bf16.vlgmr.msra.gmra.mrb[40].mxu1 %vm382_vm3, %v2032_v19 }
0x24a1   :  { %2249 = vmatpush1.bf16.msra.mxu1 %v3545_v56  ;;  %2280 = vmatprep.mubr.bf16.mxu1 %v3135_v0 }
0x24a2   :  { %2250 = vmatprep.subr.bf16.mxu1 %v3549_v60 }
0x24a5   :  { %2251 = vmatpush1.bf16.msra.mxu1 %v3551_v61 }
0x24a6   :  { %2252 = vmatprep.subr.bf16.mxu1 %v3553_v10 }
0x24a9   :  { %2253 = vmatpush1.bf16.msra.mxu1 %v3560_v63 }
0x24aa   :  { %2254 = vmatprep.subr.bf16.mxu1 %v3563_v1 }
0x24ad   :  { %2255 = vmatpush1.bf16.msra.mxu1 %v3565_v2 }
0x2573   :  { %v2070_v45 = vpop.f32.mrb[40].mxu1 }
0x2574   :  { %v2079_v56 = vadd.f32 %v2078_v22, %v2070_v45  ;;  %v2072_v47 = vpop.f32.mrb[41].mxu1 }
0x2575   :  { %v2082_v0 = vadd.f32 %v2081_v46, %v2072_v47  ;;  %v2074_v49 = vpop.f32.mrb[42].mxu1 }
0x2576   :  { %2925 = vtanh.f32 %v2079_v56  ;;  %v2075_v60 = vpop.f32.mrb[43].mxu1  ;;  %v2083_v63 = vmul.f32 0.5, %v2079_v56 }
0x2577   :  { %2927 = vtanh.f32 %v2082_v0  ;;  %v2105_v1 = vmul.f32 0.5, %v2082_v0 }
0x2578   :  { %2929 = vtanh.f32 %v2083_v63 }
0x2579   :  { %2931 = vtanh.f32 %v2105_v1 }
0x2580   :  { %v2926_v61 = vpop.eup %2925 }
0x2581   :  { %v2928_v10 = vpop.eup %2927  ;;  %2090 = vrot.lane.b32.xlu0 %v2926_v61, %s3130_s4 }
0x2582   :  { %2112 = vrot.lane.b32.xlu1 %v2928_v10, %s3130_s4  ;;  %v2930_v2 = vpop.eup %2929 }
0x2583   :  { %v2932_v21 = vpop.eup %2931  ;;  %v2085_v37 = vadd.f32 1.0, %v2930_v2 }
0x2584   :  { %v2107_v50 = vadd.f32 1.0, %v2932_v21  ;;  %v2292_v21 = vld [vmem:[#allocation2 + $0x4] sm:$0xf] }
0x2585   :  { %v2086_v51 = vmul.f32 0.5, %v2085_v37  ;;  %v2290_v37 = vunpack.c.h.bf16 %v2186_v6 }
0x2586   :  { %v2108_v52 = vmul.f32 0.5, %v2107_v50 }
0x2587   :  { %v2088_v57 = vmul.f32 %v2086_v51, %v1992_v54 }
0x2588   :  { %v2110_v59 = vmul.f32 %v2108_v52, %v2014_v26 }
0x25f3   :  { %v2091_v44 = vpop.permute.xlu0 %2090 }
0x25f4   :  { %v2093_v18 = vmul.f32 %v2091_v44, %v2086_v51  ;;  %v2113_v53 = vpop.permute.xlu1 %2112 }
0x25f5   :  { %v2115_v55 = vmul.f32 %v2113_v53, %v2108_v52 }
0x25f6   :  { %2095 = vrot.lane.b32.xlu0 %v2093_v18, %s3136_s2 }
0x25f7   :  { %2117 = vrot.lane.b32.xlu1 %v2115_v55, %s3136_s2 }
0x2668   :  { %v2096_v58 = vpop.permute.xlu0 %2095 }
0x2669   :  { %v2098_v62 = vadd.f32 %v2096_v58, %v2088_v57  ;;  %v2118_v11 = vpop.permute.xlu1 %2117 }
0x266a   :  { %v2120_v12 = vadd.f32 %v2118_v11, %v2110_v59 }
0x266b   :  { %2933 = vtanh.f32 %v2098_v62 }
0x266c   :  { %2935 = vtanh.f32 %v2120_v12 }
0x2675   :  { %v2934_v13 = vpop.eup %2933 }
0x2676   :  { %v2936_v15 = vpop.eup %2935  ;;  %2101 = vrot.lane.b32.xlu0 %v2934_v13, %s3130_s4 }
0x2677   :  { %2123 = vrot.lane.b32.xlu1 %v2936_v15, %s3130_s4 }
0x26e8   :  { %v2102_v16 = vpop.permute.xlu0 %2101 }
0x26e9   :  { %v2104_v17 = vmul.f32 %v2102_v16, %v2086_v51  ;;  %v2124_v33 = vpop.permute.xlu1 %2123  ;;  %v2293_v51 = vunpack.c.l.bf16 %v2292_v21 }
0x26ea   :  { %v2126_v23 = vmul.f32 %v2124_v33, %v2108_v52 }
0x26eb   :  { %2128 = vrot.lane.b32.xlu0 %v2104_v17, %s3136_s2 }
0x26ec   :  { %2133 = vrot.lane.b32.xlu1 %v2126_v23, %s3130_s4 }
0x275d   :  { %v2129_v3 = vpop.permute.xlu0 %2128 }
0x275e   :  { %2131 = vst.msk [vmem:[#allocation3 + $0x28] sm:$0xff] %vm482_vm1, %v2129_v3  ;;  %v2134_v4 = vpop.permute.xlu1 %2133 }
0x275f   :  { %2136 = vst.msk [vmem:[#allocation3 + $0x10] sm:$0xff] %vm489_vm2, %v2134_v4  ;;  %v2137_v5 = vsel %vm482_vm1, %v2129_v3, %v2134_v4 }
0x2760   :  { %v2138_v48 = vpack.c.bf16 %v2137_v5, %v2137_v5 }
0x2762   :  { %2607 = vmatmul.mubr.msk.bf16.vlgmr.msra.gmra.mrb[44].mxu0 %vm382_vm3, %v2138_v48 }
0x2835   :  { %v2176_v25 = vpop.f32.mrb[44].mxu0 }
0x2836   :  { %v2185_v27 = vadd.f32 %v2184_v9, %v2176_v25  ;;  %v2178_v28 = vpop.f32.mrb[45].mxu0 }
0x2837   :  { %v2188_v14 = vadd.f32 %v2187_v8, %v2178_v28  ;;  %v2180_v30 = vpop.f32.mrb[46].mxu0 }
0x2838   :  { %2937 = vtanh.f32 %v2185_v27  ;;  %v2181_v29 = vpop.f32.mrb[47].mxu0  ;;  %v2189_v35 = vmul.f32 0.5, %v2185_v27  ;;  %v2765_v27 = vld [vmem:[#allocation13] sm:$0xff]   ;;  %v2766_v30 = vld [vmem:[#allocation13 + $0x8] sm:$0xff]  }
0x2839   :  { %2939 = vtanh.f32 %v2188_v14  ;;  %v2211_v54 = vmul.f32 0.5, %v2188_v14  ;;  %2681 = vmatprep.subr.bf16.mxu0 %v2765_v27  ;;  %v2767_v29 = vld [vmem:[#allocation13 + $0x10] sm:$0xff]  }
0x283a   :  { %2941 = vtanh.f32 %v2189_v35  ;;  %2682 = vmatpush3.bf16.msra.mxu0 %v2765_v27 }
0x283b   :  { %2943 = vtanh.f32 %v2211_v54  ;;  %2683 = vmatprep.subr.bf16.mxu0 %v2766_v30 }
0x283e   :  { %2684 = vmatpush3.bf16.msra.mxu0 %v2766_v30 }
0x283f   :  { %2685 = vmatprep.subr.bf16.mxu0 %v2767_v29 }
0x2842   :  { %v2938_v31 = vpop.eup %2937  ;;  %2686 = vmatpush3.bf16.msra.mxu0 %v2767_v29 }
0x2843   :  { %v2940_v34 = vpop.eup %2939  ;;  %2196 = vrot.lane.b32.xlu0 %v2938_v31, %s3130_s4  ;;  %v2768_v31 = vld [vmem:[#allocation13 + $0x18] sm:$0xff]  }
0x2844   :  { %2218 = vrot.lane.b32.xlu1 %v2940_v34, %s3130_s4  ;;  %v2942_v32 = vpop.eup %2941  ;;  %2687 = vmatprep.subr.bf16.mxu0 %v2768_v31 }
0x2845   :  { %v2944_v36 = vpop.eup %2943  ;;  %v2191_v26 = vadd.f32 1.0, %v2942_v32 }
0x2846   :  { %v2213_v38 = vadd.f32 1.0, %v2944_v36  ;;  %2688 = vmatpush3.bf16.msra.mxu0 %v2768_v31 }
0x2847   :  { %v2192_v39 = vmul.f32 0.5, %v2191_v26 }
0x2848   :  { %v2214_v41 = vmul.f32 0.5, %v2213_v38  ;;  %v2351_v38 = vld [vmem:[#allocation3 + $0x10] sm:$0xff] }
0x2849   :  { %v2194_v20 = vmul.f32 %v2192_v39, %v2098_v62 }
0x284a   :  { %v2216_v19 = vmul.f32 %v2214_v41, %v2120_v12 }
0x28b5   :  { %v2197_v40 = vpop.permute.xlu0 %2196 }
0x28b6   :  { %v2199_v42 = vmul.f32 %v2197_v40, %v2192_v39  ;;  %v2219_v43 = vpop.permute.xlu1 %2218 }
0x28b7   :  { %v2221_v7 = vmul.f32 %v2219_v43, %v2214_v41  ;;  %v2352_v43 = vld [vmem:[#allocation3 + $0x18] sm:$0xff] }
0x28b8   :  { %2201 = vrot.lane.b32.xlu0 %v2199_v42, %s3136_s2 }
0x28b9   :  { %2223 = vrot.lane.b32.xlu1 %v2221_v7, %s3136_s2  ;;  %v2358_v7 = vpack.c.bf16 %v2352_v43, %v2351_v38 }
0x292a   :  { %v2202_v24 = vpop.permute.xlu0 %2201 }
0x292b   :  { %v2204_v22 = vadd.f32 %v2202_v24, %v2194_v20  ;;  %v2224_v45 = vpop.permute.xlu1 %2223  ;;  %v2353_v20 = vld [vmem:[#allocation3 + $0x20] sm:$0xff] }
0x292c   :  { %v2226_v46 = vadd.f32 %v2224_v45, %v2216_v19 }
0x292d   :  { %2945 = vtanh.f32 %v2204_v22 }
0x292e   :  { %2947 = vtanh.f32 %v2226_v46 }
0x2937   :  { %v2946_v56 = vpop.eup %2945 }
0x2938   :  { %v2948_v47 = vpop.eup %2947  ;;  %2207 = vrot.lane.b32.xlu0 %v2946_v56, %s3130_s4  ;;  %v2609_v56 = vld [vmem:[%s3812_s8] ss:$0 sm:$0xff]  ;;  %s3093_s8 = scalar_lea.vmem %s2523_s25, 512 }
0x2939   :  { %2229 = vrot.lane.b32.xlu1 %v2948_v47, %s3130_s4  ;;  %p3094_p6 = scmp.ne.s32.totalorder %s2523_s25, %s3093_s8  ;;  %p3099_p8 = scmp.lt.s32.totalorder %s3093_s8, %s3093_s8 }
0x293b   :  { %p3100_p9 = por %p3099_p8, %p3098_p7 }
0x293d   :  { %p3101_p10 = pnand %p3100_p9, %p3094_p6 }
0x29aa   :  { %v2208_v0 = vpop.permute.xlu0 %2207 }
0x29ab   :  { %v2210_v49 = vmul.f32 %v2208_v0, %v2192_v39  ;;  %v2230_v60 = vpop.permute.xlu1 %2229 }
0x29ac   :  { %v2232_v61 = vmul.f32 %v2230_v60, %v2214_v41  ;;  %v2354_v41 = vld [vmem:[#allocation3 + $0x28] sm:$0xff] }
0x29ad   :  { %2234 = vrot.lane.b32.xlu0 %v2210_v49, %s3136_s2  ;;  %v2359_v24 = vpack.c.bf16 %v2354_v41, %v2353_v20 }
0x29ae   :  { %2239 = vrot.lane.b32.xlu1 %v2232_v61, %s3130_s4 }
0x2a1f   :  { %v2235_v10 = vpop.permute.xlu0 %2234 }
0x2a20   :  { %2237 = vst.msk [vmem:[#allocation3 + $0x30] sm:$0xff] %vm482_vm1, %v2235_v10  ;;  %v2240_v63 = vpop.permute.xlu1 %2239 }
0x2a21   :  { %2242 = vst.msk [vmem:[#allocation3 + $0x8] sm:$0xff] %vm489_vm2, %v2240_v63  ;;  %v2243_v1 = vsel %vm482_vm1, %v2235_v10, %v2240_v63 }
0x2a22   :  { %v2244_v2 = vpack.c.bf16 %v2243_v1, %v2243_v1 }
0x2a24   :  { %2608 = vmatmul.mubr.msk.bf16.vlgmr.msra.gmra.mrb[44].mxu1 %vm382_vm3, %v2244_v2 }
0x2a28   :  { %v2350_v40 = vld [vmem:[#allocation3 + $0x8] sm:$0xff] }
0x2af7   :  { %v2282_v50 = vpop.f32.mrb[44].mxu1 }
0x2af8   :  { %v2291_v44 = vadd.f32 %v2290_v37, %v2282_v50  ;;  %v2284_v52 = vpop.f32.mrb[45].mxu1 }
0x2af9   :  { %v2294_v18 = vadd.f32 %v2293_v51, %v2284_v52  ;;  %v2286_v53 = vpop.f32.mrb[46].mxu1 }
0x2afa   :  { %2949 = vtanh.f32 %v2291_v44  ;;  %v2287_v55 = vpop.f32.mrb[47].mxu1  ;;  %v2295_v59 = vmul.f32 0.5, %v2291_v44 }
0x2afb   :  { %2951 = vtanh.f32 %v2294_v18  ;;  %v2317_v62 = vmul.f32 0.5, %v2294_v18 }
0x2afc   :  { %2953 = vtanh.f32 %v2295_v59 }
0x2afd   :  { %2955 = vtanh.f32 %v2317_v62 }
0x2b04   :  { %v2950_v57 = vpop.eup %2949 }
0x2b05   :  { %v2952_v58 = vpop.eup %2951  ;;  %2302 = vrot.lane.b32.xlu1 %v2950_v57, %s3130_s4 }
0x2b06   :  { %2324 = vrot.lane.b32.xlu0 %v2952_v58, %s3130_s4  ;;  %v2954_v11 = vpop.eup %2953 }
0x2b07   :  { %v2956_v12 = vpop.eup %2955  ;;  %v2297_v13 = vadd.f32 1.0, %v2954_v11 }
0x2b08   :  { %v2319_v15 = vadd.f32 1.0, %v2956_v12 }
0x2b09   :  { %v2298_v16 = vmul.f32 0.5, %v2297_v13 }
0x2b0a   :  { %v2320_v33 = vmul.f32 0.5, %v2319_v15 }
0x2b0b   :  { %v2300_v5 = vmul.f32 %v2298_v16, %v2204_v22  ;;  %v2355_v22 = vld [vmem:[#allocation3 + $0x30] sm:$0xff] }
0x2b0c   :  { %v2322_v6 = vmul.f32 %v2320_v33, %v2226_v46 }
0x2b77   :  { %v2303_v17 = vpop.permute.xlu1 %2302 }
0x2b78   :  { %v2305_v23 = vmul.f32 %v2303_v17, %v2298_v16  ;;  %v2325_v3 = vpop.permute.xlu0 %2324 }
0x2b79   :  { %v2327_v4 = vmul.f32 %v2325_v3, %v2320_v33 }
0x2b7a   :  { %2307 = vrot.lane.b32.xlu1 %v2305_v23, %s3136_s2 }
0x2b7b   :  { %2329 = vrot.lane.b32.xlu0 %v2327_v4, %s3136_s2 }
0x2bec   :  { %v2308_v48 = vpop.permute.xlu1 %2307 }
0x2bed   :  { %v2310_v9 = vadd.f32 %v2308_v48, %v2300_v5  ;;  %v2330_v25 = vpop.permute.xlu0 %2329 }
0x2bee   :  { %v2332_v8 = vadd.f32 %v2330_v25, %v2322_v6 }
0x2bef   :  { %2957 = vtanh.f32 %v2310_v9 }
0x2bf0   :  { %2959 = vtanh.f32 %v2332_v8 }
0x2bf9   :  { %v2958_v28 = vpop.eup %2957 }
0x2bfa   :  { %v2960_v14 = vpop.eup %2959  ;;  %2313 = vrot.lane.b32.xlu1 %v2958_v28, %s3130_s4 }
0x2bfb   :  { %2335 = vrot.lane.b32.xlu0 %v2960_v14, %s3130_s4 }
0x2c6c   :  { %v2314_v34 = vpop.permute.xlu1 %2313 }
0x2c6d   :  { %v2316_v35 = vmul.f32 %v2314_v34, %v2298_v16  ;;  %v2336_v54 = vpop.permute.xlu0 %2335 }
0x2c6e   :  { %v2338_v32 = vmul.f32 %v2336_v54, %v2320_v33 }
0x2c6f   :  { %2340 = vrot.lane.b32.xlu1 %v2316_v35, %s3136_s2 }
0x2c70   :  { %2345 = vrot.lane.b32.xlu0 %v2338_v32, %s3130_s4 }
0x2ce1   :  { %v2341_v36 = vpop.permute.xlu1 %2340 }
0x2ce2   :  { %2343 = vst.msk [vmem:[#allocation3 + $0x38] sm:$0xff] %vm482_vm1, %v2341_v36  ;;  %v2346_v26 = vpop.permute.xlu0 %2345 }
0x2ce3   :  { %2348 = vst.msk [vmem:[#allocation3] sm:$0xff] %vm489_vm2, %v2346_v26 }
0x2ce9   :  { %v2356_v19 = vld [vmem:[#allocation3 + $0x38] sm:$0xff] }
0x2cea   :  { %v2349_v39 = vld [vmem:[#allocation3] sm:$0xff]  ;;  %v2360_v45 = vpack.c.bf16 %v2356_v19, %v2355_v22 }
0x2ceb   :  { %v2357_v42 = vpack.c.bf16 %v2350_v40, %v2349_v39 }
0x2ced   :  { %2689 = vmatprep.mubr.msk.bf16.mxu0 %vm382_vm3, %v2357_v42 }
0x2cee   :  { %2690 = vmatmul.mubr.msk.bf16.vlgmr.msra.gmra.mrb[48].mxu0 %vm382_vm3, %v2358_v7 }
0x2cef   :  { %2693 = vmatprep.mubr.msk.bf16.mxu0 %vm382_vm3, %v2359_v24 }
0x2cf6   :  { %2694 = vmatmul.mubr.msk.bf16.gmra.mrb[52].mxu0 %vm382_vm3, %v2360_v45 }
0x2dc1   :  { %v2691_v46 = vpop.f32.mrb[48].mxu0 }
0x2dc2   :  { %v2446_v47 = vpop.f32.mrb[49].mxu0  ;;  %v2455_v49 = vadd.f32 %v2691_v46, %v2609_v56 }
0x2dc3   :  { %v2692_v0 = vpop.f32.mrb[50].mxu0  ;;  %v2447_v10 = vadd.f32 %v2609_v56, %v2446_v47 }
0x2dc4   :  { %v2458_v60 = vadd.f32 %v2692_v0, %v2609_v56  ;;  %v2449_v61 = vpop.f32.mrb[51].mxu0 }
0x2dc5   :  { %v2450_v63 = vadd.f32 %v2609_v56, %v2449_v61 }
0x2dc6   :  { %v2658_v1 = vpack.c.bf16 %v2458_v60, %v2455_v49 }
0x2dc7   :  { %v2653_v2 = vpack.c.bf16 %v2450_v63, %v2447_v10 }
0x2dc8   :  { %2670 = vst [vmem:[#allocation15 + $0x8] sm:$0xff] %v2658_v1  }
0x2dc9   :  { %2654 = vst [vmem:[#allocation15] sm:$0xff] %v2653_v2   ;;  %v2695_v21 = vpop.f32.mrb[52].mxu0 }
0x2dca   :  { %v2462_v37 = vpop.f32.mrb[53].mxu0  ;;  %v2471_v51 = vadd.f32 %v2695_v21, %v2609_v56 }
0x2dcb   :  { %v2696_v50 = vpop.f32.mrb[54].mxu0  ;;  %v2463_v18 = vadd.f32 %v2609_v56, %v2462_v37 }
0x2dcc   :  { %v2474_v44 = vadd.f32 %v2696_v50, %v2609_v56  ;;  %v2465_v52 = vpop.f32.mrb[55].mxu0 }
0x2dcd   :  { %v2466_v53 = vadd.f32 %v2609_v56, %v2465_v52 }
0x2dce   :  { %v2668_v55 = vpack.c.bf16 %v2474_v44, %v2471_v51 }
0x2dcf   :  { %v2663_v57 = vpack.c.bf16 %v2466_v53, %v2463_v18 }
0x2dd0   :  { %2672 = vst [vmem:[#allocation15 + $0x18] sm:$0xff] %v2668_v55  }
0x2dd1   :  { %2671 = vst [vmem:[#allocation15 + $0x10] sm:$0xff] %v2663_v57  }
0x2dd2   :  { %3104 = shalt.err (!%p3101_p10)
}
0x2dd3   :  { %s3105_s29 = scalar_lea.hbm %s3813_s9, 512 }
0x2dd4   :  { %p3106_p11 = scmp.ne.s32.totalorder %s3813_s9, %s3105_s29  ;;  %p3109_p12 = scmp.lt.u32.totalorder %s3105_s29, %s3813_s9 }
0x2dd6   :  { %p3111_p13 = pnand %p3109_p12, %p3106_p11 }
0x2dd8   :  { %3114 = shalt.err (!%p3111_p13)
}
0x2dd9   :  { %2528 = dma.vmem_to_hbm [thread:$0]  %s2523_s25, 512, %s3813_s9, [#allocation6], %s3130_s4, %s3130_s4, %s3131_s24  }
0x2dda   :  { %3123 = dma.done.wait [#allocation6], 512  }
0x2ddb   :  { %3124 = vsyncadd [#allocation6], 4294966784 }
0x2ddc   :  { %2532 = vsyncpa [#allocation5], 1 }
0x2ddd   :  { %2533 = vsyncpa [#allocation8], 1 }
0x2dde   :  { %2534 = vsyncpa [#allocation11], 1 }
0x2ddf   :  { %2535 = vsyncpa [#allocation14], 1 }
0x2de0   :  { %2536 = vsyncpa [#allocation6], 1 }

// kernel: tpu_custom_call.1
= control target key start
LH: loop header
LB: loop body
LE: loop exit
PB: predicated region body
PF: predicated region fallthrough
CT: control target
= control target key end

     0   :  { %14 = vsyncpa [#allocation5], 0  ;;  %s3804_s0 = inlined_call_operand.hbm [shape: bf16[8,8,48], index: 0, kind: input, shape index: {}]   ;;  %s3805_s1 = inlined_call_operand.hbm [shape: bf16[48,256], index: 1, kind: input, shape index: {}]   ;;  %s3806_s2 = inlined_call_operand.vmem [shape: f32[1,256], index: 2, kind: input, shape index: {}]   ;;  %s3807_s3 = inlined_call_operand.hbm [shape: bf16[64,256], index: 3, kind: input, shape index: {}]   ;;  %s3808_s4 = inlined_call_operand.hbm [shape: bf16[64,256], index: 4, kind: input, shape index: {}]   ;;  %s3809_s5 = inlined_call_operand.vmem [shape: f32[1,256], index: 5, kind: input, shape index: {}]   ;;  %s3810_s6 = inlined_call_operand.hbm [shape: bf16[64,256], index: 6, kind: input, shape index: {}]   ;;  %s3811_s7 = inlined_call_operand.hbm [shape: bf16[64,128], index: 7, kind: input, shape index: {}]   ;;  %s3812_s8 = inlined_call_operand.vmem [shape: f32[1,128], index: 8, kind: input, shape index: {}]   ;;  %s3813_s9 = inlined_call_operand.hbm [shape: bf16[8,8,128], index: 9, kind: output, shape index: {}]  }
   0x1   :  { %15 = vsyncpa [#allocation8], 0 }
   0x2   :  { %16 = vsyncpa [#allocation11], 0 }
   0x3   :  { %17 = vsyncpa [#allocation14], 0 }
   0x4   :  { %18 = vsyncpa [#allocation6], 0  ;;  %s3125_s30 = smov [#allocation7]   ;;  %s2961_s13 = scalar_lea.hbm %s3805_s1, 768 }
   0x5   :  { %s36_s10 = sshll.u32 %s3125_s30, 4  ;;  %p2962_p0 = scmp.ne.s32.totalorder %s3805_s1, %s2961_s13  ;;  %s37_s10 = int_to_ptr.vmem [resolvable:$true] %s36_s10 }
   0x6   :  { %p2965_p1 = scmp.lt.u32.totalorder %s2961_s13, %s3805_s1 }
   0x8   :  { %p2967_p2 = pnand %p2965_p1, %p2962_p0 }
   0xa   :  { %2970 = shalt.err (!%p2967_p2)
}
   0xb   :  { %s2971_s18 = scalar_lea.vmem %s37_s10, 768  ;;  %p2976_p4 = scmp.lt.s32.totalorder %s37_s10, %s37_s10 }
   0xc   :  { %p2972_p3 = scmp.ne.s32.totalorder %s37_s10, %s2971_s18  ;;  %p2977_p5 = scmp.lt.s32.totalorder %s2971_s18, %s2971_s18 }
   0xe   :  { %p2978_p6 = por %p2977_p5, %p2976_p4 }
  0x10   :  { %p2979_p7 = pnand %p2978_p6, %p2972_p3 }
  0x12   :  { %2982 = shalt.err (!%p2979_p7)
}
  0x13   :  { %s3126_s19 = smov 128   ;;  %s3127_s20 = smov 8  }
  0x14   :  { %42 = dma.hbm_to_vmem [thread:$0]  %s3805_s1, 768, %s37_s10, [#allocation8], %s3126_s19, %s3126_s19, %s3127_s20  }
  0x15   :  { %s3128_s23 = smov [#allocation10]   ;;  %s3129_s25 = smov [#allocation4]  }
  0x16   :  { %s62_s24 = sshll.u32 %s3128_s23, 4  ;;  %s24_s26 = sshll.u32 %s3129_s25, 4  ;;  %s63_s24 = int_to_ptr.vmem [resolvable:$true] %s62_s24  ;;  %s25_s26 = int_to_ptr.vmem [resolvable:$true] %s24_s26 }
  0x17   :  { %s2983_s29 = scalar_lea.hbm %s3808_s4, 1024 }
  0x18   :  { %p2984_p8 = scmp.ne.s32.totalorder %s3808_s4, %s2983_s29  ;;  %p2987_p9 = scmp.lt.u32.totalorder %s2983_s29, %s3808_s4 }
  0x1a   :  { %p2989_p10 = pnand %p2987_p9, %p2984_p8 }
  0x1c   :  { %2992 = shalt.err (!%p2989_p10)
}
  0x1d   :  { %s2993_s1 = scalar_lea.vmem %s63_s24, 1024  ;;  %p2998_p12 = scmp.lt.s32.totalorder %s63_s24, %s63_s24 }
  0x1e   :  { %p2994_p11 = scmp.ne.s32.totalorder %s63_s24, %s2993_s1  ;;  %p2999_p13 = scmp.lt.s32.totalorder %s2993_s1, %s2993_s1 }
  0x20   :  { %p3000_p0 = por %p2999_p13, %p2998_p12 }
  0x22   :  { %p3001_p1 = pnand %p3000_p0, %p2994_p11 }
  0x24   :  { %3004 = shalt.err (!%p3001_p1)
}
  0x25   :  { %68 = dma.hbm_to_vmem [thread:$0]  %s3808_s4, 1024, %s63_s24, [#allocation11], %s3126_s19, %s3126_s19, %s3127_s20  }
  0x26   :  { %s3005_s17 = scalar_lea.hbm %s3804_s0, 512 }
  0x27   :  { %p3006_p2 = scmp.ne.s32.totalorder %s3804_s0, %s3005_s17  ;;  %p3009_p3 = scmp.lt.u32.totalorder %s3005_s17, %s3804_s0 }
  0x29   :  { %p3011_p4 = pnand %p3009_p3, %p3006_p2 }
  0x2b   :  { %3014 = shalt.err (!%p3011_p4)
}
  0x2c   :  { %s3015_s25 = scalar_lea.vmem %s25_s26, 512  ;;  %p3020_p6 = scmp.lt.s32.totalorder %s25_s26, %s25_s26 }
  0x2d   :  { %p3016_p5 = scmp.ne.s32.totalorder %s25_s26, %s3015_s25  ;;  %p3021_p7 = scmp.lt.s32.totalorder %s3015_s25, %s3015_s25 }
  0x2f   :  { %p3022_p8 = por %p3021_p7, %p3020_p6 }
  0x31   :  { %p3023_p9 = pnand %p3022_p8, %p3016_p5 }
  0x33   :  { %3026 = shalt.err (!%p3023_p9)
}
  0x34   :  { %s3130_s4 = smov 64   ;;  %s3131_s24 = smov 4  }
  0x35   :  { %30 = dma.hbm_to_vmem [thread:$0]  %s3804_s0, 512, %s25_s26, [#allocation5], %s3130_s4, %s3130_s4, %s3131_s24  }
  0x36   :  { %s3132_s29 = smov [#allocation9]   ;;  %s3133_s11 = smov [#allocation12]  }
  0x37   :  { %s50_s30 = sshll.u32 %s3132_s29, 4  ;;  %s76_s12 = sshll.u32 %s3133_s11, 4  ;;  %s51_s30 = int_to_ptr.vmem [resolvable:$true] %s50_s30  ;;  %s77_s12 = int_to_ptr.vmem [resolvable:$true] %s76_s12 }
  0x38   :  { %s3027_s10 = scalar_lea.hbm %s3807_s3, 1024 }
  0x39   :  { %p3028_p10 = scmp.ne.s32.totalorder %s3807_s3, %s3027_s10  ;;  %p3031_p11 = scmp.lt.u32.totalorder %s3027_s10, %s3807_s3 }
  0x3b   :  { %p3033_p12 = pnand %p3031_p11, %p3028_p10 }
  0x3d   :  { %3036 = shalt.err (!%p3033_p12)
}
  0x3e   :  { %s3037_s0 = scalar_lea.vmem %s51_s30, 1024  ;;  %p3042_p0 = scmp.lt.s32.totalorder %s51_s30, %s51_s30 }
  0x3f   :  { %p3038_p13 = scmp.ne.s32.totalorder %s51_s30, %s3037_s0  ;;  %p3043_p1 = scmp.lt.s32.totalorder %s3037_s0, %s3037_s0 }
  0x41   :  { %p3044_p2 = por %p3043_p1, %p3042_p0 }
  0x43   :  { %p3045_p3 = pnand %p3044_p2, %p3038_p13 }
  0x45   :  { %3048 = shalt.err (!%p3045_p3)
}
  0x46   :  { %56 = dma.hbm_to_vmem [thread:$0]  %s3807_s3, 1024, %s51_s30, [#allocation8], %s3126_s19, %s3126_s19, %s3127_s20  }
  0x47   :  { %s3049_s23 = scalar_lea.hbm %s3810_s6, 1024 }
  0x48   :  { %p3050_p4 = scmp.ne.s32.totalorder %s3810_s6, %s3049_s23  ;;  %p3053_p5 = scmp.lt.u32.totalorder %s3049_s23, %s3810_s6 }
  0x4a   :  { %p3055_p6 = pnand %p3053_p5, %p3050_p4 }
  0x4c   :  { %3058 = shalt.err (!%p3055_p6)
}
  0x4d   :  { %s3059_s11 = scalar_lea.vmem %s77_s12, 1024  ;;  %p3064_p8 = scmp.lt.s32.totalorder %s77_s12, %s77_s12 }
  0x4e   :  { %p3060_p7 = scmp.ne.s32.totalorder %s77_s12, %s3059_s11  ;;  %p3065_p9 = scmp.lt.s32.totalorder %s3059_s11, %s3059_s11 }
  0x50   :  { %p3066_p10 = por %p3065_p9, %p3064_p8 }
  0x52   :  { %p3067_p11 = pnand %p3066_p10, %p3060_p7 }
  0x54   :  { %3070 = shalt.err (!%p3067_p11)
}
  0x55   :  { %82 = dma.hbm_to_vmem [thread:$0]  %s3810_s6, 1024, %s77_s12, [#allocation11], %s3126_s19, %s3126_s19, %s3127_s20  }
  0x56   :  { %s3134_s13 = smov [#allocation13]   ;;  %s3071_s15 = scalar_lea.hbm %s3811_s7, 512 }
  0x57   :  { %s88_s1 = sshll.u32 %s3134_s13, 4  ;;  %p3072_p12 = scmp.ne.s32.totalorder %s3811_s7, %s3071_s15  ;;  %s89_s1 = int_to_ptr.vmem [resolvable:$true] %s88_s1 }
  0x58   :  { %p3075_p13 = scmp.lt.u32.totalorder %s3071_s15, %s3811_s7 }
  0x5a   :  { %p3077_p0 = pnand %p3075_p13, %p3072_p12 }
  0x5c   :  { %3080 = shalt.err (!%p3077_p0)
}
  0x5d   :  { %s3081_s18 = scalar_lea.vmem %s89_s1, 512  ;;  %p3086_p2 = scmp.lt.s32.totalorder %s89_s1, %s89_s1 }
  0x5e   :  { %p3082_p1 = scmp.ne.s32.totalorder %s89_s1, %s3081_s18  ;;  %p3087_p3 = scmp.lt.s32.totalorder %s3081_s18, %s3081_s18 }
  0x60   :  { %p3088_p4 = por %p3087_p3, %p3086_p2 }
  0x62   :  { %p3089_p5 = pnand %p3088_p4, %p3082_p1 }
  0x64   :  { %3092 = shalt.err (!%p3089_p5)
}
  0x65   :  { %94 = dma.hbm_to_vmem [thread:$0]  %s3811_s7, 512, %s89_s1, [#allocation14], %s3130_s4, %s3130_s4, %s3131_s24  }
  0x66   :  { %3115 = dma.done.wait [#allocation5], 512  }
  0x67   :  { %3116 = vsyncadd [#allocation5], 4294966784 }
  0x68   :  { %3117 = dma.done.wait [#allocation8], 1792  }
  0x69   :  { %3118 = vsyncadd [#allocation8], 4294965504 }
  0x6a   :  { %3119 = dma.done.wait [#allocation11], 2048  }
  0x6b   :  { %3120 = vsyncadd [#allocation11], 4294965248 }
  0x6c   :  { %3121 = dma.done.wait [#allocation14], 512  }
  0x6d   :  { %3122 = vsyncadd [#allocation14], 4294966784  ;;  %v3135_v0 = vmov 0   ;;  %v2716_v1 = vld [vmem:[#allocation7 + $0x4] ss:$8 sps:$4 sm:$0xff]   ;;  %v2725_v8 = vld [vmem:[#allocation4 + $0x10] sm:$0xff]   ;;  %v132_v18 = vlaneseq }
  0x6e   :  { %257 = vmatprep.mubr.bf16.mxu1 %v3135_v0  ;;  %237 = vmatprep.mubr.bf16.mxu0 %v3135_v0  ;;  %v2718_v2 = vld [vmem:[#allocation7] ss:$8 sps:$4 sm:$0xff]   ;;  %v2719_v3 = vld [vmem:[#allocation7 + $0x14] ss:$8 sps:$4 sm:$0xff]   ;;  %v2721_v4 = vld [vmem:[#allocation7 + $0x10] ss:$8 sps:$4 sm:$0xff]  }
  0x6f   :  { %2697 = vmatprep.subr.bf16.mxu1 %v2716_v1  ;;  %205 = vmatprep.subr.bf16.mxu0 %v2716_v1  ;;  %v2722_v5 = vld [vmem:[#allocation7 + $0x24] ss:$8 sps:$4 sm:$0xff]   ;;  %v2724_v6 = vld [vmem:[#allocation7 + $0x20] ss:$8 sps:$4 sm:$0xff]   ;;  %v3280_v7 = vld [vmem:[#allocation9 + $0x4] ss:$8 sps:$4 sm:$0xff]  }
  0x70   :  { %2700 = vmatpush1.bf16.msra.mxu1 %v2718_v2  ;;  %206 = vmatpush1.bf16.msra.mxu0 %v2718_v2  ;;  %v2728_v9 = vld [vmem:[#allocation4] sm:$0xff]   ;;  %vm192_vm0 = vcmask 392192   ;;  %v3282_v10 = vld [vmem:[#allocation9] ss:$8 sps:$4 sm:$0xff]   ;;  %v3292_v13 = vld [vmem:[#allocation9 + $0x24] ss:$8 sps:$4 sm:$0xff]  }
  0x71   :  { %2698 = vmatprep.subr.bf16.mxu1 %v2719_v3  ;;  %207 = vmatprep.subr.bf16.mxu0 %v2719_v3  ;;  %v3285_v11 = vld [vmem:[#allocation9 + $0x14] ss:$8 sps:$4 sm:$0xff]   ;;  %v3288_v12 = vld [vmem:[#allocation9 + $0x10] ss:$8 sps:$4 sm:$0xff]   ;;  %v2733_v14 = vld [vmem:[#allocation4 + $0x18] sm:$0xff]   ;;  %v3330_v19 = vshrl.u32 %v132_v18, 7 }
  0x72   :  { %v3298_v15 = vld [vmem:[#allocation9 + $0x20] ss:$8 sps:$4 sm:$0xff]   ;;  %v3301_v16 = vld [vmem:[#allocation9 + $0x34] ss:$8 sps:$4 sm:$0xff]   ;;  %v3310_v17 = vld [vmem:[#allocation9 + $0x30] ss:$8 sps:$4 sm:$0xff]  }
  0x73   :  { %v134_v20 = vsub.s32 0, %v3330_v19  ;;  %v130_v21 = vld [vmem:[%s3806_s2] sm:$0x3]  ;;  %v138_v22 = vsub.s32 1, %v3330_v19  ;;  %s3136_s2 = smov 32   ;;  %vm482_vm1 = vcmask 261120  }
  0x74   :  { %2701 = vmatpush1.bf16.msra.mxu1 %v2721_v4  ;;  %208 = vmatpush1.bf16.msra.mxu0 %v2721_v4  ;;  %vm489_vm2 = vcmask 523520   ;;  %vm382_vm3 = vcmask 523264   ;;  %s3137_s23 = smov [#allocation15]  }
  0x75   :  { %2699 = vmatprep.subr.bf16.mxu1 %v2722_v5  ;;  %209 = vmatprep.subr.bf16.mxu0 %v2722_v5  ;;  %v3339_v23 = vrot.slane %v130_v21, %v134_v20  ;;  %v3343_v24 = vrot.slane %v130_v21, %v138_v22  ;;  %s2522_s25 = sshll.u32 %s3137_s23, 4  ;;  %s2523_s25 = int_to_ptr.vmem [resolvable:$true] %s2522_s25 }
  0x76   :  { %p3098_p7 = scmp.lt.s32.totalorder %s2523_s25, %s2523_s25 }
  0x78   :  { %2702 = vmatpush1.bf16.msra.mxu1 %v2724_v6  ;;  %210 = vmatpush1.bf16.msra.mxu0 %v2724_v6 }
  0x79   :  { %386 = vmatprep.subr.bf16.mxu1 %v3280_v7  ;;  %606 = vmatprep.subr.bf16.mxu0 %v3280_v7 }
  0x7b   :  { %2549 = vmatmul.mubr.msk.bf16.vlgmr.msra.gmra.mrb[0].mxu1 %vm192_vm0, %v2725_v8  ;;  %2547 = vmatmul.mubr.msk.bf16.vlgmr.msra.gmra.mrb[0].mxu0 %vm192_vm0, %v2728_v9 }
  0x7c   :  { %387 = vmatpush1.bf16.msra.mxu1 %v3282_v10  ;;  %267 = vmatprep.mubr.bf16.mxu1 %v3135_v0 }
  0x7d   :  { %388 = vmatprep.subr.bf16.mxu1 %v3285_v11  ;;  %247 = vmatprep.mubr.bf16.mxu0 %v3135_v0 }
  0x7e   :  { %607 = vmatpush1.bf16.msra.mxu0 %v3282_v10 }
  0x7f   :  { %608 = vmatprep.subr.bf16.mxu0 %v3285_v11 }
  0x80   :  { %389 = vmatpush1.bf16.msra.mxu1 %v3288_v12 }
  0x81   :  { %390 = vmatprep.subr.bf16.mxu1 %v3292_v13 }
  0x82   :  { %609 = vmatpush1.bf16.msra.mxu0 %v3288_v12 }
  0x83   :  { %2550 = vmatmul.mubr.msk.bf16.gmra.mrb[4].mxu1 %vm192_vm0, %v2733_v14  ;;  %610 = vmatprep.subr.bf16.mxu0 %v3292_v13 }
  0x84   :  { %391 = vmatpush1.bf16.msra.mxu1 %v3298_v15  ;;  %418 = vmatprep.mubr.bf16.mxu1 %v3135_v0 }
  0x85   :  { %392 = vmatprep.subr.bf16.mxu1 %v3301_v16 }
  0x86   :  { %611 = vmatpush1.bf16.msra.mxu0 %v3298_v15 }
  0x87   :  { %612 = vmatprep.subr.bf16.mxu0 %v3301_v16 }
  0x88   :  { %393 = vmatpush1.bf16.msra.mxu1 %v3310_v17 }
  0x89   :  { %496 = vmatprep.subr.bf16.mxu1 %v3280_v7 }
  0x8a   :  { %613 = vmatpush1.bf16.msra.mxu0 %v3310_v17 }
  0x8b   :  { %419 = vmatmul.mubr.bf16.vlgmr.msra.gmra.mrb[8].mxu1 %v3135_v0  ;;  %826 = vmatprep.subr.bf16.mxu0 %v3280_v7 }
  0x8c   :  { %497 = vmatpush1.bf16.msra.mxu1 %v3282_v10  ;;  %528 = vmatprep.mubr.bf16.mxu1 %v3135_v0 }
  0x8d   :  { %498 = vmatprep.subr.bf16.mxu1 %v3285_v11 }
  0x90   :  { %499 = vmatpush1.bf16.msra.mxu1 %v3288_v12 }
  0x91   :  { %500 = vmatprep.subr.bf16.mxu1 %v3292_v13 }
  0x94   :  { %501 = vmatpush1.bf16.msra.mxu1 %v3298_v15 }
  0x95   :  { %502 = vmatprep.subr.bf16.mxu1 %v3301_v16 }
  0x98   :  { %503 = vmatpush1.bf16.msra.mxu1 %v3310_v17 }
  0x99   :  { %716 = vmatprep.subr.bf16.mxu1 %v3280_v7 }
 0x14e   :  { %v259_v25 = vpop.f32.mrb[0].mxu1  ;;  %v239_v26 = vpop.f32.mrb[0].mxu0 }
 0x14f   :  { %v260_v27 = vadd.f32 %v259_v25, %v3339_v23  ;;  %v240_v28 = vadd.f32 %v239_v26, %v3339_v23  ;;  %v261_v29 = vpop.f32.mrb[1].mxu1  ;;  %v241_v30 = vpop.f32.mrb[1].mxu0 }
 0x150   :  { %v262_v31 = vadd.f32 %v261_v29, %v3343_v24  ;;  %v242_v32 = vadd.f32 %v241_v30, %v3343_v24  ;;  %v263_v33 = vpop.f32.mrb[2].mxu1  ;;  %v243_v34 = vpop.f32.mrb[2].mxu0 }
 0x151   :  { %v264_v35 = vadd.f32 %v263_v33, %v3339_v23  ;;  %v265_v36 = vpop.f32.mrb[3].mxu1  ;;  %v244_v37 = vadd.f32 %v243_v34, %v3339_v23  ;;  %v245_v38 = vpop.f32.mrb[3].mxu0 }
 0x152   :  { %v2630_v39 = vpack.c.bf16 %v262_v31, %v260_v27  ;;  %v2626_v40 = vpack.c.bf16 %v242_v32, %v240_v28  ;;  %v266_v41 = vadd.f32 %v265_v36, %v3343_v24  ;;  %v246_v42 = vadd.f32 %v245_v38, %v3343_v24 }
 0x154   :  { %330 = vst [vmem:[#allocation2 + $0x20] sm:$0xff] %v2630_v39  ;;  %326 = vst [vmem:[#allocation2] sm:$0xff] %v2626_v40  ;;  %v2631_v43 = vpack.c.bf16 %v266_v41, %v264_v35  ;;  %v2627_v44 = vpack.c.bf16 %v246_v42, %v244_v37 }
 0x156   :  { %331 = vst [vmem:[#allocation2 + $0x28] sm:$0xff] %v2631_v43  ;;  %327 = vst [vmem:[#allocation2 + $0x8] sm:$0xff] %v2627_v44  ;;  %v269_v45 = vpop.f32.mrb[4].mxu1 }
 0x157   :  { %v270_v46 = vadd.f32 %v269_v45, %v3339_v23  ;;  %v271_v47 = vpop.f32.mrb[5].mxu1 }
 0x158   :  { %v272_v48 = vadd.f32 %v271_v47, %v3343_v24  ;;  %v273_v49 = vpop.f32.mrb[6].mxu1 }
 0x159   :  { %v274_v50 = vadd.f32 %v273_v49, %v3339_v23  ;;  %v275_v51 = vpop.f32.mrb[7].mxu1 }
 0x15a   :  { %v2632_v52 = vpack.c.bf16 %v272_v48, %v270_v46  ;;  %v276_v53 = vadd.f32 %v275_v51, %v3343_v24 }
 0x15c   :  { %332 = vst [vmem:[#allocation2 + $0x30] sm:$0xff] %v2632_v52  ;;  %v2633_v54 = vpack.c.bf16 %v276_v53, %v274_v50 }
 0x15e   :  { %333 = vst [vmem:[#allocation2 + $0x38] sm:$0xff] %v2633_v54  ;;  %v420_v55 = vpop.f32.mrb[8].mxu1 }
 0x15f   :  { %v422_v56 = vpop.f32.mrb[9].mxu1 }
 0x160   :  { %v424_v57 = vpop.f32.mrb[10].mxu1 }
 0x161   :  { %v425_v58 = vpop.f32.mrb[11].mxu1 }
 0x163   :  { %v538_v44 = vld [vmem:[#allocation2 + $0x8] ss:$44 sps:$4 sm:$0xff]  }
 0x164   :  { %v539_v45 = vunpack.c.l.bf16 %v538_v44  ;;  %v543_v47 = vunpack.c.h.bf16 %v538_v44  ;;  %v3422_v44 = vld [vmem:[#allocation2 + $0x2c] sm:$0xff]  }
 0x165   :  { %v427_v59 = vld [vmem:[#allocation2] ss:$60 sps:$4 sm:$0xff]  }
 0x166   :  { %v428_v60 = vunpack.c.l.bf16 %v427_v59  ;;  %v432_v61 = vunpack.c.h.bf16 %v427_v59 }
 0x168   :  { %v429_v62 = vadd.f32 %v428_v60, %v420_v55  ;;  %v433_v63 = vadd.f32 %v432_v61, %v422_v56 }
 0x16a   :  { %2769 = vtanh.f32 %v429_v62  ;;  %v434_v3 = vmul.f32 0.5, %v429_v62  ;;  %v456_v4 = vmul.f32 0.5, %v433_v63 }
 0x16b   :  { %2771 = vtanh.f32 %v433_v63 }
 0x16c   :  { %2773 = vtanh.f32 %v434_v3 }
 0x16d   :  { %2775 = vtanh.f32 %v456_v4 }
 0x174   :  { %v2770_v1 = vpop.eup %2769 }
 0x175   :  { %441 = vrot.lane.b32.xlu0 %v2770_v1, %s3130_s4  ;;  %v2772_v2 = vpop.eup %2771 }
 0x176   :  { %v2774_v5 = vpop.eup %2773 }
 0x177   :  { %v436_v6 = vadd.f32 1.0, %v2774_v5  ;;  %v2776_v8 = vpop.eup %2775 }
 0x178   :  { %v458_v9 = vadd.f32 1.0, %v2776_v8 }
 0x179   :  { %463 = vrot.lane.b32.xlu0 %v2772_v2, %s3130_s4  ;;  %v437_v14 = vmul.f32 0.5, %v436_v6 }
 0x17a   :  { %v459_v25 = vmul.f32 0.5, %v458_v9 }
 0x17b   :  { %v439_v28 = vmul.f32 0.0, %v437_v14 }
 0x17c   :  { %v461_v31 = vmul.f32 0.0, %v459_v25 }
 0x1e7   :  { %v442_v18 = vpop.permute.xlu0 %441 }
 0x1e8   :  { %v444_v21 = vmul.f32 %v442_v18, %v437_v14  ;;  %v2740_v18 = vld [vmem:[#allocation4 + $0x8] sm:$0xff]  }
 0x1e9   :  { %2548 = vmatmul.mubr.msk.bf16.gmra.mrb[4].mxu0 %vm192_vm0, %v2740_v18 }
 0x1ea   :  { %446 = vrot.lane.b32.xlu1 %v444_v21, %s3136_s2  ;;  %638 = vmatprep.mubr.bf16.mxu0 %v3135_v0 }
 0x1eb   :  { %v464_v26 = vpop.permute.xlu0 %463 }
 0x1ec   :  { %v466_v27 = vmul.f32 %v464_v26, %v459_v25 }
 0x1ee   :  { %468 = vrot.lane.b32.xlu1 %v466_v27, %s3136_s2 }
 0x25c   :  { %v447_v29 = vpop.permute.xlu1 %446 }
 0x25d   :  { %v3361_v30 = vadd.f32 %v447_v29, %v439_v28 }
 0x25f   :  { %2777 = vtanh.f32 %v3361_v30 }
 0x260   :  { %v469_v32 = vpop.permute.xlu1 %468 }
 0x261   :  { %v3364_v33 = vadd.f32 %v469_v32, %v461_v31 }
 0x263   :  { %2779 = vtanh.f32 %v3364_v33 }
 0x269   :  { %v2778_v34 = vpop.eup %2777 }
 0x26a   :  { %452 = vrot.lane.b32.xlu0 %v2778_v34, %s3130_s4 }
 0x26d   :  { %v2780_v35 = vpop.eup %2779 }
 0x26e   :  { %474 = vrot.lane.b32.xlu1 %v2780_v35, %s3130_s4 }
 0x2dc   :  { %v453_v36 = vpop.permute.xlu0 %452 }
 0x2dd   :  { %v455_v37 = vmul.f32 %v453_v36, %v437_v14 }
 0x2df   :  { %479 = vrot.lane.b32.xlu0 %v455_v37, %s3136_s2 }
 0x2e0   :  { %v475_v38 = vpop.permute.xlu1 %474 }
 0x2e1   :  { %v477_v39 = vmul.f32 %v475_v38, %v459_v25 }
 0x2e3   :  { %485 = vrot.lane.b32.xlu1 %v477_v39, %s3130_s4 }
 0x351   :  { %v480_v40 = vpop.permute.xlu0 %479 }
 0x352   :  { %483 = vst.msk [vmem:[#allocation3] sm:$0xff] %vm482_vm1, %v480_v40 }
 0x355   :  { %v486_v41 = vpop.permute.xlu1 %485 }
 0x356   :  { %490 = vst.msk [vmem:[#allocation3 + $0x38] sm:$0xff] %vm489_vm2, %v486_v41  ;;  %v491_v42 = vsel %vm482_vm1, %v480_v40, %v486_v41 }
 0x357   :  { %v492_v43 = vpack.c.bf16 %v491_v42, %v491_v42 }
 0x359   :  { %2567 = vmatmul.mubr.msk.bf16.vlgmr.msra.gmra.mrb[12].mxu1 %vm382_vm3, %v492_v43 }
 0x35a   :  { %717 = vmatpush1.bf16.msra.mxu1 %v3282_v10  ;;  %748 = vmatprep.mubr.bf16.mxu1 %v3135_v0 }
 0x35b   :  { %718 = vmatprep.subr.bf16.mxu1 %v3285_v11 }
 0x35e   :  { %719 = vmatpush1.bf16.msra.mxu1 %v3288_v12 }
 0x35f   :  { %720 = vmatprep.subr.bf16.mxu1 %v3292_v13 }
 0x362   :  { %721 = vmatpush1.bf16.msra.mxu1 %v3298_v15 }
 0x363   :  { %722 = vmatprep.subr.bf16.mxu1 %v3301_v16 }
 0x366   :  { %723 = vmatpush1.bf16.msra.mxu1 %v3310_v17 }
 0x367   :  { %932 = vmatprep.subr.bf16.mxu1 %v3280_v7 }
 0x42c   :  { %v530_v46 = vpop.f32.mrb[12].mxu1 }
 0x42d   :  { %v540_v48 = vadd.f32 %v539_v45, %v530_v46  ;;  %v532_v49 = vpop.f32.mrb[13].mxu1  ;;  %v653_v46 = vunpack.c.l.bf16 %v3422_v44 }
 0x42e   :  { %v544_v50 = vadd.f32 %v543_v47, %v532_v49  ;;  %v534_v51 = vpop.f32.mrb[14].mxu1 }
 0x42f   :  { %2781 = vtanh.f32 %v540_v48  ;;  %v535_v52 = vpop.f32.mrb[15].mxu1  ;;  %v545_v55 = vmul.f32 0.5, %v540_v48 }
 0x430   :  { %2783 = vtanh.f32 %v544_v50  ;;  %v567_v56 = vmul.f32 0.5, %v544_v50 }
 0x431   :  { %2785 = vtanh.f32 %v545_v55 }
 0x432   :  { %2787 = vtanh.f32 %v567_v56 }
 0x439   :  { %v2782_v53 = vpop.eup %2781 }
 0x43a   :  { %v2784_v54 = vpop.eup %2783  ;;  %552 = vrot.lane.b32.xlu0 %v2782_v53, %s3130_s4 }
 0x43b   :  { %574 = vrot.lane.b32.xlu1 %v2784_v54, %s3130_s4  ;;  %v2786_v57 = vpop.eup %2785 }
 0x43c   :  { %v2788_v58 = vpop.eup %2787  ;;  %v547_v59 = vadd.f32 1.0, %v2786_v57 }
 0x43d   :  { %v569_v60 = vadd.f32 1.0, %v2788_v58 }
 0x43e   :  { %v548_v61 = vmul.f32 0.5, %v547_v59 }
 0x43f   :  { %v570_v63 = vmul.f32 0.5, %v569_v60 }
 0x440   :  { %v550_v4 = vmul.f32 %v548_v61, %v3361_v30  ;;  %v249_v30 = vpop.f32.mrb[4].mxu0 }
 0x441   :  { %v572_v6 = vmul.f32 %v570_v63, %v3364_v33  ;;  %v250_v31 = vadd.f32 %v249_v30, %v3339_v23  ;;  %v251_v32 = vpop.f32.mrb[5].mxu0 }
 0x442   :  { %v252_v33 = vadd.f32 %v251_v32, %v3343_v24  ;;  %v253_v34 = vpop.f32.mrb[6].mxu0 }
 0x443   :  { %v254_v35 = vadd.f32 %v253_v34, %v3339_v23  ;;  %v255_v36 = vpop.f32.mrb[7].mxu0 }
 0x444   :  { %v2628_v37 = vpack.c.bf16 %v252_v33, %v250_v31  ;;  %v256_v38 = vadd.f32 %v255_v36, %v3343_v24  ;;  %v3456_v33 = vld [vmem:[#allocation2 + $0x24] sm:$0xff]  }
 0x445   :  { %v763_v36 = vunpack.c.l.bf16 %v3456_v33 }
 0x446   :  { %328 = vst [vmem:[#allocation2 + $0x10] sm:$0xff] %v2628_v37  ;;  %v2629_v39 = vpack.c.bf16 %v256_v38, %v254_v35 }
 0x448   :  { %329 = vst [vmem:[#allocation2 + $0x18] sm:$0xff] %v2629_v39 }
 0x44d   :  { %v3419_v23 = vld [vmem:[#allocation2 + $0x10] sm:$0xff]  }
 0x44e   :  { %v649_v24 = vunpack.c.l.bf16 %v3419_v23 }
 0x44f   :  { %v3454_v32 = vld [vmem:[#allocation2 + $0x18] sm:$0xff]  }
 0x450   :  { %v759_v34 = vunpack.c.l.bf16 %v3454_v32 }
 0x4ac   :  { %v553_v62 = vpop.permute.xlu0 %552 }
 0x4ad   :  { %v555_v1 = vmul.f32 %v553_v62, %v548_v61  ;;  %v575_v2 = vpop.permute.xlu1 %574 }
 0x4ae   :  { %v577_v3 = vmul.f32 %v575_v2, %v570_v63 }
 0x4af   :  { %557 = vrot.lane.b32.xlu0 %v555_v1, %s3136_s2 }
 0x4b0   :  { %579 = vrot.lane.b32.xlu1 %v577_v3, %s3136_s2 }
 0x521   :  { %v558_v5 = vpop.permute.xlu0 %557 }
 0x522   :  { %v3390_v8 = vadd.f32 %v558_v5, %v550_v4  ;;  %v580_v9 = vpop.permute.xlu1 %579 }
 0x523   :  { %v3392_v14 = vadd.f32 %v580_v9, %v572_v6 }
 0x524   :  { %2789 = vtanh.f32 %v3390_v8 }
 0x525   :  { %2791 = vtanh.f32 %v3392_v14 }
 0x52e   :  { %v2790_v21 = vpop.eup %2789 }
 0x52f   :  { %v2792_v25 = vpop.eup %2791  ;;  %563 = vrot.lane.b32.xlu0 %v2790_v21, %s3130_s4 }
 0x530   :  { %585 = vrot.lane.b32.xlu1 %v2792_v25, %s3130_s4 }
 0x5a1   :  { %v564_v26 = vpop.permute.xlu0 %563 }
 0x5a2   :  { %v566_v27 = vmul.f32 %v564_v26, %v548_v61  ;;  %v586_v28 = vpop.permute.xlu1 %585 }
 0x5a3   :  { %v588_v29 = vmul.f32 %v586_v28, %v570_v63 }
 0x5a4   :  { %590 = vrot.lane.b32.xlu0 %v566_v27, %s3136_s2 }
 0x5a5   :  { %596 = vrot.lane.b32.xlu1 %v588_v29, %s3130_s4 }
 0x616   :  { %v591_v40 = vpop.permute.xlu0 %590 }
 0x617   :  { %594 = vst.msk [vmem:[#allocation3 + $0x8] sm:$0xff] %vm482_vm1, %v591_v40  ;;  %v597_v41 = vpop.permute.xlu1 %596 }
 0x618   :  { %600 = vst.msk [vmem:[#allocation3 + $0x30] sm:$0xff] %vm489_vm2, %v597_v41  ;;  %v601_v42 = vsel %vm482_vm1, %v591_v40, %v597_v41 }
 0x619   :  { %v602_v43 = vpack.c.bf16 %v601_v42, %v601_v42 }
 0x61b   :  { %2568 = vmatmul.mubr.msk.bf16.vlgmr.msra.gmra.mrb[8].mxu0 %vm382_vm3, %v602_v43 }
 0x61c   :  { %827 = vmatpush1.bf16.msra.mxu0 %v3282_v10  ;;  %858 = vmatprep.mubr.bf16.mxu0 %v3135_v0 }
 0x61d   :  { %828 = vmatprep.subr.bf16.mxu0 %v3285_v11 }
 0x620   :  { %829 = vmatpush1.bf16.msra.mxu0 %v3288_v12 }
 0x621   :  { %830 = vmatprep.subr.bf16.mxu0 %v3292_v13 }
 0x624   :  { %831 = vmatpush1.bf16.msra.mxu0 %v3298_v15 }
 0x625   :  { %832 = vmatprep.subr.bf16.mxu0 %v3301_v16 }
 0x628   :  { %833 = vmatpush1.bf16.msra.mxu0 %v3310_v17 }
 0x629   :  { %1038 = vmatprep.subr.bf16.mxu0 %v3280_v7 }
 0x6ee   :  { %v640_v45 = vpop.f32.mrb[8].mxu0 }
 0x6ef   :  { %v650_v47 = vadd.f32 %v649_v24, %v640_v45  ;;  %v642_v48 = vpop.f32.mrb[9].mxu0 }
 0x6f0   :  { %v654_v49 = vadd.f32 %v653_v46, %v642_v48  ;;  %v644_v50 = vpop.f32.mrb[10].mxu0 }
 0x6f1   :  { %2793 = vtanh.f32 %v650_v47  ;;  %v645_v51 = vpop.f32.mrb[11].mxu0  ;;  %v655_v54 = vmul.f32 0.5, %v650_v47 }
 0x6f2   :  { %2795 = vtanh.f32 %v654_v49  ;;  %v677_v55 = vmul.f32 0.5, %v654_v49 }
 0x6f3   :  { %2797 = vtanh.f32 %v655_v54 }
 0x6f4   :  { %2799 = vtanh.f32 %v677_v55 }
 0x6fb   :  { %v2794_v52 = vpop.eup %2793 }
 0x6fc   :  { %v2796_v53 = vpop.eup %2795  ;;  %662 = vrot.lane.b32.xlu0 %v2794_v52, %s3130_s4 }
 0x6fd   :  { %684 = vrot.lane.b32.xlu1 %v2796_v53, %s3130_s4  ;;  %v2798_v56 = vpop.eup %2797 }
 0x6fe   :  { %v2800_v57 = vpop.eup %2799  ;;  %v657_v58 = vadd.f32 1.0, %v2798_v56 }
 0x6ff   :  { %v679_v59 = vadd.f32 1.0, %v2800_v57 }
 0x700   :  { %v658_v60 = vmul.f32 0.5, %v657_v58 }
 0x701   :  { %v680_v62 = vmul.f32 0.5, %v679_v59 }
 0x702   :  { %v660_v3 = vmul.f32 %v658_v60, %v3390_v8 }
 0x703   :  { %v682_v5 = vmul.f32 %v680_v62, %v3392_v14 }
 0x76e   :  { %v663_v61 = vpop.permute.xlu0 %662 }
 0x76f   :  { %v665_v63 = vmul.f32 %v663_v61, %v658_v60  ;;  %v685_v1 = vpop.permute.xlu1 %684 }
 0x770   :  { %v687_v2 = vmul.f32 %v685_v1, %v680_v62 }
 0x771   :  { %667 = vrot.lane.b32.xlu0 %v665_v63, %s3136_s2 }
 0x772   :  { %689 = vrot.lane.b32.xlu1 %v687_v2, %s3136_s2 }
 0x7e3   :  { %v668_v4 = vpop.permute.xlu0 %667 }
 0x7e4   :  { %v3431_v6 = vadd.f32 %v668_v4, %v660_v3  ;;  %v690_v9 = vpop.permute.xlu1 %689 }
 0x7e5   :  { %v3433_v18 = vadd.f32 %v690_v9, %v682_v5 }
 0x7e6   :  { %2801 = vtanh.f32 %v3431_v6 }
 0x7e7   :  { %2803 = vtanh.f32 %v3433_v18 }
 0x7f0   :  { %v2802_v21 = vpop.eup %2801 }
 0x7f1   :  { %v2804_v25 = vpop.eup %2803  ;;  %673 = vrot.lane.b32.xlu0 %v2802_v21, %s3130_s4 }
 0x7f2   :  { %695 = vrot.lane.b32.xlu1 %v2804_v25, %s3130_s4 }
 0x863   :  { %v674_v26 = vpop.permute.xlu0 %673 }
 0x864   :  { %v676_v8 = vmul.f32 %v674_v26, %v658_v60  ;;  %v696_v27 = vpop.permute.xlu1 %695  ;;  %v871_v26 = vunpack.c.h.bf16 %v3454_v32 }
 0x865   :  { %v698_v28 = vmul.f32 %v696_v27, %v680_v62 }
 0x866   :  { %700 = vrot.lane.b32.xlu0 %v676_v8, %s3136_s2 }
 0x867   :  { %706 = vrot.lane.b32.xlu1 %v698_v28, %s3130_s4 }
 0x8d8   :  { %v701_v14 = vpop.permute.xlu0 %700 }
 0x8d9   :  { %704 = vst.msk [vmem:[#allocation3 + $0x10] sm:$0xff] %vm482_vm1, %v701_v14  ;;  %v707_v29 = vpop.permute.xlu1 %706 }
 0x8da   :  { %710 = vst.msk [vmem:[#allocation3 + $0x28] sm:$0xff] %vm489_vm2, %v707_v29  ;;  %v711_v30 = vsel %vm482_vm1, %v701_v14, %v707_v29 }
 0x8db   :  { %v712_v31 = vpack.c.bf16 %v711_v30, %v711_v30 }
 0x8dd   :  { %2569 = vmatmul.mubr.msk.bf16.vlgmr.msra.gmra.mrb[16].mxu1 %vm382_vm3, %v712_v31 }
 0x8de   :  { %933 = vmatpush1.bf16.msra.mxu1 %v3282_v10  ;;  %964 = vmatprep.mubr.bf16.mxu1 %v3135_v0 }
 0x8df   :  { %934 = vmatprep.subr.bf16.mxu1 %v3285_v11 }
 0x8e2   :  { %935 = vmatpush1.bf16.msra.mxu1 %v3288_v12 }
 0x8e3   :  { %936 = vmatprep.subr.bf16.mxu1 %v3292_v13 }
 0x8e6   :  { %937 = vmatpush1.bf16.msra.mxu1 %v3298_v15 }
 0x8e7   :  { %938 = vmatprep.subr.bf16.mxu1 %v3301_v16 }
 0x8ea   :  { %939 = vmatpush1.bf16.msra.mxu1 %v3310_v17 }
 0x8eb   :  { %1144 = vmatprep.subr.bf16.mxu1 %v3280_v7 }
 0x9b0   :  { %v750_v35 = vpop.f32.mrb[16].mxu1 }
 0x9b1   :  { %v760_v37 = vadd.f32 %v759_v34, %v750_v35  ;;  %v752_v38 = vpop.f32.mrb[17].mxu1 }
 0x9b2   :  { %v764_v39 = vadd.f32 %v763_v36, %v752_v38  ;;  %v754_v40 = vpop.f32.mrb[18].mxu1 }
 0x9b3   :  { %2805 = vtanh.f32 %v760_v37  ;;  %v755_v41 = vpop.f32.mrb[19].mxu1  ;;  %v765_v7 = vmul.f32 0.5, %v760_v37 }
 0x9b4   :  { %2807 = vtanh.f32 %v764_v39  ;;  %v787_v24 = vmul.f32 0.5, %v764_v39 }
 0x9b5   :  { %2809 = vtanh.f32 %v765_v7 }
 0x9b6   :  { %2811 = vtanh.f32 %v787_v24 }
 0x9bd   :  { %v2806_v42 = vpop.eup %2805 }
 0x9be   :  { %v2808_v43 = vpop.eup %2807  ;;  %772 = vrot.lane.b32.xlu0 %v2806_v42, %s3130_s4 }
 0x9bf   :  { %794 = vrot.lane.b32.xlu1 %v2808_v43, %s3130_s4  ;;  %v2810_v45 = vpop.eup %2809 }
 0x9c0   :  { %v2812_v46 = vpop.eup %2811  ;;  %v767_v47 = vadd.f32 1.0, %v2810_v45 }
 0x9c1   :  { %v789_v48 = vadd.f32 1.0, %v2812_v46 }
 0x9c2   :  { %v768_v49 = vmul.f32 0.5, %v767_v47 }
 0x9c3   :  { %v790_v51 = vmul.f32 0.5, %v789_v48 }
 0x9c4   :  { %v770_v55 = vmul.f32 %v768_v49, %v3431_v6 }
 0x9c5   :  { %v792_v57 = vmul.f32 %v790_v51, %v3433_v18  ;;  %v3482_v18 = vld [vmem:[#allocation2 + $0xc] ss:$20 sps:$4 sm:$0xff]  }
 0x9c6   :  { %v868_v21 = vunpack.c.h.bf16 %v3482_v18 }
 0xa30   :  { %v773_v50 = vpop.permute.xlu0 %772 }
 0xa31   :  { %v775_v52 = vmul.f32 %v773_v50, %v768_v49  ;;  %v795_v53 = vpop.permute.xlu1 %794 }
 0xa32   :  { %v797_v54 = vmul.f32 %v795_v53, %v790_v51 }
 0xa33   :  { %777 = vrot.lane.b32.xlu0 %v775_v52, %s3136_s2 }
 0xa34   :  { %799 = vrot.lane.b32.xlu1 %v797_v54, %s3136_s2 }
 0xaa5   :  { %v778_v56 = vpop.permute.xlu0 %777 }
 0xaa6   :  { %v780_v58 = vadd.f32 %v778_v56, %v770_v55  ;;  %v800_v59 = vpop.permute.xlu1 %799 }
 0xaa7   :  { %v802_v60 = vadd.f32 %v800_v59, %v792_v57 }
 0xaa8   :  { %2813 = vtanh.f32 %v780_v58 }
 0xaa9   :  { %2815 = vtanh.f32 %v802_v60 }
 0xab2   :  { %v2814_v61 = vpop.eup %2813 }
 0xab3   :  { %v2816_v62 = vpop.eup %2815  ;;  %783 = vrot.lane.b32.xlu0 %v2814_v61, %s3130_s4 }
 0xab4   :  { %805 = vrot.lane.b32.xlu1 %v2816_v62, %s3130_s4  ;;  %v977_v62 = vunpack.c.h.bf16 %v3419_v23 }
 0xb25   :  { %v784_v63 = vpop.permute.xlu0 %783 }
 0xb26   :  { %v786_v1 = vmul.f32 %v784_v63, %v768_v49  ;;  %v806_v2 = vpop.permute.xlu1 %805 }
 0xb27   :  { %v808_v3 = vmul.f32 %v806_v2, %v790_v51 }
 0xb28   :  { %810 = vrot.lane.b32.xlu0 %v786_v1, %s3136_s2 }
 0xb29   :  { %816 = vrot.lane.b32.xlu1 %v808_v3, %s3130_s4 }
 0xb9a   :  { %v811_v4 = vpop.permute.xlu0 %810 }
 0xb9b   :  { %814 = vst.msk [vmem:[#allocation3 + $0x18] sm:$0xff] %vm482_vm1, %v811_v4  ;;  %v817_v5 = vpop.permute.xlu1 %816 }
 0xb9c   :  { %820 = vst.msk [vmem:[#allocation3 + $0x20] sm:$0xff] %vm489_vm2, %v817_v5  ;;  %v821_v6 = vsel %vm482_vm1, %v811_v4, %v817_v5 }
 0xb9d   :  { %v822_v9 = vpack.c.bf16 %v821_v6, %v821_v6 }
 0xb9f   :  { %2570 = vmatmul.mubr.msk.bf16.vlgmr.msra.gmra.mrb[12].mxu0 %vm382_vm3, %v822_v9 }
 0xba0   :  { %1039 = vmatpush1.bf16.msra.mxu0 %v3282_v10  ;;  %1070 = vmatprep.mubr.bf16.mxu0 %v3135_v0 }
 0xba1   :  { %1040 = vmatprep.subr.bf16.mxu0 %v3285_v11 }
 0xba4   :  { %1041 = vmatpush1.bf16.msra.mxu0 %v3288_v12 }
 0xba5   :  { %1042 = vmatprep.subr.bf16.mxu0 %v3292_v13 }
 0xba8   :  { %1043 = vmatpush1.bf16.msra.mxu0 %v3298_v15 }
 0xba9   :  { %1044 = vmatprep.subr.bf16.mxu0 %v3301_v16 }
 0xbac   :  { %1045 = vmatpush1.bf16.msra.mxu0 %v3310_v17 }
 0xc72   :  { %v860_v25 = vpop.f32.mrb[12].mxu0 }
 0xc73   :  { %v869_v8 = vadd.f32 %v868_v21, %v860_v25  ;;  %v862_v27 = vpop.f32.mrb[13].mxu0 }
 0xc74   :  { %v872_v28 = vadd.f32 %v871_v26, %v862_v27  ;;  %v864_v14 = vpop.f32.mrb[14].mxu0 }
 0xc75   :  { %2817 = vtanh.f32 %v869_v8  ;;  %v865_v29 = vpop.f32.mrb[15].mxu0  ;;  %v873_v34 = vmul.f32 0.5, %v869_v8 }
 0xc76   :  { %2819 = vtanh.f32 %v872_v28  ;;  %v895_v35 = vmul.f32 0.5, %v872_v28 }
 0xc77   :  { %2821 = vtanh.f32 %v873_v34 }
 0xc78   :  { %2823 = vtanh.f32 %v895_v35 }
 0xc7f   :  { %v2818_v30 = vpop.eup %2817 }
 0xc80   :  { %v2820_v31 = vpop.eup %2819  ;;  %880 = vrot.lane.b32.xlu0 %v2818_v30, %s3130_s4 }
 0xc81   :  { %902 = vrot.lane.b32.xlu1 %v2820_v31, %s3130_s4  ;;  %v2822_v36 = vpop.eup %2821 }
 0xc82   :  { %v2824_v37 = vpop.eup %2823  ;;  %v875_v32 = vadd.f32 1.0, %v2822_v36 }
 0xc83   :  { %v897_v38 = vadd.f32 1.0, %v2824_v37 }
 0xc84   :  { %v876_v39 = vmul.f32 0.5, %v875_v32 }
 0xc85   :  { %v898_v41 = vmul.f32 0.5, %v897_v38 }
 0xc86   :  { %v878_v24 = vmul.f32 %v876_v39, %v780_v58 }
 0xc87   :  { %v900_v46 = vmul.f32 %v898_v41, %v802_v60  ;;  %v974_v60 = vunpack.c.h.bf16 %v3456_v33 }
 0xcf2   :  { %v881_v40 = vpop.permute.xlu0 %880 }
 0xcf3   :  { %v883_v42 = vmul.f32 %v881_v40, %v876_v39  ;;  %v903_v43 = vpop.permute.xlu1 %902 }
 0xcf4   :  { %v905_v7 = vmul.f32 %v903_v43, %v898_v41  ;;  %v1083_v43 = vunpack.c.l.bf16 %v3482_v18 }
 0xcf5   :  { %885 = vrot.lane.b32.xlu0 %v883_v42, %s3136_s2 }
 0xcf6   :  { %907 = vrot.lane.b32.xlu1 %v905_v7, %s3136_s2 }
 0xd67   :  { %v886_v45 = vpop.permute.xlu0 %885 }
 0xd68   :  { %v888_v47 = vadd.f32 %v886_v45, %v878_v24  ;;  %v908_v48 = vpop.permute.xlu1 %907 }
 0xd69   :  { %v910_v49 = vadd.f32 %v908_v48, %v900_v46 }
 0xd6a   :  { %2825 = vtanh.f32 %v888_v47 }
 0xd6b   :  { %2827 = vtanh.f32 %v910_v49 }
 0xd74   :  { %v2826_v50 = vpop.eup %2825 }
 0xd75   :  { %v2828_v51 = vpop.eup %2827  ;;  %891 = vrot.lane.b32.xlu0 %v2826_v50, %s3130_s4 }
 0xd76   :  { %913 = vrot.lane.b32.xlu1 %v2828_v51, %s3130_s4 }
 0xde7   :  { %v892_v52 = vpop.permute.xlu0 %891 }
 0xde8   :  { %v894_v53 = vmul.f32 %v892_v52, %v876_v39  ;;  %v914_v54 = vpop.permute.xlu1 %913 }
 0xde9   :  { %v916_v55 = vmul.f32 %v914_v54, %v898_v41  ;;  %v1080_v41 = vunpack.c.h.bf16 %v3422_v44 }
 0xdea   :  { %918 = vrot.lane.b32.xlu0 %v894_v53, %s3136_s2 }
 0xdeb   :  { %923 = vrot.lane.b32.xlu1 %v916_v55, %s3130_s4 }
 0xe5c   :  { %v919_v56 = vpop.permute.xlu0 %918 }
 0xe5d   :  { %921 = vst.msk [vmem:[#allocation3 + $0x20] sm:$0xff] %vm482_vm1, %v919_v56  ;;  %v924_v57 = vpop.permute.xlu1 %923 }
 0xe5e   :  { %926 = vst.msk [vmem:[#allocation3 + $0x18] sm:$0xff] %vm489_vm2, %v924_v57  ;;  %v927_v58 = vsel %vm482_vm1, %v919_v56, %v924_v57 }
 0xe5f   :  { %v928_v59 = vpack.c.bf16 %v927_v58, %v927_v58 }
 0xe61   :  { %2571 = vmatmul.mubr.msk.bf16.vlgmr.msra.gmra.mrb[20].mxu1 %vm382_vm3, %v928_v59 }
 0xe62   :  { %1145 = vmatpush1.bf16.msra.mxu1 %v3282_v10  ;;  %1176 = vmatprep.mubr.bf16.mxu1 %v3135_v0 }
 0xe63   :  { %1146 = vmatprep.subr.bf16.mxu1 %v3285_v11 }
 0xe66   :  { %1147 = vmatpush1.bf16.msra.mxu1 %v3288_v12 }
 0xe67   :  { %1148 = vmatprep.subr.bf16.mxu1 %v3292_v13 }
 0xe6a   :  { %1149 = vmatpush1.bf16.msra.mxu1 %v3298_v15 }
 0xe6b   :  { %1150 = vmatprep.subr.bf16.mxu1 %v3301_v16 }
 0xe6e   :  { %1151 = vmatpush1.bf16.msra.mxu1 %v3310_v17 }
 0xf34   :  { %v966_v61 = vpop.f32.mrb[20].mxu1 }
 0xf35   :  { %v975_v10 = vadd.f32 %v974_v60, %v966_v61  ;;  %v968_v63 = vpop.f32.mrb[21].mxu1 }
 0xf36   :  { %v978_v1 = vadd.f32 %v977_v62, %v968_v63  ;;  %v970_v2 = vpop.f32.mrb[22].mxu1 }
 0xf37   :  { %2829 = vtanh.f32 %v975_v10  ;;  %v971_v11 = vpop.f32.mrb[23].mxu1  ;;  %v979_v15 = vmul.f32 0.5, %v975_v10 }
 0xf38   :  { %2831 = vtanh.f32 %v978_v1  ;;  %v1001_v16 = vmul.f32 0.5, %v978_v1 }
 0xf39   :  { %2833 = vtanh.f32 %v979_v15 }
 0xf3a   :  { %2835 = vtanh.f32 %v1001_v16 }
 0xf41   :  { %v2830_v12 = vpop.eup %2829 }
 0xf42   :  { %v2832_v13 = vpop.eup %2831  ;;  %986 = vrot.lane.b32.xlu0 %v2830_v12, %s3130_s4 }
 0xf43   :  { %1008 = vrot.lane.b32.xlu1 %v2832_v13, %s3130_s4  ;;  %v2834_v17 = vpop.eup %2833 }
 0xf44   :  { %v2836_v33 = vpop.eup %2835  ;;  %v981_v23 = vadd.f32 1.0, %v2834_v17 }
 0xf45   :  { %v1003_v3 = vadd.f32 1.0, %v2836_v33 }
 0xf46   :  { %v982_v4 = vmul.f32 0.5, %v981_v23 }
 0xf47   :  { %v1004_v6 = vmul.f32 0.5, %v1003_v3 }
 0xf48   :  { %v984_v26 = vmul.f32 %v982_v4, %v888_v47 }
 0xf49   :  { %v1006_v27 = vmul.f32 %v1004_v6, %v910_v49 }
 0xfb4   :  { %v987_v5 = vpop.permute.xlu0 %986 }
 0xfb5   :  { %v989_v9 = vmul.f32 %v987_v5, %v982_v4  ;;  %v1009_v21 = vpop.permute.xlu1 %1008 }
 0xfb6   :  { %v1011_v25 = vmul.f32 %v1009_v21, %v1004_v6 }
 0xfb7   :  { %991 = vrot.lane.b32.xlu0 %v989_v9, %s3136_s2 }
 0xfb8   :  { %1013 = vrot.lane.b32.xlu1 %v1011_v25, %s3136_s2 }
0x1029   :  { %v992_v8 = vpop.permute.xlu0 %991 }
0x102a   :  { %v994_v28 = vadd.f32 %v992_v8, %v984_v26  ;;  %v1014_v14 = vpop.permute.xlu1 %1013 }
0x102b   :  { %v1016_v29 = vadd.f32 %v1014_v14, %v1006_v27 }
0x102c   :  { %2837 = vtanh.f32 %v994_v28 }
0x102d   :  { %2839 = vtanh.f32 %v1016_v29 }
0x1036   :  { %v2838_v30 = vpop.eup %2837 }
0x1037   :  { %v2840_v31 = vpop.eup %2839  ;;  %997 = vrot.lane.b32.xlu0 %v2838_v30, %s3130_s4 }
0x1038   :  { %1019 = vrot.lane.b32.xlu1 %v2840_v31, %s3130_s4 }
0x10a9   :  { %v998_v34 = vpop.permute.xlu0 %997 }
0x10aa   :  { %v1000_v35 = vmul.f32 %v998_v34, %v982_v4  ;;  %v1020_v36 = vpop.permute.xlu1 %1019  ;;  %v1185_v4 = vld [vmem:[#allocation2 + $0x4] ss:$52 sps:$4 sm:$0xff]  }
0x10ab   :  { %v1022_v37 = vmul.f32 %v1020_v36, %v1004_v6  ;;  %v1186_v5 = vunpack.c.h.bf16 %v1185_v4  ;;  %v1189_v9 = vunpack.c.l.bf16 %v1185_v4  ;;  %v1249_v4 = vld [vmem:[#allocation3 + $0x20] sm:$0xff] }
0x10ac   :  { %1024 = vrot.lane.b32.xlu0 %v1000_v35, %s3136_s2 }
0x10ad   :  { %1029 = vrot.lane.b32.xlu1 %v1022_v37, %s3130_s4 }
0x111e   :  { %v1025_v32 = vpop.permute.xlu0 %1024 }
0x111f   :  { %1027 = vst.msk [vmem:[#allocation3 + $0x28] sm:$0xff] %vm482_vm1, %v1025_v32  ;;  %v1030_v38 = vpop.permute.xlu1 %1029 }
0x1120   :  { %1032 = vst.msk [vmem:[#allocation3 + $0x10] sm:$0xff] %vm489_vm2, %v1030_v38  ;;  %v1033_v39 = vsel %vm482_vm1, %v1025_v32, %v1030_v38 }
0x1121   :  { %v1034_v40 = vpack.c.bf16 %v1033_v39, %v1033_v39 }
0x1123   :  { %2572 = vmatmul.mubr.msk.bf16.vlgmr.msra.gmra.mrb[16].mxu0 %vm382_vm3, %v1034_v40 }
0x1124   :  { %1361 = vmatprep.mubr.bf16.mxu0 %v3135_v0 }
0x11f6   :  { %v1072_v42 = vpop.f32.mrb[16].mxu0 }
0x11f7   :  { %v1081_v7 = vadd.f32 %v1080_v41, %v1072_v42  ;;  %v1074_v24 = vpop.f32.mrb[17].mxu0 }
0x11f8   :  { %v1084_v45 = vadd.f32 %v1083_v43, %v1074_v24  ;;  %v1076_v46 = vpop.f32.mrb[18].mxu0 }
0x11f9   :  { %2841 = vtanh.f32 %v1081_v7  ;;  %v1077_v47 = vpop.f32.mrb[19].mxu0  ;;  %v1085_v50 = vmul.f32 0.5, %v1081_v7 }
0x11fa   :  { %2843 = vtanh.f32 %v1084_v45  ;;  %v1107_v51 = vmul.f32 0.5, %v1084_v45  ;;  %v2741_v47 = vld [vmem:[#allocation10] ss:$8 sps:$4 sm:$0xff]  }
0x11fb   :  { %2845 = vtanh.f32 %v1085_v50  ;;  %v2744_v50 = vld [vmem:[#allocation10 + $0x10] ss:$8 sps:$4 sm:$0xff]  }
0x11fc   :  { %2847 = vtanh.f32 %v1107_v51 }
0x1203   :  { %v2842_v48 = vpop.eup %2841 }
0x1204   :  { %v2844_v49 = vpop.eup %2843  ;;  %1092 = vrot.lane.b32.xlu0 %v2842_v48, %s3130_s4  ;;  %v2743_v48 = vld [vmem:[#allocation10 + $0x4] ss:$8 sps:$4 sm:$0xff]  }
0x1205   :  { %1114 = vrot.lane.b32.xlu1 %v2844_v49, %s3130_s4  ;;  %v2846_v44 = vpop.eup %2845  ;;  %v2746_v49 = vld [vmem:[#allocation10 + $0x14] ss:$8 sps:$4 sm:$0xff]   ;;  %1329 = vmatprep.subr.bf16.mxu0 %v2743_v48 }
0x1206   :  { %v2848_v52 = vpop.eup %2847  ;;  %v1087_v18 = vadd.f32 1.0, %v2846_v44  ;;  %1330 = vmatpush1.bf16.msra.mxu0 %v2741_v47 }
0x1207   :  { %v1109_v53 = vadd.f32 1.0, %v2848_v52  ;;  %1331 = vmatprep.subr.bf16.mxu0 %v2746_v49  ;;  %v2747_v52 = vld [vmem:[#allocation10 + $0x20] ss:$8 sps:$4 sm:$0xff]  }
0x1208   :  { %v1088_v54 = vmul.f32 0.5, %v1087_v18  ;;  %v2749_v18 = vld [vmem:[#allocation10 + $0x24] ss:$8 sps:$4 sm:$0xff]  }
0x1209   :  { %v1110_v56 = vmul.f32 0.5, %v1109_v53  ;;  %v2752_v53 = vld [vmem:[#allocation10 + $0x34] ss:$8 sps:$4 sm:$0xff]  }
0x120a   :  { %v1090_v60 = vmul.f32 %v1088_v54, %v994_v28  ;;  %1332 = vmatpush1.bf16.msra.mxu0 %v2744_v50 }
0x120b   :  { %v1112_v62 = vmul.f32 %v1110_v56, %v1016_v29  ;;  %1333 = vmatprep.subr.bf16.mxu0 %v2749_v18 }
0x120e   :  { %1334 = vmatpush1.bf16.msra.mxu0 %v2747_v52 }
0x120f   :  { %1335 = vmatprep.subr.bf16.mxu0 %v2752_v53 }
0x1276   :  { %v1093_v55 = vpop.permute.xlu0 %1092 }
0x1277   :  { %v1095_v57 = vmul.f32 %v1093_v55, %v1088_v54  ;;  %v1115_v58 = vpop.permute.xlu1 %1114  ;;  %v2750_v55 = vld [vmem:[#allocation10 + $0x30] ss:$8 sps:$4 sm:$0xff]  }
0x1278   :  { %v1117_v59 = vmul.f32 %v1115_v58, %v1110_v56  ;;  %1336 = vmatpush1.bf16.msra.mxu0 %v2750_v55 }
0x1279   :  { %1097 = vrot.lane.b32.xlu0 %v1095_v57, %s3136_s2 }
0x127a   :  { %1119 = vrot.lane.b32.xlu1 %v1117_v59, %s3136_s2 }
0x12eb   :  { %v1098_v61 = vpop.permute.xlu0 %1097 }
0x12ec   :  { %v1100_v10 = vadd.f32 %v1098_v61, %v1090_v60  ;;  %v1120_v63 = vpop.permute.xlu1 %1119  ;;  %v3549_v60 = vld [vmem:[#allocation12 + $0x14] ss:$8 sps:$4 sm:$0xff]   ;;  %v3551_v61 = vld [vmem:[#allocation12 + $0x10] ss:$8 sps:$4 sm:$0xff]  }
0x12ed   :  { %v1122_v1 = vadd.f32 %v1120_v63, %v1112_v62  ;;  %v3560_v63 = vld [vmem:[#allocation12 + $0x20] ss:$8 sps:$4 sm:$0xff]  }
0x12ee   :  { %2849 = vtanh.f32 %v1100_v10 }
0x12ef   :  { %2851 = vtanh.f32 %v1122_v1 }
0x12f8   :  { %v2850_v2 = vpop.eup %2849 }
0x12f9   :  { %v2852_v11 = vpop.eup %2851  ;;  %1103 = vrot.lane.b32.xlu0 %v2850_v2, %s3130_s4  ;;  %v3565_v2 = vld [vmem:[#allocation12 + $0x30] ss:$8 sps:$4 sm:$0xff]  }
0x12fa   :  { %1125 = vrot.lane.b32.xlu1 %v2852_v11, %s3130_s4 }
0x136b   :  { %v1104_v12 = vpop.permute.xlu0 %1103 }
0x136c   :  { %v1106_v13 = vmul.f32 %v1104_v12, %v1088_v54  ;;  %v1126_v15 = vpop.permute.xlu1 %1125  ;;  %v3542_v54 = vld [vmem:[#allocation12 + $0x4] ss:$8 sps:$4 sm:$0xff]  }
0x136d   :  { %v1128_v16 = vmul.f32 %v1126_v15, %v1110_v56  ;;  %1506 = vmatprep.subr.bf16.mxu1 %v3542_v54  ;;  %v3545_v56 = vld [vmem:[#allocation12] ss:$8 sps:$4 sm:$0xff]   ;;  %1718 = vmatprep.subr.bf16.mxu0 %v3542_v54 }
0x136e   :  { %1130 = vrot.lane.b32.xlu0 %v1106_v13, %s3136_s2 }
0x136f   :  { %1135 = vrot.lane.b32.xlu1 %v1128_v16, %s3130_s4 }
0x13e0   :  { %v1131_v17 = vpop.permute.xlu0 %1130 }
0x13e1   :  { %1133 = vst.msk [vmem:[#allocation3 + $0x30] sm:$0xff] %vm482_vm1, %v1131_v17  ;;  %v1136_v33 = vpop.permute.xlu1 %1135 }
0x13e2   :  { %1138 = vst.msk [vmem:[#allocation3 + $0x8] sm:$0xff] %vm489_vm2, %v1136_v33  ;;  %v1139_v23 = vsel %vm482_vm1, %v1131_v17, %v1136_v33  ;;  %v1247_v17 = vld [vmem:[#allocation3 + $0x10] sm:$0xff]  ;;  %v1248_v33 = vld [vmem:[#allocation3 + $0x18] sm:$0xff] }
0x13e3   :  { %v1140_v3 = vpack.c.bf16 %v1139_v23, %v1139_v23  ;;  %v1254_v23 = vpack.c.bf16 %v1248_v33, %v1247_v17 }
0x13e5   :  { %2573 = vmatmul.mubr.msk.bf16.vlgmr.msra.gmra.mrb[24].mxu1 %vm382_vm3, %v1140_v3  ;;  %v1250_v3 = vld [vmem:[#allocation3 + $0x28] sm:$0xff] }
0x13e6   :  { %1538 = vmatprep.mubr.bf16.mxu1 %v3135_v0  ;;  %1507 = vmatpush1.bf16.msra.mxu1 %v3545_v56 }
0x13e7   :  { %1508 = vmatprep.subr.bf16.mxu1 %v3549_v60 }
0x13e9   :  { %v1246_v15 = vld [vmem:[#allocation3 + $0x8] sm:$0xff] }
0x13ea   :  { %1509 = vmatpush1.bf16.msra.mxu1 %v3551_v61 }
0x14b8   :  { %v1178_v6 = vpop.f32.mrb[24].mxu1 }
0x14b9   :  { %v1187_v21 = vadd.f32 %v1186_v5, %v1178_v6  ;;  %v1180_v25 = vpop.f32.mrb[25].mxu1  ;;  %v1255_v5 = vpack.c.bf16 %v1250_v3, %v1249_v4 }
0x14ba   :  { %v1190_v26 = vadd.f32 %v1189_v9, %v1180_v25  ;;  %v1182_v8 = vpop.f32.mrb[26].mxu1  ;;  %v1251_v9 = vld [vmem:[#allocation3 + $0x30] sm:$0xff] }
0x14bb   :  { %2853 = vtanh.f32 %v1187_v21  ;;  %v1183_v27 = vpop.f32.mrb[27].mxu1  ;;  %v1191_v29 = vmul.f32 0.5, %v1187_v21 }
0x14bc   :  { %2855 = vtanh.f32 %v1190_v26  ;;  %v1213_v30 = vmul.f32 0.5, %v1190_v26 }
0x14bd   :  { %2857 = vtanh.f32 %v1191_v29 }
0x14be   :  { %2859 = vtanh.f32 %v1213_v30 }
0x14c5   :  { %v2854_v28 = vpop.eup %2853 }
0x14c6   :  { %v2856_v14 = vpop.eup %2855  ;;  %1198 = vrot.lane.b32.xlu1 %v2854_v28, %s3130_s4  ;;  %v1265_v28 = vld [vmem:[%s3809_s5] sm:$0x3] }
0x14c7   :  { %1220 = vrot.lane.b32.xlu0 %v2856_v14, %s3130_s4  ;;  %v2858_v31 = vpop.eup %2857  ;;  %v1270_v14 = vrot.slane %v1265_v28, %v134_v20  ;;  %v1274_v29 = vrot.slane %v1265_v28, %v138_v22 }
0x14c8   :  { %v2860_v34 = vpop.eup %2859  ;;  %v1193_v35 = vadd.f32 1.0, %v2858_v31 }
0x14c9   :  { %v1215_v36 = vadd.f32 1.0, %v2860_v34 }
0x14ca   :  { %v1194_v37 = vmul.f32 0.5, %v1193_v35 }
0x14cb   :  { %v1216_v38 = vmul.f32 0.5, %v1215_v36 }
0x14cc   :  { %v1196_v42 = vmul.f32 %v1194_v37, %v1100_v10  ;;  %v3553_v10 = vld [vmem:[#allocation12 + $0x24] ss:$8 sps:$4 sm:$0xff]  }
0x14cd   :  { %v1218_v7 = vmul.f32 %v1216_v38, %v1122_v1  ;;  %1510 = vmatprep.subr.bf16.mxu1 %v3553_v10  ;;  %v3563_v1 = vld [vmem:[#allocation12 + $0x34] ss:$8 sps:$4 sm:$0xff]  }
0x14ce   :  { %1511 = vmatpush1.bf16.msra.mxu1 %v3560_v63 }
0x14cf   :  { %1512 = vmatprep.subr.bf16.mxu1 %v3563_v1 }
0x14d2   :  { %1513 = vmatpush1.bf16.msra.mxu1 %v3565_v2 }
0x14d3   :  { %1612 = vmatprep.subr.bf16.mxu1 %v3542_v54 }
0x14d5   :  { %1539 = vmatmul.mubr.bf16.vlgmr.msra.gmra.mrb[28].mxu1 %v3135_v0 }
0x14d6   :  { %1613 = vmatpush1.bf16.msra.mxu1 %v3545_v56  ;;  %1644 = vmatprep.mubr.bf16.mxu1 %v3135_v0 }
0x14d7   :  { %1614 = vmatprep.subr.bf16.mxu1 %v3549_v60 }
0x14da   :  { %1615 = vmatpush1.bf16.msra.mxu1 %v3551_v61 }
0x14db   :  { %1616 = vmatprep.subr.bf16.mxu1 %v3553_v10 }
0x14de   :  { %1617 = vmatpush1.bf16.msra.mxu1 %v3560_v63 }
0x14df   :  { %1618 = vmatprep.subr.bf16.mxu1 %v3563_v1 }
0x14e2   :  { %1619 = vmatpush1.bf16.msra.mxu1 %v3565_v2 }
0x14e3   :  { %1824 = vmatprep.subr.bf16.mxu1 %v3542_v54 }
0x1538   :  { %v1199_v32 = vpop.permute.xlu1 %1198 }
0x1539   :  { %v1201_v39 = vmul.f32 %v1199_v32, %v1194_v37  ;;  %v1221_v40 = vpop.permute.xlu0 %1220 }
0x153a   :  { %v1223_v41 = vmul.f32 %v1221_v40, %v1216_v38 }
0x153b   :  { %1203 = vrot.lane.b32.xlu1 %v1201_v39, %s3136_s2 }
0x153c   :  { %1225 = vrot.lane.b32.xlu0 %v1223_v41, %s3136_s2 }
0x15a8   :  { %v1540_v25 = vpop.f32.mrb[28].mxu1 }
0x15a9   :  { %v1542_v26 = vpop.f32.mrb[29].mxu1 }
0x15aa   :  { %v1544_v8 = vpop.f32.mrb[30].mxu1 }
0x15ab   :  { %v1545_v27 = vpop.f32.mrb[31].mxu1 }
0x15ad   :  { %v1204_v43 = vpop.permute.xlu1 %1203 }
0x15ae   :  { %v1206_v24 = vadd.f32 %v1204_v43, %v1196_v42  ;;  %v1226_v45 = vpop.permute.xlu0 %1225 }
0x15af   :  { %v1228_v46 = vadd.f32 %v1226_v45, %v1218_v7 }
0x15b0   :  { %2861 = vtanh.f32 %v1206_v24 }
0x15b1   :  { %2863 = vtanh.f32 %v1228_v46 }
0x15ba   :  { %v2862_v51 = vpop.eup %2861 }
0x15bb   :  { %v2864_v44 = vpop.eup %2863  ;;  %1209 = vrot.lane.b32.xlu1 %v2862_v51, %s3130_s4 }
0x15bc   :  { %1231 = vrot.lane.b32.xlu0 %v2864_v44, %s3130_s4 }
0x162d   :  { %v1210_v57 = vpop.permute.xlu1 %1209 }
0x162e   :  { %v1212_v58 = vmul.f32 %v1210_v57, %v1194_v37  ;;  %v1232_v59 = vpop.permute.xlu0 %1231 }
0x162f   :  { %v1234_v62 = vmul.f32 %v1232_v59, %v1216_v38 }
0x1630   :  { %1236 = vrot.lane.b32.xlu1 %v1212_v58, %s3136_s2 }
0x1631   :  { %1241 = vrot.lane.b32.xlu0 %v1234_v62, %s3130_s4 }
0x16a2   :  { %v1237_v11 = vpop.permute.xlu1 %1236 }
0x16a3   :  { %1239 = vst.msk [vmem:[#allocation3 + $0x38] sm:$0xff] %vm482_vm1, %v1237_v11  ;;  %v1242_v12 = vpop.permute.xlu0 %1241 }
0x16a4   :  { %1244 = vst.msk [vmem:[#allocation3] sm:$0xff] %vm489_vm2, %v1242_v12 }
0x16aa   :  { %v1252_v6 = vld [vmem:[#allocation3 + $0x38] sm:$0xff] }
0x16ab   :  { %v1245_v13 = vld [vmem:[#allocation3] sm:$0xff]  ;;  %v1256_v21 = vpack.c.bf16 %v1252_v6, %v1251_v9 }
0x16ac   :  { %v1253_v16 = vpack.c.bf16 %v1246_v15, %v1245_v13 }
0x16ae   :  { %2582 = vmatmul.mubr.msk.bf16.vlgmr.msra.gmra.mrb[20].mxu0 %vm382_vm3, %v1253_v16 }
0x16af   :  { %1371 = vmatprep.mubr.bf16.mxu0 %v3135_v0  ;;  %1719 = vmatpush1.bf16.msra.mxu0 %v3545_v56 }
0x16b0   :  { %1720 = vmatprep.subr.bf16.mxu0 %v3549_v60 }
0x16b3   :  { %1721 = vmatpush1.bf16.msra.mxu0 %v3551_v61 }
0x16b4   :  { %1722 = vmatprep.subr.bf16.mxu0 %v3553_v10 }
0x16b6   :  { %2583 = vmatmul.mubr.msk.bf16.gmra.mrb[24].mxu0 %vm382_vm3, %v1254_v23 }
0x16b7   :  { %1381 = vmatprep.mubr.bf16.mxu0 %v3135_v0  ;;  %1723 = vmatpush1.bf16.msra.mxu0 %v3560_v63 }
0x16b8   :  { %1724 = vmatprep.subr.bf16.mxu0 %v3563_v1 }
0x16bb   :  { %1725 = vmatpush1.bf16.msra.mxu0 %v3565_v2 }
0x16bc   :  { %1930 = vmatprep.subr.bf16.mxu0 %v3542_v54 }
0x16be   :  { %2584 = vmatmul.mubr.msk.bf16.gmra.mrb[28].mxu0 %vm382_vm3, %v1255_v5 }
0x16bf   :  { %1391 = vmatprep.mubr.bf16.mxu0 %v3135_v0 }
0x16c6   :  { %2585 = vmatmul.mubr.msk.bf16.gmra.mrb[32].mxu0 %vm382_vm3, %v1256_v21 }
0x16c7   :  { %1750 = vmatprep.mubr.bf16.mxu0 %v3135_v0 }
0x1781   :  { %v1363_v30 = vpop.f32.mrb[20].mxu0 }
0x1782   :  { %v1364_v31 = vadd.f32 %v1363_v30, %v1270_v14  ;;  %v1365_v34 = vpop.f32.mrb[21].mxu0 }
0x1783   :  { %v1366_v35 = vadd.f32 %v1365_v34, %v1274_v29  ;;  %v1367_v36 = vpop.f32.mrb[22].mxu0 }
0x1784   :  { %v1368_v37 = vadd.f32 %v1367_v36, %v1270_v14  ;;  %v1369_v32 = vpop.f32.mrb[23].mxu0 }
0x1785   :  { %v2634_v38 = vpack.c.bf16 %v1366_v35, %v1364_v31  ;;  %v1370_v39 = vadd.f32 %v1369_v32, %v1274_v29 }
0x1787   :  { %1450 = vst [vmem:[#allocation2] sm:$0xff] %v2634_v38  ;;  %v2635_v40 = vpack.c.bf16 %v1370_v39, %v1368_v37 }
0x1789   :  { %1451 = vst [vmem:[#allocation2 + $0x8] sm:$0xff] %v2635_v40  ;;  %v1373_v41 = vpop.f32.mrb[24].mxu0 }
0x178a   :  { %v1374_v42 = vadd.f32 %v1373_v41, %v1270_v14  ;;  %v1375_v43 = vpop.f32.mrb[25].mxu0 }
0x178b   :  { %v1376_v7 = vadd.f32 %v1375_v43, %v1274_v29  ;;  %v1377_v20 = vpop.f32.mrb[26].mxu0 }
0x178c   :  { %v1378_v24 = vadd.f32 %v1377_v20, %v1270_v14  ;;  %v1379_v19 = vpop.f32.mrb[27].mxu0 }
0x178d   :  { %v2636_v22 = vpack.c.bf16 %v1376_v7, %v1374_v42  ;;  %v1380_v45 = vadd.f32 %v1379_v19, %v1274_v29 }
0x178e   :  { %v1547_v46 = vld [vmem:[#allocation2] sm:$0xf] }
0x178f   :  { %1452 = vst [vmem:[#allocation2 + $0x10] sm:$0xff] %v2636_v22  ;;  %v2637_v47 = vpack.c.bf16 %v1380_v45, %v1378_v24  ;;  %v1548_v48 = vunpack.c.l.bf16 %v1547_v46 }
0x1791   :  { %1453 = vst [vmem:[#allocation2 + $0x18] sm:$0xff] %v2637_v47  ;;  %v1549_v49 = vadd.f32 %v1548_v48, %v1540_v25  ;;  %v1383_v50 = vpop.f32.mrb[28].mxu0 }
0x1792   :  { %v1384_v51 = vadd.f32 %v1383_v50, %v1270_v14  ;;  %v1385_v44 = vpop.f32.mrb[29].mxu0 }
0x1793   :  { %2865 = vtanh.f32 %v1549_v49  ;;  %v1386_v52 = vadd.f32 %v1385_v44, %v1274_v29  ;;  %v1387_v18 = vpop.f32.mrb[30].mxu0  ;;  %v1553_v25 = vmul.f32 0.5, %v1549_v49 }
0x1794   :  { %v1388_v53 = vadd.f32 %v1387_v18, %v1270_v14  ;;  %v1389_v55 = vpop.f32.mrb[31].mxu0 }
0x1795   :  { %v2638_v57 = vpack.c.bf16 %v1386_v52, %v1384_v51  ;;  %v1390_v58 = vadd.f32 %v1389_v55, %v1274_v29 }
0x1797   :  { %1454 = vst [vmem:[#allocation2 + $0x20] sm:$0xff] %v2638_v57  ;;  %v2639_v59 = vpack.c.bf16 %v1390_v58, %v1388_v53 }
0x1799   :  { %1455 = vst [vmem:[#allocation2 + $0x28] sm:$0xff] %v2639_v59  ;;  %v1393_v62 = vpop.f32.mrb[32].mxu0 }
0x179a   :  { %v1394_v11 = vadd.f32 %v1393_v62, %v1270_v14  ;;  %v1395_v12 = vpop.f32.mrb[33].mxu0 }
0x179b   :  { %v1396_v13 = vadd.f32 %v1395_v12, %v1274_v29  ;;  %v1397_v15 = vpop.f32.mrb[34].mxu0 }
0x179c   :  { %v1398_v16 = vadd.f32 %v1397_v15, %v1270_v14  ;;  %v1399_v17 = vpop.f32.mrb[35].mxu0 }
0x179d   :  { %v2866_v33 = vpop.eup %2865  ;;  %v2640_v23 = vpack.c.bf16 %v1396_v13, %v1394_v11  ;;  %v1400_v3 = vadd.f32 %v1399_v17, %v1274_v29 }
0x179e   :  { %1560 = vrot.lane.b32.xlu0 %v2866_v33, %s3130_s4 }
0x179f   :  { %1456 = vst [vmem:[#allocation2 + $0x30] sm:$0xff] %v2640_v23  ;;  %v2641_v4 = vpack.c.bf16 %v1400_v3, %v1398_v16 }
0x17a1   :  { %1457 = vst [vmem:[#allocation2 + $0x38] sm:$0xff] %v2641_v4 }
0x17a6   :  { %v3629_v48 = vld [vmem:[#allocation2 + $0x20] ss:$20 sps:$4 sm:$0xff]  }
0x17a7   :  { %v1657_v51 = vunpack.c.h.bf16 %v3629_v48 }
0x17a8   :  { %v1550_v5 = vld [vmem:[#allocation2 + $0x8] ss:$52 sps:$4 sm:$0xff]  }
0x17a9   :  { %v1551_v6 = vunpack.c.h.bf16 %v1550_v5  ;;  %v1654_v49 = vunpack.c.l.bf16 %v1550_v5 }
0x17ab   :  { %v1552_v9 = vadd.f32 %v1551_v6, %v1542_v26 }
0x17ad   :  { %2867 = vtanh.f32 %v1552_v9  ;;  %v1575_v29 = vmul.f32 0.5, %v1552_v9 }
0x17ae   :  { %2869 = vtanh.f32 %v1553_v25 }
0x17af   :  { %2871 = vtanh.f32 %v1575_v29 }
0x17b7   :  { %v2868_v21 = vpop.eup %2867 }
0x17b8   :  { %1582 = vrot.lane.b32.xlu1 %v2868_v21, %s3130_s4  ;;  %v2870_v8 = vpop.eup %2869 }
0x17b9   :  { %v1555_v27 = vadd.f32 1.0, %v2870_v8  ;;  %v2872_v31 = vpop.eup %2871 }
0x17ba   :  { %v1577_v34 = vadd.f32 1.0, %v2872_v31 }
0x17bb   :  { %v1556_v28 = vmul.f32 0.5, %v1555_v27 }
0x17bc   :  { %v1578_v35 = vmul.f32 0.5, %v1577_v34 }
0x17bd   :  { %v1558_v37 = vmul.f32 0.0, %v1556_v28 }
0x17be   :  { %v1580_v40 = vmul.f32 0.0, %v1578_v35 }
0x1810   :  { %v1561_v14 = vpop.permute.xlu0 %1560 }
0x1811   :  { %v1563_v30 = vmul.f32 %v1561_v14, %v1556_v28 }
0x1813   :  { %1565 = vrot.lane.b32.xlu0 %v1563_v30, %s3136_s2 }
0x182a   :  { %v1583_v36 = vpop.permute.xlu1 %1582 }
0x182b   :  { %v1585_v26 = vmul.f32 %v1583_v36, %v1578_v35 }
0x182d   :  { %1587 = vrot.lane.b32.xlu1 %v1585_v26, %s3136_s2 }
0x1885   :  { %v1566_v32 = vpop.permute.xlu0 %1565 }
0x1886   :  { %v3609_v38 = vadd.f32 %v1566_v32, %v1558_v37  ;;  %v3660_v37 = vld [vmem:[#allocation2 + $0x10] sm:$0xff]  }
0x1887   :  { %v3662_v32 = vld [vmem:[#allocation2 + $0x2c] sm:$0xff]  }
0x1888   :  { %2873 = vtanh.f32 %v3609_v38 }
0x1892   :  { %v2874_v39 = vpop.eup %2873 }
0x1893   :  { %1571 = vrot.lane.b32.xlu0 %v2874_v39, %s3130_s4 }
0x189f   :  { %v1588_v41 = vpop.permute.xlu1 %1587 }
0x18a0   :  { %v1590_v42 = vadd.f32 %v1588_v41, %v1580_v40  ;;  %v1763_v40 = vunpack.c.l.bf16 %v3662_v32 }
0x18a2   :  { %2875 = vtanh.f32 %v1590_v42 }
0x18ac   :  { %v2876_v43 = vpop.eup %2875 }
0x18ad   :  { %1593 = vrot.lane.b32.xlu1 %v2876_v43, %s3130_s4 }
0x1905   :  { %v1572_v7 = vpop.permute.xlu0 %1571 }
0x1906   :  { %v1574_v20 = vmul.f32 %v1572_v7, %v1556_v28 }
0x1908   :  { %1598 = vrot.lane.b32.xlu0 %v1574_v20, %s3136_s2 }
0x191f   :  { %v1594_v24 = vpop.permute.xlu1 %1593 }
0x1920   :  { %v1596_v19 = vmul.f32 %v1594_v24, %v1578_v35 }
0x1922   :  { %1603 = vrot.lane.b32.xlu1 %v1596_v19, %s3130_s4 }
0x197a   :  { %v1599_v22 = vpop.permute.xlu0 %1598 }
0x197b   :  { %1601 = vst.msk [vmem:[#allocation3] sm:$0xff] %vm482_vm1, %v1599_v22 }
0x1994   :  { %v1604_v45 = vpop.permute.xlu1 %1603 }
0x1995   :  { %1606 = vst.msk [vmem:[#allocation3 + $0x38] sm:$0xff] %vm489_vm2, %v1604_v45  ;;  %v1607_v46 = vsel %vm482_vm1, %v1599_v22, %v1604_v45 }
0x1996   :  { %v1608_v47 = vpack.c.bf16 %v1607_v46, %v1607_v46 }
0x1998   :  { %2602 = vmatmul.mubr.msk.bf16.vlgmr.msra.gmra.mrb[32].mxu1 %vm382_vm3, %v1608_v47 }
0x1999   :  { %1825 = vmatpush1.bf16.msra.mxu1 %v3545_v56  ;;  %1856 = vmatprep.mubr.bf16.mxu1 %v3135_v0 }
0x199a   :  { %1826 = vmatprep.subr.bf16.mxu1 %v3549_v60 }
0x199d   :  { %1827 = vmatpush1.bf16.msra.mxu1 %v3551_v61 }
0x199e   :  { %1828 = vmatprep.subr.bf16.mxu1 %v3553_v10 }
0x19a1   :  { %1829 = vmatpush1.bf16.msra.mxu1 %v3560_v63 }
0x19a2   :  { %1830 = vmatprep.subr.bf16.mxu1 %v3563_v1 }
0x19a5   :  { %1831 = vmatpush1.bf16.msra.mxu1 %v3565_v2 }
0x19a6   :  { %2036 = vmatprep.subr.bf16.mxu1 %v3542_v54 }
0x1a6b   :  { %v1646_v50 = vpop.f32.mrb[32].mxu1 }
0x1a6c   :  { %v1655_v44 = vadd.f32 %v1654_v49, %v1646_v50  ;;  %v1648_v52 = vpop.f32.mrb[33].mxu1 }
0x1a6d   :  { %v1658_v18 = vadd.f32 %v1657_v51, %v1648_v52  ;;  %v1650_v53 = vpop.f32.mrb[34].mxu1 }
0x1a6e   :  { %2877 = vtanh.f32 %v1655_v44  ;;  %v1651_v55 = vpop.f32.mrb[35].mxu1  ;;  %v1659_v59 = vmul.f32 0.5, %v1655_v44 }
0x1a6f   :  { %2879 = vtanh.f32 %v1658_v18  ;;  %v1681_v62 = vmul.f32 0.5, %v1658_v18 }
0x1a70   :  { %2881 = vtanh.f32 %v1659_v59 }
0x1a71   :  { %2883 = vtanh.f32 %v1681_v62 }
0x1a78   :  { %v2878_v57 = vpop.eup %2877 }
0x1a79   :  { %v2880_v58 = vpop.eup %2879  ;;  %1666 = vrot.lane.b32.xlu0 %v2878_v57, %s3130_s4 }
0x1a7a   :  { %1688 = vrot.lane.b32.xlu1 %v2880_v58, %s3130_s4  ;;  %v2882_v11 = vpop.eup %2881 }
0x1a7b   :  { %v2884_v12 = vpop.eup %2883  ;;  %v1661_v13 = vadd.f32 1.0, %v2882_v11 }
0x1a7c   :  { %v1683_v15 = vadd.f32 1.0, %v2884_v12 }
0x1a7d   :  { %v1662_v16 = vmul.f32 0.5, %v1661_v13 }
0x1a7e   :  { %v1684_v33 = vmul.f32 0.5, %v1683_v15 }
0x1a7f   :  { %v1664_v5 = vmul.f32 %v1662_v16, %v3609_v38  ;;  %v1760_v38 = vunpack.c.l.bf16 %v3660_v37 }
0x1a80   :  { %v1686_v9 = vmul.f32 %v1684_v33, %v1590_v42 }
0x1aeb   :  { %v1667_v17 = vpop.permute.xlu0 %1666 }
0x1aec   :  { %v1669_v23 = vmul.f32 %v1667_v17, %v1662_v16  ;;  %v1689_v3 = vpop.permute.xlu1 %1688 }
0x1aed   :  { %v1691_v4 = vmul.f32 %v1689_v3, %v1684_v33 }
0x1aee   :  { %1671 = vrot.lane.b32.xlu0 %v1669_v23, %s3136_s2 }
0x1aef   :  { %1693 = vrot.lane.b32.xlu1 %v1691_v4, %s3136_s2 }
0x1b60   :  { %v1672_v6 = vpop.permute.xlu0 %1671 }
0x1b61   :  { %v3637_v21 = vadd.f32 %v1672_v6, %v1664_v5  ;;  %v1694_v25 = vpop.permute.xlu1 %1693 }
0x1b62   :  { %v3639_v8 = vadd.f32 %v1694_v25, %v1686_v9  ;;  %v3695_v9 = vld [vmem:[#allocation2 + $0x18] sm:$0xff]  }
0x1b63   :  { %2885 = vtanh.f32 %v3637_v21  ;;  %v1866_v25 = vunpack.c.l.bf16 %v3695_v9 }
0x1b64   :  { %2887 = vtanh.f32 %v3639_v8 }
0x1b6d   :  { %v2886_v27 = vpop.eup %2885 }
0x1b6e   :  { %v2888_v28 = vpop.eup %2887  ;;  %1677 = vrot.lane.b32.xlu0 %v2886_v27, %s3130_s4 }
0x1b6f   :  { %1699 = vrot.lane.b32.xlu1 %v2888_v28, %s3130_s4 }
0x1be0   :  { %v1678_v14 = vpop.permute.xlu0 %1677 }
0x1be1   :  { %v1680_v30 = vmul.f32 %v1678_v14, %v1662_v16  ;;  %v1700_v29 = vpop.permute.xlu1 %1699 }
0x1be2   :  { %v1702_v31 = vmul.f32 %v1700_v29, %v1684_v33 }
0x1be3   :  { %1704 = vrot.lane.b32.xlu0 %v1680_v30, %s3136_s2 }
0x1be4   :  { %1709 = vrot.lane.b32.xlu1 %v1702_v31, %s3130_s4 }
0x1c55   :  { %v1705_v34 = vpop.permute.xlu0 %1704 }
0x1c56   :  { %1707 = vst.msk [vmem:[#allocation3 + $0x8] sm:$0xff] %vm482_vm1, %v1705_v34  ;;  %v1710_v35 = vpop.permute.xlu1 %1709 }
0x1c57   :  { %1712 = vst.msk [vmem:[#allocation3 + $0x30] sm:$0xff] %vm489_vm2, %v1710_v35  ;;  %v1713_v36 = vsel %vm482_vm1, %v1705_v34, %v1710_v35 }
0x1c58   :  { %v1714_v26 = vpack.c.bf16 %v1713_v36, %v1713_v36 }
0x1c5a   :  { %2603 = vmatmul.mubr.msk.bf16.vlgmr.msra.gmra.mrb[36].mxu0 %vm382_vm3, %v1714_v26 }
0x1c5b   :  { %1931 = vmatpush1.bf16.msra.mxu0 %v3545_v56  ;;  %1962 = vmatprep.mubr.bf16.mxu0 %v3135_v0 }
0x1c5c   :  { %1932 = vmatprep.subr.bf16.mxu0 %v3549_v60 }
0x1c5f   :  { %1933 = vmatpush1.bf16.msra.mxu0 %v3551_v61 }
0x1c60   :  { %1934 = vmatprep.subr.bf16.mxu0 %v3553_v10 }
0x1c63   :  { %1935 = vmatpush1.bf16.msra.mxu0 %v3560_v63 }
0x1c64   :  { %1936 = vmatprep.subr.bf16.mxu0 %v3563_v1 }
0x1c67   :  { %1937 = vmatpush1.bf16.msra.mxu0 %v3565_v2 }
0x1c68   :  { %2142 = vmatprep.subr.bf16.mxu0 %v3542_v54 }
0x1d2d   :  { %v1752_v39 = vpop.f32.mrb[36].mxu0 }
0x1d2e   :  { %v1761_v41 = vadd.f32 %v1760_v38, %v1752_v39  ;;  %v1754_v42 = vpop.f32.mrb[37].mxu0 }
0x1d2f   :  { %v1764_v43 = vadd.f32 %v1763_v40, %v1754_v42  ;;  %v1756_v7 = vpop.f32.mrb[38].mxu0 }
0x1d30   :  { %2889 = vtanh.f32 %v1761_v41  ;;  %v1757_v20 = vpop.f32.mrb[39].mxu0  ;;  %v1765_v22 = vmul.f32 0.5, %v1761_v41 }
0x1d31   :  { %2891 = vtanh.f32 %v1764_v43  ;;  %v1787_v45 = vmul.f32 0.5, %v1764_v43 }
0x1d32   :  { %2893 = vtanh.f32 %v1765_v22 }
0x1d33   :  { %2895 = vtanh.f32 %v1787_v45 }
0x1d3a   :  { %v2890_v24 = vpop.eup %2889 }
0x1d3b   :  { %v2892_v19 = vpop.eup %2891  ;;  %1772 = vrot.lane.b32.xlu0 %v2890_v24, %s3130_s4 }
0x1d3c   :  { %1794 = vrot.lane.b32.xlu1 %v2892_v19, %s3130_s4  ;;  %v2894_v46 = vpop.eup %2893 }
0x1d3d   :  { %v2896_v47 = vpop.eup %2895  ;;  %v1767_v49 = vadd.f32 1.0, %v2894_v46 }
0x1d3e   :  { %v1789_v50 = vadd.f32 1.0, %v2896_v47 }
0x1d3f   :  { %v1768_v51 = vmul.f32 0.5, %v1767_v49 }
0x1d40   :  { %v1790_v52 = vmul.f32 0.5, %v1789_v50 }
0x1d41   :  { %v1770_v57 = vmul.f32 %v1768_v51, %v3637_v21  ;;  %v3697_v21 = vld [vmem:[#allocation2 + $0x24] sm:$0xff]  }
0x1d42   :  { %v1792_v59 = vmul.f32 %v1790_v52, %v3639_v8  ;;  %v1869_v27 = vunpack.c.l.bf16 %v3697_v21 }
0x1dad   :  { %v1773_v44 = vpop.permute.xlu0 %1772 }
0x1dae   :  { %v1775_v18 = vmul.f32 %v1773_v44, %v1768_v51  ;;  %v1795_v53 = vpop.permute.xlu1 %1794 }
0x1daf   :  { %v1797_v55 = vmul.f32 %v1795_v53, %v1790_v52 }
0x1db0   :  { %1777 = vrot.lane.b32.xlu0 %v1775_v18, %s3136_s2 }
0x1db1   :  { %1799 = vrot.lane.b32.xlu1 %v1797_v55, %s3136_s2 }
0x1e22   :  { %v1778_v58 = vpop.permute.xlu0 %1777 }
0x1e23   :  { %v3672_v62 = vadd.f32 %v1778_v58, %v1770_v57  ;;  %v1800_v11 = vpop.permute.xlu1 %1799 }
0x1e24   :  { %v3674_v12 = vadd.f32 %v1800_v11, %v1792_v59 }
0x1e25   :  { %2897 = vtanh.f32 %v3672_v62 }
0x1e26   :  { %2899 = vtanh.f32 %v3674_v12 }
0x1e2f   :  { %v2898_v13 = vpop.eup %2897 }
0x1e30   :  { %v2900_v15 = vpop.eup %2899  ;;  %1783 = vrot.lane.b32.xlu0 %v2898_v13, %s3130_s4 }
0x1e31   :  { %1805 = vrot.lane.b32.xlu1 %v2900_v15, %s3130_s4 }
0x1ea2   :  { %v1784_v16 = vpop.permute.xlu0 %1783 }
0x1ea3   :  { %v1786_v17 = vmul.f32 %v1784_v16, %v1768_v51  ;;  %v1806_v33 = vpop.permute.xlu1 %1805 }
0x1ea4   :  { %v1808_v23 = vmul.f32 %v1806_v33, %v1790_v52 }
0x1ea5   :  { %1810 = vrot.lane.b32.xlu0 %v1786_v17, %s3136_s2 }
0x1ea6   :  { %1815 = vrot.lane.b32.xlu1 %v1808_v23, %s3130_s4 }
0x1f17   :  { %v1811_v3 = vpop.permute.xlu0 %1810 }
0x1f18   :  { %1813 = vst.msk [vmem:[#allocation3 + $0x10] sm:$0xff] %vm482_vm1, %v1811_v3  ;;  %v1816_v4 = vpop.permute.xlu1 %1815 }
0x1f19   :  { %1818 = vst.msk [vmem:[#allocation3 + $0x28] sm:$0xff] %vm489_vm2, %v1816_v4  ;;  %v1819_v5 = vsel %vm482_vm1, %v1811_v3, %v1816_v4 }
0x1f1a   :  { %v1820_v6 = vpack.c.bf16 %v1819_v5, %v1819_v5 }
0x1f1c   :  { %2604 = vmatmul.mubr.msk.bf16.vlgmr.msra.gmra.mrb[36].mxu1 %vm382_vm3, %v1820_v6 }
0x1f1d   :  { %2037 = vmatpush1.bf16.msra.mxu1 %v3545_v56  ;;  %2068 = vmatprep.mubr.bf16.mxu1 %v3135_v0 }
0x1f1e   :  { %2038 = vmatprep.subr.bf16.mxu1 %v3549_v60 }
0x1f21   :  { %2039 = vmatpush1.bf16.msra.mxu1 %v3551_v61 }
0x1f22   :  { %2040 = vmatprep.subr.bf16.mxu1 %v3553_v10 }
0x1f25   :  { %2041 = vmatpush1.bf16.msra.mxu1 %v3560_v63 }
0x1f26   :  { %2042 = vmatprep.subr.bf16.mxu1 %v3563_v1 }
0x1f29   :  { %2043 = vmatpush1.bf16.msra.mxu1 %v3565_v2 }
0x1f2a   :  { %2248 = vmatprep.subr.bf16.mxu1 %v3542_v54 }
0x1fef   :  { %v1858_v8 = vpop.f32.mrb[36].mxu1 }
0x1ff0   :  { %v1867_v28 = vadd.f32 %v1866_v25, %v1858_v8  ;;  %v1860_v14 = vpop.f32.mrb[37].mxu1 }
0x1ff1   :  { %v1870_v30 = vadd.f32 %v1869_v27, %v1860_v14  ;;  %v1862_v29 = vpop.f32.mrb[38].mxu1 }
0x1ff2   :  { %2901 = vtanh.f32 %v1867_v28  ;;  %v1863_v31 = vpop.f32.mrb[39].mxu1  ;;  %v1871_v54 = vmul.f32 0.5, %v1867_v28 }
0x1ff3   :  { %2903 = vtanh.f32 %v1870_v30  ;;  %v1893_v36 = vmul.f32 0.5, %v1870_v30 }
0x1ff4   :  { %2905 = vtanh.f32 %v1871_v54 }
0x1ff5   :  { %2907 = vtanh.f32 %v1893_v36 }
0x1ffc   :  { %v2902_v34 = vpop.eup %2901 }
0x1ffd   :  { %v2904_v35 = vpop.eup %2903  ;;  %1878 = vrot.lane.b32.xlu0 %v2902_v34, %s3130_s4 }
0x1ffe   :  { %1900 = vrot.lane.b32.xlu1 %v2904_v35, %s3130_s4  ;;  %v2906_v26 = vpop.eup %2905 }
0x1fff   :  { %v2908_v38 = vpop.eup %2907  ;;  %v1873_v39 = vadd.f32 1.0, %v2906_v26 }
0x2000   :  { %v1895_v40 = vadd.f32 1.0, %v2908_v38 }
0x2001   :  { %v1874_v41 = vmul.f32 0.5, %v1873_v39 }
0x2002   :  { %v1896_v43 = vmul.f32 0.5, %v1895_v40 }
0x2003   :  { %v1876_v19 = vmul.f32 %v1874_v41, %v3672_v62  ;;  %v1972_v62 = vunpack.c.l.bf16 %v3629_v48 }
0x2004   :  { %v1898_v45 = vmul.f32 %v1896_v43, %v3674_v12  ;;  %v1975_v12 = vunpack.c.h.bf16 %v3695_v9 }
0x206f   :  { %v1879_v42 = vpop.permute.xlu0 %1878 }
0x2070   :  { %v1881_v7 = vmul.f32 %v1879_v42, %v1874_v41  ;;  %v1901_v20 = vpop.permute.xlu1 %1900 }
0x2071   :  { %v1903_v24 = vmul.f32 %v1901_v20, %v1896_v43 }
0x2072   :  { %1883 = vrot.lane.b32.xlu0 %v1881_v7, %s3136_s2 }
0x2073   :  { %1905 = vrot.lane.b32.xlu1 %v1903_v24, %s3136_s2 }
0x20e4   :  { %v1884_v22 = vpop.permute.xlu0 %1883 }
0x20e5   :  { %v1886_v46 = vadd.f32 %v1884_v22, %v1876_v19  ;;  %v1906_v47 = vpop.permute.xlu1 %1905  ;;  %v2078_v22 = vunpack.c.h.bf16 %v3697_v21 }
0x20e6   :  { %v1908_v49 = vadd.f32 %v1906_v47, %v1898_v45 }
0x20e7   :  { %2909 = vtanh.f32 %v1886_v46 }
0x20e8   :  { %2911 = vtanh.f32 %v1908_v49 }
0x20f1   :  { %v2910_v50 = vpop.eup %2909 }
0x20f2   :  { %v2912_v51 = vpop.eup %2911  ;;  %1889 = vrot.lane.b32.xlu0 %v2910_v50, %s3130_s4 }
0x20f3   :  { %1911 = vrot.lane.b32.xlu1 %v2912_v51, %s3130_s4 }
0x2164   :  { %v1890_v44 = vpop.permute.xlu0 %1889 }
0x2165   :  { %v1892_v52 = vmul.f32 %v1890_v44, %v1874_v41  ;;  %v1912_v18 = vpop.permute.xlu1 %1911 }
0x2166   :  { %v1914_v53 = vmul.f32 %v1912_v18, %v1896_v43 }
0x2167   :  { %1916 = vrot.lane.b32.xlu0 %v1892_v52, %s3136_s2 }
0x2168   :  { %1921 = vrot.lane.b32.xlu1 %v1914_v53, %s3130_s4 }
0x21d9   :  { %v1917_v55 = vpop.permute.xlu0 %1916 }
0x21da   :  { %1919 = vst.msk [vmem:[#allocation3 + $0x18] sm:$0xff] %vm482_vm1, %v1917_v55  ;;  %v1922_v57 = vpop.permute.xlu1 %1921 }
0x21db   :  { %1924 = vst.msk [vmem:[#allocation3 + $0x20] sm:$0xff] %vm489_vm2, %v1922_v57  ;;  %v1925_v58 = vsel %vm482_vm1, %v1917_v55, %v1922_v57 }
0x21dc   :  { %v1926_v59 = vpack.c.bf16 %v1925_v58, %v1925_v58 }
0x21de   :  { %2605 = vmatmul.mubr.msk.bf16.vlgmr.msra.gmra.mrb[40].mxu0 %vm382_vm3, %v1926_v59 }
0x21df   :  { %2143 = vmatpush1.bf16.msra.mxu0 %v3545_v56  ;;  %2174 = vmatprep.mubr.bf16.mxu0 %v3135_v0 }
0x21e0   :  { %2144 = vmatprep.subr.bf16.mxu0 %v3549_v60 }
0x21e3   :  { %2145 = vmatpush1.bf16.msra.mxu0 %v3551_v61 }
0x21e4   :  { %2146 = vmatprep.subr.bf16.mxu0 %v3553_v10 }
0x21e7   :  { %2147 = vmatpush1.bf16.msra.mxu0 %v3560_v63 }
0x21e8   :  { %2148 = vmatprep.subr.bf16.mxu0 %v3563_v1 }
0x21eb   :  { %2149 = vmatpush1.bf16.msra.mxu0 %v3565_v2 }
0x22b1   :  { %v1964_v11 = vpop.f32.mrb[40].mxu0 }
0x22b2   :  { %v1973_v13 = vadd.f32 %v1972_v62, %v1964_v11  ;;  %v1966_v15 = vpop.f32.mrb[41].mxu0 }
0x22b3   :  { %v1976_v16 = vadd.f32 %v1975_v12, %v1966_v15  ;;  %v1968_v17 = vpop.f32.mrb[42].mxu0 }
0x22b4   :  { %2913 = vtanh.f32 %v1973_v13  ;;  %v1969_v33 = vpop.f32.mrb[43].mxu0  ;;  %v1977_v4 = vmul.f32 0.5, %v1973_v13 }
0x22b5   :  { %2915 = vtanh.f32 %v1976_v16  ;;  %v1999_v5 = vmul.f32 0.5, %v1976_v16 }
0x22b6   :  { %2917 = vtanh.f32 %v1977_v4 }
0x22b7   :  { %2919 = vtanh.f32 %v1999_v5 }
0x22be   :  { %v2914_v23 = vpop.eup %2913 }
0x22bf   :  { %v2916_v3 = vpop.eup %2915  ;;  %1984 = vrot.lane.b32.xlu0 %v2914_v23, %s3130_s4 }
0x22c0   :  { %2006 = vrot.lane.b32.xlu1 %v2916_v3, %s3130_s4  ;;  %v2918_v48 = vpop.eup %2917 }
0x22c1   :  { %v2920_v6 = vpop.eup %2919  ;;  %v1979_v9 = vadd.f32 1.0, %v2918_v48 }
0x22c2   :  { %v2001_v25 = vadd.f32 1.0, %v2920_v6  ;;  %v2186_v6 = vld [vmem:[#allocation2 + $0xc] ss:$44 sps:$4 sm:$0xff]  }
0x22c3   :  { %v1980_v8 = vmul.f32 0.5, %v1979_v9  ;;  %v2184_v9 = vunpack.c.h.bf16 %v3662_v32 }
0x22c4   :  { %v2002_v28 = vmul.f32 0.5, %v2001_v25 }
0x22c5   :  { %v1982_v31 = vmul.f32 %v1980_v8, %v1886_v46  ;;  %v2081_v46 = vunpack.c.h.bf16 %v3660_v37 }
0x22c6   :  { %v2004_v35 = vmul.f32 %v2002_v28, %v1908_v49 }
0x2331   :  { %v1985_v27 = vpop.permute.xlu0 %1984 }
0x2332   :  { %v1987_v14 = vmul.f32 %v1985_v27, %v1980_v8  ;;  %v2007_v30 = vpop.permute.xlu1 %2006 }
0x2333   :  { %v2009_v29 = vmul.f32 %v2007_v30, %v2002_v28 }
0x2334   :  { %1989 = vrot.lane.b32.xlu0 %v1987_v14, %s3136_s2 }
0x2335   :  { %2011 = vrot.lane.b32.xlu1 %v2009_v29, %s3136_s2 }
0x23a6   :  { %v1990_v34 = vpop.permute.xlu0 %1989 }
0x23a7   :  { %v1992_v54 = vadd.f32 %v1990_v34, %v1982_v31  ;;  %v2012_v36 = vpop.permute.xlu1 %2011 }
0x23a8   :  { %v2014_v26 = vadd.f32 %v2012_v36, %v2004_v35 }
0x23a9   :  { %2921 = vtanh.f32 %v1992_v54 }
0x23aa   :  { %2923 = vtanh.f32 %v2014_v26 }
0x23b3   :  { %v2922_v38 = vpop.eup %2921 }
0x23b4   :  { %v2924_v39 = vpop.eup %2923  ;;  %1995 = vrot.lane.b32.xlu0 %v2922_v38, %s3130_s4 }
0x23b5   :  { %2017 = vrot.lane.b32.xlu1 %v2924_v39, %s3130_s4 }
0x2426   :  { %v1996_v40 = vpop.permute.xlu0 %1995 }
0x2427   :  { %v1998_v41 = vmul.f32 %v1996_v40, %v1980_v8  ;;  %v2018_v42 = vpop.permute.xlu1 %2017  ;;  %v2187_v8 = vunpack.c.l.bf16 %v2186_v6 }
0x2428   :  { %v2020_v43 = vmul.f32 %v2018_v42, %v2002_v28 }
0x2429   :  { %2022 = vrot.lane.b32.xlu0 %v1998_v41, %s3136_s2 }
0x242a   :  { %2027 = vrot.lane.b32.xlu1 %v2020_v43, %s3130_s4 }
0x249b   :  { %v2023_v7 = vpop.permute.xlu0 %2022 }
0x249c   :  { %2025 = vst.msk [vmem:[#allocation3 + $0x20] sm:$0xff] %vm482_vm1, %v2023_v7  ;;  %v2028_v20 = vpop.permute.xlu1 %2027 }
0x249d   :  { %2030 = vst.msk [vmem:[#allocation3 + $0x18] sm:$0xff] %vm489_vm2, %v2028_v20  ;;  %v2031_v24 = vsel %vm482_vm1, %v2023_v7, %v2028_v20 }
0x249e   :  { %v2032_v19 = vpack.c.bf16 %v2031_v24, %v2031_v24 }
0x24a0   :  { %2606 = vmatmul.mubr.msk.bf16.vlgmr.msra.gmra.mrb[40].mxu1 %vm382_vm3, %v2032_v19 }
0x24a1   :  { %2249 = vmatpush1.bf16.msra.mxu1 %v3545_v56  ;;  %2280 = vmatprep.mubr.bf16.mxu1 %v3135_v0 }
0x24a2   :  { %2250 = vmatprep.subr.bf16.mxu1 %v3549_v60 }
0x24a5   :  { %2251 = vmatpush1.bf16.msra.mxu1 %v3551_v61 }
0x24a6   :  { %2252 = vmatprep.subr.bf16.mxu1 %v3553_v10 }
0x24a9   :  { %2253 = vmatpush1.bf16.msra.mxu1 %v3560_v63 }
0x24aa   :  { %2254 = vmatprep.subr.bf16.mxu1 %v3563_v1 }
0x24ad   :  { %2255 = vmatpush1.bf16.msra.mxu1 %v3565_v2 }
0x2573   :  { %v2070_v45 = vpop.f32.mrb[40].mxu1 }
0x2574   :  { %v2079_v56 = vadd.f32 %v2078_v22, %v2070_v45  ;;  %v2072_v47 = vpop.f32.mrb[41].mxu1 }
0x2575   :  { %v2082_v0 = vadd.f32 %v2081_v46, %v2072_v47  ;;  %v2074_v49 = vpop.f32.mrb[42].mxu1 }
0x2576   :  { %2925 = vtanh.f32 %v2079_v56  ;;  %v2075_v60 = vpop.f32.mrb[43].mxu1  ;;  %v2083_v63 = vmul.f32 0.5, %v2079_v56 }
0x2577   :  { %2927 = vtanh.f32 %v2082_v0  ;;  %v2105_v1 = vmul.f32 0.5, %v2082_v0 }
0x2578   :  { %2929 = vtanh.f32 %v2083_v63 }
0x2579   :  { %2931 = vtanh.f32 %v2105_v1 }
0x2580   :  { %v2926_v61 = vpop.eup %2925 }
0x2581   :  { %v2928_v10 = vpop.eup %2927  ;;  %2090 = vrot.lane.b32.xlu0 %v2926_v61, %s3130_s4 }
0x2582   :  { %2112 = vrot.lane.b32.xlu1 %v2928_v10, %s3130_s4  ;;  %v2930_v2 = vpop.eup %2929 }
0x2583   :  { %v2932_v21 = vpop.eup %2931  ;;  %v2085_v37 = vadd.f32 1.0, %v2930_v2 }
0x2584   :  { %v2107_v50 = vadd.f32 1.0, %v2932_v21  ;;  %v2292_v21 = vld [vmem:[#allocation2 + $0x4] sm:$0xf] }
0x2585   :  { %v2086_v51 = vmul.f32 0.5, %v2085_v37  ;;  %v2290_v37 = vunpack.c.h.bf16 %v2186_v6 }
0x2586   :  { %v2108_v52 = vmul.f32 0.5, %v2107_v50 }
0x2587   :  { %v2088_v57 = vmul.f32 %v2086_v51, %v1992_v54 }
0x2588   :  { %v2110_v59 = vmul.f32 %v2108_v52, %v2014_v26 }
0x25f3   :  { %v2091_v44 = vpop.permute.xlu0 %2090 }
0x25f4   :  { %v2093_v18 = vmul.f32 %v2091_v44, %v2086_v51  ;;  %v2113_v53 = vpop.permute.xlu1 %2112 }
0x25f5   :  { %v2115_v55 = vmul.f32 %v2113_v53, %v2108_v52 }
0x25f6   :  { %2095 = vrot.lane.b32.xlu0 %v2093_v18, %s3136_s2 }
0x25f7   :  { %2117 = vrot.lane.b32.xlu1 %v2115_v55, %s3136_s2 }
0x2668   :  { %v2096_v58 = vpop.permute.xlu0 %2095 }
0x2669   :  { %v2098_v62 = vadd.f32 %v2096_v58, %v2088_v57  ;;  %v2118_v11 = vpop.permute.xlu1 %2117 }
0x266a   :  { %v2120_v12 = vadd.f32 %v2118_v11, %v2110_v59 }
0x266b   :  { %2933 = vtanh.f32 %v2098_v62 }
0x266c   :  { %2935 = vtanh.f32 %v2120_v12 }
0x2675   :  { %v2934_v13 = vpop.eup %2933 }
0x2676   :  { %v2936_v15 = vpop.eup %2935  ;;  %2101 = vrot.lane.b32.xlu0 %v2934_v13, %s3130_s4 }
0x2677   :  { %2123 = vrot.lane.b32.xlu1 %v2936_v15, %s3130_s4 }
0x26e8   :  { %v2102_v16 = vpop.permute.xlu0 %2101 }
0x26e9   :  { %v2104_v17 = vmul.f32 %v2102_v16, %v2086_v51  ;;  %v2124_v33 = vpop.permute.xlu1 %2123  ;;  %v2293_v51 = vunpack.c.l.bf16 %v2292_v21 }
0x26ea   :  { %v2126_v23 = vmul.f32 %v2124_v33, %v2108_v52 }
0x26eb   :  { %2128 = vrot.lane.b32.xlu0 %v2104_v17, %s3136_s2 }
0x26ec   :  { %2133 = vrot.lane.b32.xlu1 %v2126_v23, %s3130_s4 }
0x275d   :  { %v2129_v3 = vpop.permute.xlu0 %2128 }
0x275e   :  { %2131 = vst.msk [vmem:[#allocation3 + $0x28] sm:$0xff] %vm482_vm1, %v2129_v3  ;;  %v2134_v4 = vpop.permute.xlu1 %2133 }
0x275f   :  { %2136 = vst.msk [vmem:[#allocation3 + $0x10] sm:$0xff] %vm489_vm2, %v2134_v4  ;;  %v2137_v5 = vsel %vm482_vm1, %v2129_v3, %v2134_v4 }
0x2760   :  { %v2138_v48 = vpack.c.bf16 %v2137_v5, %v2137_v5 }
0x2762   :  { %2607 = vmatmul.mubr.msk.bf16.vlgmr.msra.gmra.mrb[44].mxu0 %vm382_vm3, %v2138_v48 }
0x2835   :  { %v2176_v25 = vpop.f32.mrb[44].mxu0 }
0x2836   :  { %v2185_v27 = vadd.f32 %v2184_v9, %v2176_v25  ;;  %v2178_v28 = vpop.f32.mrb[45].mxu0 }
0x2837   :  { %v2188_v14 = vadd.f32 %v2187_v8, %v2178_v28  ;;  %v2180_v30 = vpop.f32.mrb[46].mxu0 }
0x2838   :  { %2937 = vtanh.f32 %v2185_v27  ;;  %v2181_v29 = vpop.f32.mrb[47].mxu0  ;;  %v2189_v35 = vmul.f32 0.5, %v2185_v27  ;;  %v2765_v27 = vld [vmem:[#allocation13] sm:$0xff]   ;;  %v2766_v30 = vld [vmem:[#allocation13 + $0x8] sm:$0xff]  }
0x2839   :  { %2939 = vtanh.f32 %v2188_v14  ;;  %v2211_v54 = vmul.f32 0.5, %v2188_v14  ;;  %2681 = vmatprep.subr.bf16.mxu0 %v2765_v27  ;;  %v2767_v29 = vld [vmem:[#allocation13 + $0x10] sm:$0xff]  }
0x283a   :  { %2941 = vtanh.f32 %v2189_v35  ;;  %2682 = vmatpush3.bf16.msra.mxu0 %v2765_v27 }
0x283b   :  { %2943 = vtanh.f32 %v2211_v54  ;;  %2683 = vmatprep.subr.bf16.mxu0 %v2766_v30 }
0x283e   :  { %2684 = vmatpush3.bf16.msra.mxu0 %v2766_v30 }
0x283f   :  { %2685 = vmatprep.subr.bf16.mxu0 %v2767_v29 }
0x2842   :  { %v2938_v31 = vpop.eup %2937  ;;  %2686 = vmatpush3.bf16.msra.mxu0 %v2767_v29 }
0x2843   :  { %v2940_v34 = vpop.eup %2939  ;;  %2196 = vrot.lane.b32.xlu0 %v2938_v31, %s3130_s4  ;;  %v2768_v31 = vld [vmem:[#allocation13 + $0x18] sm:$0xff]  }
0x2844   :  { %2218 = vrot.lane.b32.xlu1 %v2940_v34, %s3130_s4  ;;  %v2942_v32 = vpop.eup %2941  ;;  %2687 = vmatprep.subr.bf16.mxu0 %v2768_v31 }
0x2845   :  { %v2944_v36 = vpop.eup %2943  ;;  %v2191_v26 = vadd.f32 1.0, %v2942_v32 }
0x2846   :  { %v2213_v38 = vadd.f32 1.0, %v2944_v36  ;;  %2688 = vmatpush3.bf16.msra.mxu0 %v2768_v31 }
0x2847   :  { %v2192_v39 = vmul.f32 0.5, %v2191_v26 }
0x2848   :  { %v2214_v41 = vmul.f32 0.5, %v2213_v38  ;;  %v2351_v38 = vld [vmem:[#allocation3 + $0x10] sm:$0xff] }
0x2849   :  { %v2194_v20 = vmul.f32 %v2192_v39, %v2098_v62 }
0x284a   :  { %v2216_v19 = vmul.f32 %v2214_v41, %v2120_v12 }
0x28b5   :  { %v2197_v40 = vpop.permute.xlu0 %2196 }
0x28b6   :  { %v2199_v42 = vmul.f32 %v2197_v40, %v2192_v39  ;;  %v2219_v43 = vpop.permute.xlu1 %2218 }
0x28b7   :  { %v2221_v7 = vmul.f32 %v2219_v43, %v2214_v41  ;;  %v2352_v43 = vld [vmem:[#allocation3 + $0x18] sm:$0xff] }
0x28b8   :  { %2201 = vrot.lane.b32.xlu0 %v2199_v42, %s3136_s2 }
0x28b9   :  { %2223 = vrot.lane.b32.xlu1 %v2221_v7, %s3136_s2  ;;  %v2358_v7 = vpack.c.bf16 %v2352_v43, %v2351_v38 }
0x292a   :  { %v2202_v24 = vpop.permute.xlu0 %2201 }
0x292b   :  { %v2204_v22 = vadd.f32 %v2202_v24, %v2194_v20  ;;  %v2224_v45 = vpop.permute.xlu1 %2223  ;;  %v2353_v20 = vld [vmem:[#allocation3 + $0x20] sm:$0xff] }
0x292c   :  { %v2226_v46 = vadd.f32 %v2224_v45, %v2216_v19 }
0x292d   :  { %2945 = vtanh.f32 %v2204_v22 }
0x292e   :  { %2947 = vtanh.f32 %v2226_v46 }
0x2937   :  { %v2946_v56 = vpop.eup %2945 }
0x2938   :  { %v2948_v47 = vpop.eup %2947  ;;  %2207 = vrot.lane.b32.xlu0 %v2946_v56, %s3130_s4  ;;  %v2609_v56 = vld [vmem:[%s3812_s8] ss:$0 sm:$0xff]  ;;  %s3093_s8 = scalar_lea.vmem %s2523_s25, 512 }
0x2939   :  { %2229 = vrot.lane.b32.xlu1 %v2948_v47, %s3130_s4  ;;  %p3094_p6 = scmp.ne.s32.totalorder %s2523_s25, %s3093_s8  ;;  %p3099_p8 = scmp.lt.s32.totalorder %s3093_s8, %s3093_s8 }
0x293b   :  { %p3100_p9 = por %p3099_p8, %p3098_p7 }
0x293d   :  { %p3101_p10 = pnand %p3100_p9, %p3094_p6 }
0x29aa   :  { %v2208_v0 = vpop.permute.xlu0 %2207 }
0x29ab   :  { %v2210_v49 = vmul.f32 %v2208_v0, %v2192_v39  ;;  %v2230_v60 = vpop.permute.xlu1 %2229 }
0x29ac   :  { %v2232_v61 = vmul.f32 %v2230_v60, %v2214_v41  ;;  %v2354_v41 = vld [vmem:[#allocation3 + $0x28] sm:$0xff] }
0x29ad   :  { %2234 = vrot.lane.b32.xlu0 %v2210_v49, %s3136_s2  ;;  %v2359_v24 = vpack.c.bf16 %v2354_v41, %v2353_v20 }
0x29ae   :  { %2239 = vrot.lane.b32.xlu1 %v2232_v61, %s3130_s4 }
0x2a1f   :  { %v2235_v10 = vpop.permute.xlu0 %2234 }
0x2a20   :  { %2237 = vst.msk [vmem:[#allocation3 + $0x30] sm:$0xff] %vm482_vm1, %v2235_v10  ;;  %v2240_v63 = vpop.permute.xlu1 %2239 }
0x2a21   :  { %2242 = vst.msk [vmem:[#allocation3 + $0x8] sm:$0xff] %vm489_vm2, %v2240_v63  ;;  %v2243_v1 = vsel %vm482_vm1, %v2235_v10, %v2240_v63 }
0x2a22   :  { %v2244_v2 = vpack.c.bf16 %v2243_v1, %v2243_v1 }
0x2a24   :  { %2608 = vmatmul.mubr.msk.bf16.vlgmr.msra.gmra.mrb[44].mxu1 %vm382_vm3, %v2244_v2 }
0x2a28   :  { %v2350_v40 = vld [vmem:[#allocation3 + $0x8] sm:$0xff] }
0x2af7   :  { %v2282_v50 = vpop.f32.mrb[44].mxu1 }
0x2af8   :  { %v2291_v44 = vadd.f32 %v2290_v37, %v2282_v50  ;;  %v2284_v52 = vpop.f32.mrb[45].mxu1 }
0x2af9   :  { %v2294_v18 = vadd.f32 %v2293_v51, %v2284_v52  ;;  %v2286_v53 = vpop.f32.mrb[46].mxu1 }
0x2afa   :  { %2949 = vtanh.f32 %v2291_v44  ;;  %v2287_v55 = vpop.f32.mrb[47].mxu1  ;;  %v2295_v59 = vmul.f32 0.5, %v2291_v44 }
0x2afb   :  { %2951 = vtanh.f32 %v2294_v18  ;;  %v2317_v62 = vmul.f32 0.5, %v2294_v18 }
0x2afc   :  { %2953 = vtanh.f32 %v2295_v59 }
0x2afd   :  { %2955 = vtanh.f32 %v2317_v62 }
0x2b04   :  { %v2950_v57 = vpop.eup %2949 }
0x2b05   :  { %v2952_v58 = vpop.eup %2951  ;;  %2302 = vrot.lane.b32.xlu1 %v2950_v57, %s3130_s4 }
0x2b06   :  { %2324 = vrot.lane.b32.xlu0 %v2952_v58, %s3130_s4  ;;  %v2954_v11 = vpop.eup %2953 }
0x2b07   :  { %v2956_v12 = vpop.eup %2955  ;;  %v2297_v13 = vadd.f32 1.0, %v2954_v11 }
0x2b08   :  { %v2319_v15 = vadd.f32 1.0, %v2956_v12 }
0x2b09   :  { %v2298_v16 = vmul.f32 0.5, %v2297_v13 }
0x2b0a   :  { %v2320_v33 = vmul.f32 0.5, %v2319_v15 }
0x2b0b   :  { %v2300_v5 = vmul.f32 %v2298_v16, %v2204_v22  ;;  %v2355_v22 = vld [vmem:[#allocation3 + $0x30] sm:$0xff] }
0x2b0c   :  { %v2322_v6 = vmul.f32 %v2320_v33, %v2226_v46 }
0x2b77   :  { %v2303_v17 = vpop.permute.xlu1 %2302 }
0x2b78   :  { %v2305_v23 = vmul.f32 %v2303_v17, %v2298_v16  ;;  %v2325_v3 = vpop.permute.xlu0 %2324 }
0x2b79   :  { %v2327_v4 = vmul.f32 %v2325_v3, %v2320_v33 }
0x2b7a   :  { %2307 = vrot.lane.b32.xlu1 %v2305_v23, %s3136_s2 }
0x2b7b   :  { %2329 = vrot.lane.b32.xlu0 %v2327_v4, %s3136_s2 }
0x2bec   :  { %v2308_v48 = vpop.permute.xlu1 %2307 }
0x2bed   :  { %v2310_v9 = vadd.f32 %v2308_v48, %v2300_v5  ;;  %v2330_v25 = vpop.permute.xlu0 %2329 }
0x2bee   :  { %v2332_v8 = vadd.f32 %v2330_v25, %v2322_v6 }
0x2bef   :  { %2957 = vtanh.f32 %v2310_v9 }
0x2bf0   :  { %2959 = vtanh.f32 %v2332_v8 }
0x2bf9   :  { %v2958_v28 = vpop.eup %2957 }
0x2bfa   :  { %v2960_v14 = vpop.eup %2959  ;;  %2313 = vrot.lane.b32.xlu1 %v2958_v28, %s3130_s4 }
0x2bfb   :  { %2335 = vrot.lane.b32.xlu0 %v2960_v14, %s3130_s4 }
0x2c6c   :  { %v2314_v34 = vpop.permute.xlu1 %2313 }
0x2c6d   :  { %v2316_v35 = vmul.f32 %v2314_v34, %v2298_v16  ;;  %v2336_v54 = vpop.permute.xlu0 %2335 }
0x2c6e   :  { %v2338_v32 = vmul.f32 %v2336_v54, %v2320_v33 }
0x2c6f   :  { %2340 = vrot.lane.b32.xlu1 %v2316_v35, %s3136_s2 }
0x2c70   :  { %2345 = vrot.lane.b32.xlu0 %v2338_v32, %s3130_s4 }
0x2ce1   :  { %v2341_v36 = vpop.permute.xlu1 %2340 }
0x2ce2   :  { %2343 = vst.msk [vmem:[#allocation3 + $0x38] sm:$0xff] %vm482_vm1, %v2341_v36  ;;  %v2346_v26 = vpop.permute.xlu0 %2345 }
0x2ce3   :  { %2348 = vst.msk [vmem:[#allocation3] sm:$0xff] %vm489_vm2, %v2346_v26 }
0x2ce9   :  { %v2356_v19 = vld [vmem:[#allocation3 + $0x38] sm:$0xff] }
0x2cea   :  { %v2349_v39 = vld [vmem:[#allocation3] sm:$0xff]  ;;  %v2360_v45 = vpack.c.bf16 %v2356_v19, %v2355_v22 }
0x2ceb   :  { %v2357_v42 = vpack.c.bf16 %v2350_v40, %v2349_v39 }
0x2ced   :  { %2689 = vmatprep.mubr.msk.bf16.mxu0 %vm382_vm3, %v2357_v42 }
0x2cee   :  { %2690 = vmatmul.mubr.msk.bf16.vlgmr.msra.gmra.mrb[48].mxu0 %vm382_vm3, %v2358_v7 }
0x2cef   :  { %2693 = vmatprep.mubr.msk.bf16.mxu0 %vm382_vm3, %v2359_v24 }
0x2cf6   :  { %2694 = vmatmul.mubr.msk.bf16.gmra.mrb[52].mxu0 %vm382_vm3, %v2360_v45 }
0x2dc1   :  { %v2691_v46 = vpop.f32.mrb[48].mxu0 }
0x2dc2   :  { %v2446_v47 = vpop.f32.mrb[49].mxu0  ;;  %v2455_v49 = vadd.f32 %v2691_v46, %v2609_v56 }
0x2dc3   :  { %v2692_v0 = vpop.f32.mrb[50].mxu0  ;;  %v2447_v10 = vadd.f32 %v2609_v56, %v2446_v47 }
0x2dc4   :  { %v2458_v60 = vadd.f32 %v2692_v0, %v2609_v56  ;;  %v2449_v61 = vpop.f32.mrb[51].mxu0 }
0x2dc5   :  { %v2450_v63 = vadd.f32 %v2609_v56, %v2449_v61 }
0x2dc6   :  { %v2658_v1 = vpack.c.bf16 %v2458_v60, %v2455_v49 }
0x2dc7   :  { %v2653_v2 = vpack.c.bf16 %v2450_v63, %v2447_v10 }
0x2dc8   :  { %2670 = vst [vmem:[#allocation15 + $0x8] sm:$0xff] %v2658_v1  }
0x2dc9   :  { %2654 = vst [vmem:[#allocation15] sm:$0xff] %v2653_v2   ;;  %v2695_v21 = vpop.f32.mrb[52].mxu0 }
0x2dca   :  { %v2462_v37 = vpop.f32.mrb[53].mxu0  ;;  %v2471_v51 = vadd.f32 %v2695_v21, %v2609_v56 }
0x2dcb   :  { %v2696_v50 = vpop.f32.mrb[54].mxu0  ;;  %v2463_v18 = vadd.f32 %v2609_v56, %v2462_v37 }
0x2dcc   :  { %v2474_v44 = vadd.f32 %v2696_v50, %v2609_v56  ;;  %v2465_v52 = vpop.f32.mrb[55].mxu0 }
0x2dcd   :  { %v2466_v53 = vadd.f32 %v2609_v56, %v2465_v52 }
0x2dce   :  { %v2668_v55 = vpack.c.bf16 %v2474_v44, %v2471_v51 }
0x2dcf   :  { %v2663_v57 = vpack.c.bf16 %v2466_v53, %v2463_v18 }
0x2dd0   :  { %2672 = vst [vmem:[#allocation15 + $0x18] sm:$0xff] %v2668_v55  }
0x2dd1   :  { %2671 = vst [vmem:[#allocation15 + $0x10] sm:$0xff] %v2663_v57  }
0x2dd2   :  { %3104 = shalt.err (!%p3101_p10)
}
0x2dd3   :  { %s3105_s29 = scalar_lea.hbm %s3813_s9, 512 }
0x2dd4   :  { %p3106_p11 = scmp.ne.s32.totalorder %s3813_s9, %s3105_s29  ;;  %p3109_p12 = scmp.lt.u32.totalorder %s3105_s29, %s3813_s9 }
0x2dd6   :  { %p3111_p13 = pnand %p3109_p12, %p3106_p11 }
0x2dd8   :  { %3114 = shalt.err (!%p3111_p13)
}
0x2dd9   :  { %2528 = dma.vmem_to_hbm [thread:$0]  %s2523_s25, 512, %s3813_s9, [#allocation6], %s3130_s4, %s3130_s4, %s3131_s24  }
0x2dda   :  { %3123 = dma.done.wait [#allocation6], 512  }
0x2ddb   :  { %3124 = vsyncadd [#allocation6], 4294966784 }
0x2ddc   :  { %2532 = vsyncpa [#allocation5], 1 }
0x2ddd   :  { %2533 = vsyncpa [#allocation8], 1 }
0x2dde   :  { %2534 = vsyncpa [#allocation11], 1 }
0x2ddf   :  { %2535 = vsyncpa [#allocation14], 1 }
0x2de0   :  { %2536 = vsyncpa [#allocation6], 1 }

</bundles_post_ra>
